<compile_context>
chip_gen: v6e
topology: v6e:2x2x1
jax: 0.10.0
libtpu: 0.0.40
codegen_flags: <defaults>
</compile_context>

<pallas_src>
import functools

import jax
import jax.numpy as jnp
from jax.experimental import pallas as pl
from jax.experimental.pallas import tpu as pltpu


# ----------------------------- Pallas kernel ------------------------------- #

def _fused_forward_kernel(x_ref, wxc_ref, bxc_ref, wdec_ref, bdec_ref,
                          emb_ref, pred_ref, *, H, W, emb_pad):
    """One batch element: encoder -> decoder -> 3 x (affine_grid + grid_sample).

    x_ref:    (1, 1, DIN)              flattened input image
    wxc_ref:  (DIN, emb_pad + 6*HW)    concatenated [embedding head | grid head]
    bxc_ref:  (1,   emb_pad + 6*HW)
    wdec_ref: (emb_pad, HW)            decoder weight (rows >= emb_size are 0)
    bdec_ref: (1, HW)
    emb_ref:  (1, 1, emb_pad)          relu embedding (padded; sliced outside)
    pred_ref: (1, 1, HW)               warped decoded image (flattened)
    """
    HW = H * W
    x = x_ref[0]                                            # (1, DIN)

    # --- fused encoder: one MXU matmul for both heads -----------------------
    zc = (jnp.dot(x, wxc_ref[...], preferred_element_type=jnp.float32)
          + bxc_ref[...])                                   # (1, emb_pad + 6*HW)
    emb_p = jnp.maximum(zc[:, :emb_pad], 0.0)               # (1, emb_pad)
    emb_ref[0] = emb_p
    # g = [gx_0 | gy_0 | gx_1 | gy_1 | gx_2 | gy_2], each (1, HW), already in
    # application order (translation, scaler_shear, rotation), identity folded.
    g = zc[:, emb_pad:]                                     # (1, 6*HW)

    # --- decoder -------------------------------------------------------------
    img = jnp.maximum(
        jnp.dot(emb_p, wdec_ref[...], preferred_element_type=jnp.float32)
        + bdec_ref[...], 0.0)                               # (1, HW)

    # --- input-pixel index grids, hoisted out of the 3-pass loop -------------
    # rows (sublanes) index the input pixel q = qi*W + qj; cols (lanes) index
    # the output pixel p.
    q = jax.lax.broadcasted_iota(jnp.int32, (HW, HW), 0)
    if (W & (W - 1)) == 0:                                  # W is a power of two
        qi = q >> (W.bit_length() - 1)
        qj = q & (W - 1)
    else:
        qi = q // W   # TODO(synk): non-pow2 W falls back to vector int division
        qj = q - qi * W

    # --- three grid_sample passes, each a single MXU matmul ------------------
    for t in range(3):
        gx = g[:, (2 * t) * HW:(2 * t + 1) * HW]            # (1, HW)
        gy = g[:, (2 * t + 1) * HW:(2 * t + 2) * HW]        # (1, HW)
        # normalized -> pixel coords (align_corners=False)
        ix = ((gx + 1.0) * W - 1.0) * 0.5
        iy = ((gy + 1.0) * H - 1.0) * 0.5
        ix0f = jnp.floor(ix)
        iy0f = jnp.floor(iy)
        wx1 = ix - ix0f
        wx0 = 1.0 - wx1
        wy1 = iy - iy0f
        wy0 = 1.0 - wy1
        ix0 = ix0f.astype(jnp.int32)
        iy0 = iy0f.astype(jnp.int32)
        # One-hot bilinear weight matrix Wt[q, p] (int32 comparisons, not float
        # equality).  Out-of-range corners never match any (qi, qj), which
        # implements padding_mode='zeros' exactly.
        colw = (jnp.where(qj == ix0, wx0, 0.0)
                + jnp.where(qj == ix0 + 1, wx1, 0.0))
        roww = (jnp.where(qi == iy0, wy0, 0.0)
                + jnp.where(qi == iy0 + 1, wy1, 0.0))
        img = jnp.dot(img, colw * roww, preferred_element_type=jnp.float32)

    pred_ref[0] = img


# ------------------------------ parameters --------------------------------- #

def make_params(key, din, emb_size, hw):
    """Deterministic synthetic parameters for the enc / dec stand-ins."""
    k1, k2, k3 = jax.random.split(key, 3)
    return dict(
        w_emb=(jax.random.normal(k1, (din, emb_size), jnp.float32)
               / jnp.sqrt(float(din))),
        b_emb=jnp.zeros((1, emb_size), jnp.float32),
        # small scale -> near-identity affine transforms after adding identity
        w_aff=0.02 * jax.random.normal(k2, (din, 18), jnp.float32),
        b_aff=jnp.zeros((1, 18), jnp.float32),
        w_dec=(jax.random.normal(k3, (emb_size, hw), jnp.float32)
               / jnp.sqrt(float(emb_size))),
        b_dec=jnp.zeros((1, hw), jnp.float32),
    )


def pack_params(params, H, W):
    """Fold identity-add, application-order permute and the affine_grid basis
    into the encoder weights; pad narrow heads to 128 lanes."""
    HW = H * W
    din, E = params["w_emb"].shape
    E_PAD = max(128, ((E + 127) // 128) * 128)

    # affine_grid base coordinates (align_corners=False), flattened row-major
    jj = (2.0 * jnp.arange(W, dtype=jnp.float32) + 1.0) / W - 1.0
    ii = (2.0 * jnp.arange(H, dtype=jnp.float32) + 1.0) / H - 1.0
    xs = jnp.broadcast_to(jj[None, :], (H, W)).reshape(HW)
    ys = jnp.broadcast_to(ii[:, None], (H, W)).reshape(HW)
    basis = jnp.stack([xs, ys, jnp.ones((HW,), jnp.float32)], axis=0)   # (3, HW)

    ident6 = jnp.array([1.0, 0.0, 0.0, 0.0, 1.0, 0.0], jnp.float32)
    perm = (2, 0, 1)   # raw enc order (scaler_shear, rotation, translation)
                       # -> application order (translation, scaler_shear, rotation)

    w_aff = params["w_aff"]
    b_aff = params["b_aff"][0]
    wg_cols, bg_cols = [], []
    for raw in perm:
        wt = w_aff[:, 6 * raw:6 * raw + 6]                  # (din, 6)
        bt = b_aff[6 * raw:6 * raw + 6] + ident6            # (6,)
        wg_cols.append(wt[:, 0:3] @ basis)                  # gx weights (din, HW)
        wg_cols.append(wt[:, 3:6] @ basis)                  # gy weights (din, HW)
        bg_cols.append(bt[0:3] @ basis)                     # gx bias (HW,)
        bg_cols.append(bt[3:6] @ basis)                     # gy bias (HW,)
    w_grid = jnp.concatenate(wg_cols, axis=1)               # (din, 6*HW)
    b_grid = jnp.concatenate(bg_cols, axis=0)[None, :]      # (1, 6*HW)

    w_emb_p = jnp.zeros((din, E_PAD), jnp.float32).at[:, :E].set(params["w_emb"])
    b_emb_p = jnp.zeros((1, E_PAD), jnp.float32).at[:, :E].set(params["b_emb"])
    w_dec_p = jnp.zeros((E_PAD, HW), jnp.float32).at[:E, :].set(params["w_dec"])

    return dict(
        emb_size=E,
        emb_pad=E_PAD,
        w_xc=jnp.concatenate([w_emb_p, w_grid], axis=1),    # (din, E_PAD + 6*HW)
        b_xc=jnp.concatenate([b_emb_p, b_grid], axis=1),    # (1,   E_PAD + 6*HW)
        w_dec_p=w_dec_p,                                    # (E_PAD, HW)
        b_dec=params["b_dec"],                              # (1, HW)
    )


# ------------------------------ JAX wrapper --------------------------------- #

def autoencoder_forward(x, packed, train=True):
    """Mirrors AutoEncoder.forward: enc -> dec -> grid_sample(translation),
    grid_sample(scaler_shear), grid_sample(rotation)."""
    B, C, H, W = x.shape
    DIN = C * H * W
    HW = H * W
    E_PAD = packed["emb_pad"]
    GW = packed["w_xc"].shape[1]                            # E_PAD + 6*HW

    x3 = x.reshape(B, 1, DIN).astype(jnp.float32)

    kernel = functools.partial(_fused_forward_kernel, H=H, W=W, emb_pad=E_PAD)
    emb_p, pred_flat = pl.pallas_call(
        kernel,
        grid=(B,),   # one batch element per grid step; "parallel" lets v7x's
                     # two TensorCores split the batch (no-op on v5e/v6e).
        out_shape=(jax.ShapeDtypeStruct((B, 1, E_PAD), jnp.float32),
                   jax.ShapeDtypeStruct((B, 1, HW), jnp.float32)),
        in_specs=[
            pl.BlockSpec((1, 1, DIN), lambda b: (b, 0, 0)),
            pl.BlockSpec((DIN, GW), lambda b: (0, 0)),
            pl.BlockSpec((1, GW), lambda b: (0, 0)),
            pl.BlockSpec((E_PAD, HW), lambda b: (0, 0)),
            pl.BlockSpec((1, HW), lambda b: (0, 0)),
        ],
        out_specs=(pl.BlockSpec((1, 1, E_PAD), lambda b: (b, 0, 0)),
                   pl.BlockSpec((1, 1, HW), lambda b: (b, 0, 0))),
        compiler_params=pltpu.CompilerParams(
            dimension_semantics=("parallel",),
            vmem_limit_bytes=32 * 1024 * 1024),
    )(x3, packed["w_xc"], packed["b_xc"], packed["w_dec_p"], packed["b_dec"])

    emb = emb_p[:, 0, :packed["emb_size"]]                  # (B, emb_size)
    pred = pred_flat.reshape(B, H, W)                       # == predicted.squeeze()
    if train:
        return emb, pred
    return pred


# ---------------------------------- main ------------------------------------ #

if __name__ == "__main__":
    B, C, H, W = 2, 1, 16, 16
    EMB = 32

    key = jax.random.PRNGKey(0)
    kx, kp = jax.random.split(key)
    x = jax.random.normal(kx, (B, C, H, W), jnp.float32)
    params = make_params(kp, C * H * W, EMB, H * W)
    packed = pack_params(params, H, W)

    emb, pred = autoencoder_forward(x, packed, train=True)
    jax.block_until_ready((emb, pred))

    assert emb.shape == (B, EMB)
    assert pred.shape == (B, H, W)
    assert bool(jnp.isfinite(emb).all()) and bool(jnp.isfinite(pred).all())
    print("KERNEL_OK")
</pallas_src>

<mosaic_0001>
module attributes {stable_mosaic.version = 11 : i64} {
  func.func @_fused_forward_kernel(%arg0: i32, %arg1: memref<1x1x256xf32, #tpu.memory_space<vmem>>, %arg2: memref<256x1664xf32, #tpu.memory_space<vmem>>, %arg3: memref<1x1664xf32, #tpu.memory_space<vmem>>, %arg4: memref<128x256xf32, #tpu.memory_space<vmem>>, %arg5: memref<1x256xf32, #tpu.memory_space<vmem>>, %arg6: memref<1x1x128xf32, #tpu.memory_space<vmem>>, %arg7: memref<1x1x256xf32, #tpu.memory_space<vmem>>) attributes {dimension_semantics = [#tpu.dimension_semantics<parallel>], iteration_bounds = array<i64: 2>, scalar_prefetch = 0 : i64, scratch_operands = 0 : i64, tpu.core_type = #tpu.core_type<tc>, window_params = [{transform_indices = @transform_0, window_bounds = array<i64: 1, 1, 256>}, {pipeline_mode = #tpu.pipeline_mode<synchronous>, transform_indices = @transform_1, window_bounds = array<i64: 256, 1664>}, {pipeline_mode = #tpu.pipeline_mode<synchronous>, transform_indices = @transform_2, window_bounds = array<i64: 1, 1664>}, {pipeline_mode = #tpu.pipeline_mode<synchronous>, transform_indices = @transform_3, window_bounds = array<i64: 128, 256>}, {pipeline_mode = #tpu.pipeline_mode<synchronous>, transform_indices = @transform_4, window_bounds = array<i64: 1, 256>}, {transform_indices = @transform_5, window_bounds = array<i64: 1, 1, 128>}, {transform_indices = @transform_6, window_bounds = array<i64: 1, 1, 256>}]} {
    %c0 = arith.constant 0 : index
    %c0_0 = arith.constant 0 : index
    %c0_1 = arith.constant 0 : index
    %0 = vector.load %arg1[%c0, %c0_0, %c0_1] : memref<1x1x256xf32, #tpu.memory_space<vmem>>, vector<1x1x256xf32>
    %1 = vector.shape_cast %0 : vector<1x1x256xf32> to vector<1x256xf32>
    %c0_2 = arith.constant 0 : index
    %c0_3 = arith.constant 0 : index
    %2 = vector.load %arg2[%c0_2, %c0_3] : memref<256x1664xf32, #tpu.memory_space<vmem>>, vector<256x1664xf32>
    %cst = arith.constant dense<0.000000e+00> : vector<1x1664xf32>
    %3 = tpu.matmul %1, %2, %cst {dimension_numbers = #tpu.dot_dimension_numbers<[1], [0], [0], [1], [0, 0, 1, 1], [], []>} : vector<1x256xf32>, vector<256x1664xf32>, vector<1x1664xf32> -> vector<1x1664xf32>
    %c0_4 = arith.constant 0 : index
    %c0_5 = arith.constant 0 : index
    %4 = vector.load %arg3[%c0_4, %c0_5] : memref<1x1664xf32, #tpu.memory_space<vmem>>, vector<1x1664xf32>
    %5 = arith.addf %3, %4 : vector<1x1664xf32>
    %6 = vector.extract_strided_slice %5 {offsets = [0, 0], sizes = [1, 128], strides = [1, 1]} : vector<1x1664xf32> to vector<1x128xf32>
    %cst_6 = arith.constant 0.000000e+00 : f32
    %7 = vector.broadcast %cst_6 : f32 to vector<1x128xf32>
    %8 = arith.maximumf %6, %7 : vector<1x128xf32>
    %c0_7 = arith.constant 0 : index
    %c0_8 = arith.constant 0 : index
    %c0_9 = arith.constant 0 : index
    %9 = vector.load %arg6[%c0_7, %c0_8, %c0_9] : memref<1x1x128xf32, #tpu.memory_space<vmem>>, vector<1x1x128xf32>
    %10 = vector.shape_cast %9 : vector<1x1x128xf32> to vector<1x128xf32>
    %11 = vector.shape_cast %8 : vector<1x128xf32> to vector<1x1x128xf32>
    tpu.vector_store %arg6[%c0_7, %c0_8, %c0_9], %11 {strides = array<i32>} : memref<1x1x128xf32, #tpu.memory_space<vmem>>, vector<1x1x128xf32>,
    %12 = vector.extract_strided_slice %5 {offsets = [0, 128], sizes = [1, 1536], strides = [1, 1]} : vector<1x1664xf32> to vector<1x1536xf32>
    %c0_10 = arith.constant 0 : index
    %c0_11 = arith.constant 0 : index
    %13 = vector.load %arg4[%c0_10, %c0_11] : memref<128x256xf32, #tpu.memory_space<vmem>>, vector<128x256xf32>
    %cst_12 = arith.constant dense<0.000000e+00> : vector<1x256xf32>
    %14 = tpu.matmul %8, %13, %cst_12 {dimension_numbers = #tpu.dot_dimension_numbers<[1], [0], [0], [1], [0, 0, 1, 1], [], []>} : vector<1x128xf32>, vector<128x256xf32>, vector<1x256xf32> -> vector<1x256xf32>
    %c0_13 = arith.constant 0 : index
    %c0_14 = arith.constant 0 : index
    %15 = vector.load %arg5[%c0_13, %c0_14] : memref<1x256xf32, #tpu.memory_space<vmem>>, vector<1x256xf32>
    %16 = arith.addf %14, %15 : vector<1x256xf32>
    %cst_15 = arith.constant 0.000000e+00 : f32
    %17 = vector.broadcast %cst_15 : f32 to vector<1x256xf32>
    %18 = arith.maximumf %16, %17 : vector<1x256xf32>
    %19 = tpu.iota {dimensions = array<i32: 0>} : vector<256x256xi32>
    %c4_i32 = arith.constant 4 : i32
    %20 = vector.broadcast %c4_i32 : i32 to vector<256x256xi32>
    %21 = arith.shrsi %19, %20 : vector<256x256xi32>
    %c15_i32 = arith.constant 15 : i32
    %22 = vector.broadcast %c15_i32 : i32 to vector<256x256xi32>
    %23 = arith.andi %19, %22 : vector<256x256xi32>
    %24 = vector.extract_strided_slice %12 {offsets = [0, 0], sizes = [1, 256], strides = [1, 1]} : vector<1x1536xf32> to vector<1x256xf32>
    %25 = vector.extract_strided_slice %12 {offsets = [0, 256], sizes = [1, 256], strides = [1, 1]} : vector<1x1536xf32> to vector<1x256xf32>
    %cst_16 = arith.constant 1.000000e+00 : f32
    %26 = vector.broadcast %cst_16 : f32 to vector<1x256xf32>
    %27 = arith.addf %24, %26 : vector<1x256xf32>
    %cst_17 = arith.constant 1.600000e+01 : f32
    %28 = vector.broadcast %cst_17 : f32 to vector<1x256xf32>
    %29 = arith.mulf %27, %28 : vector<1x256xf32>
    %cst_18 = arith.constant 1.000000e+00 : f32
    %30 = vector.broadcast %cst_18 : f32 to vector<1x256xf32>
    %31 = arith.subf %29, %30 : vector<1x256xf32>
    %cst_19 = arith.constant 5.000000e-01 : f32
    %32 = vector.broadcast %cst_19 : f32 to vector<1x256xf32>
    %33 = arith.mulf %31, %32 : vector<1x256xf32>
    %cst_20 = arith.constant 1.000000e+00 : f32
    %34 = vector.broadcast %cst_20 : f32 to vector<1x256xf32>
    %35 = arith.addf %25, %34 : vector<1x256xf32>
    %cst_21 = arith.constant 1.600000e+01 : f32
    %36 = vector.broadcast %cst_21 : f32 to vector<1x256xf32>
    %37 = arith.mulf %35, %36 : vector<1x256xf32>
    %cst_22 = arith.constant 1.000000e+00 : f32
    %38 = vector.broadcast %cst_22 : f32 to vector<1x256xf32>
    %39 = arith.subf %37, %38 : vector<1x256xf32>
    %cst_23 = arith.constant 5.000000e-01 : f32
    %40 = vector.broadcast %cst_23 : f32 to vector<1x256xf32>
    %41 = arith.mulf %39, %40 : vector<1x256xf32>
    %42 = math.floor %33 : vector<1x256xf32>
    %43 = math.floor %41 : vector<1x256xf32>
    %44 = arith.subf %33, %42 : vector<1x256xf32>
    %cst_24 = arith.constant 1.000000e+00 : f32
    %45 = vector.broadcast %cst_24 : f32 to vector<1x256xf32>
    %46 = arith.subf %45, %44 : vector<1x256xf32>
    %47 = arith.subf %41, %43 : vector<1x256xf32>
    %cst_25 = arith.constant 1.000000e+00 : f32
    %48 = vector.broadcast %cst_25 : f32 to vector<1x256xf32>
    %49 = arith.subf %48, %47 : vector<1x256xf32>
    %50 = arith.fptosi %42 : vector<1x256xf32> to vector<1x256xi32>
    %51 = arith.fptosi %43 : vector<1x256xf32> to vector<1x256xi32>
    %52 = vector.broadcast %50 : vector<1x256xi32> to vector<256x256xi32>
    %53 = arith.cmpi eq, %23, %52 : vector<256x256xi32>
    %cst_26 = arith.constant 0.000000e+00 : f32
    %54 = vector.shape_cast %46 : vector<1x256xf32> to vector<1x256xf32>
    %55 = vector.broadcast %54 : vector<1x256xf32> to vector<256x256xf32>
    %56 = vector.broadcast %cst_26 : f32 to vector<256x256xf32>
    %57 = arith.select %53, %55, %56 : vector<256x256xi1>, vector<256x256xf32>
    %c1_i32 = arith.constant 1 : i32
    %58 = vector.broadcast %c1_i32 : i32 to vector<1x256xi32>
    %59 = arith.addi %50, %58 : vector<1x256xi32>
    %60 = vector.broadcast %59 : vector<1x256xi32> to vector<256x256xi32>
    %61 = arith.cmpi eq, %23, %60 : vector<256x256xi32>
    %cst_27 = arith.constant 0.000000e+00 : f32
    %62 = vector.shape_cast %44 : vector<1x256xf32> to vector<1x256xf32>
    %63 = vector.broadcast %62 : vector<1x256xf32> to vector<256x256xf32>
    %64 = vector.broadcast %cst_27 : f32 to vector<256x256xf32>
    %65 = arith.select %61, %63, %64 : vector<256x256xi1>, vector<256x256xf32>
    %66 = arith.addf %57, %65 : vector<256x256xf32>
    %67 = vector.broadcast %51 : vector<1x256xi32> to vector<256x256xi32>
    %68 = arith.cmpi eq, %21, %67 : vector<256x256xi32>
    %cst_28 = arith.constant 0.000000e+00 : f32
    %69 = vector.shape_cast %49 : vector<1x256xf32> to vector<1x256xf32>
    %70 = vector.broadcast %69 : vector<1x256xf32> to vector<256x256xf32>
    %71 = vector.broadcast %cst_28 : f32 to vector<256x256xf32>
    %72 = arith.select %68, %70, %71 : vector<256x256xi1>, vector<256x256xf32>
    %c1_i32_29 = arith.constant 1 : i32
    %73 = vector.broadcast %c1_i32_29 : i32 to vector<1x256xi32>
    %74 = arith.addi %51, %73 : vector<1x256xi32>
    %75 = vector.broadcast %74 : vector<1x256xi32> to vector<256x256xi32>
    %76 = arith.cmpi eq, %21, %75 : vector<256x256xi32>
    %cst_30 = arith.constant 0.000000e+00 : f32
    %77 = vector.shape_cast %47 : vector<1x256xf32> to vector<1x256xf32>
    %78 = vector.broadcast %77 : vector<1x256xf32> to vector<256x256xf32>
    %79 = vector.broadcast %cst_30 : f32 to vector<256x256xf32>
    %80 = arith.select %76, %78, %79 : vector<256x256xi1>, vector<256x256xf32>
    %81 = arith.addf %72, %80 : vector<256x256xf32>
    %82 = arith.mulf %66, %81 : vector<256x256xf32>
    %cst_31 = arith.constant dense<0.000000e+00> : vector<1x256xf32>
    %83 = tpu.matmul %18, %82, %cst_31 {dimension_numbers = #tpu.dot_dimension_numbers<[1], [0], [0], [1], [0, 0, 1, 1], [], []>} : vector<1x256xf32>, vector<256x256xf32>, vector<1x256xf32> -> vector<1x256xf32>
    %84 = vector.extract_strided_slice %12 {offsets = [0, 512], sizes = [1, 256], strides = [1, 1]} : vector<1x1536xf32> to vector<1x256xf32>
    %85 = vector.extract_strided_slice %12 {offsets = [0, 768], sizes = [1, 256], strides = [1, 1]} : vector<1x1536xf32> to vector<1x256xf32>
    %cst_32 = arith.constant 1.000000e+00 : f32
    %86 = vector.broadcast %cst_32 : f32 to vector<1x256xf32>
    %87 = arith.addf %84, %86 : vector<1x256xf32>
    %cst_33 = arith.constant 1.600000e+01 : f32
    %88 = vector.broadcast %cst_33 : f32 to vector<1x256xf32>
    %89 = arith.mulf %87, %88 : vector<1x256xf32>
    %cst_34 = arith.constant 1.000000e+00 : f32
    %90 = vector.broadcast %cst_34 : f32 to vector<1x256xf32>
    %91 = arith.subf %89, %90 : vector<1x256xf32>
    %cst_35 = arith.constant 5.000000e-01 : f32
    %92 = vector.broadcast %cst_35 : f32 to vector<1x256xf32>
    %93 = arith.mulf %91, %92 : vector<1x256xf32>
    %cst_36 = arith.constant 1.000000e+00 : f32
    %94 = vector.broadcast %cst_36 : f32 to vector<1x256xf32>
    %95 = arith.addf %85, %94 : vector<1x256xf32>
    %cst_37 = arith.constant 1.600000e+01 : f32
    %96 = vector.broadcast %cst_37 : f32 to vector<1x256xf32>
    %97 = arith.mulf %95, %96 : vector<1x256xf32>
    %cst_38 = arith.constant 1.000000e+00 : f32
    %98 = vector.broadcast %cst_38 : f32 to vector<1x256xf32>
    %99 = arith.subf %97, %98 : vector<1x256xf32>
    %cst_39 = arith.constant 5.000000e-01 : f32
    %100 = vector.broadcast %cst_39 : f32 to vector<1x256xf32>
    %101 = arith.mulf %99, %100 : vector<1x256xf32>
    %102 = math.floor %93 : vector<1x256xf32>
    %103 = math.floor %101 : vector<1x256xf32>
    %104 = arith.subf %93, %102 : vector<1x256xf32>
    %cst_40 = arith.constant 1.000000e+00 : f32
    %105 = vector.broadcast %cst_40 : f32 to vector<1x256xf32>
    %106 = arith.subf %105, %104 : vector<1x256xf32>
    %107 = arith.subf %101, %103 : vector<1x256xf32>
    %cst_41 = arith.constant 1.000000e+00 : f32
    %108 = vector.broadcast %cst_41 : f32 to vector<1x256xf32>
    %109 = arith.subf %108, %107 : vector<1x256xf32>
    %110 = arith.fptosi %102 : vector<1x256xf32> to vector<1x256xi32>
    %111 = arith.fptosi %103 : vector<1x256xf32> to vector<1x256xi32>
    %112 = vector.broadcast %110 : vector<1x256xi32> to vector<256x256xi32>
    %113 = arith.cmpi eq, %23, %112 : vector<256x256xi32>
    %cst_42 = arith.constant 0.000000e+00 : f32
    %114 = vector.shape_cast %106 : vector<1x256xf32> to vector<1x256xf32>
    %115 = vector.broadcast %114 : vector<1x256xf32> to vector<256x256xf32>
    %116 = vector.broadcast %cst_42 : f32 to vector<256x256xf32>
    %117 = arith.select %113, %115, %116 : vector<256x256xi1>, vector<256x256xf32>
    %c1_i32_43 = arith.constant 1 : i32
    %118 = vector.broadcast %c1_i32_43 : i32 to vector<1x256xi32>
    %119 = arith.addi %110, %118 : vector<1x256xi32>
    %120 = vector.broadcast %119 : vector<1x256xi32> to vector<256x256xi32>
    %121 = arith.cmpi eq, %23, %120 : vector<256x256xi32>
    %cst_44 = arith.constant 0.000000e+00 : f32
    %122 = vector.shape_cast %104 : vector<1x256xf32> to vector<1x256xf32>
    %123 = vector.broadcast %122 : vector<1x256xf32> to vector<256x256xf32>
    %124 = vector.broadcast %cst_44 : f32 to vector<256x256xf32>
    %125 = arith.select %121, %123, %124 : vector<256x256xi1>, vector<256x256xf32>
    %126 = arith.addf %117, %125 : vector<256x256xf32>
    %127 = vector.broadcast %111 : vector<1x256xi32> to vector<256x256xi32>
    %128 = arith.cmpi eq, %21, %127 : vector<256x256xi32>
    %cst_45 = arith.constant 0.000000e+00 : f32
    %129 = vector.shape_cast %109 : vector<1x256xf32> to vector<1x256xf32>
    %130 = vector.broadcast %129 : vector<1x256xf32> to vector<256x256xf32>
    %131 = vector.broadcast %cst_45 : f32 to vector<256x256xf32>
    %132 = arith.select %128, %130, %131 : vector<256x256xi1>, vector<256x256xf32>
    %c1_i32_46 = arith.constant 1 : i32
    %133 = vector.broadcast %c1_i32_46 : i32 to vector<1x256xi32>
    %134 = arith.addi %111, %133 : vector<1x256xi32>
    %135 = vector.broadcast %134 : vector<1x256xi32> to vector<256x256xi32>
    %136 = arith.cmpi eq, %21, %135 : vector<256x256xi32>
    %cst_47 = arith.constant 0.000000e+00 : f32
    %137 = vector.shape_cast %107 : vector<1x256xf32> to vector<1x256xf32>
    %138 = vector.broadcast %137 : vector<1x256xf32> to vector<256x256xf32>
    %139 = vector.broadcast %cst_47 : f32 to vector<256x256xf32>
    %140 = arith.select %136, %138, %139 : vector<256x256xi1>, vector<256x256xf32>
    %141 = arith.addf %132, %140 : vector<256x256xf32>
    %142 = arith.mulf %126, %141 : vector<256x256xf32>
    %cst_48 = arith.constant dense<0.000000e+00> : vector<1x256xf32>
    %143 = tpu.matmul %83, %142, %cst_48 {dimension_numbers = #tpu.dot_dimension_numbers<[1], [0], [0], [1], [0, 0, 1, 1], [], []>} : vector<1x256xf32>, vector<256x256xf32>, vector<1x256xf32> -> vector<1x256xf32>
    %144 = vector.extract_strided_slice %12 {offsets = [0, 1024], sizes = [1, 256], strides = [1, 1]} : vector<1x1536xf32> to vector<1x256xf32>
    %145 = vector.extract_strided_slice %12 {offsets = [0, 1280], sizes = [1, 256], strides = [1, 1]} : vector<1x1536xf32> to vector<1x256xf32>
    %cst_49 = arith.constant 1.000000e+00 : f32
    %146 = vector.broadcast %cst_49 : f32 to vector<1x256xf32>
    %147 = arith.addf %144, %146 : vector<1x256xf32>
    %cst_50 = arith.constant 1.600000e+01 : f32
    %148 = vector.broadcast %cst_50 : f32 to vector<1x256xf32>
    %149 = arith.mulf %147, %148 : vector<1x256xf32>
    %cst_51 = arith.constant 1.000000e+00 : f32
    %150 = vector.broadcast %cst_51 : f32 to vector<1x256xf32>
    %151 = arith.subf %149, %150 : vector<1x256xf32>
    %cst_52 = arith.constant 5.000000e-01 : f32
    %152 = vector.broadcast %cst_52 : f32 to vector<1x256xf32>
    %153 = arith.mulf %151, %152 : vector<1x256xf32>
    %cst_53 = arith.constant 1.000000e+00 : f32
    %154 = vector.broadcast %cst_53 : f32 to vector<1x256xf32>
    %155 = arith.addf %145, %154 : vector<1x256xf32>
    %cst_54 = arith.constant 1.600000e+01 : f32
    %156 = vector.broadcast %cst_54 : f32 to vector<1x256xf32>
    %157 = arith.mulf %155, %156 : vector<1x256xf32>
    %cst_55 = arith.constant 1.000000e+00 : f32
    %158 = vector.broadcast %cst_55 : f32 to vector<1x256xf32>
    %159 = arith.subf %157, %158 : vector<1x256xf32>
    %cst_56 = arith.constant 5.000000e-01 : f32
    %160 = vector.broadcast %cst_56 : f32 to vector<1x256xf32>
    %161 = arith.mulf %159, %160 : vector<1x256xf32>
    %162 = math.floor %153 : vector<1x256xf32>
    %163 = math.floor %161 : vector<1x256xf32>
    %164 = arith.subf %153, %162 : vector<1x256xf32>
    %cst_57 = arith.constant 1.000000e+00 : f32
    %165 = vector.broadcast %cst_57 : f32 to vector<1x256xf32>
    %166 = arith.subf %165, %164 : vector<1x256xf32>
    %167 = arith.subf %161, %163 : vector<1x256xf32>
    %cst_58 = arith.constant 1.000000e+00 : f32
    %168 = vector.broadcast %cst_58 : f32 to vector<1x256xf32>
    %169 = arith.subf %168, %167 : vector<1x256xf32>
    %170 = arith.fptosi %162 : vector<1x256xf32> to vector<1x256xi32>
    %171 = arith.fptosi %163 : vector<1x256xf32> to vector<1x256xi32>
    %172 = vector.broadcast %170 : vector<1x256xi32> to vector<256x256xi32>
    %173 = arith.cmpi eq, %23, %172 : vector<256x256xi32>
    %cst_59 = arith.constant 0.000000e+00 : f32
    %174 = vector.shape_cast %166 : vector<1x256xf32> to vector<1x256xf32>
    %175 = vector.broadcast %174 : vector<1x256xf32> to vector<256x256xf32>
    %176 = vector.broadcast %cst_59 : f32 to vector<256x256xf32>
    %177 = arith.select %173, %175, %176 : vector<256x256xi1>, vector<256x256xf32>
    %c1_i32_60 = arith.constant 1 : i32
    %178 = vector.broadcast %c1_i32_60 : i32 to vector<1x256xi32>
    %179 = arith.addi %170, %178 : vector<1x256xi32>
    %180 = vector.broadcast %179 : vector<1x256xi32> to vector<256x256xi32>
    %181 = arith.cmpi eq, %23, %180 : vector<256x256xi32>
    %cst_61 = arith.constant 0.000000e+00 : f32
    %182 = vector.shape_cast %164 : vector<1x256xf32> to vector<1x256xf32>
    %183 = vector.broadcast %182 : vector<1x256xf32> to vector<256x256xf32>
    %184 = vector.broadcast %cst_61 : f32 to vector<256x256xf32>
    %185 = arith.select %181, %183, %184 : vector<256x256xi1>, vector<256x256xf32>
    %186 = arith.addf %177, %185 : vector<256x256xf32>
    %187 = vector.broadcast %171 : vector<1x256xi32> to vector<256x256xi32>
    %188 = arith.cmpi eq, %21, %187 : vector<256x256xi32>
    %cst_62 = arith.constant 0.000000e+00 : f32
    %189 = vector.shape_cast %169 : vector<1x256xf32> to vector<1x256xf32>
    %190 = vector.broadcast %189 : vector<1x256xf32> to vector<256x256xf32>
    %191 = vector.broadcast %cst_62 : f32 to vector<256x256xf32>
    %192 = arith.select %188, %190, %191 : vector<256x256xi1>, vector<256x256xf32>
    %c1_i32_63 = arith.constant 1 : i32
    %193 = vector.broadcast %c1_i32_63 : i32 to vector<1x256xi32>
    %194 = arith.addi %171, %193 : vector<1x256xi32>
    %195 = vector.broadcast %194 : vector<1x256xi32> to vector<256x256xi32>
    %196 = arith.cmpi eq, %21, %195 : vector<256x256xi32>
    %cst_64 = arith.constant 0.000000e+00 : f32
    %197 = vector.shape_cast %167 : vector<1x256xf32> to vector<1x256xf32>
    %198 = vector.broadcast %197 : vector<1x256xf32> to vector<256x256xf32>
    %199 = vector.broadcast %cst_64 : f32 to vector<256x256xf32>
    %200 = arith.select %196, %198, %199 : vector<256x256xi1>, vector<256x256xf32>
    %201 = arith.addf %192, %200 : vector<256x256xf32>
    %202 = arith.mulf %186, %201 : vector<256x256xf32>
    %cst_65 = arith.constant dense<0.000000e+00> : vector<1x256xf32>
    %203 = tpu.matmul %143, %202, %cst_65 {dimension_numbers = #tpu.dot_dimension_numbers<[1], [0], [0], [1], [0, 0, 1, 1], [], []>} : vector<1x256xf32>, vector<256x256xf32>, vector<1x256xf32> -> vector<1x256xf32>
    %c0_66 = arith.constant 0 : index
    %c0_67 = arith.constant 0 : index
    %c0_68 = arith.constant 0 : index
    %204 = vector.load %arg7[%c0_66, %c0_67, %c0_68] : memref<1x1x256xf32, #tpu.memory_space<vmem>>, vector<1x1x256xf32>
    %205 = vector.shape_cast %204 : vector<1x1x256xf32> to vector<1x256xf32>
    %206 = vector.shape_cast %203 : vector<1x256xf32> to vector<1x1x256xf32>
    tpu.vector_store %arg7[%c0_66, %c0_67, %c0_68], %206 {strides = array<i32>} : memref<1x1x256xf32, #tpu.memory_space<vmem>>, vector<1x1x256xf32>,
    return
  }
  func.func @transform_0(%arg0: i32) -> (i32, i32, i32) {
    %c0_i32 = arith.constant 0 : i32
    %c0_i32_0 = arith.constant 0 : i32
    %c0_i32_1 = arith.constant 0 : i32
    return %arg0, %c0_i32, %c0_i32_0 : i32, i32, i32
  }
  func.func @transform_1(%arg0: i32) -> (i32, i32) {
    %c0_i32 = arith.constant 0 : i32
    %c0_i32_0 = arith.constant 0 : i32
    %c0_i32_1 = arith.constant 0 : i32
    return %c0_i32, %c0_i32_0 : i32, i32
  }
  func.func @transform_2(%arg0: i32) -> (i32, i32) {
    %c0_i32 = arith.constant 0 : i32
    %c0_i32_0 = arith.constant 0 : i32
    %c0_i32_1 = arith.constant 0 : i32
    return %c0_i32, %c0_i32_0 : i32, i32
  }
  func.func @transform_3(%arg0: i32) -> (i32, i32) {
    %c0_i32 = arith.constant 0 : i32
    %c0_i32_0 = arith.constant 0 : i32
    %c0_i32_1 = arith.constant 0 : i32
    return %c0_i32, %c0_i32_0 : i32, i32
  }
  func.func @transform_4(%arg0: i32) -> (i32, i32) {
    %c0_i32 = arith.constant 0 : i32
    %c0_i32_0 = arith.constant 0 : i32
    %c0_i32_1 = arith.constant 0 : i32
    return %c0_i32, %c0_i32_0 : i32, i32
  }
  func.func @transform_5(%arg0: i32) -> (i32, i32, i32) {
    %c0_i32 = arith.constant 0 : i32
    %c0_i32_0 = arith.constant 0 : i32
    %c0_i32_1 = arith.constant 0 : i32
    return %arg0, %c0_i32, %c0_i32_0 : i32, i32, i32
  }
  func.func @transform_6(%arg0: i32) -> (i32, i32, i32) {
    %c0_i32 = arith.constant 0 : i32
    %c0_i32_0 = arith.constant 0 : i32
    %c0_i32_1 = arith.constant 0 : i32
    return %arg0, %c0_i32, %c0_i32_0 : i32, i32, i32
  }
}

</mosaic_0001>

<bundles_post_ra>
// kernel: tpu_custom_call.1
= control target key start
LH: loop header
LB: loop body
LE: loop exit
PB: predicated region body
PF: predicated region fallthrough
CT: control target
= control target key end

     0   :  { %s7893_s0 = inlined_call_operand.hbm [shape: f32[2,1,256], index: 0, kind: input, shape index: {}]   ;;  %s7894_s1 = inlined_call_operand.hbm [shape: f32[256,1664], index: 1, kind: input, shape index: {}]   ;;  %s7895_s2 = inlined_call_operand.hbm [shape: f32[1,1664], index: 2, kind: input, shape index: {}]   ;;  %s7896_s3 = inlined_call_operand.hbm [shape: f32[128,256], index: 3, kind: input, shape index: {}]   ;;  %s7897_s4 = inlined_call_operand.hbm [shape: f32[1,256], index: 4, kind: input, shape index: {}]   ;;  %s7898_s5 = inlined_call_operand.hbm [shape: f32[2,1,128], index: 5, kind: output, shape index: {0}]   ;;  %s7899_s6 = inlined_call_operand.hbm [shape: f32[2,1,256], index: 6, kind: output, shape index: {1}]  }
   0x1   :  { %8065 = sst [smem:[#allocation87_spill]] %s7894_s1 }
   0x2   :  { %12 = vsyncpa [#allocation3], 0 }
   0x3   :  { %14 = vsyncpa [#allocation3 + $0x1], 0 }
   0x4   :  { %15 = vsyncpa [#allocation6], 0 }
   0x5   :  { %16 = vsyncpa [#allocation9], 0 }
   0x6   :  { %17 = vsyncpa [#allocation4], 0 }
   0x7   :  { %19 = vsyncpa [#allocation4 + $0x1], 0 }
   0x8   :  { %20 = vsyncpa [#allocation13], 0 }
   0x9   :  { %22 = vsyncpa [#allocation13 + $0x1], 0  ;;  %s4836_s21 = smov 0   ;;  %s4838_s22 = smov 0  }
   0xa   :  { %s4840_s23 = smov 0   ;;  %s4842_s24 = smov 0  }
   0xb LB: > { %s4788_s25 = smov [#allocation5]   ;;  %s4857_s27 = sadd.s32 4294967295, %s4786_s24   ;;  %s4786_s24 = sphi %s4842_s24, %s8302_s24   ;;  %s4782_s23 = sphi %s4840_s23, %s8301_s23   ;;  %s4778_s22 = sphi %s4838_s22, %s8300_s22   ;;  %s4774_s21 = sphi %s4836_s21, %s8299_s21  }
   0xc   : > { %s207_s26 = sshll.u32 %s4788_s25, 4  ;;  %p4358_p0 = scmp.ge.s32.totalorder %s4786_s24, 1  ;;  %s208_s26 = int_to_ptr.vmem [resolvable:$true] %s207_s26 }
   0xd   : > { %p7900_p1 = scmp.eq.s32.totalorder %s4857_s27, 0  ;;  %p195_p2 = scmp.lt.s32.totalorder %s4786_s24, 3 }
   0xe   : > { %s4789_s29 = smov [#allocation8]   ;;  %s4790_s8 = smov [#allocation7]  }
   0xf   : > { %p4862_p3 = pnand %p4358_p0, %p195_p2  ;;  %s231_s30 = sshll.u32 %s4789_s29, 4  ;;  %s4875_s30 = int_to_ptr.vmem [resolvable:$true] %s231_s30 }
  0x10   : > { %s4877_s9 = sshll.u32 %s4790_s8, 4  ;;  %s4563_s10 = scalar_lea.vmem %s208_s26, 53248  ;;  %s222_s9 = int_to_ptr.vmem [resolvable:$true] %s4877_s9 }
  0x11   : > { %s8066_s28 = scalar_select %p4862_p3, 1, 0 }
  0x12   : > { %p4475_p5 = pneg %p4862_p3  ;;  %p4564_p8 = scmp.ne.s32.totalorder %s208_s26, %s4563_s10 }
  0x13   : > { %p4571_p11 = scmp.lt.s32.totalorder %s208_s26, %s208_s26  ;;  %p4572_p12 = scmp.lt.s32.totalorder %s4563_s10, %s4563_s10 }
  0x14   : > { %p4871_p6 = pnand %p4475_p5, %p7900_p1 }
  0x15   : > { %p4573_p13 = por %p4572_p12, %p4571_p11 }
  0x16   : > { %p4554_p7 = pneg %p4871_p6 }
  0x18   : > { %p4566_p9 = pnand %p4564_p8, %p4554_p7 }
  0x1a   : > { %p4567_p10 = pneg %p4566_p9 }
  0x1c   : > { %p4574_p0 = pnand %p4573_p13, %p4567_p10 }
  0x1e   : > { %4577 = shalt.err (!%p4574_p0)
}
  0x1f   : > { %s4791_s11 = smov 1664   ;;  %s4792_s12 = smov 104  }
  0x20   : > { %s8068_s1 = sld [smem:[#allocation87_spill]]  ;;  %s4589_s15 = scalar_lea.vmem %s4875_s30, 4096 }
  0x21   : > { %p4590_p2 = scmp.ne.s32.totalorder %s4875_s30, %s4589_s15  ;;  %p4597_p9 = scmp.lt.s32.totalorder %s4875_s30, %s4875_s30 }
  0x22   : > { %p4598_p10 = scmp.lt.s32.totalorder %s4589_s15, %s4589_s15 }
  0x23   : > { %p4592_p5 = pnand %p4590_p2, %p4554_p7 }
  0x24   : > { %p4599_p11 = por %p4598_p10, %p4597_p9 }
  0x25   : > { %p4593_p8 = pneg %p4592_p5 }
  0x26   : > { %4478 = dma.hbm_to_vmem [thread:$0]  (!%p4871_p6), %s8068_s1, 53248, %s208_s26, [#allocation6], %s4791_s11, %s4791_s11, %s4792_s12  }
  0x27   : > { %p4600_p12 = pnand %p4599_p11, %p4593_p8 }
  0x29   : > { %4603 = shalt.err (!%p4600_p12)
}
  0x2a   : > { %s4793_s16 = smov 256   ;;  %s4794_s17 = smov 16  }
  0x2b   : > { %4484 = dma.hbm_to_vmem [thread:$0]  (!%p4871_p6), %s7896_s3, 4096, %s4875_s30, [#allocation9], %s4793_s16, %s4793_s16, %s4794_s17  }
  0x2c   : > { %s4615_s20 = scalar_lea.vmem %s222_s9, 208  ;;  %s4622_s25 = scalar_lea.vmem %s222_s9, 224 }
  0x2d   : > { %p4616_p13 = scmp.ne.s32.totalorder %s222_s9, %s4615_s20  ;;  %p4623_p5 = scmp.lt.s32.totalorder %s222_s9, %s222_s9 }
  0x2e   : > { %p4624_p8 = scmp.lt.s32.totalorder %s4622_s25, %s4615_s20 }
  0x2f   : > { %p4618_p0 = pnand %p4616_p13, %p4554_p7 }
  0x30   : > { %p4625_p9 = por %p4624_p8, %p4623_p5 }
  0x31   : > { %p4619_p2 = pneg %p4618_p0 }
  0x33   : > { %p4626_p10 = pnand %p4625_p9, %p4619_p2 }
  0x35   : > { %4629 = shalt.err (!%p4626_p10)
}
  0x36   : > { %4481 = dma.hbm_to_vmem [thread:$0]  (!%p4871_p6), %s7895_s2, 208, %s222_s9, [#allocation6]  }
  0x37   : > { %s4795_s30 = smov [#allocation10]  }
  0x38   : > { %s245_s8 = sshll.u32 %s4795_s30, 4  ;;  %s246_s8 = int_to_ptr.vmem [resolvable:$true] %s245_s8 }
  0x39   : > { %s4641_s10 = scalar_lea.vmem %s246_s8, 32  ;;  %p4649_p0 = scmp.lt.s32.totalorder %s246_s8, %s246_s8 }
  0x3a   : > { %p4642_p11 = scmp.ne.s32.totalorder %s246_s8, %s4641_s10  ;;  %p4650_p5 = scmp.lt.s32.totalorder %s4641_s10, %s4641_s10 }
  0x3c   : > { %p4644_p12 = pnand %p4642_p11, %p4554_p7  ;;  %p4651_p2 = por %p4650_p5, %p4649_p0 }
  0x3e   : > { %p4645_p13 = pneg %p4644_p12 }
  0x40   : > { %p4652_p8 = pnand %p4651_p2, %p4645_p13 }
  0x42   : > { %4655 = shalt.err (!%p4652_p8)
}
  0x43   : > { %4487 = dma.hbm_to_vmem [thread:$0]  (!%p4871_p6), %s7897_s4, 32, %s246_s8, [#allocation9]  }
  0x44   : > { %s4357_s9 = sadd.s32 4294967294, %s4786_s24   ;;  %s4921_s7 = sadd.s32 1, %s4786_s24  }
  0x45   : > { %s32_s13 = ssub.s32 %s4786_s24, %s4921_s7  ;;  %s35_s14 = sadd.s32 1, %s4782_s23 }
  0x46   : > { %p33_p7 = scmp.eq.s32.totalorder %s32_s13, 0  ;;  %p42_p9 = scmp.ne.s32.totalorder %s4782_s23, %s4778_s22 }
  0x47   : > { %p43_p10 = scmp.eq.s32.totalorder %s4786_s24, 0  ;;  %p48_p11 = scmp.ne.s32.totalorder %s4778_s22, %s4774_s21 }
  0x48   : > { %s4932_s15 = scalar_select %p33_p7, %s4782_s23, %s35_s14  }
  0x49   : > { %p4934_p12 = por %p43_p10, %p42_p9  ;;  %p4940_p6 = por %p7900_p1, %p48_p11 }
  0x4a   : > { %p156_p13 = scmp.eq.s32.totalorder %s4857_s27, 1  ;;  %p162_p0 = scmp.eq.s32.totalorder %s4357_s9, 1 }
  0x4b   : > { %s8070_s17 = scalar_select %p4940_p6, 1, 0 }
  0x4c   : > { %p4503_p5 = scmp.lt.s32.totalorder %s4786_s24, 2  ;;  %s256_s18 = sand.u32 1, %s4782_s23  }
  0x4d   : > { %p4947_p2 = por %p156_p13, %p42_p9  ;;  %p4951_p8 = por %p162_p0, %p48_p11 }
  0x4e   : > { %s4364_s25 = sshll.u32 %s256_s18, 1  ;;  %s4392_s26 = sshll.u32 %s4786_s24, 5 }
  0x4f   : > { %s8071_s19 = scalar_select %p4947_p2, 1, 0 }
  0x50   : > { %s8072_s20 = scalar_select %p4951_p8, 1, 0 }
  0x51   : > { %s4959_s8 = scalar_lea.hbm %s7893_s0, %s4392_s26  ;;  %s260_s10 = scalar_lea.vmem [#allocation2], %s4364_s25 }
  0x52   : > { %s268_s11 = sshll.u32 %s260_s10, 4  ;;  %p4963_p7 = pnand %p4503_p5, %p4934_p12  ;;  %s269_s11 = int_to_ptr.vmem [resolvable:$true] %s268_s11 }
  0x53   : > { %s257_s9 = scalar_lea.sflag [#allocation3], %s256_s18  ;;  %s4656_s13 = scalar_lea.hbm %s4959_s8, 32 }
  0x54   : > { %p4657_p9 = scmp.ne.s32.totalorder %s4959_s8, %s4656_s13  ;;  %p4658_p10 = pneg %p4963_p7 }
  0x55   : > { %s4661_s29 = scalar_lea.hbm %s7893_s0, 64  ;;  %p4662_p0 = scmp.lt.s32.totalorder %s4959_s8, %s7893_s0 }
  0x56   : > { %p4659_p11 = pnand %p4658_p10, %p4657_p9  ;;  %p4663_p12 = scmp.lt.s32.totalorder %s4661_s29, %s4656_s13 }
  0x58   : > { %p4660_p13 = pneg %p4659_p11  ;;  %p4664_p5 = por %p4663_p12, %p4662_p0 }
  0x5a   : > { %p4665_p4 = pnand %p4664_p5, %p4660_p13 }
  0x5c   : > { %4668 = shalt.err (!%p4665_p4)
}
  0x5d   : > { %s4669_s16 = scalar_lea.vmem %s269_s11, 32  ;;  %s4796_s18 = smov [#allocation2]  }
  0x5e   : > { %p4670_p1 = scmp.ne.s32.totalorder %s269_s11, %s4669_s16  ;;  %s4674_s10 = sshll.u32 %s4796_s18, 4  ;;  %s4675_s10 = int_to_ptr.vmem [resolvable:$false] %s4674_s10 }
  0x5f   : > { %s4676_s1 = scalar_lea.vmem %s4675_s10, 64  ;;  %p4677_p9 = scmp.lt.s32.totalorder %s269_s11, %s4675_s10 }
  0x60   : > { %p4672_p8 = pnand %p4670_p1, %p4658_p10  ;;  %p4678_p11 = scmp.lt.s32.totalorder %s4676_s1, %s4669_s16 }
  0x62   : > { %p4673_p2 = pneg %p4672_p8  ;;  %p4679_p6 = por %p4678_p11, %p4677_p9 }
  0x64   : > { %p4680_p3 = pnand %p4679_p6, %p4673_p2 }
  0x66   : > { %4683 = shalt.err (!%p4680_p3)
}
  0x67   : > { %4491 = dma.hbm_to_vmem [thread:$0]  (!%p4963_p7), %s4959_s8, 32, %s269_s11, %s257_s9  }
  0x68   : > { %p8074_p13 = scmp.ne.s32.totalorder %s8066_s28, 0 }
  0x6a   : > { %277 = sbr.rel (%p8074_p13) target bundleno = 1358 (0x54e), region = 40 }
  0x6f   : > { %s4984_s13 = sand.u32 1, %s4778_s22   ;;  %p8075_p1 = scmp.ne.s32.totalorder %s8070_s17, 0 }
  0x70   : > { %s4368_s14 = sshll.u32 %s4984_s13, 1  ;;  %s280_s26 = scalar_lea.sflag [#allocation3], %s4984_s13 }
  0x71   : > { %s4990_s1 = scalar_lea.vmem [#allocation2], %s4368_s14 }
  0x72   : > { %4753 = dma.done.wait (%p8075_p1), %s280_s26, 32  }
  0x73   : > { %4755 = vsyncadd (%p8075_p1), %s280_s26, 4294967264  ;;  %p8076_p3 = scmp.eq.s32.totalorder %s4857_s27, 0 }
  0x75   : > { %4757 = dma.done.wait (%p8076_p3), [#allocation6], 53456   ;;  %p8077_p4 = pmov %p8076_p3 }
  0x76   : > { %p8078_p6 = pmov %p8076_p3 }
  0x77   : > { %4759 = vsyncadd (%p8077_p4), [#allocation6], 4294913840 }
  0x78   : > { %4761 = dma.done.wait (%p8078_p6), [#allocation9], 4128   ;;  %p8079_p2 = pmov %p8076_p3 }
  0x79   : > { %v529_v0 = vld [vmem:[#allocation5 + $0x620] sm:$0xff]  ;;  %v531_v1 = vld [vmem:[#allocation5 + $0x630] sm:$0xff]  ;;  %v528_v2 = vld [vmem:[#allocation5 + $0x618] sm:$0xff]  ;;  %s324_s28 = scalar_lea.vmem [#allocation11], %s4984_s13  ;;  %s4387_s17 = sshll.u32 %s4857_s27, 4 }
  0x7a   : > { %4763 = vsyncadd (%p8079_p2), [#allocation9], 4294963168  ;;  %829 = vmatprep.subr.mxu0 %v529_v0  ;;  %900 = vmatprep.subr.mxu1 %v531_v1  ;;  %v530_v3 = vld [vmem:[#allocation5 + $0x628] sm:$0xff]  ;;  %v516_v4 = vld [vmem:[#allocation5 + $0x5b8] sm:$0xff]  ;;  %s4205_s12 = scalar_lea.hbm %s7898_s5, %s4387_s17  ;;  %s4207_s9 = sshll.u32 %s324_s28, 4  ;;  %s4208_s9 = int_to_ptr.vmem [resolvable:$true] %s4207_s9 }
  0x7b   : > { %v518_v5 = vld [vmem:[#allocation5 + $0x5c8] sm:$0xff]  ;;  %830 = vmatpush1.msra.mxu0 %v528_v2  ;;  %901 = vmatpush1.msra.mxu1 %v530_v3  ;;  %v515_v6 = vld [vmem:[#allocation5 + $0x5b0] sm:$0xff]  ;;  %v517_v7 = vld [vmem:[#allocation5 + $0x5c0] sm:$0xff]  ;;  %s4190_s29 = scalar_lea.sflag [#allocation4], %s4984_s13  ;;  %s4684_s25 = scalar_lea.vmem %s4208_s9, 16 }
  0x7c   : > { %v503_v8 = vld [vmem:[#allocation5 + $0x550] sm:$0xff]  ;;  %831 = vmatprep.subr.mxu0 %v516_v4  ;;  %902 = vmatprep.subr.mxu1 %v518_v5  ;;  %v505_v9 = vld [vmem:[#allocation5 + $0x560] sm:$0xff]  ;;  %v502_v10 = vld [vmem:[#allocation5 + $0x548] sm:$0xff]  ;;  %p4685_p8 = scmp.ne.s32.totalorder %s4208_s9, %s4684_s25  ;;  %p8294_p7 = scmp.ne.s32.totalorder %s8071_s19, 0 }
  0x7d   : > { %v504_v11 = vld [vmem:[#allocation5 + $0x558] sm:$0xff]  ;;  %832 = vmatpush1.msra.mxu0 %v515_v6  ;;  %903 = vmatpush1.msra.mxu1 %v517_v7  ;;  %v490_v12 = vld [vmem:[#allocation5 + $0x4e8] sm:$0xff]  ;;  %v489_v14 = vld [vmem:[#allocation5 + $0x4e0] sm:$0xff]  ;;  %s4798_s30 = smov [#allocation11]  }
  0x7e   : > { %v492_v13 = vld [vmem:[#allocation5 + $0x4f8] sm:$0xff]  ;;  %833 = vmatprep.subr.mxu0 %v503_v8  ;;  %904 = vmatprep.subr.mxu1 %v505_v9  ;;  %v491_v15 = vld [vmem:[#allocation5 + $0x4f0] sm:$0xff]  ;;  %v477_v16 = vld [vmem:[#allocation5 + $0x480] sm:$0xff]  ;;  %p4686_p10 = pnand %p4685_p8, %p8294_p7  ;;  %s4688_s16 = sshll.u32 %s4798_s30, 4  ;;  %s4689_s16 = int_to_ptr.vmem [resolvable:$false] %s4688_s16 }
  0x7f   : > { %834 = vmatpush1.msra.mxu0 %v502_v10  ;;  %905 = vmatpush1.msra.mxu1 %v504_v11  ;;  %v479_v17 = vld [vmem:[#allocation5 + $0x490] sm:$0xff]  ;;  %v476_v18 = vld [vmem:[#allocation5 + $0x478] sm:$0xff]  ;;  %v478_v19 = vld [vmem:[#allocation5 + $0x488] sm:$0xff]  ;;  %s4690_s18 = scalar_lea.vmem %s4689_s16, 32  ;;  %p4691_p12 = scmp.lt.s32.totalorder %s4208_s9, %s4689_s16 }
  0x80   : > { %835 = vmatprep.subr.mxu0 %v490_v12  ;;  %906 = vmatprep.subr.mxu1 %v492_v13  ;;  %v464_v20 = vld [vmem:[#allocation5 + $0x418] sm:$0xff]  ;;  %v466_v21 = vld [vmem:[#allocation5 + $0x428] sm:$0xff]  ;;  %v463_v22 = vld [vmem:[#allocation5 + $0x410] sm:$0xff]  ;;  %p4687_p0 = pneg %p4686_p10  ;;  %p4692_p5 = scmp.lt.s32.totalorder %s4690_s18, %s4684_s25 }
  0x81   : > { %836 = vmatpush1.msra.mxu0 %v489_v14  ;;  %907 = vmatpush1.msra.mxu1 %v491_v15  ;;  %v465_v23 = vld [vmem:[#allocation5 + $0x420] sm:$0xff]  ;;  %v451_v24 = vld [vmem:[#allocation5 + $0x3b0] sm:$0xff]  ;;  %v450_v26 = vld [vmem:[#allocation5 + $0x3a8] sm:$0xff] }
  0x82   : > { %837 = vmatprep.subr.mxu0 %v477_v16  ;;  %908 = vmatprep.subr.mxu1 %v479_v17  ;;  %v453_v25 = vld [vmem:[#allocation5 + $0x3c0] sm:$0xff]  ;;  %v452_v27 = vld [vmem:[#allocation5 + $0x3b8] sm:$0xff]  ;;  %v438_v28 = vld [vmem:[#allocation5 + $0x348] sm:$0xff]  ;;  %p4693_p9 = por %p4692_p5, %p4691_p12 }
  0x83   : > { %838 = vmatpush1.msra.mxu0 %v476_v18  ;;  %909 = vmatpush1.msra.mxu1 %v478_v19  ;;  %v440_v29 = vld [vmem:[#allocation5 + $0x358] sm:$0xff]  ;;  %v437_v30 = vld [vmem:[#allocation5 + $0x340] sm:$0xff]  ;;  %v439_v31 = vld [vmem:[#allocation5 + $0x350] sm:$0xff] }
  0x84   : > { %839 = vmatprep.subr.mxu0 %v464_v20  ;;  %910 = vmatprep.subr.mxu1 %v466_v21  ;;  %v425_v32 = vld [vmem:[#allocation5 + $0x2e0] sm:$0xff]  ;;  %v427_v33 = vld [vmem:[#allocation5 + $0x2f0] sm:$0xff]  ;;  %v424_v34 = vld [vmem:[#allocation5 + $0x2d8] sm:$0xff]  ;;  %p4694_p11 = pnand %p4693_p9, %p4687_p0 }
  0x85   : > { %840 = vmatpush1.msra.mxu0 %v463_v22  ;;  %911 = vmatpush1.msra.mxu1 %v465_v23  ;;  %v426_v35 = vld [vmem:[#allocation5 + $0x2e8] sm:$0xff]  ;;  %v412_v36 = vld [vmem:[#allocation5 + $0x278] sm:$0xff]  ;;  %v411_v38 = vld [vmem:[#allocation5 + $0x270] sm:$0xff] }
  0x86   : > { %841 = vmatprep.subr.mxu0 %v451_v24  ;;  %912 = vmatprep.subr.mxu1 %v453_v25  ;;  %v414_v37 = vld [vmem:[#allocation5 + $0x288] sm:$0xff]  ;;  %v413_v39 = vld [vmem:[#allocation5 + $0x280] sm:$0xff]  ;;  %v399_v40 = vld [vmem:[#allocation5 + $0x210] sm:$0xff] }
  0x87   : > { %842 = vmatpush1.msra.mxu0 %v450_v26  ;;  %913 = vmatpush1.msra.mxu1 %v452_v27  ;;  %v401_v41 = vld [vmem:[#allocation5 + $0x220] sm:$0xff]  ;;  %v398_v42 = vld [vmem:[#allocation5 + $0x208] sm:$0xff]  ;;  %v400_v43 = vld [vmem:[#allocation5 + $0x218] sm:$0xff] }
  0x88   : > { %843 = vmatprep.subr.mxu0 %v438_v28  ;;  %914 = vmatprep.subr.mxu1 %v440_v29  ;;  %v386_v44 = vld [vmem:[#allocation5 + $0x1a8] sm:$0xff]  ;;  %v388_v45 = vld [vmem:[#allocation5 + $0x1b8] sm:$0xff]  ;;  %v385_v46 = vld [vmem:[#allocation5 + $0x1a0] sm:$0xff] }
  0x89   : > { %844 = vmatpush1.msra.mxu0 %v437_v30  ;;  %915 = vmatpush1.msra.mxu1 %v439_v31  ;;  %v387_v47 = vld [vmem:[#allocation5 + $0x1b0] sm:$0xff]  ;;  %v373_v48 = vld [vmem:[#allocation5 + $0x140] sm:$0xff]  ;;  %v372_v50 = vld [vmem:[#allocation5 + $0x138] sm:$0xff] }
  0x8a   : > { %845 = vmatprep.subr.mxu0 %v425_v32  ;;  %916 = vmatprep.subr.mxu1 %v427_v33  ;;  %v375_v49 = vld [vmem:[#allocation5 + $0x150] sm:$0xff]  ;;  %v374_v51 = vld [vmem:[#allocation5 + $0x148] sm:$0xff]  ;;  %v360_v52 = vld [vmem:[#allocation5 + $0xd8] sm:$0xff] }
  0x8b   : > { %846 = vmatpush1.msra.mxu0 %v424_v34  ;;  %917 = vmatpush1.msra.mxu1 %v426_v35  ;;  %v362_v53 = vld [vmem:[#allocation5 + $0xe8] sm:$0xff]  ;;  %v359_v54 = vld [vmem:[#allocation5 + $0xd0] sm:$0xff]  ;;  %v361_v55 = vld [vmem:[#allocation5 + $0xe0] sm:$0xff] }
  0x8c   : > { %847 = vmatprep.subr.mxu0 %v412_v36  ;;  %918 = vmatprep.subr.mxu1 %v414_v37  ;;  %v347_v56 = vld [vmem:[#allocation5 + $0x70] sm:$0xff]  ;;  %v349_v57 = vld [vmem:[#allocation5 + $0x80] sm:$0xff]  ;;  %v346_v58 = vld [vmem:[#allocation5 + $0x68] sm:$0xff] }
  0x8d   : > { %848 = vmatpush1.msra.mxu0 %v411_v38  ;;  %919 = vmatpush1.msra.mxu1 %v413_v39  ;;  %v348_v59 = vld [vmem:[#allocation5 + $0x78] sm:$0xff]  ;;  %v334_v60 = vld [vmem:[#allocation5 + $0x8] sm:$0xff]  ;;  %v333_v62 = vld [vmem:[#allocation5] sm:$0xff]  ;;  %v7904_v38 = vlaneseq }
  0x8e   : > { %849 = vmatprep.subr.mxu0 %v399_v40  ;;  %920 = vmatprep.subr.mxu1 %v401_v41  ;;  %v336_v61 = vld [vmem:[#allocation5 + $0x18] sm:$0xff]  ;;  %v335_v63 = vld [vmem:[#allocation5 + $0x10] sm:$0xff]  ;;  %v737_v0 = vld [vmem:[#allocation5 + $0xca0] sm:$0xff] }
  0x8f   : > { %850 = vmatpush1.msra.mxu0 %v398_v42  ;;  %921 = vmatpush1.msra.mxu1 %v400_v43  ;;  %v739_v1 = vld [vmem:[#allocation5 + $0xcb0] sm:$0xff]  ;;  %v736_v2 = vld [vmem:[#allocation5 + $0xc98] sm:$0xff]  ;;  %v738_v3 = vld [vmem:[#allocation5 + $0xca8] sm:$0xff] }
  0x90   : > { %851 = vmatprep.subr.mxu0 %v386_v44  ;;  %922 = vmatprep.subr.mxu1 %v388_v45  ;;  %v724_v4 = vld [vmem:[#allocation5 + $0xc38] sm:$0xff]  ;;  %v726_v5 = vld [vmem:[#allocation5 + $0xc48] sm:$0xff]  ;;  %v723_v6 = vld [vmem:[#allocation5 + $0xc30] sm:$0xff] }
  0x91   : > { %852 = vmatpush1.msra.mxu0 %v385_v46  ;;  %923 = vmatpush1.msra.mxu1 %v387_v47  ;;  %v725_v7 = vld [vmem:[#allocation5 + $0xc40] sm:$0xff]  ;;  %v711_v8 = vld [vmem:[#allocation5 + $0xbd0] sm:$0xff]  ;;  %v710_v10 = vld [vmem:[#allocation5 + $0xbc8] sm:$0xff]  ;;  %v5005_v47 = vshrl.u32 %v7904_v38, 7 }
  0x92   : > { %853 = vmatprep.subr.mxu0 %v373_v48  ;;  %924 = vmatprep.subr.mxu1 %v375_v49  ;;  %v713_v9 = vld [vmem:[#allocation5 + $0xbe0] sm:$0xff]  ;;  %v712_v11 = vld [vmem:[#allocation5 + $0xbd8] sm:$0xff]  ;;  %v698_v12 = vld [vmem:[#allocation5 + $0xb68] sm:$0xff] }
  0x93   : > { %854 = vmatpush1.msra.mxu0 %v372_v50  ;;  %925 = vmatpush1.msra.mxu1 %v374_v51  ;;  %v700_v13 = vld [vmem:[#allocation5 + $0xb78] sm:$0xff]  ;;  %v697_v14 = vld [vmem:[#allocation5 + $0xb60] sm:$0xff]  ;;  %v699_v15 = vld [vmem:[#allocation5 + $0xb70] sm:$0xff]  ;;  %8080 = vst [vmem:[#allocation19_spill] sm:$0xff] %v5005_v47 }
  0x94   : > { %855 = vmatprep.subr.mxu0 %v360_v52  ;;  %926 = vmatprep.subr.mxu1 %v362_v53  ;;  %v685_v16 = vld [vmem:[#allocation5 + $0xb00] sm:$0xff]  ;;  %v687_v17 = vld [vmem:[#allocation5 + $0xb10] sm:$0xff]  ;;  %v684_v18 = vld [vmem:[#allocation5 + $0xaf8] sm:$0xff] }
  0x95   : > { %856 = vmatpush1.msra.mxu0 %v359_v54  ;;  %927 = vmatpush1.msra.mxu1 %v361_v55  ;;  %v686_v19 = vld [vmem:[#allocation5 + $0xb08] sm:$0xff]  ;;  %v672_v20 = vld [vmem:[#allocation5 + $0xa98] sm:$0xff]  ;;  %v671_v22 = vld [vmem:[#allocation5 + $0xa90] sm:$0xff] }
  0x96   : > { %857 = vmatprep.subr.mxu0 %v347_v56  ;;  %928 = vmatprep.subr.mxu1 %v349_v57  ;;  %v674_v21 = vld [vmem:[#allocation5 + $0xaa8] sm:$0xff]  ;;  %v673_v23 = vld [vmem:[#allocation5 + $0xaa0] sm:$0xff]  ;;  %v659_v24 = vld [vmem:[#allocation5 + $0xa30] sm:$0xff]  ;;  %v5008_v56 = vsub.s32 1, %v5005_v47 }
  0x97   : > { %858 = vmatpush1.msra.mxu0 %v346_v58  ;;  %929 = vmatpush1.msra.mxu1 %v348_v59  ;;  %v661_v25 = vld [vmem:[#allocation5 + $0xa40] sm:$0xff]  ;;  %v658_v26 = vld [vmem:[#allocation5 + $0xa28] sm:$0xff]  ;;  %v660_v27 = vld [vmem:[#allocation5 + $0xa38] sm:$0xff] }
  0x98   : > { %859 = vmatprep.subr.mxu0 %v334_v60  ;;  %930 = vmatprep.subr.mxu1 %v336_v61  ;;  %v646_v28 = vld [vmem:[#allocation5 + $0x9c8] sm:$0xff]  ;;  %v648_v29 = vld [vmem:[#allocation5 + $0x9d8] sm:$0xff]  ;;  %v645_v30 = vld [vmem:[#allocation5 + $0x9c0] sm:$0xff]  ;;  %8081 = vst [vmem:[#allocation20_spill] sm:$0xff] %v5008_v56 }
  0x99   : > { %860 = vmatpush1.msra.mxu0 %v333_v62  ;;  %931 = vmatpush1.msra.mxu1 %v335_v63  ;;  %v647_v31 = vld [vmem:[#allocation5 + $0x9d0] sm:$0xff]  ;;  %v633_v32 = vld [vmem:[#allocation5 + $0x960] sm:$0xff]  ;;  %v632_v34 = vld [vmem:[#allocation5 + $0x958] sm:$0xff]  ;;  %v5012_v62 = vsub.s32 0, %v5005_v47 }
  0x9a   : > { %861 = vmatprep.subr.mxu0 %v737_v0  ;;  %932 = vmatprep.subr.mxu1 %v739_v1  ;;  %v635_v33 = vld [vmem:[#allocation5 + $0x970] sm:$0xff]  ;;  %v634_v35 = vld [vmem:[#allocation5 + $0x968] sm:$0xff]  ;;  %v620_v36 = vld [vmem:[#allocation5 + $0x8f8] sm:$0xff] }
  0x9b   : > { %862 = vmatpush2.msra.mxu0 %v736_v2  ;;  %933 = vmatpush2.msra.mxu1 %v738_v3  ;;  %v622_v37 = vld [vmem:[#allocation5 + $0x908] sm:$0xff]  ;;  %v619_v39 = vld [vmem:[#allocation5 + $0x8f0] sm:$0xff]  ;;  %v621_v40 = vld [vmem:[#allocation5 + $0x900] sm:$0xff] }
  0x9c   : > { %863 = vmatprep.subr.mxu0 %v724_v4  ;;  %934 = vmatprep.subr.mxu1 %v726_v5  ;;  %v607_v41 = vld [vmem:[#allocation5 + $0x890] sm:$0xff]  ;;  %v609_v42 = vld [vmem:[#allocation5 + $0x8a0] sm:$0xff]  ;;  %v606_v43 = vld [vmem:[#allocation5 + $0x888] sm:$0xff] }
  0x9d   : > { %864 = vmatpush2.msra.mxu0 %v723_v6  ;;  %935 = vmatpush2.msra.mxu1 %v725_v7  ;;  %v608_v44 = vld [vmem:[#allocation5 + $0x898] sm:$0xff]  ;;  %v594_v45 = vld [vmem:[#allocation5 + $0x828] sm:$0xff]  ;;  %v593_v48 = vld [vmem:[#allocation5 + $0x820] sm:$0xff] }
  0x9e   : > { %865 = vmatprep.subr.mxu0 %v711_v8  ;;  %936 = vmatprep.subr.mxu1 %v713_v9  ;;  %v596_v46 = vld [vmem:[#allocation5 + $0x838] sm:$0xff]  ;;  %v595_v49 = vld [vmem:[#allocation5 + $0x830] sm:$0xff]  ;;  %v581_v50 = vld [vmem:[#allocation5 + $0x7c0] sm:$0xff] }
  0x9f   : > { %866 = vmatpush2.msra.mxu0 %v710_v10  ;;  %937 = vmatpush2.msra.mxu1 %v712_v11  ;;  %v583_v51 = vld [vmem:[#allocation5 + $0x7d0] sm:$0xff]  ;;  %v580_v52 = vld [vmem:[#allocation5 + $0x7b8] sm:$0xff]  ;;  %v582_v53 = vld [vmem:[#allocation5 + $0x7c8] sm:$0xff] }
  0xa0   : > { %867 = vmatprep.subr.mxu0 %v698_v12  ;;  %938 = vmatprep.subr.mxu1 %v700_v13  ;;  %v568_v54 = vld [vmem:[#allocation5 + $0x758] sm:$0xff]  ;;  %v570_v55 = vld [vmem:[#allocation5 + $0x768] sm:$0xff]  ;;  %v567_v57 = vld [vmem:[#allocation5 + $0x750] sm:$0xff] }
  0xa1   : > { %868 = vmatpush2.msra.mxu0 %v697_v14  ;;  %939 = vmatpush2.msra.mxu1 %v699_v15  ;;  %v569_v58 = vld [vmem:[#allocation5 + $0x760] sm:$0xff]  ;;  %v332_v59 = vld [vmem:[%s4990_s1] sm:$0x3]  ;;  %v555_v60 = vld [vmem:[#allocation5 + $0x6f0] sm:$0xff] }
  0xa2   : > { %869 = vmatprep.subr.mxu0 %v685_v16  ;;  %940 = vmatprep.subr.mxu1 %v687_v17  ;;  %v557_v61 = vld [vmem:[#allocation5 + $0x700] sm:$0xff]  ;;  %v554_v63 = vld [vmem:[#allocation5 + $0x6e8] sm:$0xff]  ;;  %v556_v0 = vld [vmem:[#allocation5 + $0x6f8] sm:$0xff]  ;;  %v5015_v3 = vrot.slane %v332_v59, %v5008_v56  ;;  %v5018_v6 = vrot.slane %v332_v59, %v5012_v62 }
  0xa3   : > { %870 = vmatpush2.msra.mxu0 %v684_v18  ;;  %941 = vmatpush2.msra.mxu1 %v686_v19  ;;  %v542_v1 = vld [vmem:[#allocation5 + $0x688] sm:$0xff]  ;;  %v544_v2 = vld [vmem:[#allocation5 + $0x698] sm:$0xff]  ;;  %v541_v4 = vld [vmem:[#allocation5 + $0x680] sm:$0xff] }
  0xa4   : > { %871 = vmatprep.subr.mxu0 %v672_v20  ;;  %942 = vmatprep.subr.mxu1 %v674_v21  ;;  %v543_v5 = vld [vmem:[#allocation5 + $0x690] sm:$0xff]  ;;  %v533_v7 = vld [vmem:[#allocation5 + $0x640] sm:$0xff]  ;;  %v532_v9 = vld [vmem:[#allocation5 + $0x638] sm:$0xff] }
  0xa5   : > { %872 = vmatpush2.msra.mxu0 %v671_v22  ;;  %943 = vmatpush2.msra.mxu1 %v673_v23  ;;  %v535_v8 = vld [vmem:[#allocation5 + $0x650] sm:$0xff]  ;;  %v534_v10 = vld [vmem:[#allocation5 + $0x648] sm:$0xff]  ;;  %v520_v11 = vld [vmem:[#allocation5 + $0x5d8] sm:$0xff] }
  0xa6   : > { %873 = vmatprep.subr.mxu0 %v659_v24  ;;  %944 = vmatprep.subr.mxu1 %v661_v25  ;;  %v522_v12 = vld [vmem:[#allocation5 + $0x5e8] sm:$0xff]  ;;  %v519_v13 = vld [vmem:[#allocation5 + $0x5d0] sm:$0xff]  ;;  %v521_v14 = vld [vmem:[#allocation5 + $0x5e0] sm:$0xff] }
  0xa7   : > { %874 = vmatpush2.msra.mxu0 %v658_v26  ;;  %945 = vmatpush2.msra.mxu1 %v660_v27  ;;  %v507_v15 = vld [vmem:[#allocation5 + $0x570] sm:$0xff]  ;;  %v509_v16 = vld [vmem:[#allocation5 + $0x580] sm:$0xff]  ;;  %v506_v17 = vld [vmem:[#allocation5 + $0x568] sm:$0xff] }
  0xa8   : > { %875 = vmatprep.subr.mxu0 %v646_v28  ;;  %946 = vmatprep.subr.mxu1 %v648_v29  ;;  %v508_v18 = vld [vmem:[#allocation5 + $0x578] sm:$0xff]  ;;  %v494_v19 = vld [vmem:[#allocation5 + $0x508] sm:$0xff]  ;;  %v493_v21 = vld [vmem:[#allocation5 + $0x500] sm:$0xff] }
  0xa9   : > { %876 = vmatpush2.msra.mxu0 %v645_v30  ;;  %947 = vmatpush2.msra.mxu1 %v647_v31  ;;  %v496_v20 = vld [vmem:[#allocation5 + $0x518] sm:$0xff]  ;;  %v495_v22 = vld [vmem:[#allocation5 + $0x510] sm:$0xff]  ;;  %v481_v23 = vld [vmem:[#allocation5 + $0x4a0] sm:$0xff] }
  0xaa   : > { %877 = vmatprep.subr.mxu0 %v633_v32  ;;  %948 = vmatprep.subr.mxu1 %v635_v33  ;;  %v483_v24 = vld [vmem:[#allocation5 + $0x4b0] sm:$0xff]  ;;  %v480_v25 = vld [vmem:[#allocation5 + $0x498] sm:$0xff]  ;;  %v482_v26 = vld [vmem:[#allocation5 + $0x4a8] sm:$0xff] }
  0xab   : > { %878 = vmatpush2.msra.mxu0 %v632_v34  ;;  %949 = vmatpush2.msra.mxu1 %v634_v35  ;;  %v468_v27 = vld [vmem:[#allocation5 + $0x438] sm:$0xff]  ;;  %v470_v28 = vld [vmem:[#allocation5 + $0x448] sm:$0xff]  ;;  %v467_v29 = vld [vmem:[#allocation5 + $0x430] sm:$0xff] }
  0xac   : > { %879 = vmatprep.subr.mxu0 %v620_v36  ;;  %950 = vmatprep.subr.mxu1 %v622_v37  ;;  %v469_v30 = vld [vmem:[#allocation5 + $0x440] sm:$0xff]  ;;  %v455_v31 = vld [vmem:[#allocation5 + $0x3d0] sm:$0xff]  ;;  %v454_v33 = vld [vmem:[#allocation5 + $0x3c8] sm:$0xff] }
  0xad   : > { %880 = vmatpush2.msra.mxu0 %v619_v39  ;;  %951 = vmatpush2.msra.mxu1 %v621_v40  ;;  %v457_v32 = vld [vmem:[#allocation5 + $0x3e0] sm:$0xff]  ;;  %v456_v34 = vld [vmem:[#allocation5 + $0x3d8] sm:$0xff]  ;;  %v442_v35 = vld [vmem:[#allocation5 + $0x368] sm:$0xff] }
  0xae   : > { %881 = vmatprep.subr.mxu0 %v607_v41  ;;  %952 = vmatprep.subr.mxu1 %v609_v42  ;;  %v444_v36 = vld [vmem:[#allocation5 + $0x378] sm:$0xff]  ;;  %v441_v37 = vld [vmem:[#allocation5 + $0x360] sm:$0xff]  ;;  %v443_v39 = vld [vmem:[#allocation5 + $0x370] sm:$0xff] }
  0xaf   : > { %882 = vmatpush2.msra.mxu0 %v606_v43  ;;  %953 = vmatpush2.msra.mxu1 %v608_v44  ;;  %v429_v40 = vld [vmem:[#allocation5 + $0x300] sm:$0xff]  ;;  %v431_v41 = vld [vmem:[#allocation5 + $0x310] sm:$0xff]  ;;  %v428_v42 = vld [vmem:[#allocation5 + $0x2f8] sm:$0xff] }
  0xb0   : > { %883 = vmatprep.subr.mxu0 %v594_v45  ;;  %954 = vmatprep.subr.mxu1 %v596_v46  ;;  %v430_v43 = vld [vmem:[#allocation5 + $0x308] sm:$0xff]  ;;  %v416_v44 = vld [vmem:[#allocation5 + $0x298] sm:$0xff]  ;;  %v415_v46 = vld [vmem:[#allocation5 + $0x290] sm:$0xff] }
  0xb1   : > { %884 = vmatpush2.msra.mxu0 %v593_v48  ;;  %955 = vmatpush2.msra.mxu1 %v595_v49  ;;  %v418_v45 = vld [vmem:[#allocation5 + $0x2a8] sm:$0xff]  ;;  %v417_v48 = vld [vmem:[#allocation5 + $0x2a0] sm:$0xff]  ;;  %v403_v49 = vld [vmem:[#allocation5 + $0x230] sm:$0xff] }
  0xb2   : > { %885 = vmatprep.subr.mxu0 %v581_v50  ;;  %956 = vmatprep.subr.mxu1 %v583_v51  ;;  %v405_v50 = vld [vmem:[#allocation5 + $0x240] sm:$0xff]  ;;  %v402_v51 = vld [vmem:[#allocation5 + $0x228] sm:$0xff]  ;;  %v379_v59 = vld [vmem:[#allocation5 + $0x170] sm:$0xff] }
  0xb3   : > { %886 = vmatpush2.msra.mxu0 %v580_v52  ;;  %957 = vmatpush2.msra.mxu1 %v582_v53  ;;  %v404_v52 = vld [vmem:[#allocation5 + $0x238] sm:$0xff]  ;;  %v390_v53 = vld [vmem:[#allocation5 + $0x1c8] sm:$0xff] }
  0xb4   : > { %887 = vmatprep.subr.mxu0 %v568_v54  ;;  %958 = vmatprep.subr.mxu1 %v570_v55  ;;  %v392_v54 = vld [vmem:[#allocation5 + $0x1d8] sm:$0xff]  ;;  %v389_v55 = vld [vmem:[#allocation5 + $0x1c0] sm:$0xff] }
  0xb5   : > { %888 = vmatpush2.msra.mxu0 %v567_v57  ;;  %959 = vmatpush2.msra.mxu1 %v569_v58  ;;  %v391_v57 = vld [vmem:[#allocation5 + $0x1d0] sm:$0xff]  ;;  %v377_v58 = vld [vmem:[#allocation5 + $0x160] sm:$0xff] }
  0xb6   : > { %889 = vmatprep.subr.mxu0 %v555_v60  ;;  %960 = vmatprep.subr.mxu1 %v557_v61  ;;  %v376_v60 = vld [vmem:[#allocation5 + $0x158] sm:$0xff]  ;;  %v378_v61 = vld [vmem:[#allocation5 + $0x168] sm:$0xff] }
  0xb7   : > { %890 = vmatpush2.msra.mxu0 %v554_v63  ;;  %961 = vmatpush2.msra.mxu1 %v556_v0  ;;  %v364_v63 = vld [vmem:[#allocation5 + $0xf8] sm:$0xff]  ;;  %v366_v0 = vld [vmem:[#allocation5 + $0x108] sm:$0xff] }
  0xb8   : > { %891 = vmatprep.subr.mxu0 %v542_v1  ;;  %962 = vmatprep.subr.mxu1 %v544_v2  ;;  %v363_v1 = vld [vmem:[#allocation5 + $0xf0] sm:$0xff]  ;;  %v365_v2 = vld [vmem:[#allocation5 + $0x100] sm:$0xff] }
  0xb9   : > { %892 = vmatpush2.msra.mxu0 %v541_v4  ;;  %893 = vmatprep.mubr.f32.mxu0 %v5015_v3  ;;  %v351_v4 = vld [vmem:[#allocation5 + $0x90] sm:$0xff] }
  0xba   : > { %963 = vmatpush2.msra.mxu1 %v543_v5  ;;  %964 = vmatprep.mubr.f32.mxu1 %v5015_v3  ;;  %v353_v5 = vld [vmem:[#allocation5 + $0xa0] sm:$0xff] }
  0xbb   : > { %894 = vmatmul.mubr.f32.vlgmr.msra.gmra.mxu0 %v5018_v6  ;;  %965 = vmatmul.mubr.f32.vlgmr.msra.gmra.mxu1 %v5018_v6 }
  0xbc   : > { %971 = vmatprep.subr.mxu0 %v533_v7  ;;  %1042 = vmatprep.subr.mxu1 %v535_v8  ;;  %v350_v7 = vld [vmem:[#allocation5 + $0x88] sm:$0xff]  ;;  %v352_v8 = vld [vmem:[#allocation5 + $0x98] sm:$0xff] }
  0xbd   : > { %972 = vmatpush1.msra.mxu0 %v532_v9  ;;  %1043 = vmatpush1.msra.mxu1 %v534_v10  ;;  %v338_v9 = vld [vmem:[#allocation5 + $0x28] sm:$0xff]  ;;  %v340_v10 = vld [vmem:[#allocation5 + $0x38] sm:$0xff] }
  0xbe   : > { %973 = vmatprep.subr.mxu0 %v520_v11  ;;  %1044 = vmatprep.subr.mxu1 %v522_v12  ;;  %v337_v11 = vld [vmem:[#allocation5 + $0x20] sm:$0xff]  ;;  %v339_v12 = vld [vmem:[#allocation5 + $0x30] sm:$0xff] }
  0xbf   : > { %974 = vmatpush1.msra.mxu0 %v519_v13  ;;  %1045 = vmatpush1.msra.mxu1 %v521_v14  ;;  %v741_v13 = vld [vmem:[#allocation5 + $0xcc0] sm:$0xff]  ;;  %v743_v14 = vld [vmem:[#allocation5 + $0xcd0] sm:$0xff] }
  0xc0   : > { %975 = vmatprep.subr.mxu0 %v507_v15  ;;  %1046 = vmatprep.subr.mxu1 %v509_v16  ;;  %v740_v15 = vld [vmem:[#allocation5 + $0xcb8] sm:$0xff]  ;;  %v742_v16 = vld [vmem:[#allocation5 + $0xcc8] sm:$0xff] }
  0xc1   : > { %976 = vmatpush1.msra.mxu0 %v506_v17  ;;  %1047 = vmatpush1.msra.mxu1 %v508_v18  ;;  %v728_v17 = vld [vmem:[#allocation5 + $0xc58] sm:$0xff]  ;;  %v730_v18 = vld [vmem:[#allocation5 + $0xc68] sm:$0xff] }
  0xc2   : > { %977 = vmatprep.subr.mxu0 %v494_v19  ;;  %1048 = vmatprep.subr.mxu1 %v496_v20  ;;  %v727_v19 = vld [vmem:[#allocation5 + $0xc50] sm:$0xff]  ;;  %v729_v20 = vld [vmem:[#allocation5 + $0xc60] sm:$0xff] }
  0xc3   : > { %978 = vmatpush1.msra.mxu0 %v493_v21  ;;  %1049 = vmatpush1.msra.mxu1 %v495_v22  ;;  %v715_v21 = vld [vmem:[#allocation5 + $0xbf0] sm:$0xff]  ;;  %v717_v22 = vld [vmem:[#allocation5 + $0xc00] sm:$0xff] }
  0xc4   : > { %979 = vmatprep.subr.mxu0 %v481_v23  ;;  %1050 = vmatprep.subr.mxu1 %v483_v24  ;;  %v714_v23 = vld [vmem:[#allocation5 + $0xbe8] sm:$0xff]  ;;  %v716_v24 = vld [vmem:[#allocation5 + $0xbf8] sm:$0xff] }
  0xc5   : > { %980 = vmatpush1.msra.mxu0 %v480_v25  ;;  %1051 = vmatpush1.msra.mxu1 %v482_v26  ;;  %v702_v25 = vld [vmem:[#allocation5 + $0xb88] sm:$0xff]  ;;  %v704_v26 = vld [vmem:[#allocation5 + $0xb98] sm:$0xff] }
  0xc6   : > { %981 = vmatprep.subr.mxu0 %v468_v27  ;;  %1052 = vmatprep.subr.mxu1 %v470_v28  ;;  %v701_v27 = vld [vmem:[#allocation5 + $0xb80] sm:$0xff]  ;;  %v703_v28 = vld [vmem:[#allocation5 + $0xb90] sm:$0xff] }
  0xc7   : > { %982 = vmatpush1.msra.mxu0 %v467_v29  ;;  %1053 = vmatpush1.msra.mxu1 %v469_v30  ;;  %v689_v29 = vld [vmem:[#allocation5 + $0xb20] sm:$0xff]  ;;  %v691_v30 = vld [vmem:[#allocation5 + $0xb30] sm:$0xff] }
  0xc8   : > { %983 = vmatprep.subr.mxu0 %v455_v31  ;;  %1054 = vmatprep.subr.mxu1 %v457_v32  ;;  %v688_v31 = vld [vmem:[#allocation5 + $0xb18] sm:$0xff]  ;;  %v690_v32 = vld [vmem:[#allocation5 + $0xb28] sm:$0xff] }
  0xc9   : > { %984 = vmatpush1.msra.mxu0 %v454_v33  ;;  %1055 = vmatpush1.msra.mxu1 %v456_v34  ;;  %v676_v33 = vld [vmem:[#allocation5 + $0xab8] sm:$0xff]  ;;  %v678_v34 = vld [vmem:[#allocation5 + $0xac8] sm:$0xff] }
  0xca   : > { %985 = vmatprep.subr.mxu0 %v442_v35  ;;  %1056 = vmatprep.subr.mxu1 %v444_v36  ;;  %v675_v35 = vld [vmem:[#allocation5 + $0xab0] sm:$0xff]  ;;  %v677_v36 = vld [vmem:[#allocation5 + $0xac0] sm:$0xff] }
  0xcb   : > { %986 = vmatpush1.msra.mxu0 %v441_v37  ;;  %1057 = vmatpush1.msra.mxu1 %v443_v39  ;;  %v663_v37 = vld [vmem:[#allocation5 + $0xa50] sm:$0xff]  ;;  %v665_v39 = vld [vmem:[#allocation5 + $0xa60] sm:$0xff] }
  0xcc   : > { %987 = vmatprep.subr.mxu0 %v429_v40  ;;  %1058 = vmatprep.subr.mxu1 %v431_v41  ;;  %v662_v40 = vld [vmem:[#allocation5 + $0xa48] sm:$0xff]  ;;  %v664_v41 = vld [vmem:[#allocation5 + $0xa58] sm:$0xff] }
  0xcd   : > { %988 = vmatpush1.msra.mxu0 %v428_v42  ;;  %1059 = vmatpush1.msra.mxu1 %v430_v43  ;;  %v650_v42 = vld [vmem:[#allocation5 + $0x9e8] sm:$0xff]  ;;  %v652_v43 = vld [vmem:[#allocation5 + $0x9f8] sm:$0xff] }
  0xce   : > { %989 = vmatprep.subr.mxu0 %v416_v44  ;;  %1060 = vmatprep.subr.mxu1 %v418_v45  ;;  %v649_v44 = vld [vmem:[#allocation5 + $0x9e0] sm:$0xff]  ;;  %v651_v45 = vld [vmem:[#allocation5 + $0x9f0] sm:$0xff] }
  0xcf   : > { %990 = vmatpush1.msra.mxu0 %v415_v46  ;;  %1061 = vmatpush1.msra.mxu1 %v417_v48  ;;  %v637_v46 = vld [vmem:[#allocation5 + $0x980] sm:$0xff]  ;;  %v639_v48 = vld [vmem:[#allocation5 + $0x990] sm:$0xff] }
  0xd0   : > { %991 = vmatprep.subr.mxu0 %v403_v49  ;;  %1062 = vmatprep.subr.mxu1 %v405_v50  ;;  %v636_v49 = vld [vmem:[#allocation5 + $0x978] sm:$0xff]  ;;  %v638_v50 = vld [vmem:[#allocation5 + $0x988] sm:$0xff] }
  0xd1   : > { %992 = vmatpush1.msra.mxu0 %v402_v51  ;;  %1063 = vmatpush1.msra.mxu1 %v404_v52  ;;  %v624_v51 = vld [vmem:[#allocation5 + $0x918] sm:$0xff]  ;;  %v626_v52 = vld [vmem:[#allocation5 + $0x928] sm:$0xff] }
  0xd2   : > { %993 = vmatprep.subr.mxu0 %v390_v53  ;;  %1064 = vmatprep.subr.mxu1 %v392_v54  ;;  %v623_v53 = vld [vmem:[#allocation5 + $0x910] sm:$0xff]  ;;  %v625_v54 = vld [vmem:[#allocation5 + $0x920] sm:$0xff] }
  0xd3   : > { %994 = vmatpush1.msra.mxu0 %v389_v55  ;;  %1065 = vmatpush1.msra.mxu1 %v391_v57  ;;  %v611_v55 = vld [vmem:[#allocation5 + $0x8b0] sm:$0xff]  ;;  %v613_v57 = vld [vmem:[#allocation5 + $0x8c0] sm:$0xff] }
  0xd4   : > { %995 = vmatprep.subr.mxu0 %v377_v58  ;;  %1066 = vmatprep.subr.mxu1 %v379_v59  ;;  %v610_v58 = vld [vmem:[#allocation5 + $0x8a8] sm:$0xff]  ;;  %v612_v59 = vld [vmem:[#allocation5 + $0x8b8] sm:$0xff] }
  0xd5   : > { %996 = vmatpush1.msra.mxu0 %v376_v60  ;;  %1067 = vmatpush1.msra.mxu1 %v378_v61  ;;  %v598_v60 = vld [vmem:[#allocation5 + $0x848] sm:$0xff]  ;;  %v600_v61 = vld [vmem:[#allocation5 + $0x858] sm:$0xff] }
  0xd6   : > { %997 = vmatprep.subr.mxu0 %v364_v63  ;;  %1068 = vmatprep.subr.mxu1 %v366_v0  ;;  %v597_v63 = vld [vmem:[#allocation5 + $0x840] sm:$0xff]  ;;  %v599_v0 = vld [vmem:[#allocation5 + $0x850] sm:$0xff] }
  0xd7   : > { %998 = vmatpush1.msra.mxu0 %v363_v1  ;;  %1069 = vmatpush1.msra.mxu1 %v365_v2  ;;  %v585_v1 = vld [vmem:[#allocation5 + $0x7e0] sm:$0xff]  ;;  %v587_v2 = vld [vmem:[#allocation5 + $0x7f0] sm:$0xff] }
  0xd8   : > { %999 = vmatprep.subr.mxu0 %v351_v4  ;;  %1070 = vmatprep.subr.mxu1 %v353_v5  ;;  %v584_v4 = vld [vmem:[#allocation5 + $0x7d8] sm:$0xff]  ;;  %v586_v5 = vld [vmem:[#allocation5 + $0x7e8] sm:$0xff] }
  0xd9   : > { %1000 = vmatpush1.msra.mxu0 %v350_v7  ;;  %1071 = vmatpush1.msra.mxu1 %v352_v8  ;;  %v572_v7 = vld [vmem:[#allocation5 + $0x778] sm:$0xff]  ;;  %v574_v8 = vld [vmem:[#allocation5 + $0x788] sm:$0xff] }
  0xda   : > { %1001 = vmatprep.subr.mxu0 %v338_v9  ;;  %1072 = vmatprep.subr.mxu1 %v340_v10  ;;  %v571_v9 = vld [vmem:[#allocation5 + $0x770] sm:$0xff]  ;;  %v573_v10 = vld [vmem:[#allocation5 + $0x780] sm:$0xff] }
  0xdb   : > { %1002 = vmatpush1.msra.mxu0 %v337_v11  ;;  %1073 = vmatpush1.msra.mxu1 %v339_v12  ;;  %v559_v11 = vld [vmem:[#allocation5 + $0x710] sm:$0xff]  ;;  %v561_v12 = vld [vmem:[#allocation5 + $0x720] sm:$0xff] }
  0xdc   : > { %1003 = vmatprep.subr.mxu0 %v741_v13  ;;  %1074 = vmatprep.subr.mxu1 %v743_v14  ;;  %v558_v13 = vld [vmem:[#allocation5 + $0x708] sm:$0xff]  ;;  %v560_v14 = vld [vmem:[#allocation5 + $0x718] sm:$0xff] }
  0xdd   : > { %1004 = vmatpush2.msra.mxu0 %v740_v15  ;;  %1075 = vmatpush2.msra.mxu1 %v742_v16  ;;  %v546_v15 = vld [vmem:[#allocation5 + $0x6a8] sm:$0xff]  ;;  %v548_v16 = vld [vmem:[#allocation5 + $0x6b8] sm:$0xff] }
  0xde   : > { %1005 = vmatprep.subr.mxu0 %v728_v17  ;;  %1076 = vmatprep.subr.mxu1 %v730_v18  ;;  %v545_v17 = vld [vmem:[#allocation5 + $0x6a0] sm:$0xff]  ;;  %v547_v18 = vld [vmem:[#allocation5 + $0x6b0] sm:$0xff] }
  0xdf   : > { %1006 = vmatpush2.msra.mxu0 %v727_v19  ;;  %1077 = vmatpush2.msra.mxu1 %v729_v20  ;;  %v537_v19 = vld [vmem:[#allocation5 + $0x660] sm:$0xff]  ;;  %v539_v20 = vld [vmem:[#allocation5 + $0x670] sm:$0xff] }
  0xe0   : > { %1007 = vmatprep.subr.mxu0 %v715_v21  ;;  %1078 = vmatprep.subr.mxu1 %v717_v22  ;;  %v536_v21 = vld [vmem:[#allocation5 + $0x658] sm:$0xff]  ;;  %v538_v22 = vld [vmem:[#allocation5 + $0x668] sm:$0xff] }
  0xe1   : > { %1008 = vmatpush2.msra.mxu0 %v714_v23  ;;  %1079 = vmatpush2.msra.mxu1 %v716_v24  ;;  %v524_v23 = vld [vmem:[#allocation5 + $0x5f8] sm:$0xff]  ;;  %v526_v24 = vld [vmem:[#allocation5 + $0x608] sm:$0xff] }
  0xe2   : > { %1009 = vmatprep.subr.mxu0 %v702_v25  ;;  %1080 = vmatprep.subr.mxu1 %v704_v26  ;;  %v523_v25 = vld [vmem:[#allocation5 + $0x5f0] sm:$0xff]  ;;  %v525_v26 = vld [vmem:[#allocation5 + $0x600] sm:$0xff] }
  0xe3   : > { %1010 = vmatpush2.msra.mxu0 %v701_v27  ;;  %1081 = vmatpush2.msra.mxu1 %v703_v28  ;;  %v511_v27 = vld [vmem:[#allocation5 + $0x590] sm:$0xff]  ;;  %v513_v28 = vld [vmem:[#allocation5 + $0x5a0] sm:$0xff] }
  0xe4   : > { %1011 = vmatprep.subr.mxu0 %v689_v29  ;;  %1082 = vmatprep.subr.mxu1 %v691_v30  ;;  %v510_v29 = vld [vmem:[#allocation5 + $0x588] sm:$0xff]  ;;  %v512_v30 = vld [vmem:[#allocation5 + $0x598] sm:$0xff] }
  0xe5   : > { %1012 = vmatpush2.msra.mxu0 %v688_v31  ;;  %1083 = vmatpush2.msra.mxu1 %v690_v32  ;;  %v498_v31 = vld [vmem:[#allocation5 + $0x528] sm:$0xff]  ;;  %v500_v32 = vld [vmem:[#allocation5 + $0x538] sm:$0xff] }
  0xe6   : > { %1013 = vmatprep.subr.mxu0 %v676_v33  ;;  %1084 = vmatprep.subr.mxu1 %v678_v34  ;;  %v497_v33 = vld [vmem:[#allocation5 + $0x520] sm:$0xff]  ;;  %v499_v34 = vld [vmem:[#allocation5 + $0x530] sm:$0xff] }
  0xe7   : > { %1014 = vmatpush2.msra.mxu0 %v675_v35  ;;  %1085 = vmatpush2.msra.mxu1 %v677_v36  ;;  %v485_v35 = vld [vmem:[#allocation5 + $0x4c0] sm:$0xff]  ;;  %v487_v36 = vld [vmem:[#allocation5 + $0x4d0] sm:$0xff] }
  0xe8   : > { %1015 = vmatprep.subr.mxu0 %v663_v37  ;;  %1086 = vmatprep.subr.mxu1 %v665_v39  ;;  %v484_v37 = vld [vmem:[#allocation5 + $0x4b8] sm:$0xff]  ;;  %v486_v39 = vld [vmem:[#allocation5 + $0x4c8] sm:$0xff] }
  0xe9   : > { %1016 = vmatpush2.msra.mxu0 %v662_v40  ;;  %1087 = vmatpush2.msra.mxu1 %v664_v41  ;;  %v472_v40 = vld [vmem:[#allocation5 + $0x458] sm:$0xff]  ;;  %v474_v41 = vld [vmem:[#allocation5 + $0x468] sm:$0xff] }
  0xea   : > { %1017 = vmatprep.subr.mxu0 %v650_v42  ;;  %1088 = vmatprep.subr.mxu1 %v652_v43  ;;  %v471_v42 = vld [vmem:[#allocation5 + $0x450] sm:$0xff]  ;;  %v473_v43 = vld [vmem:[#allocation5 + $0x460] sm:$0xff] }
  0xeb   : > { %1018 = vmatpush2.msra.mxu0 %v649_v44  ;;  %1089 = vmatpush2.msra.mxu1 %v651_v45  ;;  %v459_v44 = vld [vmem:[#allocation5 + $0x3f0] sm:$0xff]  ;;  %v461_v45 = vld [vmem:[#allocation5 + $0x400] sm:$0xff] }
  0xec   : > { %1019 = vmatprep.subr.mxu0 %v637_v46  ;;  %1090 = vmatprep.subr.mxu1 %v639_v48  ;;  %v458_v46 = vld [vmem:[#allocation5 + $0x3e8] sm:$0xff]  ;;  %v460_v48 = vld [vmem:[#allocation5 + $0x3f8] sm:$0xff] }
  0xed   : > { %1020 = vmatpush2.msra.mxu0 %v636_v49  ;;  %1091 = vmatpush2.msra.mxu1 %v638_v50  ;;  %v446_v49 = vld [vmem:[#allocation5 + $0x388] sm:$0xff]  ;;  %v448_v50 = vld [vmem:[#allocation5 + $0x398] sm:$0xff] }
  0xee   : > { %1021 = vmatprep.subr.mxu0 %v624_v51  ;;  %1092 = vmatprep.subr.mxu1 %v626_v52  ;;  %v445_v51 = vld [vmem:[#allocation5 + $0x380] sm:$0xff]  ;;  %v447_v52 = vld [vmem:[#allocation5 + $0x390] sm:$0xff] }
  0xef   : > { %1022 = vmatpush2.msra.mxu0 %v623_v53  ;;  %1093 = vmatpush2.msra.mxu1 %v625_v54  ;;  %v433_v53 = vld [vmem:[#allocation5 + $0x320] sm:$0xff]  ;;  %v435_v54 = vld [vmem:[#allocation5 + $0x330] sm:$0xff] }
  0xf0   : > { %1023 = vmatprep.subr.mxu0 %v611_v55  ;;  %1094 = vmatprep.subr.mxu1 %v613_v57  ;;  %v432_v55 = vld [vmem:[#allocation5 + $0x318] sm:$0xff]  ;;  %v434_v57 = vld [vmem:[#allocation5 + $0x328] sm:$0xff] }
  0xf1   : > { %1024 = vmatpush2.msra.mxu0 %v610_v58  ;;  %1095 = vmatpush2.msra.mxu1 %v612_v59  ;;  %v420_v58 = vld [vmem:[#allocation5 + $0x2b8] sm:$0xff]  ;;  %v422_v59 = vld [vmem:[#allocation5 + $0x2c8] sm:$0xff] }
  0xf2   : > { %1025 = vmatprep.subr.mxu0 %v598_v60  ;;  %1096 = vmatprep.subr.mxu1 %v600_v61  ;;  %v419_v60 = vld [vmem:[#allocation5 + $0x2b0] sm:$0xff]  ;;  %v421_v61 = vld [vmem:[#allocation5 + $0x2c0] sm:$0xff] }
  0xf3   : > { %1026 = vmatpush2.msra.mxu0 %v597_v63  ;;  %1097 = vmatpush2.msra.mxu1 %v599_v0  ;;  %v407_v63 = vld [vmem:[#allocation5 + $0x250] sm:$0xff]  ;;  %v409_v0 = vld [vmem:[#allocation5 + $0x260] sm:$0xff] }
  0xf4   : > { %1027 = vmatprep.subr.mxu0 %v585_v1  ;;  %1098 = vmatprep.subr.mxu1 %v587_v2  ;;  %v406_v1 = vld [vmem:[#allocation5 + $0x248] sm:$0xff]  ;;  %v408_v2 = vld [vmem:[#allocation5 + $0x258] sm:$0xff] }
  0xf5   : > { %1028 = vmatpush2.msra.mxu0 %v584_v4  ;;  %1099 = vmatpush2.msra.mxu1 %v586_v5  ;;  %v394_v4 = vld [vmem:[#allocation5 + $0x1e8] sm:$0xff]  ;;  %v396_v5 = vld [vmem:[#allocation5 + $0x1f8] sm:$0xff] }
  0xf6   : > { %1029 = vmatprep.subr.mxu0 %v572_v7  ;;  %1100 = vmatprep.subr.mxu1 %v574_v8  ;;  %v393_v7 = vld [vmem:[#allocation5 + $0x1e0] sm:$0xff]  ;;  %v395_v8 = vld [vmem:[#allocation5 + $0x1f0] sm:$0xff] }
  0xf7   : > { %1030 = vmatpush2.msra.mxu0 %v571_v9  ;;  %1101 = vmatpush2.msra.mxu1 %v573_v10  ;;  %v381_v9 = vld [vmem:[#allocation5 + $0x180] sm:$0xff]  ;;  %v383_v10 = vld [vmem:[#allocation5 + $0x190] sm:$0xff] }
  0xf8   : > { %1031 = vmatprep.subr.mxu0 %v559_v11  ;;  %1102 = vmatprep.subr.mxu1 %v561_v12  ;;  %v380_v11 = vld [vmem:[#allocation5 + $0x178] sm:$0xff]  ;;  %v382_v12 = vld [vmem:[#allocation5 + $0x188] sm:$0xff] }
  0xf9   : > { %1032 = vmatpush2.msra.mxu0 %v558_v13  ;;  %1103 = vmatpush2.msra.mxu1 %v560_v14  ;;  %v368_v13 = vld [vmem:[#allocation5 + $0x118] sm:$0xff]  ;;  %v370_v14 = vld [vmem:[#allocation5 + $0x128] sm:$0xff] }
  0xfa   : > { %1033 = vmatprep.subr.mxu0 %v546_v15  ;;  %1104 = vmatprep.subr.mxu1 %v548_v16  ;;  %v367_v15 = vld [vmem:[#allocation5 + $0x110] sm:$0xff]  ;;  %v369_v16 = vld [vmem:[#allocation5 + $0x120] sm:$0xff] }
  0xfb   : > { %1034 = vmatpush2.msra.mxu0 %v545_v17  ;;  %1035 = vmatprep.mubr.f32.mxu0 %v5015_v3  ;;  %v355_v17 = vld [vmem:[#allocation5 + $0xb0] sm:$0xff] }
  0xfc   : > { %1105 = vmatpush2.msra.mxu1 %v547_v18  ;;  %1106 = vmatprep.mubr.f32.mxu1 %v5015_v3  ;;  %v357_v18 = vld [vmem:[#allocation5 + $0xc0] sm:$0xff] }
  0xfd   : > { %1036 = vmatmul.mubr.f32.vlgmr.msra.gmra.mxu0 %v5018_v6  ;;  %1107 = vmatmul.mubr.f32.vlgmr.msra.gmra.mxu1 %v5018_v6 }
  0xfe   : > { %1113 = vmatprep.subr.mxu0 %v537_v19  ;;  %1184 = vmatprep.subr.mxu1 %v539_v20  ;;  %v354_v19 = vld [vmem:[#allocation5 + $0xa8] sm:$0xff]  ;;  %v356_v20 = vld [vmem:[#allocation5 + $0xb8] sm:$0xff] }
  0xff   : > { %1114 = vmatpush1.msra.mxu0 %v536_v21  ;;  %1185 = vmatpush1.msra.mxu1 %v538_v22  ;;  %v342_v21 = vld [vmem:[#allocation5 + $0x48] sm:$0xff]  ;;  %v344_v22 = vld [vmem:[#allocation5 + $0x58] sm:$0xff] }
 0x100   : > { %1115 = vmatprep.subr.mxu0 %v524_v23  ;;  %1186 = vmatprep.subr.mxu1 %v526_v24  ;;  %v341_v23 = vld [vmem:[#allocation5 + $0x40] sm:$0xff]  ;;  %v343_v24 = vld [vmem:[#allocation5 + $0x50] sm:$0xff] }
 0x101   : > { %1116 = vmatpush1.msra.mxu0 %v523_v25  ;;  %1187 = vmatpush1.msra.mxu1 %v525_v26  ;;  %v745_v25 = vld [vmem:[#allocation5 + $0xce0] sm:$0xff]  ;;  %v747_v26 = vld [vmem:[#allocation5 + $0xcf0] sm:$0xff] }
 0x102   : > { %1117 = vmatprep.subr.mxu0 %v511_v27  ;;  %1188 = vmatprep.subr.mxu1 %v513_v28  ;;  %v744_v27 = vld [vmem:[#allocation5 + $0xcd8] sm:$0xff]  ;;  %v746_v28 = vld [vmem:[#allocation5 + $0xce8] sm:$0xff] }
 0x103   : > { %1118 = vmatpush1.msra.mxu0 %v510_v29  ;;  %1189 = vmatpush1.msra.mxu1 %v512_v30  ;;  %v732_v29 = vld [vmem:[#allocation5 + $0xc78] sm:$0xff]  ;;  %v734_v30 = vld [vmem:[#allocation5 + $0xc88] sm:$0xff] }
 0x104   : > { %1119 = vmatprep.subr.mxu0 %v498_v31  ;;  %1190 = vmatprep.subr.mxu1 %v500_v32  ;;  %v731_v31 = vld [vmem:[#allocation5 + $0xc70] sm:$0xff]  ;;  %v733_v32 = vld [vmem:[#allocation5 + $0xc80] sm:$0xff] }
 0x105   : > { %1120 = vmatpush1.msra.mxu0 %v497_v33  ;;  %1191 = vmatpush1.msra.mxu1 %v499_v34  ;;  %v719_v33 = vld [vmem:[#allocation5 + $0xc10] sm:$0xff]  ;;  %v721_v34 = vld [vmem:[#allocation5 + $0xc20] sm:$0xff] }
 0x106   : > { %1121 = vmatprep.subr.mxu0 %v485_v35  ;;  %1192 = vmatprep.subr.mxu1 %v487_v36  ;;  %v718_v35 = vld [vmem:[#allocation5 + $0xc08] sm:$0xff]  ;;  %v720_v36 = vld [vmem:[#allocation5 + $0xc18] sm:$0xff] }
 0x107   : > { %1122 = vmatpush1.msra.mxu0 %v484_v37  ;;  %1193 = vmatpush1.msra.mxu1 %v486_v39  ;;  %v706_v37 = vld [vmem:[#allocation5 + $0xba8] sm:$0xff]  ;;  %v708_v39 = vld [vmem:[#allocation5 + $0xbb8] sm:$0xff] }
 0x108   : > { %1123 = vmatprep.subr.mxu0 %v472_v40  ;;  %1194 = vmatprep.subr.mxu1 %v474_v41  ;;  %v705_v40 = vld [vmem:[#allocation5 + $0xba0] sm:$0xff]  ;;  %v707_v41 = vld [vmem:[#allocation5 + $0xbb0] sm:$0xff] }
 0x109   : > { %1124 = vmatpush1.msra.mxu0 %v471_v42  ;;  %1195 = vmatpush1.msra.mxu1 %v473_v43  ;;  %v693_v42 = vld [vmem:[#allocation5 + $0xb40] sm:$0xff]  ;;  %v695_v43 = vld [vmem:[#allocation5 + $0xb50] sm:$0xff] }
 0x10a   : > { %1125 = vmatprep.subr.mxu0 %v459_v44  ;;  %1196 = vmatprep.subr.mxu1 %v461_v45  ;;  %v692_v44 = vld [vmem:[#allocation5 + $0xb38] sm:$0xff]  ;;  %v694_v45 = vld [vmem:[#allocation5 + $0xb48] sm:$0xff] }
 0x10b   : > { %1126 = vmatpush1.msra.mxu0 %v458_v46  ;;  %1197 = vmatpush1.msra.mxu1 %v460_v48  ;;  %v680_v46 = vld [vmem:[#allocation5 + $0xad8] sm:$0xff]  ;;  %v682_v48 = vld [vmem:[#allocation5 + $0xae8] sm:$0xff] }
 0x10c   : > { %1127 = vmatprep.subr.mxu0 %v446_v49  ;;  %1198 = vmatprep.subr.mxu1 %v448_v50  ;;  %v679_v49 = vld [vmem:[#allocation5 + $0xad0] sm:$0xff]  ;;  %v681_v50 = vld [vmem:[#allocation5 + $0xae0] sm:$0xff] }
 0x10d   : > { %1128 = vmatpush1.msra.mxu0 %v445_v51  ;;  %1199 = vmatpush1.msra.mxu1 %v447_v52  ;;  %v667_v51 = vld [vmem:[#allocation5 + $0xa70] sm:$0xff]  ;;  %v669_v52 = vld [vmem:[#allocation5 + $0xa80] sm:$0xff] }
 0x10e   : > { %1129 = vmatprep.subr.mxu0 %v433_v53  ;;  %1200 = vmatprep.subr.mxu1 %v435_v54  ;;  %v666_v53 = vld [vmem:[#allocation5 + $0xa68] sm:$0xff]  ;;  %v668_v54 = vld [vmem:[#allocation5 + $0xa78] sm:$0xff] }
 0x10f   : > { %1130 = vmatpush1.msra.mxu0 %v432_v55  ;;  %1201 = vmatpush1.msra.mxu1 %v434_v57  ;;  %v654_v55 = vld [vmem:[#allocation5 + $0xa08] sm:$0xff]  ;;  %v656_v57 = vld [vmem:[#allocation5 + $0xa18] sm:$0xff] }
 0x110   : > { %1131 = vmatprep.subr.mxu0 %v420_v58  ;;  %1202 = vmatprep.subr.mxu1 %v422_v59  ;;  %v653_v58 = vld [vmem:[#allocation5 + $0xa00] sm:$0xff]  ;;  %v655_v59 = vld [vmem:[#allocation5 + $0xa10] sm:$0xff] }
 0x111   : > { %1132 = vmatpush1.msra.mxu0 %v419_v60  ;;  %1203 = vmatpush1.msra.mxu1 %v421_v61  ;;  %v641_v60 = vld [vmem:[#allocation5 + $0x9a0] sm:$0xff]  ;;  %v643_v61 = vld [vmem:[#allocation5 + $0x9b0] sm:$0xff] }
 0x112   : > { %1133 = vmatprep.subr.mxu0 %v407_v63  ;;  %1204 = vmatprep.subr.mxu1 %v409_v0  ;;  %v640_v63 = vld [vmem:[#allocation5 + $0x998] sm:$0xff]  ;;  %v642_v0 = vld [vmem:[#allocation5 + $0x9a8] sm:$0xff] }
 0x113   : > { %1134 = vmatpush1.msra.mxu0 %v406_v1  ;;  %1205 = vmatpush1.msra.mxu1 %v408_v2  ;;  %v628_v1 = vld [vmem:[#allocation5 + $0x938] sm:$0xff]  ;;  %v630_v2 = vld [vmem:[#allocation5 + $0x948] sm:$0xff] }
 0x114   : > { %1135 = vmatprep.subr.mxu0 %v394_v4  ;;  %1206 = vmatprep.subr.mxu1 %v396_v5  ;;  %v627_v4 = vld [vmem:[#allocation5 + $0x930] sm:$0xff]  ;;  %v629_v5 = vld [vmem:[#allocation5 + $0x940] sm:$0xff] }
 0x115   : > { %1136 = vmatpush1.msra.mxu0 %v393_v7  ;;  %1207 = vmatpush1.msra.mxu1 %v395_v8  ;;  %v615_v7 = vld [vmem:[#allocation5 + $0x8d0] sm:$0xff]  ;;  %v617_v8 = vld [vmem:[#allocation5 + $0x8e0] sm:$0xff] }
 0x116   : > { %1137 = vmatprep.subr.mxu0 %v381_v9  ;;  %1208 = vmatprep.subr.mxu1 %v383_v10  ;;  %v614_v9 = vld [vmem:[#allocation5 + $0x8c8] sm:$0xff]  ;;  %v616_v10 = vld [vmem:[#allocation5 + $0x8d8] sm:$0xff] }
 0x117   : > { %1138 = vmatpush1.msra.mxu0 %v380_v11  ;;  %1209 = vmatpush1.msra.mxu1 %v382_v12  ;;  %v602_v11 = vld [vmem:[#allocation5 + $0x868] sm:$0xff]  ;;  %v604_v12 = vld [vmem:[#allocation5 + $0x878] sm:$0xff] }
 0x118   : > { %1139 = vmatprep.subr.mxu0 %v368_v13  ;;  %1210 = vmatprep.subr.mxu1 %v370_v14  ;;  %v601_v13 = vld [vmem:[#allocation5 + $0x860] sm:$0xff]  ;;  %v603_v14 = vld [vmem:[#allocation5 + $0x870] sm:$0xff] }
 0x119   : > { %1140 = vmatpush1.msra.mxu0 %v367_v15  ;;  %1211 = vmatpush1.msra.mxu1 %v369_v16  ;;  %v589_v15 = vld [vmem:[#allocation5 + $0x800] sm:$0xff]  ;;  %v591_v16 = vld [vmem:[#allocation5 + $0x810] sm:$0xff] }
 0x11a   : > { %1141 = vmatprep.subr.mxu0 %v355_v17  ;;  %1212 = vmatprep.subr.mxu1 %v357_v18  ;;  %v588_v17 = vld [vmem:[#allocation5 + $0x7f8] sm:$0xff]  ;;  %v590_v18 = vld [vmem:[#allocation5 + $0x808] sm:$0xff] }
 0x11b   : > { %1142 = vmatpush1.msra.mxu0 %v354_v19  ;;  %1213 = vmatpush1.msra.mxu1 %v356_v20  ;;  %v576_v19 = vld [vmem:[#allocation5 + $0x798] sm:$0xff]  ;;  %v578_v20 = vld [vmem:[#allocation5 + $0x7a8] sm:$0xff] }
 0x11c   : > { %1143 = vmatprep.subr.mxu0 %v342_v21  ;;  %1214 = vmatprep.subr.mxu1 %v344_v22  ;;  %v575_v21 = vld [vmem:[#allocation5 + $0x790] sm:$0xff]  ;;  %v577_v22 = vld [vmem:[#allocation5 + $0x7a0] sm:$0xff] }
 0x11d   : > { %1144 = vmatpush1.msra.mxu0 %v341_v23  ;;  %1215 = vmatpush1.msra.mxu1 %v343_v24  ;;  %v563_v23 = vld [vmem:[#allocation5 + $0x730] sm:$0xff]  ;;  %v565_v24 = vld [vmem:[#allocation5 + $0x740] sm:$0xff] }
 0x11e   : > { %1145 = vmatprep.subr.mxu0 %v745_v25  ;;  %1216 = vmatprep.subr.mxu1 %v747_v26  ;;  %v562_v25 = vld [vmem:[#allocation5 + $0x728] sm:$0xff]  ;;  %v564_v26 = vld [vmem:[#allocation5 + $0x738] sm:$0xff] }
 0x11f   : > { %1146 = vmatpush2.msra.mxu0 %v744_v27  ;;  %1217 = vmatpush2.msra.mxu1 %v746_v28  ;;  %v550_v27 = vld [vmem:[#allocation5 + $0x6c8] sm:$0xff]  ;;  %v552_v28 = vld [vmem:[#allocation5 + $0x6d8] sm:$0xff] }
 0x120   : > { %1147 = vmatprep.subr.mxu0 %v732_v29  ;;  %1218 = vmatprep.subr.mxu1 %v734_v30  ;;  %v549_v29 = vld [vmem:[#allocation5 + $0x6c0] sm:$0xff]  ;;  %v551_v30 = vld [vmem:[#allocation5 + $0x6d0] sm:$0xff] }
 0x121   : > { %1148 = vmatpush2.msra.mxu0 %v731_v31  ;;  %1219 = vmatpush2.msra.mxu1 %v733_v32  ;;  %v748_v31 = vld [vmem:[#allocation5 + $0xcf8] sm:$0xff] }
 0x122   : > { %1149 = vmatprep.subr.mxu0 %v719_v33  ;;  %1220 = vmatprep.subr.mxu1 %v721_v34  ;;  %v540_v32 = vld [vmem:[#allocation5 + $0x678] sm:$0xff]  ;;  %v735_v33 = vld [vmem:[#allocation5 + $0xc90] sm:$0xff] }
 0x123   : > { %1150 = vmatpush2.msra.mxu0 %v718_v35  ;;  %1221 = vmatpush2.msra.mxu1 %v720_v36  ;;  %v527_v34 = vld [vmem:[#allocation5 + $0x610] sm:$0xff]  ;;  %v722_v35 = vld [vmem:[#allocation5 + $0xc28] sm:$0xff] }
 0x124   : > { %1151 = vmatprep.subr.mxu0 %v706_v37  ;;  %1222 = vmatprep.subr.mxu1 %v708_v39  ;;  %v514_v36 = vld [vmem:[#allocation5 + $0x5a8] sm:$0xff]  ;;  %v709_v37 = vld [vmem:[#allocation5 + $0xbc0] sm:$0xff] }
 0x125   : > { %1152 = vmatpush2.msra.mxu0 %v705_v40  ;;  %1223 = vmatpush2.msra.mxu1 %v707_v41  ;;  %v501_v39 = vld [vmem:[#allocation5 + $0x540] sm:$0xff]  ;;  %v696_v40 = vld [vmem:[#allocation5 + $0xb58] sm:$0xff] }
 0x126   : > { %1153 = vmatprep.subr.mxu0 %v693_v42  ;;  %1224 = vmatprep.subr.mxu1 %v695_v43  ;;  %v488_v41 = vld [vmem:[#allocation5 + $0x4d8] sm:$0xff]  ;;  %v683_v42 = vld [vmem:[#allocation5 + $0xaf0] sm:$0xff] }
 0x127   : > { %1154 = vmatpush2.msra.mxu0 %v692_v44  ;;  %1225 = vmatpush2.msra.mxu1 %v694_v45  ;;  %v475_v43 = vld [vmem:[#allocation5 + $0x470] sm:$0xff]  ;;  %v670_v44 = vld [vmem:[#allocation5 + $0xa88] sm:$0xff]  ;;  %v657_v45 = vld [vmem:[#allocation5 + $0xa20] sm:$0xff] }
 0x128   : > { %1155 = vmatprep.subr.mxu0 %v680_v46  ;;  %1226 = vmatprep.subr.mxu1 %v682_v48  ;;  %v449_v46 = vld [vmem:[#allocation5 + $0x3a0] sm:$0xff]  ;;  %v644_v48 = vld [vmem:[#allocation5 + $0x9b8] sm:$0xff] }
 0x129   : > { %1156 = vmatpush2.msra.mxu0 %v679_v49  ;;  %1227 = vmatpush2.msra.mxu1 %v681_v50  ;;  %v436_v49 = vld [vmem:[#allocation5 + $0x338] sm:$0xff]  ;;  %v631_v50 = vld [vmem:[#allocation5 + $0x950] sm:$0xff] }
 0x12a   : > { %1157 = vmatprep.subr.mxu0 %v667_v51  ;;  %1228 = vmatprep.subr.mxu1 %v669_v52  ;;  %v423_v51 = vld [vmem:[#allocation5 + $0x2d0] sm:$0xff]  ;;  %v618_v52 = vld [vmem:[#allocation5 + $0x8e8] sm:$0xff] }
 0x12b   : > { %1158 = vmatpush2.msra.mxu0 %v666_v53  ;;  %1229 = vmatpush2.msra.mxu1 %v668_v54  ;;  %v410_v53 = vld [vmem:[#allocation5 + $0x268] sm:$0xff]  ;;  %v605_v54 = vld [vmem:[#allocation5 + $0x880] sm:$0xff] }
 0x12c   : > { %1159 = vmatprep.subr.mxu0 %v654_v55  ;;  %1230 = vmatprep.subr.mxu1 %v656_v57  ;;  %v397_v55 = vld [vmem:[#allocation5 + $0x200] sm:$0xff]  ;;  %v592_v57 = vld [vmem:[#allocation5 + $0x818] sm:$0xff] }
 0x12d   : > { %1160 = vmatpush2.msra.mxu0 %v653_v58  ;;  %1231 = vmatpush2.msra.mxu1 %v655_v59  ;;  %v384_v58 = vld [vmem:[#allocation5 + $0x198] sm:$0xff]  ;;  %v579_v59 = vld [vmem:[#allocation5 + $0x7b0] sm:$0xff] }
 0x12e   : > { %1161 = vmatprep.subr.mxu0 %v641_v60  ;;  %1232 = vmatprep.subr.mxu1 %v643_v61  ;;  %v371_v60 = vld [vmem:[#allocation5 + $0x130] sm:$0xff]  ;;  %v566_v61 = vld [vmem:[#allocation5 + $0x748] sm:$0xff] }
 0x12f   : > { %1162 = vmatpush2.msra.mxu0 %v640_v63  ;;  %1233 = vmatpush2.msra.mxu1 %v642_v0  ;;  %v358_v63 = vld [vmem:[#allocation5 + $0xc8] sm:$0xff]  ;;  %v553_v0 = vld [vmem:[#allocation5 + $0x6e0] sm:$0xff] }
 0x130   : > { %1163 = vmatprep.subr.mxu0 %v628_v1  ;;  %1234 = vmatprep.subr.mxu1 %v630_v2  ;;  %v345_v1 = vld [vmem:[#allocation5 + $0x60] sm:$0xff] }
 0x131   : > { %1164 = vmatpush2.msra.mxu0 %v627_v4  ;;  %1235 = vmatpush2.msra.mxu1 %v629_v5  ;;  %v1358_v2 = vld [vmem:[#allocation8 + $0xf8] sm:$0xff]  ;;  %v1357_v4 = vld [vmem:[#allocation8 + $0xf0] sm:$0xff]  ;;  %v1356_v5 = vld [vmem:[#allocation8 + $0xe8] sm:$0xff] }
 0x132   : > { %1165 = vmatprep.subr.mxu0 %v615_v7  ;;  %1236 = vmatprep.subr.mxu1 %v617_v8  ;;  %v1355_v7 = vld [vmem:[#allocation8 + $0xe0] sm:$0xff]  ;;  %v1354_v8 = vld [vmem:[#allocation8 + $0xd8] sm:$0xff] }
 0x133   : > { %1166 = vmatpush2.msra.mxu0 %v614_v9  ;;  %1237 = vmatpush2.msra.mxu1 %v616_v10  ;;  %v4797_v9 = vmov 0.0   ;;  %v1353_v10 = vld [vmem:[#allocation8 + $0xd0] sm:$0xff] }
 0x134   : > { %1167 = vmatprep.subr.mxu0 %v602_v11  ;;  %1238 = vmatprep.subr.mxu1 %v604_v12  ;;  %v1352_v11 = vld [vmem:[#allocation8 + $0xc8] sm:$0xff]  ;;  %v1351_v12 = vld [vmem:[#allocation8 + $0xc0] sm:$0xff] }
 0x135   : > { %1168 = vmatpush2.msra.mxu0 %v601_v13  ;;  %1239 = vmatpush2.msra.mxu1 %v603_v14  ;;  %v1350_v13 = vld [vmem:[#allocation8 + $0xb8] sm:$0xff]  ;;  %v1349_v14 = vld [vmem:[#allocation8 + $0xb0] sm:$0xff] }
 0x136   : > { %1169 = vmatprep.subr.mxu0 %v589_v15  ;;  %1240 = vmatprep.subr.mxu1 %v591_v16  ;;  %v1348_v15 = vld [vmem:[#allocation8 + $0xa8] sm:$0xff]  ;;  %v1346_v16 = vld [vmem:[#allocation8 + $0x98] sm:$0xff] }
 0x137   : > { %1170 = vmatpush2.msra.mxu0 %v588_v17  ;;  %1241 = vmatpush2.msra.mxu1 %v590_v18  ;;  %v1345_v17 = vld [vmem:[#allocation8 + $0x90] sm:$0xff]  ;;  %v1344_v18 = vld [vmem:[#allocation8 + $0x88] sm:$0xff] }
 0x138   : > { %1171 = vmatprep.subr.mxu0 %v576_v19  ;;  %1242 = vmatprep.subr.mxu1 %v578_v20  ;;  %v1343_v19 = vld [vmem:[#allocation8 + $0x80] sm:$0xff]  ;;  %v1342_v20 = vld [vmem:[#allocation8 + $0x78] sm:$0xff] }
 0x139   : > { %1172 = vmatpush2.msra.mxu0 %v575_v21  ;;  %1243 = vmatpush2.msra.mxu1 %v577_v22  ;;  %v1341_v21 = vld [vmem:[#allocation8 + $0x70] sm:$0xff]  ;;  %v1340_v22 = vld [vmem:[#allocation8 + $0x68] sm:$0xff] }
 0x13a   : > { %1173 = vmatprep.subr.mxu0 %v563_v23  ;;  %1244 = vmatprep.subr.mxu1 %v565_v24  ;;  %v1339_v23 = vld [vmem:[#allocation8 + $0x60] sm:$0xff]  ;;  %v7907_v24 = vsub.s32 2, %v5005_v47 }
 0x13b   : > { %1174 = vmatpush2.msra.mxu0 %v562_v25  ;;  %1245 = vmatpush2.msra.mxu1 %v564_v26  ;;  %v1338_v25 = vld [vmem:[#allocation8 + $0x58] sm:$0xff] }
 0x13c   : > { %1175 = vmatprep.subr.mxu0 %v550_v27  ;;  %1246 = vmatprep.subr.mxu1 %v552_v28  ;;  %v5035_v26 = vld [vmem:[#allocation7] sm:$0xff]  ;;  %v7906_v27 = vsub.s32 3, %v5005_v47 }
 0x13d   : > { %1176 = vmatpush2.msra.mxu0 %v549_v29  ;;  %1177 = vmatprep.mubr.f32.mxu0 %v5015_v3  ;;  %v1337_v28 = vld [vmem:[#allocation8 + $0x50] sm:$0xff]  ;;  %v7905_v29 = vsub.s32 4, %v5005_v47 }
 0x13e   : > { %1247 = vmatpush2.msra.mxu1 %v551_v30  ;;  %1248 = vmatprep.mubr.f32.mxu1 %v5015_v3  ;;  %v1460_v30 = vadd.s32 120, %v5005_v47 }
 0x13f   : > { %1178 = vmatmul.mubr.f32.vlgmr.msra.gmra.mxu0 %v5018_v6  ;;  %1249 = vmatmul.mubr.f32.vlgmr.msra.gmra.mxu1 %v5018_v6 }
 0x140   : > { %4394 = vmatprep.subr.mxu1 %v748_v31  ;;  %1319 = vmatprep.mubr.f32.mxu1 %v5015_v3  ;;  %v462_v3 = vld [vmem:[#allocation5 + $0x408] sm:$0xff]  ;;  %v1336_v31 = vld [vmem:[#allocation8 + $0x48] sm:$0xff] }
 0x141   : > { %4395 = vmatpush3.msra.mxu1 %v540_v32  ;;  %v1459_v32 = vadd.s32 112, %v5005_v47 }
 0x142   : > { %4396 = vmatprep.subr.mxu1 %v735_v33  ;;  %v1458_v33 = vadd.s32 104, %v5005_v47 }
 0x143   : > { %4397 = vmatpush3.msra.mxu1 %v527_v34  ;;  %v1335_v34 = vld [vmem:[#allocation8 + $0x40] sm:$0xff] }
 0x144   : > { %4398 = vmatprep.subr.mxu1 %v722_v35  ;;  %v767_v35 = vrot.slane %v5035_v26, %v5012_v62 }
 0x145   : > { %4399 = vmatpush3.msra.mxu1 %v514_v36  ;;  %v775_v36 = vrot.slane %v5035_v26, %v7907_v24 }
 0x146   : > { %4400 = vmatprep.subr.mxu1 %v709_v37  ;;  %v1334_v37 = vld [vmem:[#allocation8 + $0x38] sm:$0xff] }
 0x147   : > { %4401 = vmatpush3.msra.mxu1 %v501_v39  ;;  %v771_v39 = vrot.slane %v5035_v26, %v5008_v56 }
 0x148   : > { %4402 = vmatprep.subr.mxu1 %v696_v40  ;;  %v779_v40 = vrot.slane %v5035_v26, %v7906_v27 }
 0x149   : > { %4403 = vmatpush3.msra.mxu1 %v488_v41  ;;  %v1457_v41 = vadd.s32 96, %v5005_v47 }
 0x14a   : > { %4404 = vmatprep.subr.mxu1 %v683_v42  ;;  %v1456_v42 = vadd.s32 88, %v5005_v47 }
 0x14b   : > { %4405 = vmatpush3.msra.mxu1 %v475_v43  ;;  %v1333_v43 = vld [vmem:[#allocation8 + $0x30] sm:$0xff] }
 0x14c   : > { %4406 = vmatprep.subr.mxu1 %v670_v44  ;;  %v5057_v44 = vrot.slane %v5035_v26, %v7905_v29 }
 0x14d   : > { %4407 = vmatpush3.msra.mxu1 %v462_v3  ;;  %v5059_v3 = vand.u32 15, %v1460_v30 }
 0x14e   : > { %4408 = vmatprep.subr.mxu1 %v657_v45  ;;  %v1455_v45 = vadd.s32 80, %v5005_v47 }
 0x14f   : > { %4409 = vmatpush3.msra.mxu1 %v449_v46  ;;  %8082 = vst [vmem:[#allocation21_spill] sm:$0xff] %v5059_v3  ;;  %v1454_v46 = vadd.s32 72, %v5005_v47 }
 0x150   : > { %4410 = vmatprep.subr.mxu1 %v644_v48  ;;  %v1332_v48 = vld [vmem:[#allocation8 + $0x28] sm:$0xff] }
 0x151   : > { %4411 = vmatpush3.msra.mxu1 %v436_v49  ;;  %v5063_v49 = vand.u32 15, %v1459_v32 }
 0x152   : > { %4412 = vmatprep.subr.mxu1 %v631_v50  ;;  %v5065_v50 = vand.u32 15, %v1458_v33 }
 0x153   : > { %4413 = vmatpush3.msra.mxu1 %v423_v51  ;;  %8083 = vst [vmem:[#allocation22_spill] sm:$0xff] %v5063_v49  ;;  %v1453_v51 = vadd.s32 64, %v5005_v47 }
 0x154   : > { %4414 = vmatprep.subr.mxu1 %v618_v52  ;;  %8084 = vst [vmem:[#allocation23_spill] sm:$0xff] %v5065_v50  ;;  %v1452_v52 = vadd.s32 56, %v5005_v47 }
 0x155   : > { %4415 = vmatpush3.msra.mxu1 %v410_v53  ;;  %v1331_v53 = vld [vmem:[#allocation8 + $0x20] sm:$0xff] }
 0x156   : > { %4416 = vmatprep.subr.mxu1 %v605_v54  ;;  %v5069_v54 = vshra.s32 %v1460_v30, 4 }
 0x157   : > { %4417 = vmatpush3.msra.mxu1 %v397_v55  ;;  %v5071_v55 = vshra.s32 %v1459_v32, 4 }
 0x158   : > { %4418 = vmatprep.subr.mxu1 %v592_v57  ;;  %v5073_v57 = vshra.s32 %v1458_v33, 4  ;;  %v790_v33 = vsub.s32 6, %v5005_v47 }
 0x159   : > { %4419 = vmatpush3.msra.mxu1 %v384_v58  ;;  %8085 = vst [vmem:[#allocation24_spill] sm:$0xff] %v5071_v55  ;;  %v1451_v58 = vadd.s32 48, %v5005_v47 }
 0x15a   : > { %4420 = vmatprep.subr.mxu1 %v579_v59  ;;  %v1330_v59 = vld [vmem:[#allocation8 + $0x18] sm:$0xff] }
 0x15b   : > { %4421 = vmatpush3.msra.mxu1 %v371_v60  ;;  %v5076_v60 = vshra.s32 %v1457_v41, 4 }
 0x15c   : > { %4422 = vmatprep.subr.mxu1 %v566_v61  ;;  %v5078_v61 = vand.u32 15, %v1457_v41 }
 0x15d   : > { %4423 = vmatpush3.msra.mxu1 %v358_v63  ;;  %v5080_v63 = vand.u32 15, %v1456_v42 }
 0x15e   : > { %4424 = vmatprep.subr.mxu1 %v553_v0  ;;  %8086 = vst [vmem:[#allocation25_spill] sm:$0xff] %v5078_v61  ;;  %v1450_v0 = vadd.s32 40, %v5005_v47 }
 0x15f   : > { %4425 = vmatpush3.msra.mxu1 %v345_v1  ;;  %8087 = vst [vmem:[#allocation26_spill] sm:$0xff] %v5080_v63  ;;  %v1329_v1 = vld [vmem:[#allocation8 + $0x10] sm:$0xff] }
 0x160   : > { %1320 = vmatmul.mubr.f32.vlgmr.msra.gmra.mxu1 %v5018_v6  ;;  %1371 = vmatprep.subr.mxu1 %v1358_v2  ;;  %v1347_v6 = vld [vmem:[#allocation8 + $0xa0] sm:$0xff]  ;;  %v5083_v2 = vshra.s32 %v1456_v42, 4 }
 0x161   : > { %1372 = vmatpush1.msra.mxu1 %v1357_v4  ;;  %1435 = vmatprep.mubr.f32.mxu1 %v4797_v9  ;;  %v5085_v4 = vshra.s32 %v1455_v45, 4 }
 0x162   : > { %1373 = vmatprep.subr.mxu1 %v1356_v5  ;;  %v5087_v5 = vand.u32 15, %v1455_v45 }
 0x163   : > { %1374 = vmatpush1.msra.mxu1 %v1355_v7  ;;  %v5089_v7 = vand.u32 15, %v1454_v46 }
 0x164   : > { %1375 = vmatprep.subr.mxu1 %v1354_v8  ;;  %8088 = vst [vmem:[#allocation27_spill] sm:$0xff] %v5087_v5 }
 0x165   : > { %1376 = vmatpush1.msra.mxu1 %v1353_v10  ;;  %8089 = vst [vmem:[#allocation28_spill] sm:$0xff] %v5089_v7  ;;  %v1328_v10 = vld [vmem:[#allocation8 + $0x8] sm:$0xff] }
 0x166   : > { %1377 = vmatprep.subr.mxu1 %v1352_v11  ;;  %v5091_v11 = vshra.s32 %v1454_v46, 4  ;;  %v1446_v46 = vadd.s32 8, %v5005_v47 }
 0x167   : > { %1378 = vmatpush1.msra.mxu1 %v1351_v12  ;;  %v5093_v12 = vshra.s32 %v1453_v51, 4 }
 0x168   : > { %1379 = vmatprep.subr.mxu1 %v1350_v13  ;;  %v5095_v13 = vand.u32 15, %v1453_v51 }
 0x169   : > { %1380 = vmatpush1.msra.mxu1 %v1349_v14  ;;  %8090 = vst [vmem:[#allocation29_spill] sm:$0xff] %v5093_v12  ;;  %v5097_v14 = vand.u32 15, %v1452_v52 }
 0x16a   : > { %1381 = vmatprep.subr.mxu1 %v1348_v15  ;;  %8091 = vst [vmem:[#allocation30_spill] sm:$0xff] %v5095_v13 }
 0x16b   : > { %1382 = vmatpush1.msra.mxu1 %v1347_v6  ;;  %8092 = vst [vmem:[#allocation31_spill] sm:$0xff] %v5097_v14 }
 0x16c   : > { %1383 = vmatprep.subr.mxu1 %v1346_v16  ;;  %v1327_v16 = vld [vmem:[#allocation8] sm:$0xff] }
 0x16d   : > { %1384 = vmatpush1.msra.mxu1 %v1345_v17  ;;  %v5099_v17 = vshra.s32 %v1452_v52, 4 }
 0x16e   : > { %1385 = vmatprep.subr.mxu1 %v1344_v18  ;;  %v5101_v18 = vand.u32 15, %v1451_v58 }
 0x16f   : > { %1386 = vmatpush1.msra.mxu1 %v1343_v19  ;;  %8093 = vst [vmem:[#allocation32_spill] sm:$0xff] %v5099_v17 }
 0x170   : > { %1387 = vmatprep.subr.mxu1 %v1342_v20  ;;  %8094 = vst [vmem:[#allocation33_spill] sm:$0xff] %v5101_v18 }
 0x171   : > { %1388 = vmatpush1.msra.mxu1 %v1341_v21  ;;  %v5103_v21 = vshra.s32 %v1451_v58, 4  ;;  %v5128_v58 = vrot.slane %v5035_v26, %v790_v33  ;;  %v1473_v33 = vadd.s32 224, %v5005_v47 }
 0x172   : > { %1389 = vmatprep.subr.mxu1 %v1340_v22  ;;  %v5105_v22 = vand.u32 15, %v1450_v0 }
 0x173   : > { %1390 = vmatpush1.msra.mxu1 %v1339_v23  ;;  %8095 = vst [vmem:[#allocation34_spill] sm:$0xff] %v5103_v21  ;;  %v1449_v23 = vadd.s32 32, %v5005_v47  ;;  %v5171_v56 = vshra.s32 %v1473_v33, 4 }
 0x174   : > { %1391 = vmatprep.subr.mxu1 %v1338_v25  ;;  %8096 = vst [vmem:[#allocation35_spill] sm:$0xff] %v5105_v22  ;;  %v1448_v25 = vadd.s32 24, %v5005_v47 }
 0x175   : > { %1392 = vmatpush1.msra.mxu1 %v1337_v28  ;;  %8115 = vst [vmem:[#allocation54_spill] sm:$0xff] %v5171_v56 }
 0x176   : > { %1393 = vmatprep.subr.mxu1 %v1336_v31  ;;  %v5122_v45 = vand.u32 15, %v1448_v25 }
 0x177   : > { %1394 = vmatpush1.msra.mxu1 %v1335_v34  ;;  %v786_v34 = vsub.s32 5, %v5005_v47 }
 0x178   : > { %1395 = vmatprep.subr.mxu1 %v1334_v37  ;;  %8100 = vst [vmem:[#allocation39_spill] sm:$0xff] %v5122_v45 }
 0x179   : > { %1396 = vmatpush1.msra.mxu1 %v1333_v43  ;;  %v5120_v43 = vand.u32 15, %v1449_v23 }
 0x17a   : > { %1397 = vmatprep.subr.mxu1 %v1332_v48 }
 0x17b   : > { %v895_v8 = vpop.f32.mrf.mxu0  ;;  %v966_v9 = vpop.f32.mrf.mxu1  ;;  %1398 = vmatpush1.msra.mxu1 %v1331_v53  ;;  %8099 = vst [vmem:[#allocation38_spill] sm:$0xff] %v5120_v43  ;;  %v5125_v53 = vshra.s32 %v1448_v25, 4 }
 0x17c   : > { %v896_v15 = vadd.f32 %v895_v8, %v767_v35  ;;  %v967_v6 = vadd.f32 %v966_v9, %v775_v36  ;;  %1399 = vmatprep.subr.mxu1 %v1330_v59  ;;  %v794_v35 = vsub.s32 7, %v5005_v47  ;;  %v5112_v36 = vshra.s32 %v1450_v0, 4 }
 0x17d   : > { %v897_v19 = vpop.f32.mrf.mxu0  ;;  %v968_v20 = vpop.f32.mrf.mxu1  ;;  %1400 = vmatpush1.msra.mxu1 %v1329_v1  ;;  %8101 = vst [vmem:[#allocation40_spill] sm:$0xff] %v5125_v53  ;;  %v5131_v59 = vrot.slane %v5035_v26, %v786_v34  ;;  %v1476_v1 = vadd.s32 248, %v5005_v47 }
 0x17e   : > { %v1325_v28 = vmax.f32 %v896_v15, 0.0  ;;  %v1542_v30 = vadd.f32 1.0, %v967_v6  ;;  %v898_v31 = vadd.f32 %v897_v19, %v771_v39  ;;  %v969_v32 = vadd.f32 %v968_v20, %v779_v40  ;;  %1401 = vmatprep.subr.mxu1 %v1328_v10  ;;  %8097 = vst [vmem:[#allocation36_spill] sm:$0xff] %v5112_v36 }
 0x17f   : > { %1402 = vmatpush1.msra.mxu1 %v1327_v16  ;;  %v1447_v39 = vadd.s32 16, %v5005_v47  ;;  %v5118_v40 = vshra.s32 %v1449_v23, 4  ;;  %v5134_v0 = vrot.slane %v5035_v26, %v794_v35  ;;  %v5141_v16 = vand.u32 15, %v1446_v46 }
 0x180   : > { %1326 = vst [vmem:[%s324_s28] sm:$0x1] %v1325_v28  ;;  %v1544_v37 = vmul.f32 16.0, %v1542_v30  ;;  %v1541_v41 = vadd.f32 1.0, %v898_v31  ;;  %v1549_v42 = vadd.f32 1.0, %v969_v32  ;;  %1436 = vmatmul.mubr.f32.vlgmr.msra.gmra.mxu1 %v1325_v28  ;;  %v1475_v19 = vadd.s32 240, %v5005_v47 }
 0x181   : > { %8098 = vst [vmem:[#allocation37_spill] sm:$0xff] %v5118_v40  ;;  %v5137_v15 = vand.u32 15, %v1447_v39  ;;  %v5139_v6 = vshra.s32 %v1447_v39, 4  ;;  %8104 = vst [vmem:[#allocation43_spill] sm:$0xff] %v5141_v16  ;;  %v1474_v20 = vadd.s32 232, %v5005_v47  ;;  %v5145_v26 = vshra.s32 %v1446_v46, 4 }
 0x182   : > { %v4375_v48 = vadd.f32 -1.0, %v1544_v37  ;;  %v1543_v51 = vmul.f32 16.0, %v1541_v41  ;;  %v1551_v52 = vmul.f32 16.0, %v1549_v42  ;;  %v5148_v30 = vshra.s32 %v5005_v47, 4 }
 0x183   : > { %8102 = vst [vmem:[#allocation41_spill] sm:$0xff] %v5137_v15  ;;  %8103 = vst [vmem:[#allocation42_spill] sm:$0xff] %v5139_v6  ;;  %v5151_v31 = vand.u32 15, %v5005_v47  ;;  %v5153_v32 = vand.u32 15, %v1476_v1  ;;  %v5156_v42 = vshra.s32 %v1476_v1, 4  ;;  %v5158_v39 = vshra.s32 %v1475_v19, 4 }
 0x184   : > { %v1548_v8 = vmul.f32 0.5, %v4375_v48  ;;  %v4374_v9 = vadd.f32 -1.0, %v1543_v51  ;;  %v4376_v10 = vadd.f32 -1.0, %v1551_v52  ;;  %8105 = vst [vmem:[#allocation44_spill] sm:$0xff] %v5145_v26  ;;  %8106 = vst [vmem:[#allocation45_spill] sm:$0xff] %v5148_v30  ;;  %v5160_v46 = vand.u32 15, %v1475_v19 }
 0x185   : > { %8107 = vst [vmem:[#allocation46_spill] sm:$0xff] %v5151_v31  ;;  %8108 = vst [vmem:[#allocation47_spill] sm:$0xff] %v5153_v32  ;;  %v5162_v48 = vand.u32 15, %v1474_v20 }
 0x186   : > { %v1558_v23 = vfloor.f32 %v1548_v8  ;;  %v1547_v25 = vmul.f32 0.5, %v4374_v9  ;;  %v1555_v28 = vmul.f32 0.5, %v4376_v10  ;;  %8109 = vst [vmem:[#allocation48_spill] sm:$0xff] %v5156_v42  ;;  %8110 = vst [vmem:[#allocation49_spill] sm:$0xff] %v5158_v39  ;;  %v5164_v10 = vshra.s32 %v1474_v20, 4 }
 0x187   : > { %8111 = vst [vmem:[#allocation50_spill] sm:$0xff] %v5160_v46  ;;  %8112 = vst [vmem:[#allocation51_spill] sm:$0xff] %v5162_v48  ;;  %v5176_v20 = vld [vmem:[#allocation7 + $0x8] sm:$0x1f] }
 0x188   : > { %v1562_v34 = vsub.f32 %v1548_v8, %v1558_v23  ;;  %v4431_v35 = vtrunc.f32 %v1558_v23  ;;  %v1557_v37 = vfloor.f32 %v1547_v25  ;;  %v1559_v41 = vfloor.f32 %v1555_v28  ;;  %8113 = vst [vmem:[#allocation52_spill] sm:$0xff] %v5164_v10  ;;  %8116 = vst [vmem:[#allocation55_spill] sm:$0xff] %v5176_v20 }
 0x189   : > { %v5166_v8 = vand.u32 15, %v1473_v33 }
 0x18a   : > { %v1564_v51 = vsub.f32 1.0, %v1562_v34  ;;  %v4432_v52 = vcvt.f32.s32 %v4431_v35  ;;  %v1561_v9 = vsub.f32 %v1547_v25, %v1557_v37  ;;  %v4429_v38 = vtrunc.f32 %v1557_v37 }
 0x18b   : > { %v1565_v29 = vsub.f32 %v1555_v28, %v1559_v41  ;;  %v4433_v27 = vtrunc.f32 %v1559_v41  ;;  %8114 = vst [vmem:[#allocation53_spill] sm:$0xff] %v5166_v8  ;;  %v5174_v19 = vrot.slane %v1562_v34, %v5012_v62 }
 0x18c   : > { %v5169_v23 = vrot.slane %v4432_v52, %v5012_v62  ;;  %v1718_v1 = vadd.s32 1, %v4432_v52  ;;  %v1563_v24 = vsub.f32 1.0, %v1561_v9  ;;  %v4430_v47 = vcvt.f32.s32 %v4429_v38 }
 0x18d   : > { %v1567_v35 = vsub.f32 1.0, %v1565_v29  ;;  %v4434_v25 = vcvt.f32.s32 %v4433_v27  ;;  %v5179_v28 = vrot.slane %v1564_v51, %v5012_v62  ;;  %v5199_v51 = vrot.slane %v1561_v9, %v5012_v62 }
 0x18e   : > { %v5182_v37 = vrot.slane %v1718_v1, %v5012_v62  ;;  %v5185_v41 = vrot.slane %v1563_v24, %v5012_v62  ;;  %vm1612_vm0 = vcmp.eq.s32.totalorder %v5059_v3, %v5169_v23  ;;  %v5190_v33 = vrot.slane %v4430_v47, %v5012_v62 }
 0x18f   : > { %v1717_v38 = vadd.s32 1, %v4430_v47  ;;  %v5193_v27 = vrot.slane %v4434_v25, %v5012_v62  ;;  %v5196_v34 = vrot.slane %v1567_v35, %v5012_v62  ;;  %v2071_v52 = vadd.s32 1, %v4434_v25 }
 0x190   : > { %vm1758_vm1 = vcmp.eq.s32.totalorder %v5059_v3, %v5182_v37  ;;  %vm1611_vm2 = vcmp.eq.s32.totalorder %v5059_v3, %v5190_v33  ;;  %vm1610_vm4 = vcmp.eq.s32.totalorder %v5063_v49, %v5169_v23  ;;  %v5218_v9 = vrot.slane %v1565_v29, %v5012_v62 }
 0x191   : > { %v5206_v1 = vrot.slane %v1717_v38, %v5012_v62  ;;  %vm1965_vm3 = vcmp.eq.s32.totalorder %v5069_v54, %v5193_v27  ;;  %v5215_v47 = vrot.slane %v2071_v52, %v5012_v62  ;;  %v1684_v35 = vsel %vm1612_vm0, %v5179_v28, 0.0 }
 0x192   : > { %v1830_v25 = vsel %vm1758_vm1, %v5174_v19, 0.0  ;;  %v1683_v38 = vsel %vm1611_vm2, %v5185_v41, 0.0  ;;  %v2037_v24 = vsel %vm1965_vm3, %v5196_v34, 0.0  ;;  %vm1756_vm6 = vcmp.eq.s32.totalorder %v5063_v49, %v5182_v37 }
 0x193   : > { %vm1757_vm5 = vcmp.eq.s32.totalorder %v5059_v3, %v5206_v1  ;;  %vm2111_vm7 = vcmp.eq.s32.totalorder %v5069_v54, %v5215_v47  ;;  %v1682_v29 = vsel %vm1610_vm4, %v5179_v28, 0.0  ;;  %vm1609_vm8 = vcmp.eq.s32.totalorder %v5063_v49, %v5190_v33 }
 0x194   : > { %v1829_v52 = vsel %vm1757_vm5, %v5199_v51, 0.0  ;;  %v2183_v8 = vsel %vm2111_vm7, %v5218_v9, 0.0  ;;  %v1828_v3 = vsel %vm1756_vm6, %v5174_v19, 0.0  ;;  %vm1755_vm9 = vcmp.eq.s32.totalorder %v5063_v49, %v5206_v1 }
 0x195   : > { %v1893_v56 = vadd.f32 %v1829_v52, %v1683_v38  ;;  %v2247_v20 = vadd.f32 %v2183_v8, %v2037_v24  ;;  %v1827_v10 = vsel %vm1755_vm9, %v5199_v51, 0.0  ;;  %vm1963_vm10 = vcmp.eq.s32.totalorder %v5071_v55, %v5193_v27 }
 0x196   : > { %vm2109_vm11 = vcmp.eq.s32.totalorder %v5071_v55, %v5215_v47  ;;  %v1681_v48 = vsel %vm1609_vm8, %v5185_v41, 0.0  ;;  %v2035_v38 = vsel %vm1963_vm10, %v5196_v34, 0.0  ;;  %vm1608_vm12 = vcmp.eq.s32.totalorder %v5065_v50, %v5169_v23 }
 0x197   : > { %v2181_v52 = vsel %vm2109_vm11, %v5218_v9, 0.0  ;;  %v5248_v39 = vadd.f32 %v1830_v25, %v1684_v35  ;;  %v5250_v8 = vadd.f32 %v1828_v3, %v1682_v29  ;;  %v1891_v24 = vadd.f32 %v1827_v10, %v1681_v48 }
 0x198   : > { %vm1754_vm13 = vcmp.eq.s32.totalorder %v5065_v50, %v5182_v37  ;;  %v5254_v49 = vmul.f32 %v2247_v20, %v1893_v56  ;;  %vm1607_vm14 = vcmp.eq.s32.totalorder %v5065_v50, %v5190_v33  ;;  %vm1753_vm15 = vcmp.eq.s32.totalorder %v5065_v50, %v5206_v1 }
 0x199   : > { %vm1961_vm0 = vcmp.eq.s32.totalorder %v5073_v57, %v5193_v27  ;;  %v2245_v46 = vadd.f32 %v2181_v52, %v2035_v38  ;;  %v1680_v35 = vsel %vm1608_vm12, %v5179_v28, 0.0  ;;  %v1826_v3 = vsel %vm1754_vm13, %v5174_v19, 0.0 }
 0x19a   : > { %v1825_v48 = vsel %vm1753_vm15, %v5199_v51, 0.0  ;;  %v1679_v10 = vsel %vm1607_vm14, %v5185_v41, 0.0  ;;  %v2033_v56 = vsel %vm1961_vm0, %v5196_v34, 0.0  ;;  %vm2107_vm1 = vcmp.eq.s32.totalorder %v5073_v57, %v5215_v47 }
 0x19b   : > { %vm1606_vm2 = vcmp.eq.s32.totalorder %v5078_v61, %v5169_v23  ;;  %v1889_v20 = vadd.f32 %v1825_v48, %v1679_v10  ;;  %v2179_v25 = vsel %vm2107_vm1, %v5218_v9, 0.0  ;;  %vm1752_vm3 = vcmp.eq.s32.totalorder %v5078_v61, %v5182_v37 }
 0x19c   : > { %vm1605_vm4 = vcmp.eq.s32.totalorder %v5078_v61, %v5190_v33  ;;  %v2243_v29 = vadd.f32 %v2179_v25, %v2033_v56  ;;  %v1678_v38 = vsel %vm1606_vm2, %v5179_v28, 0.0  ;;  %v1824_v52 = vsel %vm1752_vm3, %v5174_v19, 0.0 }
 0x19d   : > { %vm1751_vm5 = vcmp.eq.s32.totalorder %v5078_v61, %v5206_v1  ;;  %v5280_v50 = vmul.f32 %v2245_v46, %v1891_v24  ;;  %vm1959_vm6 = vcmp.eq.s32.totalorder %v5076_v60, %v5193_v27  ;;  %vm2105_vm7 = vcmp.eq.s32.totalorder %v5076_v60, %v5215_v47 }
 0x19e   : > { %v1823_v48 = vsel %vm1751_vm5, %v5199_v51, 0.0  ;;  %v5287_v10 = vadd.f32 %v1826_v3, %v1680_v35  ;;  %v1677_v56 = vsel %vm1605_vm4, %v5185_v41, 0.0  ;;  %v2031_v25 = vsel %vm1959_vm6, %v5196_v34, 0.0 }
 0x19f   : > { %v2177_v42 = vsel %vm2105_vm7, %v5218_v9, 0.0  ;;  %v5292_v32 = vadd.f32 %v1824_v52, %v1678_v38  ;;  %vm1604_vm8 = vcmp.eq.s32.totalorder %v5080_v63, %v5169_v23  ;;  %vm1750_vm9 = vcmp.eq.s32.totalorder %v5080_v63, %v5182_v37 }
 0x1a0   : > { %vm1603_vm10 = vcmp.eq.s32.totalorder %v5080_v63, %v5190_v33  ;;  %v5300_v46 = vmul.f32 %v2243_v29, %v1889_v20  ;;  %v1887_v24 = vadd.f32 %v1823_v48, %v1677_v56  ;;  %v2241_v35 = vadd.f32 %v2177_v42, %v2031_v25 }
 0x1a1   : > { %vm1749_vm11 = vcmp.eq.s32.totalorder %v5080_v63, %v5206_v1  ;;  %v1676_v3 = vsel %vm1604_vm8, %v5179_v28, 0.0  ;;  %v1822_v38 = vsel %vm1750_vm9, %v5174_v19, 0.0  ;;  %vm1957_vm12 = vcmp.eq.s32.totalorder %v5083_v2, %v5193_v27 }
 0x1a2   : > { %v1821_v52 = vsel %vm1749_vm11, %v5199_v51, 0.0  ;;  %v1675_v61 = vsel %vm1603_vm10, %v5185_v41, 0.0  ;;  %v2029_v30 = vsel %vm1957_vm12, %v5196_v34, 0.0  ;;  %vm2103_vm13 = vcmp.eq.s32.totalorder %v5083_v2, %v5215_v47 }
 0x1a3   : > { %vm1602_vm14 = vcmp.eq.s32.totalorder %v5087_v5, %v5169_v23  ;;  %v1885_v42 = vadd.f32 %v1821_v52, %v1675_v61  ;;  %v2175_v20 = vsel %vm2103_vm13, %v5218_v9, 0.0  ;;  %vm1748_vm15 = vcmp.eq.s32.totalorder %v5087_v5, %v5182_v37 }
 0x1a4   : > { %vm1601_vm0 = vcmp.eq.s32.totalorder %v5087_v5, %v5190_v33  ;;  %v2239_v29 = vadd.f32 %v2175_v20, %v2029_v30  ;;  %v1674_v48 = vsel %vm1602_vm14, %v5179_v28, 0.0  ;;  %v1820_v56 = vsel %vm1748_vm15, %v5174_v19, 0.0 }
 0x1a5   : > { %vm1747_vm1 = vcmp.eq.s32.totalorder %v5087_v5, %v5206_v1  ;;  %v5324_v25 = vmul.f32 %v2241_v35, %v1887_v24  ;;  %vm1955_vm2 = vcmp.eq.s32.totalorder %v5085_v4, %v5193_v27  ;;  %vm2101_vm3 = vcmp.eq.s32.totalorder %v5085_v4, %v5215_v47 }
 0x1a6   : > { %v1819_v61 = vsel %vm1747_vm1, %v5199_v51, 0.0  ;;  %v5331_v52 = vadd.f32 %v1822_v38, %v1676_v3  ;;  %v1673_v30 = vsel %vm1601_vm0, %v5185_v41, 0.0  ;;  %v2027_v20 = vsel %vm1955_vm2, %v5196_v34, 0.0 }
 0x1a7   : > { %v2173_v63 = vsel %vm2101_vm3, %v5218_v9, 0.0  ;;  %v5336_v31 = vadd.f32 %v1820_v56, %v1674_v48  ;;  %vm1600_vm4 = vcmp.eq.s32.totalorder %v5089_v7, %v5169_v23  ;;  %vm1746_vm5 = vcmp.eq.s32.totalorder %v5089_v7, %v5182_v37 }
 0x1a8   : > { %vm1599_vm6 = vcmp.eq.s32.totalorder %v5089_v7, %v5190_v33  ;;  %v5344_v24 = vmul.f32 %v2239_v29, %v1885_v42  ;;  %v1883_v35 = vadd.f32 %v1819_v61, %v1673_v30  ;;  %v2237_v3 = vadd.f32 %v2173_v63, %v2027_v20 }
 0x1a9   : > { %vm1745_vm7 = vcmp.eq.s32.totalorder %v5089_v7, %v5206_v1  ;;  %v1672_v38 = vsel %vm1600_vm4, %v5179_v28, 0.0  ;;  %v1818_v48 = vsel %vm1746_vm5, %v5174_v19, 0.0  ;;  %vm1953_vm8 = vcmp.eq.s32.totalorder %v5091_v11, %v5193_v27 }
 0x1aa   : > { %8117 = vst [vmem:[#allocation56_spill] sm:$0xff] %v5344_v24  ;;  %v1817_v56 = vsel %vm1745_vm7, %v5199_v51, 0.0  ;;  %v1671_v5 = vsel %vm1599_vm6, %v5185_v41, 0.0  ;;  %v2025_v26 = vsel %vm1953_vm8, %v5196_v34, 0.0  ;;  %vm2099_vm9 = vcmp.eq.s32.totalorder %v5091_v11, %v5215_v47 }
 0x1ab   : > { %vm1598_vm10 = vcmp.eq.s32.totalorder %v5095_v13, %v5169_v23  ;;  %v1881_v63 = vadd.f32 %v1817_v56, %v1671_v5  ;;  %v2171_v42 = vsel %vm2099_vm9, %v5218_v9, 0.0  ;;  %vm1744_vm11 = vcmp.eq.s32.totalorder %v5095_v13, %v5182_v37 }
 0x1ac   : > { %vm1597_vm12 = vcmp.eq.s32.totalorder %v5095_v13, %v5190_v33  ;;  %v2235_v29 = vadd.f32 %v2171_v42, %v2025_v26  ;;  %v1670_v61 = vsel %vm1598_vm10, %v5179_v28, 0.0  ;;  %v1816_v30 = vsel %vm1744_vm11, %v5174_v19, 0.0 }
 0x1ad   : > { %vm1743_vm13 = vcmp.eq.s32.totalorder %v5095_v13, %v5206_v1  ;;  %v5368_v20 = vmul.f32 %v2237_v3, %v1883_v35  ;;  %vm1951_vm14 = vcmp.eq.s32.totalorder %v5093_v12, %v5193_v27  ;;  %vm2097_vm15 = vcmp.eq.s32.totalorder %v5093_v12, %v5215_v47 }
 0x1ae   : > { %v1815_v5 = vsel %vm1743_vm13, %v5199_v51, 0.0  ;;  %v5375_v56 = vadd.f32 %v1818_v48, %v1672_v38  ;;  %v1669_v26 = vsel %vm1597_vm12, %v5185_v41, 0.0  ;;  %v2023_v42 = vsel %vm1951_vm14, %v5196_v34, 0.0 }
 0x1af   : > { %8118 = vst [vmem:[#allocation57_spill] sm:$0xff] %v5368_v20  ;;  %v2169_v7 = vsel %vm2097_vm15, %v5218_v9, 0.0  ;;  %v5380_v16 = vadd.f32 %v1816_v30, %v1670_v61  ;;  %vm1596_vm0 = vcmp.eq.s32.totalorder %v5097_v14, %v5169_v23  ;;  %vm1742_vm1 = vcmp.eq.s32.totalorder %v5097_v14, %v5182_v37 }
 0x1b0   : > { %vm1595_vm2 = vcmp.eq.s32.totalorder %v5097_v14, %v5190_v33  ;;  %v5388_v35 = vmul.f32 %v2235_v29, %v1881_v63  ;;  %v1879_v3 = vadd.f32 %v1815_v5, %v1669_v26  ;;  %v2233_v38 = vadd.f32 %v2169_v7, %v2023_v42 }
 0x1b1   : > { %8119 = vst [vmem:[#allocation58_spill] sm:$0xff] %v5380_v16  ;;  %vm1741_vm3 = vcmp.eq.s32.totalorder %v5097_v14, %v5206_v1  ;;  %v1668_v48 = vsel %vm1596_vm0, %v5179_v28, 0.0  ;;  %v1814_v61 = vsel %vm1742_vm1, %v5174_v19, 0.0  ;;  %vm1949_vm4 = vcmp.eq.s32.totalorder %v5099_v17, %v5193_v27 }
 0x1b2   : > { %8120 = vst [vmem:[#allocation59_spill] sm:$0xff] %v5388_v35  ;;  %v1813_v30 = vsel %vm1741_vm3, %v5199_v51, 0.0  ;;  %v1667_v13 = vsel %vm1595_vm2, %v5185_v41, 0.0  ;;  %v2021_v6 = vsel %vm1949_vm4, %v5196_v34, 0.0  ;;  %vm2095_vm5 = vcmp.eq.s32.totalorder %v5099_v17, %v5215_v47 }
 0x1b3   : > { %vm1594_vm6 = vcmp.eq.s32.totalorder %v5101_v18, %v5169_v23  ;;  %v1877_v7 = vadd.f32 %v1813_v30, %v1667_v13  ;;  %v2167_v63 = vsel %vm2095_vm5, %v5218_v9, 0.0  ;;  %vm1740_vm7 = vcmp.eq.s32.totalorder %v5101_v18, %v5182_v37 }
 0x1b4   : > { %vm1593_vm8 = vcmp.eq.s32.totalorder %v5101_v18, %v5190_v33  ;;  %v2231_v29 = vadd.f32 %v2167_v63, %v2021_v6  ;;  %v1666_v5 = vsel %vm1594_vm6, %v5179_v28, 0.0  ;;  %v1812_v26 = vsel %vm1740_vm7, %v5174_v19, 0.0 }
 0x1b5   : > { %vm1739_vm9 = vcmp.eq.s32.totalorder %v5101_v18, %v5206_v1  ;;  %v1665_v42 = vsel %vm1593_vm8, %v5185_v41, 0.0  ;;  %vm1947_vm10 = vcmp.eq.s32.totalorder %v5103_v21, %v5193_v27  ;;  %vm2093_vm11 = vcmp.eq.s32.totalorder %v5103_v21, %v5215_v47 }
 0x1b6   : > { %v1811_v13 = vsel %vm1739_vm9, %v5199_v51, 0.0  ;;  %v5418_v30 = vmul.f32 %v2233_v38, %v1879_v3  ;;  %v2019_v63 = vsel %vm1947_vm10, %v5196_v34, 0.0  ;;  %v2165_v14 = vsel %vm2093_vm11, %v5218_v9, 0.0 }
 0x1b7   : > { %v1875_v6 = vadd.f32 %v1811_v13, %v1665_v42  ;;  %v2229_v35 = vadd.f32 %v2165_v14, %v2019_v63  ;;  %vm1592_vm12 = vcmp.eq.s32.totalorder %v5105_v22, %v5169_v23  ;;  %vm1738_vm13 = vcmp.eq.s32.totalorder %v5105_v22, %v5182_v37 }
 0x1b8   : > { %8121 = vst [vmem:[#allocation60_spill] sm:$0xff] %v5418_v30  ;;  %vm1591_vm14 = vcmp.eq.s32.totalorder %v5105_v22, %v5190_v33  ;;  %v5428_v18 = vadd.f32 %v1814_v61, %v1668_v48  ;;  %v5430_v20 = vmul.f32 %v2231_v29, %v1877_v7  ;;  %v5432_v3 = vadd.f32 %v1812_v26, %v1666_v5 }
 0x1b9   : > { %vm1737_vm15 = vcmp.eq.s32.totalorder %v5105_v22, %v5206_v1  ;;  %v1664_v14 = vsel %vm1592_vm12, %v5179_v28, 0.0  ;;  %v1810_v38 = vsel %vm1738_vm13, %v5174_v19, 0.0  ;;  %vm1945_vm0 = vcmp.eq.s32.totalorder %v5112_v36, %v5193_v27 }
 0x1ba   : > { %8122 = vst [vmem:[#allocation61_spill] sm:$0xff] %v5428_v18  ;;  %8123 = vst [vmem:[#allocation62_spill] sm:$0xff] %v5430_v20  ;;  %v1809_v42 = vsel %vm1737_vm15, %v5199_v51, 0.0  ;;  %v1663_v13 = vsel %vm1591_vm14, %v5185_v41, 0.0  ;;  %v2017_v48 = vsel %vm1945_vm0, %v5196_v34, 0.0  ;;  %vm2091_vm1 = vcmp.eq.s32.totalorder %v5112_v36, %v5215_v47 }
 0x1bb   : > { %8124 = vst [vmem:[#allocation63_spill] sm:$0xff] %v5432_v3  ;;  %vm1590_vm2 = vcmp.eq.s32.totalorder %v5120_v43, %v5169_v23  ;;  %v5447_v61 = vmul.f32 %v2229_v35, %v1875_v6  ;;  %v2163_v7 = vsel %vm2091_vm1, %v5218_v9, 0.0  ;;  %vm1736_vm3 = vcmp.eq.s32.totalorder %v5120_v43, %v5182_v37 }
 0x1bc   : > { %vm1589_vm4 = vcmp.eq.s32.totalorder %v5120_v43, %v5190_v33  ;;  %v5454_v26 = vadd.f32 %v1810_v38, %v1664_v14  ;;  %v1873_v63 = vadd.f32 %v1809_v42, %v1663_v13  ;;  %v1662_v22 = vsel %vm1590_vm2, %v5179_v28, 0.0 }
 0x1bd   : > { %8125 = vst [vmem:[#allocation64_spill] sm:$0xff] %v5447_v61  ;;  %v1037_v29 = vpop.f32.mrf.mxu0  ;;  %v1108_v5 = vpop.f32.mrf.mxu1  ;;  %vm1735_vm5 = vcmp.eq.s32.totalorder %v5120_v43, %v5206_v1  ;;  %v2227_v61 = vadd.f32 %v2163_v7, %v2017_v48  ;;  %v1808_v20 = vsel %vm1736_vm3, %v5174_v19, 0.0  ;;  %v1661_v18 = vsel %vm1589_vm4, %v5185_v41, 0.0 }
 0x1be   : > { %8126 = vst [vmem:[#allocation65_spill] sm:$0xff] %v5454_v26  ;;  %v1038_v35 = vadd.f32 %v1037_v29, %v5057_v44  ;;  %v1109_v6 = vadd.f32 %v1108_v5, %v5128_v58  ;;  %v1807_v14 = vsel %vm1735_vm5, %v5199_v51, 0.0  ;;  %vm1943_vm6 = vcmp.eq.s32.totalorder %v5118_v40, %v5193_v27 }
 0x1bf   : > { %v1039_v30 = vpop.f32.mrf.mxu0  ;;  %v1110_v3 = vpop.f32.mrf.mxu1  ;;  %vm2089_vm7 = vcmp.eq.s32.totalorder %v5118_v40, %v5215_v47  ;;  %v2015_v13 = vsel %vm1943_vm6, %v5196_v34, 0.0  ;;  %vm1588_vm8 = vcmp.eq.s32.totalorder %v5122_v45, %v5169_v23  ;;  %vm1734_vm9 = vcmp.eq.s32.totalorder %v5122_v45, %v5182_v37 }
 0x1c0   : > { %v1550_v38 = vadd.f32 1.0, %v1038_v35  ;;  %v2417_v42 = vadd.f32 1.0, %v1109_v6  ;;  %v1040_v44 = vadd.f32 %v1039_v30, %v5131_v59  ;;  %v1111_v58 = vadd.f32 %v1110_v3, %v5134_v0 }
 0x1c1   : > { %v2161_v48 = vsel %vm2089_vm7, %v5218_v9, 0.0  ;;  %v5476_v35 = vmul.f32 %v2227_v61, %v1873_v63  ;;  %v5478_v6 = vadd.f32 %v1808_v20, %v1662_v22  ;;  %v1871_v59 = vadd.f32 %v1807_v14, %v1661_v18 }
 0x1c2   : > { %v1552_v7 = vmul.f32 16.0, %v1550_v38  ;;  %v2419_v29 = vmul.f32 16.0, %v2417_v42  ;;  %v2416_v5 = vadd.f32 1.0, %v1040_v44  ;;  %v2424_v43 = vadd.f32 1.0, %v1111_v58 }
 0x1c3   : > { %8127 = vst [vmem:[#allocation66_spill] sm:$0xff] %v5476_v35  ;;  %v2225_v0 = vadd.f32 %v2161_v48, %v2015_v13  ;;  %v1660_v16 = vsel %vm1588_vm8, %v5179_v28, 0.0  ;;  %v1806_v24 = vsel %vm1734_vm9, %v5174_v19, 0.0  ;;  %vm1587_vm10 = vcmp.eq.s32.totalorder %v5122_v45, %v5190_v33 }
 0x1c4   : > { %v4377_v30 = vadd.f32 -1.0, %v1552_v7  ;;  %v4379_v3 = vadd.f32 -1.0, %v2419_v29  ;;  %v2418_v26 = vmul.f32 16.0, %v2416_v5  ;;  %v2426_v40 = vmul.f32 16.0, %v2424_v43 }
 0x1c5   : > { %vm1733_vm11 = vcmp.eq.s32.totalorder %v5122_v45, %v5206_v1  ;;  %vm1941_vm12 = vcmp.eq.s32.totalorder %v5125_v53, %v5193_v27  ;;  %vm2087_vm13 = vcmp.eq.s32.totalorder %v5125_v53, %v5215_v47  ;;  %vm1586_vm14 = vcmp.eq.s32.totalorder %v5137_v15, %v5169_v23 }
 0x1c6   : > { %v1556_v61 = vmul.f32 0.5, %v4377_v30  ;;  %v2423_v63 = vmul.f32 0.5, %v4379_v3  ;;  %v4378_v22 = vadd.f32 -1.0, %v2418_v26  ;;  %v4380_v20 = vadd.f32 -1.0, %v2426_v40 }
 0x1c7   : > { %v1805_v18 = vsel %vm1733_vm11, %v5199_v51, 0.0  ;;  %v5493_v44 = vmul.f32 %v2225_v0, %v1871_v59  ;;  %v1659_v26 = vsel %vm1587_vm10, %v5185_v41, 0.0  ;;  %v2013_v40 = vsel %vm1941_vm12, %v5196_v34, 0.0 }
 0x1c8   : > { %v1560_v43 = vfloor.f32 %v1556_v61  ;;  %v2433_v14 = vfloor.f32 %v2423_v63  ;;  %v2422_v38 = vmul.f32 0.5, %v4378_v22  ;;  %v2430_v42 = vmul.f32 0.5, %v4380_v20 }
 0x1c9   : > { %8128 = vst [vmem:[#allocation67_spill] sm:$0xff] %v5493_v44  ;;  %v2159_v58 = vsel %vm2087_vm13, %v5218_v9, 0.0  ;;  %v5498_v30 = vadd.f32 %v1806_v24, %v1660_v16  ;;  %v5500_v3 = vadd.f32 %v1805_v18, %v1659_v26  ;;  %v5506_v59 = vsel %vm1586_vm14, %v5179_v28, 0.0 }
 0x1ca   : > { %v1566_v13 = vsub.f32 %v1556_v61, %v1560_v43  ;;  %v4435_v48 = vtrunc.f32 %v1560_v43  ;;  %v2437_v7 = vsub.f32 %v2423_v63, %v2433_v14  ;;  %v4439_v29 = vtrunc.f32 %v2433_v14 }
 0x1cb   : > { %v2432_v5 = vfloor.f32 %v2422_v38  ;;  %v2434_v45 = vfloor.f32 %v2430_v42  ;;  %v5508_v63 = vadd.f32 %v2159_v58, %v2013_v40  ;;  %vm1732_vm13 = vcmp.eq.s32.totalorder %v5137_v15, %v5182_v37 }
 0x1cc   : > { %v1568_v0 = vsub.f32 1.0, %v1566_v13  ;;  %v4436_v22 = vcvt.f32.s32 %v4435_v48  ;;  %v2439_v20 = vsub.f32 1.0, %v2437_v7  ;;  %v4440_v44 = vcvt.f32.s32 %v4439_v29 }
 0x1cd   : > { %v2436_v61 = vsub.f32 %v2422_v38, %v2432_v5  ;;  %v4437_v43 = vtrunc.f32 %v2432_v5  ;;  %v5514_v18 = vrot.slane %v1566_v13, %v5012_v62  ;;  %v5517_v14 = vrot.slane %v2437_v7, %v5012_v62 }
 0x1ce   : > { %v5511_v16 = vrot.slane %v4436_v22, %v5012_v62  ;;  %v2072_v24 = vadd.s32 1, %v4436_v22  ;;  %v5520_v26 = vrot.slane %v1568_v0, %v5012_v62  ;;  %v2593_v48 = vadd.s32 1, %v4440_v44 }
 0x1cf   : > { %v2438_v35 = vsub.f32 1.0, %v2436_v61  ;;  %v4438_v29 = vcvt.f32.s32 %v4437_v43  ;;  %v5526_v40 = vrot.slane %v2439_v20, %v5012_v62  ;;  %v5528_v58 = vsub.f32 %v2430_v42, %v2434_v45 }
 0x1d0   : > { %v5523_v38 = vrot.slane %v2072_v24, %v5012_v62  ;;  %v4441_v5 = vtrunc.f32 %v2434_v45  ;;  %v5531_v13 = vrot.slane %v4440_v44, %v5012_v62  ;;  %v5534_v7 = vrot.slane %v2593_v48, %v5012_v62 }
 0x1d1   : > { %v2592_v0 = vadd.s32 1, %v4438_v29  ;;  %v5537_v22 = vrot.slane %v2436_v61, %v5012_v62  ;;  %v5540_v43 = vrot.slane %v4438_v29, %v5012_v62  ;;  %v5543_v24 = vrot.slane %v2438_v35, %v5012_v62 }
 0x1d2   : > { %v4442_v20 = vcvt.f32.s32 %v4441_v5  ;;  %vm1966_vm15 = vcmp.eq.s32.totalorder %v5069_v54, %v5511_v16  ;;  %vm2112_vm0 = vcmp.eq.s32.totalorder %v5069_v54, %v5523_v38  ;;  %vm1964_vm1 = vcmp.eq.s32.totalorder %v5071_v55, %v5511_v16 }
 0x1d3   : > { %8129 = vst [vmem:[#allocation68_spill] sm:$0xff] %v5537_v22  ;;  %v2038_v42 = vsel %vm1966_vm15, %v5520_v26, 0.0  ;;  %v5554_v44 = vrot.slane %v2592_v0, %v5012_v62  ;;  %v5561_v61 = vrot.slane %v5528_v58, %v5012_v62  ;;  %v2184_v48 = vsel %vm2112_vm0, %v5514_v18, 0.0 }
 0x1d4   : > { %v5557_v35 = vrot.slane %v4442_v20, %v5012_v62  ;;  %v2248_v29 = vadd.f32 %v2184_v48, %v2038_v42  ;;  %v2036_v5 = vsel %vm1964_vm1, %v5520_v26, 0.0  ;;  %vm2110_vm2 = vcmp.eq.s32.totalorder %v5071_v55, %v5523_v38 }
 0x1d5   : > { %8131 = vst [vmem:[#allocation70_spill] sm:$0xff] %v5561_v61  ;;  %vm1962_vm3 = vcmp.eq.s32.totalorder %v5073_v57, %v5511_v16  ;;  %v5569_v0 = vadd.s32 1, %v4442_v20  ;;  %v2182_v45 = vsel %vm2110_vm2, %v5514_v18, 0.0  ;;  %vm2108_vm4 = vcmp.eq.s32.totalorder %v5073_v57, %v5523_v38 }
 0x1d6   : > { %8130 = vst [vmem:[#allocation69_spill] sm:$0xff] %v5557_v35  ;;  %v2034_v22 = vsel %vm1962_vm3, %v5520_v26, 0.0  ;;  %v2312_v61 = vmul.f32 %v2248_v29, %v5248_v39  ;;  %v2246_v42 = vadd.f32 %v2182_v45, %v2036_v5  ;;  %v2180_v48 = vsel %vm2108_vm4, %v5514_v18, 0.0 }
 0x1d7   : > { %vm1960_vm5 = vcmp.eq.s32.totalorder %v5076_v60, %v5511_v16  ;;  %v2244_v55 = vadd.f32 %v2180_v48, %v2034_v22  ;;  %vm2106_vm6 = vcmp.eq.s32.totalorder %v5076_v60, %v5523_v38  ;;  %vm1958_vm7 = vcmp.eq.s32.totalorder %v5083_v2, %v5511_v16 }
 0x1d8   : > { %v2032_v35 = vsel %vm1960_vm5, %v5520_v26, 0.0  ;;  %2345 = vmatprep.subr.mxu0 %v2312_v61  ;;  %v2310_v20 = vmul.f32 %v2246_v42, %v5250_v8  ;;  %v2178_v39 = vsel %vm2106_vm6, %v5514_v18, 0.0  ;;  %v2030_v45 = vsel %vm1958_vm7, %v5520_v26, 0.0 }
 0x1d9   : > { %vm2104_vm8 = vcmp.eq.s32.totalorder %v5083_v2, %v5523_v38  ;;  %2346 = vmatpush1.msra.mxu0 %v5254_v49  ;;  %v2308_v22 = vmul.f32 %v2244_v55, %v5287_v10  ;;  %v2242_v29 = vadd.f32 %v2178_v39, %v2032_v35  ;;  %vm1956_vm9 = vcmp.eq.s32.totalorder %v5085_v4, %v5511_v16 }
 0x1da   : > { %v2176_v5 = vsel %vm2104_vm8, %v5514_v18, 0.0  ;;  %2347 = vmatprep.subr.mxu0 %v2310_v20  ;;  %v2028_v8 = vsel %vm1956_vm9, %v5520_v26, 0.0  ;;  %vm2102_vm10 = vcmp.eq.s32.totalorder %v5085_v4, %v5523_v38  ;;  %vm1954_vm11 = vcmp.eq.s32.totalorder %v5091_v11, %v5511_v16 }
 0x1db   : > { %v2240_v61 = vadd.f32 %v2176_v5, %v2030_v45  ;;  %2348 = vmatpush1.msra.mxu0 %v5280_v50  ;;  %v2306_v49 = vmul.f32 %v2242_v29, %v5292_v32  ;;  %v2174_v55 = vsel %vm2102_vm10, %v5514_v18, 0.0  ;;  %v2026_v10 = vsel %vm1954_vm11, %v5520_v26, 0.0  ;;  %v8132_v5 = vld [vmem:[#allocation56_spill] sm:$0xff] }
 0x1dc   : > { %vm2100_vm12 = vcmp.eq.s32.totalorder %v5091_v11, %v5523_v38  ;;  %2349 = vmatprep.subr.mxu0 %v2308_v22  ;;  %v2238_v42 = vadd.f32 %v2174_v55, %v2028_v8  ;;  %vm1952_vm14 = vcmp.eq.s32.totalorder %v5093_v12, %v5511_v16  ;;  %vm2098_vm15 = vcmp.eq.s32.totalorder %v5093_v12, %v5523_v38 }
 0x1dd   : > { %v2304_v35 = vmul.f32 %v2240_v61, %v5331_v52  ;;  %v2172_v48 = vsel %vm2100_vm12, %v5514_v18, 0.0  ;;  %2350 = vmatpush1.msra.mxu0 %v5300_v46  ;;  %v2024_v32 = vsel %vm1952_vm14, %v5520_v26, 0.0  ;;  %vm1950_vm0 = vcmp.eq.s32.totalorder %v5099_v17, %v5511_v16 }
 0x1de   : > { %v2236_v50 = vadd.f32 %v2172_v48, %v2026_v10  ;;  %2351 = vmatprep.subr.mxu0 %v2306_v49  ;;  %v2302_v52 = vmul.f32 %v2238_v42, %v5336_v31  ;;  %v2170_v20 = vsel %vm2098_vm15, %v5514_v18, 0.0  ;;  %v2022_v39 = vsel %vm1950_vm0, %v5520_v26, 0.0  ;;  %v8134_v49 = vld [vmem:[#allocation61_spill] sm:$0xff] }
 0x1df   : > { %vm2096_vm1 = vcmp.eq.s32.totalorder %v5099_v17, %v5523_v38  ;;  %2352 = vmatpush1.msra.mxu0 %v5324_v25  ;;  %v2234_v45 = vadd.f32 %v2170_v20, %v2024_v32  ;;  %vm1948_vm2 = vcmp.eq.s32.totalorder %v5103_v21, %v5511_v16  ;;  %vm2094_vm3 = vcmp.eq.s32.totalorder %v5103_v21, %v5523_v38  ;;  %v8133_v25 = vld [vmem:[#allocation58_spill] sm:$0xff]  ;;  %v8135_v42 = vld [vmem:[#allocation37_spill] sm:$0xff] }
 0x1e0   : > { %v2300_v46 = vmul.f32 %v2236_v50, %v5375_v56  ;;  %v2168_v22 = vsel %vm2096_vm1, %v5514_v18, 0.0  ;;  %2353 = vmatprep.subr.mxu0 %v2304_v35  ;;  %v2020_v31 = vsel %vm1948_vm2, %v5520_v26, 0.0  ;;  %vm1946_vm4 = vcmp.eq.s32.totalorder %v5112_v36, %v5511_v16  ;;  %v8136_v48 = vld [vmem:[#allocation57_spill] sm:$0xff] }
 0x1e1   : > { %v2232_v29 = vadd.f32 %v2168_v22, %v2022_v39  ;;  %2354 = vmatpush1.msra.mxu0 %v8132_v5  ;;  %v2298_v56 = vmul.f32 %v2234_v45, %v8133_v25  ;;  %v2166_v61 = vsel %vm2094_vm3, %v5514_v18, 0.0  ;;  %v2018_v8 = vsel %vm1946_vm4, %v5520_v26, 0.0  ;;  %v8138_v22 = vld [vmem:[#allocation59_spill] sm:$0xff] }
 0x1e2   : > { %vm2092_vm5 = vcmp.eq.s32.totalorder %v5112_v36, %v5523_v38  ;;  %2355 = vmatprep.subr.mxu0 %v2302_v52  ;;  %v2230_v10 = vadd.f32 %v2166_v61, %v2020_v31  ;;  %vm1944_vm6 = vcmp.eq.s32.totalorder %v8135_v42, %v5511_v16  ;;  %vm2090_vm7 = vcmp.eq.s32.totalorder %v8135_v42, %v5523_v38  ;;  %v8137_v52 = vld [vmem:[#allocation63_spill] sm:$0xff] }
 0x1e3   : > { %v2296_v55 = vmul.f32 %v2232_v29, %v8134_v49  ;;  %v2164_v35 = vsel %vm2092_vm5, %v5514_v18, 0.0  ;;  %2356 = vmatpush1.msra.mxu0 %v8136_v48  ;;  %v2016_v32 = vsel %vm1944_vm6, %v5520_v26, 0.0  ;;  %vm1942_vm8 = vcmp.eq.s32.totalorder %v5125_v53, %v5511_v16  ;;  %v8139_v29 = vld [vmem:[#allocation65_spill] sm:$0xff]  ;;  %v8140_v49 = vld [vmem:[#allocation42_spill] sm:$0xff] }
 0x1e4   : > { %v2228_v50 = vadd.f32 %v2164_v35, %v2018_v8  ;;  %2357 = vmatprep.subr.mxu0 %v2300_v46  ;;  %v2294_v20 = vmul.f32 %v2230_v10, %v8137_v52  ;;  %v2162_v39 = vsel %vm2090_vm7, %v5514_v18, 0.0  ;;  %v2014_v45 = vsel %vm1942_vm8, %v5520_v26, 0.0  ;;  %v8141_v10 = vld [vmem:[#allocation60_spill] sm:$0xff] }
 0x1e5   : > { %vm2088_vm9 = vcmp.eq.s32.totalorder %v5125_v53, %v5523_v38  ;;  %2358 = vmatpush1.msra.mxu0 %v8138_v22  ;;  %v2226_v5 = vadd.f32 %v2162_v39, %v2016_v32  ;;  %v2287_v61 = vmul.f32 %v5508_v63, %v5500_v3  ;;  %v1804_v8 = vsel %vm1732_vm13, %v5174_v19, 0.0  ;;  %v8142_v32 = vld [vmem:[#allocation62_spill] sm:$0xff] }
 0x1e6   : > { %v2292_v31 = vmul.f32 %v2228_v50, %v8139_v29  ;;  %v2160_v25 = vsel %vm2088_vm9, %v5514_v18, 0.0  ;;  %2359 = vmatprep.subr.mxu0 %v2298_v56  ;;  %vm1940_vm10 = vcmp.eq.s32.totalorder %v8140_v49, %v5511_v16  ;;  %vm2086_vm11 = vcmp.eq.s32.totalorder %v8140_v49, %v5523_v38  ;;  %v8144_v29 = vld [vmem:[#allocation43_spill] sm:$0xff] }
 0x1e7   : > { %v2224_v46 = vadd.f32 %v2160_v25, %v2014_v45  ;;  %2360 = vmatpush1.msra.mxu0 %v8141_v10  ;;  %v2290_v35 = vmul.f32 %v2226_v5, %v5478_v6  ;;  %v1868_v48 = vadd.f32 %v1804_v8, %v5506_v59  ;;  %v2012_v3 = vsel %vm1940_vm10, %v5520_v26, 0.0  ;;  %v8143_v45 = vld [vmem:[#allocation64_spill] sm:$0xff]  ;;  %v8146_v8 = vld [vmem:[#allocation66_spill] sm:$0xff] }
 0x1e8   : > { %v2158_v63 = vsel %vm2086_vm11, %v5514_v18, 0.0  ;;  %2361 = vmatprep.subr.mxu0 %v2296_v55  ;;  %vm1585_vm12 = vcmp.eq.s32.totalorder %v5137_v15, %v5190_v33  ;;  %vm1731_vm13 = vcmp.eq.s32.totalorder %v5137_v15, %v5206_v1  ;;  %vm1939_vm14 = vcmp.eq.s32.totalorder %v8140_v49, %v5193_v27  ;;  %v8145_v5 = vld [vmem:[#allocation44_spill] sm:$0xff] }
 0x1e9   : > { %v2288_v56 = vmul.f32 %v2224_v46, %v5498_v30  ;;  %v2222_v50 = vadd.f32 %v2158_v63, %v2012_v3  ;;  %2362 = vmatpush1.msra.mxu0 %v8142_v32  ;;  %v1657_v6 = vsel %vm1585_vm12, %v5185_v41, 0.0  ;;  %v1803_v59 = vsel %vm1731_vm13, %v5199_v51, 0.0 }
 0x1ea   : > { %vm2085_vm15 = vcmp.eq.s32.totalorder %v8140_v49, %v5215_v47  ;;  %2363 = vmatprep.subr.mxu0 %v2294_v20  ;;  %v1867_v55 = vadd.f32 %v1803_v59, %v1657_v6  ;;  %v2011_v52 = vsel %vm1939_vm14, %v5196_v34, 0.0  ;;  %vm1584_vm0 = vcmp.eq.s32.totalorder %v8144_v29, %v5169_v23 }
 0x1eb   : > { %v2286_v30 = vmul.f32 %v2222_v50, %v1868_v48  ;;  %v2157_v39 = vsel %vm2085_vm15, %v5218_v9, 0.0  ;;  %2364 = vmatpush1.msra.mxu0 %v8143_v45  ;;  %vm1730_vm1 = vcmp.eq.s32.totalorder %v8144_v29, %v5182_v37  ;;  %vm1938_vm2 = vcmp.eq.s32.totalorder %v8145_v5, %v5511_v16  ;;  %v8147_v50 = vld [vmem:[#allocation67_spill] sm:$0xff] }
 0x1ec   : > { %v2221_v22 = vadd.f32 %v2157_v39, %v2011_v52  ;;  %2365 = vmatprep.subr.mxu0 %v2292_v31  ;;  %v1656_v20 = vsel %vm1584_vm0, %v5179_v28, 0.0  ;;  %v1802_v25 = vsel %vm1730_vm1, %v5174_v19, 0.0  ;;  %v2010_v46 = vsel %vm1938_vm2, %v5520_v26, 0.0 }
 0x1ed   : > { %vm2084_vm3 = vcmp.eq.s32.totalorder %v8145_v5, %v5523_v38  ;;  %2366 = vmatpush1.msra.mxu0 %v8146_v8  ;;  %v1866_v48 = vadd.f32 %v1802_v25, %v1656_v20  ;;  %vm1583_vm4 = vcmp.eq.s32.totalorder %v8144_v29, %v5190_v33  ;;  %vm1729_vm5 = vcmp.eq.s32.totalorder %v8144_v29, %v5206_v1 }
 0x1ee   : > { %v2285_v10 = vmul.f32 %v2221_v22, %v1867_v55  ;;  %v2156_v3 = vsel %vm2084_vm3, %v5514_v18, 0.0  ;;  %2367 = vmatprep.subr.mxu0 %v2290_v35  ;;  %v1655_v63 = vsel %vm1583_vm4, %v5185_v41, 0.0  ;;  %vm1937_vm6 = vcmp.eq.s32.totalorder %v8145_v5, %v5193_v27  ;;  %v8148_v35 = vld [vmem:[#allocation46_spill] sm:$0xff]  ;;  %v8149_v22 = vld [vmem:[#allocation45_spill] sm:$0xff] }
 0x1ef   : > { %v2220_v31 = vadd.f32 %v2156_v3, %v2010_v46  ;;  %2368 = vmatpush1.msra.mxu0 %v8147_v50  ;;  %v1801_v32 = vsel %vm1729_vm5, %v5199_v51, 0.0  ;;  %v2009_v6 = vsel %vm1937_vm6, %v5196_v34, 0.0  ;;  %vm2083_vm7 = vcmp.eq.s32.totalorder %v8145_v5, %v5215_v47 }
 0x1f0   : > { %vm1582_vm8 = vcmp.eq.s32.totalorder %v8148_v35, %v5169_v23  ;;  %2369 = vmatprep.subr.mxu0 %v2288_v56  ;;  %v1865_v55 = vadd.f32 %v1801_v32, %v1655_v63  ;;  %v2155_v52 = vsel %vm2083_vm7, %v5218_v9, 0.0  ;;  %vm1728_vm9 = vcmp.eq.s32.totalorder %v8148_v35, %v5182_v37 }
 0x1f1   : > { %v2284_v59 = vmul.f32 %v2220_v31, %v1866_v48  ;;  %v1654_v39 = vsel %vm1582_vm8, %v5179_v28, 0.0  ;;  %2370 = vmatpush1.msra.mxu0 %v2287_v61  ;;  %v2219_v45 = vadd.f32 %v2155_v52, %v2009_v6  ;;  %vm1936_vm10 = vcmp.eq.s32.totalorder %v8149_v22, %v5511_v16 }
 0x1f2   : > { %vm2082_vm11 = vcmp.eq.s32.totalorder %v8149_v22, %v5523_v38  ;;  %2371 = vmatprep.subr.mxu0 %v2286_v30  ;;  %v1800_v56 = vsel %vm1728_vm9, %v5174_v19, 0.0  ;;  %v2008_v20 = vsel %vm1936_vm10, %v5520_v26, 0.0  ;;  %vm1581_vm12 = vcmp.eq.s32.totalorder %v8148_v35, %v5190_v33  ;;  %v8150_v30 = vld [vmem:[#allocation47_spill] sm:$0xff] }
 0x1f3   : > { %v2154_v25 = vsel %vm2082_vm11, %v5514_v18, 0.0  ;;  %2372 = vmatpush1.msra.mxu0 %v2285_v10  ;;  %v2283_v61 = vmul.f32 %v2219_v45, %v1865_v55  ;;  %v1864_v46 = vadd.f32 %v1800_v56, %v1654_v39  ;;  %v1653_v48 = vsel %vm1581_vm12, %v5185_v41, 0.0  ;;  %v8151_v55 = vld [vmem:[#allocation48_spill] sm:$0xff] }
 0x1f4   : > { %v2218_v8 = vadd.f32 %v2154_v25, %v2008_v20  ;;  %2373 = vmatprep.subr.mxu0 %v2284_v59  ;;  %vm1727_vm13 = vcmp.eq.s32.totalorder %v8148_v35, %v5206_v1  ;;  %vm1935_vm14 = vcmp.eq.s32.totalorder %v8149_v22, %v5193_v27  ;;  %vm2081_vm15 = vcmp.eq.s32.totalorder %v8149_v22, %v5215_v47 }
 0x1f5   : > { %vm1644_vm0 = vcmp.eq.s32.totalorder %v8150_v30, %v5169_v23  ;;  %2374 = vmatpush1.msra.mxu0 %v2283_v61  ;;  %v1799_v3 = vsel %vm1727_vm13, %v5199_v51, 0.0  ;;  %v2007_v31 = vsel %vm1935_vm14, %v5196_v34, 0.0  ;;  %v2153_v63 = vsel %vm2081_vm15, %v5218_v9, 0.0 }
 0x1f6   : > { %v2282_v10 = vmul.f32 %v2218_v8, %v1864_v46  ;;  %v1863_v50 = vadd.f32 %v1799_v3, %v1653_v48  ;;  %v2217_v32 = vadd.f32 %v2153_v63, %v2007_v31  ;;  %v1716_v6 = vsel %vm1644_vm0, %v5179_v28, 0.0  ;;  %v8152_v8 = vld [vmem:[#allocation50_spill] sm:$0xff] }
 0x1f7   : > { %vm1790_vm1 = vcmp.eq.s32.totalorder %v8150_v30, %v5182_v37  ;;  %vm1998_vm2 = vcmp.eq.s32.totalorder %v8151_v55, %v5511_v16  ;;  %vm2144_vm3 = vcmp.eq.s32.totalorder %v8151_v55, %v5523_v38  ;;  %vm1643_vm4 = vcmp.eq.s32.totalorder %v8150_v30, %v5190_v33 }
 0x1f8   : > { %2375 = vmatprep.subr.mxu0 %v2282_v10  ;;  %v1862_v59 = vsel %vm1790_vm1, %v5174_v19, 0.0  ;;  %v2281_v52 = vmul.f32 %v2217_v32, %v1863_v50  ;;  %v2070_v45 = vsel %vm1998_vm2, %v5520_v26, 0.0  ;;  %v2216_v56 = vsel %vm2144_vm3, %v5514_v18, 0.0  ;;  %v8153_v50 = vld [vmem:[#allocation49_spill] sm:$0xff] }
 0x1f9   : > { %v1926_v39 = vadd.f32 %v1862_v59, %v1716_v6  ;;  %v2280_v20 = vadd.f32 %v2216_v56, %v2070_v45  ;;  %v1715_v25 = vsel %vm1643_vm4, %v5185_v41, 0.0  ;;  %vm1789_vm5 = vcmp.eq.s32.totalorder %v8150_v30, %v5206_v1 }
 0x1fa   : > { %vm1997_vm6 = vcmp.eq.s32.totalorder %v8151_v55, %v5193_v27  ;;  %2376 = vmatpush1.msra.mxu0 %v2281_v52  ;;  %v1861_v61 = vsel %vm1789_vm5, %v5199_v51, 0.0  ;;  %vm2143_vm7 = vcmp.eq.s32.totalorder %v8151_v55, %v5215_v47  ;;  %vm1642_vm8 = vcmp.eq.s32.totalorder %v8152_v8, %v5169_v23  ;;  %v8158_v55 = vld [vmem:[#allocation19_spill] sm:$0xff] }
 0x1fb   : > { %v2069_v46 = vsel %vm1997_vm6, %v5196_v34, 0.0  ;;  %v2344_v48 = vmul.f32 %v2280_v20, %v1926_v39  ;;  %v1925_v10 = vadd.f32 %v1861_v61, %v1715_v25  ;;  %v2215_v3 = vsel %vm2143_vm7, %v5218_v9, 0.0  ;;  %v8154_v20 = vld [vmem:[#allocation51_spill] sm:$0xff] }
 0x1fc   : > { %v1714_v31 = vsel %vm1642_vm8, %v5179_v28, 0.0  ;;  %v2279_v63 = vadd.f32 %v2215_v3, %v2069_v46  ;;  %vm1788_vm9 = vcmp.eq.s32.totalorder %v8152_v8, %v5182_v37  ;;  %vm1996_vm10 = vcmp.eq.s32.totalorder %v8153_v50, %v5511_v16 }
 0x1fd   : > { %vm2142_vm11 = vcmp.eq.s32.totalorder %v8153_v50, %v5523_v38  ;;  %2377 = vmatprep.subr.mxu0 %v2344_v48  ;;  %v1860_v32 = vsel %vm1788_vm9, %v5174_v19, 0.0  ;;  %v2068_v6 = vsel %vm1996_vm10, %v5520_v26, 0.0  ;;  %vm1641_vm12 = vcmp.eq.s32.totalorder %v8152_v8, %v5190_v33 }
 0x1fe   : > { %v2214_v59 = vsel %vm2142_vm11, %v5514_v18, 0.0  ;;  %v2343_v52 = vmul.f32 %v2279_v63, %v1925_v10  ;;  %v1924_v39 = vadd.f32 %v1860_v32, %v1714_v31  ;;  %v1713_v56 = vsel %vm1641_vm12, %v5185_v41, 0.0 }
 0x1ff   : > { %v2278_v45 = vadd.f32 %v2214_v59, %v2068_v6  ;;  %vm1787_vm13 = vcmp.eq.s32.totalorder %v8152_v8, %v5206_v1  ;;  %vm1995_vm14 = vcmp.eq.s32.totalorder %v8153_v50, %v5193_v27  ;;  %vm2141_vm15 = vcmp.eq.s32.totalorder %v8153_v50, %v5215_v47  ;;  %v1179_v25 = vpop.f32.mrf.mxu0  ;;  %v8155_v6 = vld [vmem:[#allocation52_spill] sm:$0xff]  ;;  %v8156_v59 = vld [vmem:[#allocation55_spill] sm:$0xff]  ;;  %v5799_v8 = vld [vmem:[#allocation7 + $0x8] sm:$0x1f] }
 0x200   : > { %vm1640_vm0 = vcmp.eq.s32.totalorder %v8154_v20, %v5169_v23  ;;  %2378 = vmatpush2.msra.mxu0 %v2343_v52  ;;  %v1859_v46 = vsel %vm1787_vm13, %v5199_v51, 0.0  ;;  %v2067_v48 = vsel %vm1995_vm14, %v5196_v34, 0.0  ;;  %v2213_v10 = vsel %vm2141_vm15, %v5218_v9, 0.0 }
 0x201   : > { %v2342_v61 = vmul.f32 %v2278_v45, %v1924_v39  ;;  %v1923_v3 = vadd.f32 %v1859_v46, %v1713_v56  ;;  %v2277_v31 = vadd.f32 %v2213_v10, %v2067_v48  ;;  %v1712_v63 = vsel %vm1640_vm0, %v5179_v28, 0.0  ;;  %v1250_v10 = vpop.f32.mrf.mxu1 }
 0x202   : > { %vm1786_vm1 = vcmp.eq.s32.totalorder %v8154_v20, %v5182_v37  ;;  %vm1994_vm2 = vcmp.eq.s32.totalorder %v8155_v6, %v5511_v16  ;;  %vm2140_vm3 = vcmp.eq.s32.totalorder %v8155_v6, %v5523_v38  ;;  %v8157_v52 = vrot.slane %v8156_v59, %v5012_v62 }
 0x203   : > { %2379 = vmatprep.subr.mxu0 %v2342_v61  ;;  %v1858_v32 = vsel %vm1786_vm1, %v5174_v19, 0.0  ;;  %v2341_v45 = vmul.f32 %v2277_v31, %v1923_v3  ;;  %v2066_v46 = vsel %vm1994_vm2, %v5520_v26, 0.0  ;;  %v2212_v48 = vsel %vm2140_vm3, %v5514_v18, 0.0 }
 0x204   : > { %v1180_v39 = vadd.f32 %v1179_v25, %v8157_v52  ;;  %v1922_v56 = vadd.f32 %v1858_v32, %v1712_v63  ;;  %v2276_v61 = vadd.f32 %v2212_v48, %v2066_v46  ;;  %v8159_v30 = vsub.s32 2, %v8158_v55 }
 0x205   : > { %vm1639_vm4 = vcmp.eq.s32.totalorder %v8154_v20, %v5190_v33  ;;  %2380 = vmatpush2.msra.mxu0 %v2341_v45  ;;  %vm1785_vm5 = vcmp.eq.s32.totalorder %v8154_v20, %v5206_v1  ;;  %vm1993_vm6 = vcmp.eq.s32.totalorder %v8155_v6, %v5193_v27  ;;  %vm2139_vm7 = vcmp.eq.s32.totalorder %v8155_v6, %v5215_v47  ;;  %v1181_v6 = vpop.f32.mrf.mxu0 }
 0x206   : > { %v2425_v50 = vadd.f32 1.0, %v1180_v39  ;;  %v807_v22 = vrot.slane %v5799_v8, %v8159_v30  ;;  %v1711_v25 = vsel %vm1639_vm4, %v5185_v41, 0.0  ;;  %v2340_v3 = vmul.f32 %v2276_v61, %v1922_v56  ;;  %v8160_v39 = vld [vmem:[#allocation53_spill] sm:$0xff] }
 0x207   : > { %v1857_v30 = vsel %vm1785_vm5, %v5199_v51, 0.0  ;;  %v2065_v59 = vsel %vm1993_vm6, %v5196_v34, 0.0  ;;  %v2211_v52 = vsel %vm2139_vm7, %v5218_v9, 0.0  ;;  %vm1638_vm8 = vcmp.eq.s32.totalorder %v8160_v39, %v5169_v23 }
 0x208   : > { %v2427_v31 = vmul.f32 16.0, %v2425_v50  ;;  %v1251_v63 = vadd.f32 %v1250_v10, %v807_v22  ;;  %v1921_v32 = vadd.f32 %v1857_v30, %v1711_v25  ;;  %2381 = vmatprep.subr.mxu0 %v2340_v3  ;;  %v2275_v48 = vadd.f32 %v2211_v52, %v2065_v59  ;;  %v8161_v22 = vld [vmem:[#allocation54_spill] sm:$0xff]  ;;  %v8162_v50 = vld [vmem:[#allocation20_spill] sm:$0xff] }
 0x209   : > { %v1710_v20 = vsel %vm1638_vm8, %v5179_v28, 0.0  ;;  %vm1784_vm9 = vcmp.eq.s32.totalorder %v8160_v39, %v5182_v37  ;;  %vm1992_vm10 = vcmp.eq.s32.totalorder %v8161_v22, %v5511_v16  ;;  %vm2138_vm11 = vcmp.eq.s32.totalorder %v8161_v22, %v5523_v38 }
 0x20a   : > { %v4381_v45 = vadd.f32 -1.0, %v2427_v31  ;;  %v3292_v46 = vadd.f32 1.0, %v1251_v63  ;;  %v803_v56 = vrot.slane %v5799_v8, %v8162_v50  ;;  %v2339_v25 = vmul.f32 %v2275_v48, %v1921_v32  ;;  %v1252_v50 = vpop.f32.mrf.mxu1 }
 0x20b   : > { %v1856_v3 = vsel %vm1784_vm9, %v5174_v19, 0.0  ;;  %v2064_v63 = vsel %vm1992_vm10, %v5520_v26, 0.0  ;;  %v2210_v30 = vsel %vm2138_vm11, %v5514_v18, 0.0  ;;  %v8163_v29 = vsub.s32 3, %v8158_v55 }
 0x20c   : > { %v2431_v10 = vmul.f32 0.5, %v4381_v45  ;;  %v3294_v61 = vmul.f32 16.0, %v3292_v46  ;;  %v1920_v31 = vadd.f32 %v1856_v3, %v1710_v20  ;;  %v1182_v59 = vadd.f32 %v1181_v6, %v803_v56  ;;  %2382 = vmatpush2.msra.mxu0 %v2339_v25 }
 0x20d   : > { %v2274_v5 = vadd.f32 %v2210_v30, %v2064_v63  ;;  %v811_v49 = vrot.slane %v5799_v8, %v8163_v29  ;;  %v8164_v32 = vsub.f32 1.0, %v5528_v58  ;;  %vm1637_vm12 = vcmp.eq.s32.totalorder %v8160_v39, %v5190_v33 }
 0x20e   : > { %v2435_v52 = vfloor.f32 %v2431_v10  ;;  %v4383_v35 = vadd.f32 -1.0, %v3294_v61  ;;  %v3291_v20 = vadd.f32 1.0, %v1182_v59  ;;  %vm1783_vm13 = vcmp.eq.s32.totalorder %v8160_v39, %v5206_v1 }
 0x20f   : > { %v5836_v45 = vrot.slane %v8164_v32, %v5012_v62  ;;  %v2338_v56 = vmul.f32 %v2274_v5, %v1920_v31  ;;  %v1253_v25 = vadd.f32 %v1252_v50, %v811_v49  ;;  %v1855_v29 = vsel %vm1783_vm13, %v5199_v51, 0.0 }
 0x210   : > { %v2441_v6 = vsub.f32 %v2431_v10, %v2435_v52  ;;  %v4443_v46 = vtrunc.f32 %v2435_v52  ;;  %v3298_v48 = vmul.f32 0.5, %v4383_v35  ;;  %v3293_v61 = vmul.f32 16.0, %v3291_v20 }
 0x211   : > { %vm1991_vm14 = vcmp.eq.s32.totalorder %v8161_v22, %v5193_v27  ;;  %v5847_v58 = vrot.slane %v5569_v0, %v5012_v62  ;;  %2383 = vmatprep.subr.mxu0 %v2338_v56  ;;  %v3299_v5 = vadd.f32 1.0, %v1253_v25  ;;  %v1709_v49 = vsel %vm1637_vm12, %v5185_v41, 0.0 }
 0x212   : > { %v2443_v3 = vsub.f32 1.0, %v2441_v6  ;;  %v4444_v63 = vcvt.f32.s32 %v4443_v46  ;;  %v3308_v30 = vfloor.f32 %v3298_v48  ;;  %v5850_v10 = vrot.slane %v2441_v6, %v5012_v62 }
 0x213   : > { %v4382_v35 = vadd.f32 -1.0, %v3293_v61  ;;  %v1919_v59 = vadd.f32 %v1855_v29, %v1709_v49  ;;  %v2063_v0 = vsel %vm1991_vm14, %v5196_v34, 0.0  ;;  %v3301_v20 = vmul.f32 16.0, %v3299_v5 }
 0x214   : > { %v2947_v50 = vadd.s32 1, %v4444_v63  ;;  %v3312_v31 = vsub.f32 %v3298_v48, %v3308_v30  ;;  %v4447_v52 = vtrunc.f32 %v3308_v30  ;;  %vm2137_vm15 = vcmp.eq.s32.totalorder %v8161_v22, %v5215_v47 }
 0x215   : > { %v3297_v32 = vmul.f32 0.5, %v4382_v35  ;;  %v5860_v6 = vrot.slane %v4444_v63, %v5012_v62  ;;  %v5863_v46 = vrot.slane %v2443_v3, %v5012_v62  ;;  %v2209_v61 = vsel %vm2137_vm15, %v5218_v9, 0.0 }
 0x216   : > { %v3314_v56 = vsub.f32 1.0, %v3312_v31  ;;  %v4448_v25 = vcvt.f32.s32 %v4447_v52  ;;  %v4384_v29 = vadd.f32 -1.0, %v3301_v20  ;;  %v2273_v49 = vadd.f32 %v2209_v61, %v2063_v0 }
 0x217   : > { %v3307_v48 = vfloor.f32 %v3297_v32  ;;  %v5867_v30 = vrot.slane %v2947_v50, %v5012_v62  ;;  %v5873_v5 = vrot.slane %v3312_v31, %v5012_v62  ;;  %v1472_v63 = vadd.s32 216, %v8158_v55 }
 0x218   : > { %v5870_v35 = vrot.slane %v3314_v56, %v5012_v62  ;;  %v3468_v3 = vadd.s32 1, %v4448_v25  ;;  %v1471_v15 = vadd.s32 208, %v8158_v55  ;;  %v3305_v52 = vmul.f32 0.5, %v4384_v29 }
 0x219   : > { %8166 = vst [vmem:[#allocation58_spill] sm:$0xff] %v5873_v5  ;;  %v3311_v22 = vsub.f32 %v3297_v32, %v3307_v48  ;;  %v4445_v39 = vtrunc.f32 %v3307_v48  ;;  %v2337_v53 = vmul.f32 %v2273_v49, %v1919_v59  ;;  %v5877_v20 = vshra.s32 %v1472_v63, 4 }
 0x21a   : > { %8165 = vst [vmem:[#allocation56_spill] sm:$0xff] %v5870_v35  ;;  %v5879_v0 = vand.u32 15, %v1472_v63  ;;  %v5882_v50 = vrot.slane %v4448_v25, %v5012_v62  ;;  %v1470_v31 = vadd.s32 200, %v8158_v55  ;;  %v3309_v5 = vfloor.f32 %v3305_v52 }
 0x21b   : > { %8167 = vst [vmem:[#allocation61_spill] sm:$0xff] %v5877_v20  ;;  %v3313_v56 = vsub.f32 1.0, %v3311_v22  ;;  %v4446_v61 = vcvt.f32.s32 %v4445_v39  ;;  %2384 = vmatpush2.msra.mxu0 %v2337_v53  ;;  %vm1990_vm2 = vcmp.eq.s32.totalorder %v5877_v20, %v5511_v16  ;;  %v5892_v59 = vrot.slane %v3468_v3, %v5012_v62 }
 0x21c   : > { %8168 = vst [vmem:[#allocation57_spill] sm:$0xff] %v5879_v0  ;;  %vm1636_vm0 = vcmp.eq.s32.totalorder %v5879_v0, %v5169_v23  ;;  %vm1782_vm1 = vcmp.eq.s32.totalorder %v5879_v0, %v5182_v37  ;;  %v5895_v25 = vrot.slane %v3311_v22, %v5012_v62  ;;  %v5898_v48 = vsub.f32 %v3305_v52, %v3309_v5 }
 0x21d   : > { %8169 = vst [vmem:[#allocation63_spill] sm:$0xff] %v5892_v59  ;;  %v3467_v32 = vadd.s32 1, %v4446_v61  ;;  %v1708_v39 = vsel %vm1636_vm0, %v5179_v28, 0.0  ;;  %v4449_v53 = vtrunc.f32 %v3309_v5  ;;  %v1854_v29 = vsel %vm1782_vm1, %v5174_v19, 0.0 }
 0x21e   : > { %8170 = vst [vmem:[#allocation59_spill] sm:$0xff] %v5895_v25  ;;  %v2062_v49 = vsel %vm1990_vm2, %v5520_v26, 0.0  ;;  %v5903_v63 = vrot.slane %v4446_v61, %v5012_v62  ;;  %v5906_v35 = vrot.slane %v3313_v56, %v5012_v62  ;;  %vm2136_vm3 = vcmp.eq.s32.totalorder %v5877_v20, %v5523_v38 }
 0x21f   : > { %vm1635_vm4 = vcmp.eq.s32.totalorder %v5879_v0, %v5190_v33  ;;  %v5913_v22 = vrot.slane %v3467_v32, %v5012_v62  ;;  %v4450_v5 = vcvt.f32.s32 %v4449_v53  ;;  %v1918_v3 = vadd.f32 %v1854_v29, %v1708_v39 }
 0x220   : > { %8171 = vst [vmem:[#allocation65_spill] sm:$0xff] %v5903_v63  ;;  %8172 = vst [vmem:[#allocation60_spill] sm:$0xff] %v5906_v35  ;;  %v2208_v52 = vsel %vm2136_vm3, %v5514_v18, 0.0  ;;  %vm1781_vm5 = vcmp.eq.s32.totalorder %v5879_v0, %v5206_v1  ;;  %vm1989_vm6 = vcmp.eq.s32.totalorder %v5877_v20, %v5193_v27  ;;  %v5926_v32 = vrot.slane %v5898_v48, %v5012_v62 }
 0x221   : > { %8173 = vst [vmem:[#allocation62_spill] sm:$0xff] %v5913_v22  ;;  %v2272_v61 = vadd.f32 %v2208_v52, %v2062_v49  ;;  %v5922_v56 = vrot.slane %v4450_v5, %v5012_v62  ;;  %v1707_v39 = vsel %vm1635_vm4, %v5185_v41, 0.0  ;;  %v1853_v53 = vsel %vm1781_vm5, %v5199_v51, 0.0 }
 0x222   : > { %8175 = vst [vmem:[#allocation66_spill] sm:$0xff] %v5926_v32  ;;  %v1917_v25 = vadd.f32 %v1853_v53, %v1707_v39  ;;  %v2061_v49 = vsel %vm1989_vm6, %v5196_v34, 0.0  ;;  %vm2135_vm7 = vcmp.eq.s32.totalorder %v5877_v20, %v5215_v47  ;;  %v5933_v52 = vadd.s32 1, %v4450_v5 }
 0x223   : > { %8174 = vst [vmem:[#allocation64_spill] sm:$0xff] %v5922_v56  ;;  %v2336_v29 = vmul.f32 %v2272_v61, %v1918_v3  ;;  %v2207_v22 = vsel %vm2135_vm7, %v5218_v9, 0.0  ;;  %v5936_v56 = vshra.s32 %v1471_v15, 4  ;;  %v5938_v35 = vand.u32 15, %v1471_v15 }
 0x224   : > { %v2271_v32 = vadd.f32 %v2207_v22, %v2061_v49  ;;  %v5940_v63 = vshra.s32 %v1470_v31, 4  ;;  %v5942_v0 = vand.u32 15, %v1470_v31  ;;  %v1469_v3 = vadd.s32 192, %v8158_v55 }
 0x225   : > { %8176 = vst [vmem:[#allocation67_spill] sm:$0xff] %v5936_v56  ;;  %8177 = vst [vmem:[#allocation55_spill] sm:$0xff] %v5938_v35  ;;  %2385 = vmatprep.subr.mxu0 %v2336_v29  ;;  %vm1634_vm8 = vcmp.eq.s32.totalorder %v5938_v35, %v5169_v23  ;;  %vm1780_vm9 = vcmp.eq.s32.totalorder %v5938_v35, %v5182_v37  ;;  %vm1988_vm10 = vcmp.eq.s32.totalorder %v5936_v56, %v5511_v16 }
 0x226   : > { %8178 = vst [vmem:[#allocation71_spill] sm:$0xff] %v5940_v63  ;;  %8179 = vst [vmem:[#allocation72_spill] sm:$0xff] %v5942_v0  ;;  %vm2134_vm11 = vcmp.eq.s32.totalorder %v5936_v56, %v5523_v38  ;;  %v2335_v15 = vmul.f32 %v2271_v32, %v1917_v25  ;;  %v1706_v22 = vsel %vm1634_vm8, %v5179_v28, 0.0  ;;  %v1852_v31 = vsel %vm1780_vm9, %v5174_v19, 0.0 }
 0x227   : > { %v2060_v5 = vsel %vm1988_vm10, %v5520_v26, 0.0  ;;  %v1916_v61 = vadd.f32 %v1852_v31, %v1706_v22  ;;  %v2206_v39 = vsel %vm2134_vm11, %v5514_v18, 0.0  ;;  %vm1633_vm12 = vcmp.eq.s32.totalorder %v5938_v35, %v5190_v33 }
 0x228   : > { %vm1779_vm13 = vcmp.eq.s32.totalorder %v5938_v35, %v5206_v1  ;;  %2386 = vmatpush2.msra.mxu0 %v2335_v15  ;;  %v2270_v53 = vadd.f32 %v2206_v39, %v2060_v5  ;;  %v1705_v29 = vsel %vm1633_vm12, %v5185_v41, 0.0  ;;  %vm1987_vm14 = vcmp.eq.s32.totalorder %v5936_v56, %v5193_v27 }
 0x229   : > { %v1851_v25 = vsel %vm1779_vm13, %v5199_v51, 0.0  ;;  %v2059_v49 = vsel %vm1987_vm14, %v5196_v34, 0.0  ;;  %vm2133_vm15 = vcmp.eq.s32.totalorder %v5936_v56, %v5215_v47  ;;  %vm1632_vm0 = vcmp.eq.s32.totalorder %v5942_v0, %v5169_v23 }
 0x22a   : > { %v1915_v32 = vadd.f32 %v1851_v25, %v1705_v29  ;;  %v2334_v22 = vmul.f32 %v2270_v53, %v1916_v61  ;;  %v2205_v15 = vsel %vm2133_vm15, %v5218_v9, 0.0  ;;  %v1704_v31 = vsel %vm1632_vm0, %v5179_v28, 0.0 }
 0x22b   : > { %vm1778_vm1 = vcmp.eq.s32.totalorder %v5942_v0, %v5182_v37  ;;  %v2269_v5 = vadd.f32 %v2205_v15, %v2059_v49  ;;  %vm1986_vm2 = vcmp.eq.s32.totalorder %v5940_v63, %v5511_v16  ;;  %vm2132_vm3 = vcmp.eq.s32.totalorder %v5940_v63, %v5523_v38 }
 0x22c   : > { %v1850_v39 = vsel %vm1778_vm1, %v5174_v19, 0.0  ;;  %2387 = vmatprep.subr.mxu0 %v2334_v22  ;;  %v2058_v61 = vsel %vm1986_vm2, %v5520_v26, 0.0  ;;  %v2204_v53 = vsel %vm2132_vm3, %v5514_v18, 0.0  ;;  %vm1631_vm4 = vcmp.eq.s32.totalorder %v5942_v0, %v5190_v33 }
 0x22d   : > { %v1914_v29 = vadd.f32 %v1850_v39, %v1704_v31  ;;  %v2333_v25 = vmul.f32 %v2269_v5, %v1915_v32  ;;  %v2268_v56 = vadd.f32 %v2204_v53, %v2058_v61  ;;  %v1703_v49 = vsel %vm1631_vm4, %v5185_v41, 0.0 }
 0x22e   : > { %vm1777_vm5 = vcmp.eq.s32.totalorder %v5942_v0, %v5206_v1  ;;  %vm1985_vm6 = vcmp.eq.s32.totalorder %v5940_v63, %v5193_v27  ;;  %vm2131_vm7 = vcmp.eq.s32.totalorder %v5940_v63, %v5215_v47  ;;  %v5991_v22 = vshra.s32 %v1469_v3, 4 }
 0x22f   : > { %v1849_v15 = vsel %vm1777_vm5, %v5199_v51, 0.0  ;;  %2388 = vmatpush2.msra.mxu0 %v2333_v25  ;;  %v2332_v31 = vmul.f32 %v2268_v56, %v1914_v29  ;;  %v2057_v32 = vsel %vm1985_vm6, %v5196_v34, 0.0  ;;  %v2203_v5 = vsel %vm2131_vm7, %v5218_v9, 0.0 }
 0x230   : > { %8180 = vst [vmem:[#allocation73_spill] sm:$0xff] %v5991_v22  ;;  %v1913_v39 = vadd.f32 %v1849_v15, %v1703_v49  ;;  %v2267_v61 = vadd.f32 %v2203_v5, %v2057_v32  ;;  %v5995_v53 = vand.u32 15, %v1469_v3  ;;  %vm1984_vm8 = vcmp.eq.s32.totalorder %v5991_v22, %v5511_v16 }
 0x231   : > { %vm2130_vm9 = vcmp.eq.s32.totalorder %v5991_v22, %v5523_v38  ;;  %2389 = vmatprep.subr.mxu0 %v2332_v31  ;;  %v2056_v63 = vsel %vm1984_vm8, %v5520_v26, 0.0  ;;  %vm1983_vm10 = vcmp.eq.s32.totalorder %v5991_v22, %v5193_v27  ;;  %vm2129_vm11 = vcmp.eq.s32.totalorder %v5991_v22, %v5215_v47 }
 0x232   : > { %8181 = vst [vmem:[#allocation74_spill] sm:$0xff] %v5995_v53  ;;  %v2202_v25 = vsel %vm2130_vm9, %v5514_v18, 0.0  ;;  %v2331_v56 = vmul.f32 %v2267_v61, %v1913_v39  ;;  %vm1630_vm12 = vcmp.eq.s32.totalorder %v5995_v53, %v5169_v23  ;;  %vm1776_vm13 = vcmp.eq.s32.totalorder %v5995_v53, %v5182_v37 }
 0x233   : > { %v2266_v3 = vadd.f32 %v2202_v25, %v2056_v63  ;;  %v1702_v29 = vsel %vm1630_vm12, %v5179_v28, 0.0  ;;  %v1848_v49 = vsel %vm1776_vm13, %v5174_v19, 0.0  ;;  %vm1629_vm14 = vcmp.eq.s32.totalorder %v5995_v53, %v5190_v33 }
 0x234   : > { %vm1775_vm15 = vcmp.eq.s32.totalorder %v5995_v53, %v5206_v1  ;;  %2390 = vmatpush2.msra.mxu0 %v2331_v56  ;;  %v1912_v15 = vadd.f32 %v1848_v49, %v1702_v29  ;;  %v1701_v31 = vsel %vm1629_vm14, %v5185_v41, 0.0  ;;  %v2055_v32 = vsel %vm1983_vm10, %v5196_v34, 0.0 }
 0x235   : > { %v1847_v39 = vsel %vm1775_vm15, %v5199_v51, 0.0  ;;  %v2201_v63 = vsel %vm2129_vm11, %v5218_v9, 0.0  ;;  %v1468_v61 = vadd.s32 184, %v8158_v55  ;;  %v1467_v25 = vadd.s32 176, %v8158_v55 }
 0x236   : > { %v1911_v5 = vadd.f32 %v1847_v39, %v1701_v31  ;;  %v2330_v22 = vmul.f32 %v2266_v3, %v1912_v15  ;;  %v2265_v0 = vadd.f32 %v2201_v63, %v2055_v32  ;;  %v1466_v35 = vadd.s32 168, %v8158_v55 }
 0x237   : > { %v6025_v56 = vadd.s32 160, %v8158_v55  ;;  %v6027_v29 = vshra.s32 %v1468_v61, 4  ;;  %v6029_v49 = vand.u32 15, %v1468_v61  ;;  %v6031_v53 = vshra.s32 %v1467_v25, 4 }
 0x238   : > { %v6033_v31 = vand.u32 15, %v1467_v25  ;;  %2391 = vmatprep.subr.mxu0 %v2330_v22  ;;  %v2329_v39 = vmul.f32 %v2265_v0, %v1911_v5  ;;  %v6035_v20 = vshra.s32 %v1466_v35, 4  ;;  %v6037_v59 = vand.u32 15, %v1466_v35 }
 0x239   : > { %8182 = vst [vmem:[#allocation75_spill] sm:$0xff] %v6027_v29  ;;  %8183 = vst [vmem:[#allocation76_spill] sm:$0xff] %v6029_v49  ;;  %v6040_v3 = vshra.s32 %v6025_v56, 4  ;;  %vm1628_vm0 = vcmp.eq.s32.totalorder %v6029_v49, %v5169_v23  ;;  %vm1774_vm1 = vcmp.eq.s32.totalorder %v6029_v49, %v5182_v37  ;;  %vm1982_vm2 = vcmp.eq.s32.totalorder %v6027_v29, %v5511_v16 }
 0x23a   : > { %8184 = vst [vmem:[#allocation77_spill] sm:$0xff] %v6031_v53  ;;  %8185 = vst [vmem:[#allocation78_spill] sm:$0xff] %v6033_v31  ;;  %vm2128_vm3 = vcmp.eq.s32.totalorder %v6027_v29, %v5523_v38  ;;  %2392 = vmatpush2.msra.mxu0 %v2329_v39  ;;  %v1700_v0 = vsel %vm1628_vm0, %v5179_v28, 0.0  ;;  %v1846_v35 = vsel %vm1774_vm1, %v5174_v19, 0.0  ;;  %v2054_v22 = vsel %vm1982_vm2, %v5520_v26, 0.0 }
 0x23b   : > { %8186 = vst [vmem:[#allocation79_spill] sm:$0xff] %v6035_v20  ;;  %8187 = vst [vmem:[#allocation80_spill] sm:$0xff] %v6037_v59  ;;  %v2200_v15 = vsel %vm2128_vm3, %v5514_v18, 0.0  ;;  %v1910_v32 = vadd.f32 %v1846_v35, %v1700_v0  ;;  %vm1627_vm4 = vcmp.eq.s32.totalorder %v6029_v49, %v5190_v33  ;;  %vm1773_vm5 = vcmp.eq.s32.totalorder %v6029_v49, %v5206_v1 }
 0x23c   : > { %8188 = vst [vmem:[#allocation81_spill] sm:$0xff] %v6040_v3  ;;  %v2264_v5 = vadd.f32 %v2200_v15, %v2054_v22  ;;  %v1699_v63 = vsel %vm1627_vm4, %v5185_v41, 0.0  ;;  %v1845_v61 = vsel %vm1773_vm5, %v5199_v51, 0.0  ;;  %vm1981_vm6 = vcmp.eq.s32.totalorder %v6027_v29, %v5193_v27 }
 0x23d   : > { %vm2127_vm7 = vcmp.eq.s32.totalorder %v6027_v29, %v5215_v47  ;;  %v1909_v39 = vadd.f32 %v1845_v61, %v1699_v63  ;;  %v2053_v0 = vsel %vm1981_vm6, %v5196_v34, 0.0  ;;  %vm1626_vm8 = vcmp.eq.s32.totalorder %v6033_v31, %v5169_v23 }
 0x23e   : > { %v2328_v25 = vmul.f32 %v2264_v5, %v1910_v32  ;;  %v2199_v35 = vsel %vm2127_vm7, %v5218_v9, 0.0  ;;  %vm1772_vm9 = vcmp.eq.s32.totalorder %v6033_v31, %v5182_v37  ;;  %vm1980_vm10 = vcmp.eq.s32.totalorder %v6031_v53, %v5511_v16 }
 0x23f   : > { %v2263_v22 = vadd.f32 %v2199_v35, %v2053_v0  ;;  %v1698_v15 = vsel %vm1626_vm8, %v5179_v28, 0.0  ;;  %v1844_v32 = vsel %vm1772_vm9, %v5174_v19, 0.0  ;;  %v2052_v5 = vsel %vm1980_vm10, %v5520_v26, 0.0 }
 0x240   : > { %2393 = vmatprep.subr.mxu0 %v2328_v25  ;;  %vm2126_vm11 = vcmp.eq.s32.totalorder %v6031_v53, %v5523_v38  ;;  %v1908_v61 = vadd.f32 %v1844_v32, %v1698_v15  ;;  %vm1625_vm12 = vcmp.eq.s32.totalorder %v6033_v31, %v5190_v33  ;;  %vm1771_vm13 = vcmp.eq.s32.totalorder %v6033_v31, %v5206_v1 }
 0x241   : > { %v2327_v63 = vmul.f32 %v2263_v22, %v1909_v39  ;;  %v2198_v0 = vsel %vm2126_vm11, %v5514_v18, 0.0  ;;  %v1697_v29 = vsel %vm1625_vm12, %v5185_v41, 0.0  ;;  %vm1979_vm14 = vcmp.eq.s32.totalorder %v6031_v53, %v5193_v27 }
 0x242   : > { %v2262_v35 = vadd.f32 %v2198_v0, %v2052_v5  ;;  %v1843_v25 = vsel %vm1771_vm13, %v5199_v51, 0.0  ;;  %v2051_v39 = vsel %vm1979_vm14, %v5196_v34, 0.0  ;;  %vm2125_vm15 = vcmp.eq.s32.totalorder %v6031_v53, %v5215_v47 }
 0x243   : > { %2394 = vmatpush2.msra.mxu0 %v2327_v63  ;;  %vm1624_vm0 = vcmp.eq.s32.totalorder %v6037_v59, %v5169_v23  ;;  %v1907_v15 = vadd.f32 %v1843_v25, %v1697_v29  ;;  %v2197_v32 = vsel %vm2125_vm15, %v5218_v9, 0.0  ;;  %vm1770_vm1 = vcmp.eq.s32.totalorder %v6037_v59, %v5182_v37 }
 0x244   : > { %v2326_v22 = vmul.f32 %v2262_v35, %v1908_v61  ;;  %v1696_v5 = vsel %vm1624_vm0, %v5179_v28, 0.0  ;;  %v2261_v0 = vadd.f32 %v2197_v32, %v2051_v39  ;;  %vm1978_vm2 = vcmp.eq.s32.totalorder %v6035_v20, %v5511_v16 }
 0x245   : > { %vm2124_vm3 = vcmp.eq.s32.totalorder %v6035_v20, %v5523_v38  ;;  %v1842_v63 = vsel %vm1770_vm1, %v5174_v19, 0.0  ;;  %v2050_v61 = vsel %vm1978_vm2, %v5520_v26, 0.0  ;;  %vm1623_vm4 = vcmp.eq.s32.totalorder %v6037_v59, %v5190_v33 }
 0x246   : > { %2395 = vmatprep.subr.mxu0 %v2326_v22  ;;  %v2196_v29 = vsel %vm2124_vm3, %v5514_v18, 0.0  ;;  %v2325_v35 = vmul.f32 %v2261_v0, %v1907_v15  ;;  %v1906_v25 = vadd.f32 %v1842_v63, %v1696_v5  ;;  %v1695_v32 = vsel %vm1623_vm4, %v5185_v41, 0.0 }
 0x247   : > { %v2260_v39 = vadd.f32 %v2196_v29, %v2050_v61  ;;  %vm1769_vm5 = vcmp.eq.s32.totalorder %v6037_v59, %v5206_v1  ;;  %vm1977_vm6 = vcmp.eq.s32.totalorder %v6035_v20, %v5193_v27  ;;  %vm2123_vm7 = vcmp.eq.s32.totalorder %v6035_v20, %v5215_v47 }
 0x248   : > { %v6112_v22 = vand.u32 15, %v6025_v56  ;;  %2396 = vmatpush2.msra.mxu0 %v2325_v35  ;;  %v1841_v15 = vsel %vm1769_vm5, %v5199_v51, 0.0  ;;  %v2049_v5 = vsel %vm1977_vm6, %v5196_v34, 0.0  ;;  %v2195_v0 = vsel %vm2123_vm7, %v5218_v9, 0.0 }
 0x249   : > { %v2324_v53 = vmul.f32 %v2260_v39, %v1906_v25  ;;  %v1905_v63 = vadd.f32 %v1841_v15, %v1695_v32  ;;  %v2259_v61 = vadd.f32 %v2195_v0, %v2049_v5  ;;  %vm1976_vm10 = vcmp.eq.s32.totalorder %v6040_v3, %v5511_v16 }
 0x24a   : > { %8189 = vst [vmem:[#allocation82_spill] sm:$0xff] %v6112_v22  ;;  %vm1622_vm8 = vcmp.eq.s32.totalorder %v6112_v22, %v5169_v23  ;;  %vm1768_vm9 = vcmp.eq.s32.totalorder %v6112_v22, %v5182_v37  ;;  %vm2122_vm11 = vcmp.eq.s32.totalorder %v6040_v3, %v5523_v38  ;;  %v2048_v39 = vsel %vm1976_vm10, %v5520_v26, 0.0 }
 0x24b   : > { %2397 = vmatprep.subr.mxu0 %v2324_v53  ;;  %v1694_v56 = vsel %vm1622_vm8, %v5179_v28, 0.0  ;;  %v1840_v29 = vsel %vm1768_vm9, %v5174_v19, 0.0  ;;  %v2323_v35 = vmul.f32 %v2259_v61, %v1905_v63  ;;  %v2194_v32 = vsel %vm2122_vm11, %v5514_v18, 0.0 }
 0x24c   : > { %v1904_v25 = vadd.f32 %v1840_v29, %v1694_v56  ;;  %v2258_v15 = vadd.f32 %v2194_v32, %v2048_v39  ;;  %vm1621_vm12 = vcmp.eq.s32.totalorder %v6112_v22, %v5190_v33  ;;  %vm1767_vm13 = vcmp.eq.s32.totalorder %v6112_v22, %v5206_v1 }
 0x24d   : > { %vm1975_vm14 = vcmp.eq.s32.totalorder %v6040_v3, %v5193_v27  ;;  %2398 = vmatpush2.msra.mxu0 %v2323_v35  ;;  %v1693_v53 = vsel %vm1621_vm12, %v5185_v41, 0.0  ;;  %v1839_v5 = vsel %vm1767_vm13, %v5199_v51, 0.0  ;;  %vm2121_vm15 = vcmp.eq.s32.totalorder %v6040_v3, %v5215_v47 }
 0x24e   : > { %v2047_v0 = vsel %vm1975_vm14, %v5196_v34, 0.0  ;;  %v2322_v63 = vmul.f32 %v2258_v15, %v1904_v25  ;;  %v1903_v61 = vadd.f32 %v1839_v5, %v1693_v53  ;;  %v2193_v56 = vsel %vm2121_vm15, %v5218_v9, 0.0 }
 0x24f   : > { %v1464_v29 = vadd.s32 152, %v8158_v55  ;;  %v8190_v39 = vsub.f32 1.0, %v5898_v48  ;;  %v2257_v35 = vadd.f32 %v2193_v56, %v2047_v0  ;;  %v1463_v22 = vadd.s32 144, %v8158_v55 }
 0x250   : > { %v1462_v20 = vadd.s32 136, %v8158_v55  ;;  %v6151_v59 = vrot.slane %v5933_v52, %v5012_v62  ;;  %2399 = vmatprep.subr.mxu0 %v2322_v63  ;;  %v6158_v53 = vadd.s32 128, %v8158_v55 }
 0x251   : > { %v6145_v32 = vrot.slane %v8190_v39, %v5012_v62  ;;  %v6153_v25 = vshra.s32 %v1464_v29, 4  ;;  %v6155_v15 = vand.u32 15, %v1464_v29  ;;  %v2321_v48 = vmul.f32 %v2257_v35, %v1903_v61 }
 0x252   : > { %v6160_v5 = vshra.s32 %v1463_v22, 4  ;;  %v6162_v0 = vand.u32 15, %v1463_v22  ;;  %v6164_v56 = vshra.s32 %v1462_v20, 4 }
 0x253   : > { %8191 = vst [vmem:[#allocation83_spill] sm:$0xff] %v6145_v32  ;;  %8192 = vst [vmem:[#allocation84_spill] sm:$0xff] %v6153_v25  ;;  %vm1620_vm0 = vcmp.eq.s32.totalorder %v6155_v15, %v5169_v23  ;;  %vm1766_vm1 = vcmp.eq.s32.totalorder %v6155_v15, %v5182_v37  ;;  %vm1974_vm2 = vcmp.eq.s32.totalorder %v6153_v25, %v5511_v16  ;;  %2400 = vmatpush2.msra.mxu0 %v2321_v48 }
 0x254   : > { %8193 = vst [vmem:[#allocation85_spill] sm:$0xff] %v6160_v5  ;;  %vm2120_vm3 = vcmp.eq.s32.totalorder %v6153_v25, %v5523_v38  ;;  %v1692_v52 = vsel %vm1620_vm0, %v5179_v28, 0.0  ;;  %v1838_v22 = vsel %vm1766_vm1, %v5174_v19, 0.0  ;;  %v2046_v63 = vsel %vm1974_vm2, %v5520_v26, 0.0 }
 0x255   : > { %v2192_v61 = vsel %vm2120_vm3, %v5514_v18, 0.0  ;;  %v1902_v29 = vadd.f32 %v1838_v22, %v1692_v52  ;;  %vm1619_vm4 = vcmp.eq.s32.totalorder %v6155_v15, %v5190_v33  ;;  %vm1765_vm5 = vcmp.eq.s32.totalorder %v6155_v15, %v5206_v1 }
 0x256   : > { %v2256_v39 = vadd.f32 %v2192_v61, %v2046_v63  ;;  %v1691_v35 = vsel %vm1619_vm4, %v5185_v41, 0.0  ;;  %v1837_v48 = vsel %vm1765_vm5, %v5199_v51, 0.0  ;;  %vm1973_vm6 = vcmp.eq.s32.totalorder %v6153_v25, %v5193_v27 }
 0x257   : > { %vm2119_vm7 = vcmp.eq.s32.totalorder %v6153_v25, %v5215_v47  ;;  %v1901_v32 = vadd.f32 %v1837_v48, %v1691_v35  ;;  %v2045_v52 = vsel %vm1973_vm6, %v5196_v34, 0.0  ;;  %vm1618_vm8 = vcmp.eq.s32.totalorder %v6162_v0, %v5169_v23 }
 0x258   : > { %v2320_v3 = vmul.f32 %v2256_v39, %v1902_v29  ;;  %v2191_v22 = vsel %vm2119_vm7, %v5218_v9, 0.0  ;;  %vm1764_vm9 = vcmp.eq.s32.totalorder %v6162_v0, %v5182_v37  ;;  %vm1972_vm10 = vcmp.eq.s32.totalorder %v6160_v5, %v5511_v16 }
 0x259   : > { %v2255_v63 = vadd.f32 %v2191_v22, %v2045_v52  ;;  %v1690_v61 = vsel %vm1618_vm8, %v5179_v28, 0.0  ;;  %v1836_v29 = vsel %vm1764_vm9, %v5174_v19, 0.0  ;;  %v2044_v39 = vsel %vm1972_vm10, %v5520_v26, 0.0 }
 0x25a   : > { %2401 = vmatprep.subr.mxu0 %v2320_v3  ;;  %vm2118_vm11 = vcmp.eq.s32.totalorder %v6160_v5, %v5523_v38  ;;  %v1900_v48 = vadd.f32 %v1836_v29, %v1690_v61  ;;  %vm1617_vm12 = vcmp.eq.s32.totalorder %v6162_v0, %v5190_v33  ;;  %vm1763_vm13 = vcmp.eq.s32.totalorder %v6162_v0, %v5206_v1 }
 0x25b   : > { %v2319_v35 = vmul.f32 %v2255_v63, %v1901_v32  ;;  %v2190_v52 = vsel %vm2118_vm11, %v5514_v18, 0.0  ;;  %v1689_v25 = vsel %vm1617_vm12, %v5185_v41, 0.0  ;;  %vm1971_vm14 = vcmp.eq.s32.totalorder %v6160_v5, %v5193_v27 }
 0x25c   : > { %v2254_v22 = vadd.f32 %v2190_v52, %v2044_v39  ;;  %v1835_v3 = vsel %vm1763_vm13, %v5199_v51, 0.0  ;;  %v2043_v32 = vsel %vm1971_vm14, %v5196_v34, 0.0  ;;  %vm2117_vm15 = vcmp.eq.s32.totalorder %v6160_v5, %v5215_v47  ;;  %v8195_v52 = vld [vmem:[#allocation21_spill] sm:$0xff] }
 0x25d   : > { %2402 = vmatpush2.msra.mxu0 %v2319_v35  ;;  %v6213_v63 = vand.u32 15, %v1462_v20  ;;  %v1899_v29 = vadd.f32 %v1835_v3, %v1689_v25  ;;  %v2189_v39 = vsel %vm2117_vm15, %v5218_v9, 0.0  ;;  %vm1970_vm0 = vcmp.eq.s32.totalorder %v6164_v56, %v5511_v16 }
 0x25e   : > { %v2318_v61 = vmul.f32 %v2254_v22, %v1900_v48  ;;  %vm2487_vm1 = vcmp.eq.s32.totalorder %v8195_v52, %v5531_v13  ;;  %v2253_v35 = vadd.f32 %v2189_v39, %v2043_v32  ;;  %v2042_v20 = vsel %vm1970_vm0, %v5520_v26, 0.0 }
 0x25f   : > { %8194 = vst [vmem:[#allocation86_spill] sm:$0xff] %v6213_v63  ;;  %vm1616_vm2 = vcmp.eq.s32.totalorder %v6213_v63, %v5169_v23  ;;  %vm1762_vm3 = vcmp.eq.s32.totalorder %v6213_v63, %v5182_v37  ;;  %vm2633_vm4 = vcmp.eq.s32.totalorder %v8195_v52, %v5534_v7  ;;  %vm2116_vm5 = vcmp.eq.s32.totalorder %v6164_v56, %v5523_v38 }
 0x260   : > { %2403 = vmatprep.subr.mxu0 %v2318_v61  ;;  %v1688_v25 = vsel %vm1616_vm2, %v5179_v28, 0.0  ;;  %v1834_v48 = vsel %vm1762_vm3, %v5174_v19, 0.0  ;;  %vm1615_vm6 = vcmp.eq.s32.totalorder %v6213_v63, %v5190_v33  ;;  %v2317_v22 = vmul.f32 %v2253_v35, %v1899_v29 }
 0x261   : > { %v1898_v3 = vadd.f32 %v1834_v48, %v1688_v25  ;;  %v2188_v32 = vsel %vm2116_vm5, %v5514_v18, 0.0  ;;  %v1687_v39 = vsel %vm1615_vm6, %v5185_v41, 0.0  ;;  %vm1761_vm7 = vcmp.eq.s32.totalorder %v6213_v63, %v5206_v1 }
 0x262   : > { %v2252_v5 = vadd.f32 %v2188_v32, %v2042_v20  ;;  %vm1969_vm8 = vcmp.eq.s32.totalorder %v6164_v56, %v5193_v27  ;;  %vm2115_vm9 = vcmp.eq.s32.totalorder %v6164_v56, %v5215_v47  ;;  %2404 = vmatpush2.msra.mxu0 %v2317_v22  ;;  %v1833_v61 = vsel %vm1761_vm7, %v5199_v51, 0.0 }
 0x263   : > { %v2041_v29 = vsel %vm1969_vm8, %v5196_v34, 0.0  ;;  %v2187_v35 = vsel %vm2115_vm9, %v5218_v9, 0.0  ;;  %v6245_v25 = vshra.s32 %v6158_v53, 4  ;;  %v1897_v48 = vadd.f32 %v1833_v61, %v1687_v39 }
 0x264   : > { %v2316_v20 = vmul.f32 %v2252_v5, %v1898_v3  ;;  %v2251_v32 = vadd.f32 %v2187_v35, %v2041_v29  ;;  %v6248_v63 = vand.u32 15, %v6158_v53  ;;  %vm2841_vm3 = vcmp.eq.s32.totalorder %v5069_v54, %v5860_v6  ;;  %v8197_v29 = vld [vmem:[#allocation69_spill] sm:$0xff]  ;;  %v8198_v35 = vld [vmem:[#allocation68_spill] sm:$0xff] }
 0x265   : > { %8196 = vst [vmem:[#allocation21_spill] sm:$0xff] %v6245_v25  ;;  %vm1968_vm10 = vcmp.eq.s32.totalorder %v6245_v25, %v5511_v16  ;;  %vm2114_vm11 = vcmp.eq.s32.totalorder %v6245_v25, %v5523_v38  ;;  %vm1967_vm12 = vcmp.eq.s32.totalorder %v6245_v25, %v5193_v27  ;;  %vm2113_vm13 = vcmp.eq.s32.totalorder %v6245_v25, %v5215_v47 }
 0x266   : > { %2405 = vmatprep.subr.mxu0 %v2316_v20  ;;  %v2315_v22 = vmul.f32 %v2251_v32, %v1897_v48  ;;  %vm1614_vm14 = vcmp.eq.s32.totalorder %v6248_v63, %v5169_v23  ;;  %vm1760_vm15 = vcmp.eq.s32.totalorder %v6248_v63, %v5182_v37  ;;  %v2040_v53 = vsel %vm1968_vm10, %v5520_v26, 0.0  ;;  %v8199_v32 = vld [vmem:[#allocation70_spill] sm:$0xff] }
 0x267   : > { %v1686_v16 = vsel %vm1614_vm14, %v5179_v28, 0.0  ;;  %v1832_v38 = vsel %vm1760_vm15, %v5174_v19, 0.0  ;;  %v2186_v5 = vsel %vm2114_vm11, %v5514_v18, 0.0  ;;  %vm1613_vm0 = vcmp.eq.s32.totalorder %v6248_v63, %v5190_v33 }
 0x268   : > { %2406 = vmatpush2.msra.mxu0 %v2315_v22  ;;  %v1896_v3 = vadd.f32 %v1832_v38, %v1686_v16  ;;  %v2250_v39 = vadd.f32 %v2186_v5, %v2040_v53  ;;  %v1685_v61 = vsel %vm1613_vm0, %v5185_v41, 0.0  ;;  %vm1759_vm2 = vcmp.eq.s32.totalorder %v6248_v63, %v5206_v1  ;;  %v8200_v53 = vld [vmem:[#allocation22_spill] sm:$0xff] }
 0x269   : > { %v1831_v23 = vsel %vm1759_vm2, %v5199_v51, 0.0  ;;  %v2039_v19 = vsel %vm1967_vm12, %v5196_v34, 0.0  ;;  %v2185_v28 = vsel %vm2113_vm13, %v5218_v9, 0.0  ;;  %v2559_v37 = vsel %vm2487_vm1, %v5526_v40, 0.0 }
 0x26a   : > { %v2314_v41 = vmul.f32 %v2250_v39, %v1896_v3  ;;  %v1895_v33 = vadd.f32 %v1831_v23, %v1685_v61  ;;  %v2249_v1 = vadd.f32 %v2185_v28, %v2039_v19  ;;  %v2705_v51 = vsel %vm2633_vm4, %v5517_v14, 0.0  ;;  %v8201_v39 = vld [vmem:[#allocation24_spill] sm:$0xff] }
 0x26b   : > { %v2769_v27 = vadd.f32 %v2705_v51, %v2559_v37  ;;  %vm2987_vm5 = vcmp.eq.s32.totalorder %v5069_v54, %v5867_v30  ;;  %vm2486_vm6 = vcmp.eq.s32.totalorder %v8195_v52, %v5540_v43  ;;  %v2913_v47 = vsel %vm2841_vm3, %v5863_v46, 0.0  ;;  %v8202_v51 = vld [vmem:[#allocation23_spill] sm:$0xff] }
 0x26c   : > { %2407 = vmatprep.subr.mxu0 %v2314_v41  ;;  %v2313_v34 = vmul.f32 %v2249_v1, %v1895_v33  ;;  %v3059_v9 = vsel %vm2987_vm5, %v5850_v10, 0.0  ;;  %v2558_v18 = vsel %vm2486_vm6, %v5543_v24, 0.0  ;;  %vm2632_vm1 = vcmp.eq.s32.totalorder %v8195_v52, %v5554_v44 }
 0x26d   : > { %v3123_v26 = vadd.f32 %v3059_v9, %v2913_v47  ;;  %vm2840_vm4 = vcmp.eq.s32.totalorder %v5069_v54, %v8197_v29  ;;  %vm2986_vm7 = vcmp.eq.s32.totalorder %v5069_v54, %v5847_v58  ;;  %v2704_v20 = vsel %vm2632_vm1, %v8198_v35, 0.0 }
 0x26e   : > { %2408 = vmatpush2.msra.mxu0 %v2313_v34  ;;  %v2912_v48 = vsel %vm2840_vm4, %v5836_v45, 0.0  ;;  %v3058_v22 = vsel %vm2986_vm7, %v8199_v32, 0.0  ;;  %vm2485_vm8 = vcmp.eq.s32.totalorder %v8200_v53, %v5531_v13  ;;  %v2768_v38 = vadd.f32 %v2704_v20, %v2558_v18 }
 0x26f   : > { %v3187_v16 = vmul.f32 %v3123_v26, %v2769_v27  ;;  %v3122_v5 = vadd.f32 %v3058_v22, %v2912_v48  ;;  %v2557_v3 = vsel %vm2485_vm8, %v5526_v40, 0.0  ;;  %vm2631_vm9 = vcmp.eq.s32.totalorder %v8200_v53, %v5534_v7  ;;  %v4426_v22 = vpop.f32.mrf.mxu1 }
 0x270   : > { %vm2839_vm10 = vcmp.eq.s32.totalorder %v8201_v39, %v5860_v6  ;;  %vm2985_vm11 = vcmp.eq.s32.totalorder %v8201_v39, %v5867_v30  ;;  %vm2484_vm12 = vcmp.eq.s32.totalorder %v8200_v53, %v5540_v43  ;;  %v2703_v23 = vsel %vm2631_vm9, %v5517_v14, 0.0 }
 0x271   : > { %3220 = vmatprep.subr.mxu1 %v3187_v16  ;;  %v3186_v61 = vmul.f32 %v3122_v5, %v2768_v38  ;;  %v2911_v19 = vsel %vm2839_vm10, %v5863_v46, 0.0  ;;  %v3057_v28 = vsel %vm2985_vm11, %v5850_v10, 0.0  ;;  %v2767_v37 = vadd.f32 %v2703_v23, %v2557_v3 }
 0x272   : > { %v3121_v41 = vadd.f32 %v3057_v28, %v2911_v19  ;;  %v2556_v33 = vsel %vm2484_vm12, %v5543_v24, 0.0  ;;  %vm2630_vm13 = vcmp.eq.s32.totalorder %v8200_v53, %v5554_v44  ;;  %vm2838_vm14 = vcmp.eq.s32.totalorder %v8201_v39, %v8197_v29 }
 0x273   : > { %3221 = vmatpush1.msra.mxu1 %v3186_v61  ;;  %v2702_v1 = vsel %vm2630_vm13, %v8198_v35, 0.0  ;;  %vm2984_vm15 = vcmp.eq.s32.totalorder %v8201_v39, %v5847_v58  ;;  %vm2483_vm0 = vcmp.eq.s32.totalorder %v8202_v51, %v5531_v13  ;;  %v2910_v47 = vsel %vm2838_vm14, %v5836_v45, 0.0 }
 0x274   : > { %v3185_v27 = vmul.f32 %v3121_v41, %v2767_v37  ;;  %v2766_v34 = vadd.f32 %v2702_v1, %v2556_v33  ;;  %v3056_v9 = vsel %vm2984_vm15, %v8199_v32, 0.0  ;;  %v2555_v26 = vsel %vm2483_vm0, %v5526_v40, 0.0  ;;  %v8203_v37 = vld [vmem:[#allocation25_spill] sm:$0xff] }
 0x275   : > { %v3120_v18 = vadd.f32 %v3056_v9, %v2910_v47  ;;  %vm2629_vm2 = vcmp.eq.s32.totalorder %v8202_v51, %v5534_v7  ;;  %vm2837_vm3 = vcmp.eq.s32.totalorder %v5073_v57, %v5860_v6  ;;  %vm2983_vm5 = vcmp.eq.s32.totalorder %v5073_v57, %v5867_v30 }
 0x276   : > { %3222 = vmatprep.subr.mxu1 %v3185_v27  ;;  %v2701_v20 = vsel %vm2629_vm2, %v5517_v14, 0.0  ;;  %v2909_v48 = vsel %vm2837_vm3, %v5863_v46, 0.0  ;;  %vm2482_vm6 = vcmp.eq.s32.totalorder %v8202_v51, %v5540_v43  ;;  %v3055_v5 = vsel %vm2983_vm5, %v5850_v10, 0.0 }
 0x277   : > { %v3184_v16 = vmul.f32 %v3120_v18, %v2766_v34  ;;  %v2765_v38 = vadd.f32 %v2701_v20, %v2555_v26  ;;  %v2554_v3 = vsel %vm2482_vm6, %v5543_v24, 0.0  ;;  %v3119_v61 = vadd.f32 %v3055_v5, %v2909_v48  ;;  %v4427_v34 = vpop.f32.mrf.mxu1 }
 0x278   : > { %vm2628_vm1 = vcmp.eq.s32.totalorder %v8202_v51, %v5554_v44  ;;  %vm2836_vm4 = vcmp.eq.s32.totalorder %v5073_v57, %v8197_v29  ;;  %vm2982_vm7 = vcmp.eq.s32.totalorder %v5073_v57, %v5847_v58  ;;  %vm2481_vm8 = vcmp.eq.s32.totalorder %v8203_v37, %v5531_v13 }
 0x279   : > { %3223 = vmatpush1.msra.mxu1 %v3184_v16  ;;  %v2700_v23 = vsel %vm2628_vm1, %v8198_v35, 0.0  ;;  %v2908_v19 = vsel %vm2836_vm4, %v5836_v45, 0.0  ;;  %v3054_v28 = vsel %vm2982_vm7, %v8199_v32, 0.0  ;;  %v3183_v41 = vmul.f32 %v3119_v61, %v2765_v38 }
 0x27a   : > { %v2764_v33 = vadd.f32 %v2700_v23, %v2554_v3  ;;  %v3118_v1 = vadd.f32 %v3054_v28, %v2908_v19  ;;  %v2553_v27 = vsel %vm2481_vm8, %v5526_v40, 0.0  ;;  %vm2627_vm9 = vcmp.eq.s32.totalorder %v8203_v37, %v5534_v7 }
 0x27b   : > { %vm2835_vm10 = vcmp.eq.s32.totalorder %v5076_v60, %v5860_v6  ;;  %vm2981_vm11 = vcmp.eq.s32.totalorder %v5076_v60, %v5867_v30  ;;  %v8204_v47 = vsub.s32 4, %v8158_v55  ;;  %3224 = vmatprep.subr.mxu1 %v3183_v41  ;;  %v2699_v26 = vsel %vm2627_vm9, %v5517_v14, 0.0  ;;  %v8205_v41 = vld [vmem:[#allocation26_spill] sm:$0xff] }
 0x27c   : > { %v3182_v18 = vmul.f32 %v3118_v1, %v2764_v33  ;;  %v2907_v20 = vsel %vm2835_vm10, %v5863_v46, 0.0  ;;  %v3053_v48 = vsel %vm2981_vm11, %v5850_v10, 0.0  ;;  %v2763_v16 = vadd.f32 %v2699_v26, %v2553_v27 }
 0x27d   : > { %v815_v9 = vrot.slane %v5799_v8, %v8204_v47  ;;  %v3117_v38 = vadd.f32 %v3053_v48, %v2907_v20  ;;  %v4428_v5 = vadd.f32 %v4427_v34, %v4426_v22  ;;  %vm2480_vm12 = vcmp.eq.s32.totalorder %v8203_v37, %v5540_v43 }
 0x27e   : > { %3225 = vmatpush1.msra.mxu1 %v3182_v18  ;;  %v2552_v3 = vsel %vm2480_vm12, %v5543_v24, 0.0  ;;  %vm2626_vm13 = vcmp.eq.s32.totalorder %v8203_v37, %v5554_v44  ;;  %vm2834_vm14 = vcmp.eq.s32.totalorder %v5076_v60, %v8197_v29  ;;  %vm2980_vm15 = vcmp.eq.s32.totalorder %v5076_v60, %v5847_v58 }
 0x27f   : > { %v3181_v8 = vmul.f32 %v3117_v38, %v2763_v16  ;;  %v1322_v61 = vadd.f32 %v4428_v5, %v815_v9  ;;  %v2698_v23 = vsel %vm2626_vm13, %v8198_v35, 0.0  ;;  %v2906_v22 = vsel %vm2834_vm14, %v5836_v45, 0.0 }
 0x280   : > { %v2762_v19 = vadd.f32 %v2698_v23, %v2552_v3  ;;  %v3052_v28 = vsel %vm2980_vm15, %v8199_v32, 0.0  ;;  %vm2479_vm0 = vcmp.eq.s32.totalorder %v8205_v41, %v5531_v13  ;;  %vm2625_vm2 = vcmp.eq.s32.totalorder %v8205_v41, %v5534_v7 }
 0x281   : > { %3226 = vmatprep.subr.mxu1 %v3181_v8  ;;  %v3300_v33 = vadd.f32 1.0, %v1322_v61  ;;  %v3116_v1 = vadd.f32 %v3052_v28, %v2906_v22  ;;  %v2551_v27 = vsel %vm2479_vm0, %v5526_v40, 0.0  ;;  %v2697_v34 = vsel %vm2625_vm2, %v5517_v14, 0.0  ;;  %v8206_v22 = vld [vmem:[#allocation27_spill] sm:$0xff] }
 0x282   : > { %v2761_v47 = vadd.f32 %v2697_v34, %v2551_v27  ;;  %vm2833_vm3 = vcmp.eq.s32.totalorder %v5083_v2, %v5860_v6  ;;  %vm2979_vm5 = vcmp.eq.s32.totalorder %v5083_v2, %v5867_v30  ;;  %vm2478_vm6 = vcmp.eq.s32.totalorder %v8205_v41, %v5540_v43 }
 0x283   : > { %v3302_v9 = vmul.f32 16.0, %v3300_v33  ;;  %v3180_v18 = vmul.f32 %v3116_v1, %v2762_v19  ;;  %v2905_v26 = vsel %vm2833_vm3, %v5863_v46, 0.0  ;;  %v3051_v20 = vsel %vm2979_vm5, %v5850_v10, 0.0 }
 0x284   : > { %v3115_v48 = vadd.f32 %v3051_v20, %v2905_v26  ;;  %v2550_v16 = vsel %vm2478_vm6, %v5543_v24, 0.0  ;;  %vm2624_vm1 = vcmp.eq.s32.totalorder %v8205_v41, %v5554_v44  ;;  %vm2832_vm4 = vcmp.eq.s32.totalorder %v5083_v2, %v8197_v29 }
 0x285   : > { %v4385_v38 = vadd.f32 -1.0, %v3302_v9  ;;  %3227 = vmatpush1.msra.mxu1 %v3180_v18  ;;  %v2696_v5 = vsel %vm2624_vm1, %v8198_v35, 0.0  ;;  %v2904_v3 = vsel %vm2832_vm4, %v5836_v45, 0.0  ;;  %vm2978_vm7 = vcmp.eq.s32.totalorder %v5083_v2, %v5847_v58 }
 0x286   : > { %v3179_v8 = vmul.f32 %v3115_v48, %v2761_v47  ;;  %v2760_v61 = vadd.f32 %v2696_v5, %v2550_v16  ;;  %v3050_v23 = vsel %vm2978_vm7, %v8199_v32, 0.0  ;;  %vm2477_vm8 = vcmp.eq.s32.totalorder %v8206_v22, %v5531_v13 }
 0x287   : > { %v3306_v19 = vmul.f32 0.5, %v4385_v38  ;;  %v3114_v28 = vadd.f32 %v3050_v23, %v2904_v3  ;;  %v2549_v33 = vsel %vm2477_vm8, %v5526_v40, 0.0  ;;  %vm2623_vm9 = vcmp.eq.s32.totalorder %v8206_v22, %v5534_v7 }
 0x288   : > { %3228 = vmatprep.subr.mxu1 %v3179_v8  ;;  %v2695_v1 = vsel %vm2623_vm9, %v5517_v14, 0.0  ;;  %vm2831_vm10 = vcmp.eq.s32.totalorder %v5085_v4, %v5860_v6  ;;  %vm2977_vm11 = vcmp.eq.s32.totalorder %v5085_v4, %v5867_v30  ;;  %vm2476_vm12 = vcmp.eq.s32.totalorder %v8206_v22, %v5540_v43  ;;  %v8207_v8 = vld [vmem:[#allocation28_spill] sm:$0xff] }
 0x289   : > { %v3310_v27 = vfloor.f32 %v3306_v19  ;;  %v3178_v34 = vmul.f32 %v3114_v28, %v2760_v61  ;;  %v2759_v47 = vadd.f32 %v2695_v1, %v2549_v33  ;;  %v2903_v9 = vsel %vm2831_vm10, %v5863_v46, 0.0 }
 0x28a   : > { %v3049_v18 = vsel %vm2977_vm11, %v5850_v10, 0.0  ;;  %v2548_v26 = vsel %vm2476_vm12, %v5543_v24, 0.0  ;;  %vm2622_vm13 = vcmp.eq.s32.totalorder %v8206_v22, %v5554_v44  ;;  %vm2830_vm14 = vcmp.eq.s32.totalorder %v5085_v4, %v8197_v29 }
 0x28b   : > { %v3316_v20 = vsub.f32 %v3306_v19, %v3310_v27  ;;  %v4451_v48 = vtrunc.f32 %v3310_v27  ;;  %3229 = vmatpush1.msra.mxu1 %v3178_v34  ;;  %v3113_v16 = vadd.f32 %v3049_v18, %v2903_v9  ;;  %v2694_v38 = vsel %vm2622_vm13, %v8198_v35, 0.0 }
 0x28c   : > { %v2758_v5 = vadd.f32 %v2694_v38, %v2548_v26  ;;  %v2902_v3 = vsel %vm2830_vm14, %v5836_v45, 0.0  ;;  %vm2976_vm15 = vcmp.eq.s32.totalorder %v5085_v4, %v5847_v58  ;;  %vm2475_vm0 = vcmp.eq.s32.totalorder %v8207_v8, %v5531_v13 }
 0x28d   : > { %v3318_v61 = vsub.f32 1.0, %v3316_v20  ;;  %v4452_v23 = vcvt.f32.s32 %v4451_v48  ;;  %v6431_v28 = vrot.slane %v3316_v20, %v5012_v62  ;;  %v3177_v19 = vmul.f32 %v3113_v16, %v2759_v47 }
 0x28e   : > { %v3048_v33 = vsel %vm2976_vm15, %v8199_v32, 0.0  ;;  %v2547_v1 = vsel %vm2475_vm0, %v5526_v40, 0.0  ;;  %vm2621_vm2 = vcmp.eq.s32.totalorder %v8207_v8, %v5534_v7  ;;  %vm2829_vm3 = vcmp.eq.s32.totalorder %v5091_v11, %v5860_v6 }
 0x28f   : > { %v6440_v27 = vrot.slane %v4452_v23, %v5012_v62  ;;  %v6443_v34 = vrot.slane %v3318_v61, %v5012_v62  ;;  %v3822_v9 = vadd.s32 1, %v4452_v23  ;;  %3230 = vmatprep.subr.mxu1 %v3177_v19  ;;  %v3112_v18 = vadd.f32 %v3048_v33, %v2902_v3 }
 0x290   : > { %v2693_v47 = vsel %vm2621_vm2, %v5517_v14, 0.0  ;;  %v2901_v26 = vsel %vm2829_vm3, %v5863_v46, 0.0  ;;  %vm2975_vm5 = vcmp.eq.s32.totalorder %v5091_v11, %v5867_v30  ;;  %vm2474_vm6 = vcmp.eq.s32.totalorder %v8207_v8, %v5540_v43 }
 0x291   : > { %v6452_v20 = vrot.slane %v3822_v9, %v5012_v62  ;;  %v3176_v48 = vmul.f32 %v3112_v18, %v2758_v5  ;;  %v2757_v16 = vadd.f32 %v2693_v47, %v2547_v1  ;;  %v3047_v38 = vsel %vm2975_vm5, %v5850_v10, 0.0  ;;  %v8208_v5 = vld [vmem:[#allocation30_spill] sm:$0xff] }
 0x292   : > { %v3111_v61 = vadd.f32 %v3047_v38, %v2901_v26  ;;  %v2546_v3 = vsel %vm2474_vm6, %v5543_v24, 0.0  ;;  %vm2620_vm1 = vcmp.eq.s32.totalorder %v8207_v8, %v5554_v44  ;;  %vm2828_vm4 = vcmp.eq.s32.totalorder %v5091_v11, %v8197_v29 }
 0x293   : > { %3231 = vmatpush1.msra.mxu1 %v3176_v48  ;;  %v2692_v23 = vsel %vm2620_vm1, %v8198_v35, 0.0  ;;  %v2900_v19 = vsel %vm2828_vm4, %v5836_v45, 0.0  ;;  %vm2974_vm7 = vcmp.eq.s32.totalorder %v5091_v11, %v5847_v58  ;;  %vm2473_vm8 = vcmp.eq.s32.totalorder %v8208_v5, %v5531_v13 }
 0x294   : > { %v3175_v33 = vmul.f32 %v3111_v61, %v2757_v16  ;;  %v2756_v1 = vadd.f32 %v2692_v23, %v2546_v3  ;;  %v3046_v9 = vsel %vm2974_vm7, %v8199_v32, 0.0  ;;  %v2545_v18 = vsel %vm2473_vm8, %v5526_v40, 0.0 }
 0x295   : > { %v3110_v47 = vadd.f32 %v3046_v9, %v2900_v19  ;;  %vm2619_vm9 = vcmp.eq.s32.totalorder %v8208_v5, %v5534_v7  ;;  %vm2827_vm10 = vcmp.eq.s32.totalorder %v5093_v12, %v5860_v6  ;;  %vm2973_vm11 = vcmp.eq.s32.totalorder %v5093_v12, %v5867_v30  ;;  %v8209_v19 = vld [vmem:[#allocation31_spill] sm:$0xff] }
 0x296   : > { %3232 = vmatprep.subr.mxu1 %v3175_v33  ;;  %v2691_v26 = vsel %vm2619_vm9, %v5517_v14, 0.0  ;;  %v2899_v48 = vsel %vm2827_vm10, %v5863_v46, 0.0  ;;  %v3045_v16 = vsel %vm2973_vm11, %v5850_v10, 0.0  ;;  %vm2472_vm12 = vcmp.eq.s32.totalorder %v8208_v5, %v5540_v43 }
 0x297   : > { %v3174_v38 = vmul.f32 %v3110_v47, %v2756_v1  ;;  %v2755_v61 = vadd.f32 %v2691_v26, %v2545_v18  ;;  %v3109_v3 = vadd.f32 %v3045_v16, %v2899_v48  ;;  %v2544_v23 = vsel %vm2472_vm12, %v5543_v24, 0.0 }
 0x298   : > { %vm2618_vm13 = vcmp.eq.s32.totalorder %v8208_v5, %v5554_v44  ;;  %vm2826_vm14 = vcmp.eq.s32.totalorder %v5093_v12, %v8197_v29  ;;  %vm2972_vm15 = vcmp.eq.s32.totalorder %v5093_v12, %v5847_v58  ;;  %vm2471_vm0 = vcmp.eq.s32.totalorder %v8209_v19, %v5531_v13 }
 0x299   : > { %3233 = vmatpush1.msra.mxu1 %v3174_v38  ;;  %v3173_v33 = vmul.f32 %v3109_v3, %v2755_v61  ;;  %v2690_v1 = vsel %vm2618_vm13, %v8198_v35, 0.0  ;;  %v2898_v9 = vsel %vm2826_vm14, %v5836_v45, 0.0  ;;  %v3044_v18 = vsel %vm2972_vm15, %v8199_v32, 0.0 }
 0x29a   : > { %v2754_v47 = vadd.f32 %v2690_v1, %v2544_v23  ;;  %v3108_v26 = vadd.f32 %v3044_v18, %v2898_v9  ;;  %v2543_v48 = vsel %vm2471_vm0, %v5526_v40, 0.0  ;;  %vm2617_vm2 = vcmp.eq.s32.totalorder %v8209_v19, %v5534_v7 }
 0x29b   : > { %3234 = vmatprep.subr.mxu1 %v3173_v33  ;;  %v2689_v16 = vsel %vm2617_vm2, %v5517_v14, 0.0  ;;  %vm2825_vm3 = vcmp.eq.s32.totalorder %v5099_v17, %v5860_v6  ;;  %vm2971_vm5 = vcmp.eq.s32.totalorder %v5099_v17, %v5867_v30  ;;  %vm2470_vm6 = vcmp.eq.s32.totalorder %v8209_v19, %v5540_v43 }
 0x29c   : > { %v3172_v38 = vmul.f32 %v3108_v26, %v2754_v47  ;;  %v2753_v61 = vadd.f32 %v2689_v16, %v2543_v48  ;;  %v2897_v3 = vsel %vm2825_vm3, %v5863_v46, 0.0  ;;  %v3043_v23 = vsel %vm2971_vm5, %v5850_v10, 0.0  ;;  %v8210_v47 = vld [vmem:[#allocation33_spill] sm:$0xff] }
 0x29d   : > { %v3107_v1 = vadd.f32 %v3043_v23, %v2897_v3  ;;  %v2542_v33 = vsel %vm2470_vm6, %v5543_v24, 0.0  ;;  %vm2616_vm1 = vcmp.eq.s32.totalorder %v8209_v19, %v5554_v44  ;;  %vm2824_vm4 = vcmp.eq.s32.totalorder %v5099_v17, %v8197_v29 }
 0x29e   : > { %3235 = vmatpush1.msra.mxu1 %v3172_v38  ;;  %v2688_v9 = vsel %vm2616_vm1, %v8198_v35, 0.0  ;;  %v2896_v18 = vsel %vm2824_vm4, %v5836_v45, 0.0  ;;  %vm2970_vm7 = vcmp.eq.s32.totalorder %v5099_v17, %v5847_v58  ;;  %vm2469_vm8 = vcmp.eq.s32.totalorder %v8210_v47, %v5531_v13 }
 0x29f   : > { %v3171_v26 = vmul.f32 %v3107_v1, %v2753_v61  ;;  %v2752_v48 = vadd.f32 %v2688_v9, %v2542_v33  ;;  %v3042_v16 = vsel %vm2970_vm7, %v8199_v32, 0.0  ;;  %v2541_v3 = vsel %vm2469_vm8, %v5526_v40, 0.0 }
 0x2a0   : > { %v3106_v23 = vadd.f32 %v3042_v16, %v2896_v18  ;;  %vm2615_vm9 = vcmp.eq.s32.totalorder %v8210_v47, %v5534_v7  ;;  %vm2823_vm10 = vcmp.eq.s32.totalorder %v5103_v21, %v5860_v6  ;;  %vm2969_vm11 = vcmp.eq.s32.totalorder %v5103_v21, %v5867_v30 }
 0x2a1   : > { %3236 = vmatprep.subr.mxu1 %v3171_v26  ;;  %v2687_v38 = vsel %vm2615_vm9, %v5517_v14, 0.0  ;;  %v2895_v61 = vsel %vm2823_vm10, %v5863_v46, 0.0  ;;  %v3041_v1 = vsel %vm2969_vm11, %v5850_v10, 0.0  ;;  %vm2468_vm12 = vcmp.eq.s32.totalorder %v8210_v47, %v5540_v43  ;;  %v8211_v26 = vld [vmem:[#allocation35_spill] sm:$0xff] }
 0x2a2   : > { %v3170_v33 = vmul.f32 %v3106_v23, %v2752_v48  ;;  %v2751_v9 = vadd.f32 %v2687_v38, %v2541_v3  ;;  %v3105_v18 = vadd.f32 %v3041_v1, %v2895_v61  ;;  %v2540_v16 = vsel %vm2468_vm12, %v5543_v24, 0.0 }
 0x2a3   : > { %vm2614_vm13 = vcmp.eq.s32.totalorder %v8210_v47, %v5554_v44  ;;  %vm2822_vm14 = vcmp.eq.s32.totalorder %v5103_v21, %v8197_v29  ;;  %vm2968_vm15 = vcmp.eq.s32.totalorder %v5103_v21, %v5847_v58  ;;  %vm2467_vm0 = vcmp.eq.s32.totalorder %v8211_v26, %v5531_v13 }
 0x2a4   : > { %3237 = vmatpush1.msra.mxu1 %v3170_v33  ;;  %v3169_v55 = vmul.f32 %v3105_v18, %v2751_v9  ;;  %v2686_v48 = vsel %vm2614_vm13, %v8198_v35, 0.0  ;;  %v2894_v3 = vsel %vm2822_vm14, %v5836_v45, 0.0  ;;  %v3040_v23 = vsel %vm2968_vm15, %v8199_v32, 0.0 }
 0x2a5   : > { %v2750_v38 = vadd.f32 %v2686_v48, %v2540_v16  ;;  %v3104_v61 = vadd.f32 %v3040_v23, %v2894_v3  ;;  %v2539_v1 = vsel %vm2467_vm0, %v5526_v40, 0.0  ;;  %vm2613_vm2 = vcmp.eq.s32.totalorder %v8211_v26, %v5534_v7 }
 0x2a6   : > { %3238 = vmatprep.subr.mxu1 %v3169_v55  ;;  %v2685_v21 = vsel %vm2613_vm2, %v5517_v14, 0.0  ;;  %vm2821_vm3 = vcmp.eq.s32.totalorder %v5112_v36, %v5860_v6  ;;  %vm2967_vm5 = vcmp.eq.s32.totalorder %v5112_v36, %v5867_v30  ;;  %vm2466_vm6 = vcmp.eq.s32.totalorder %v8211_v26, %v5540_v43 }
 0x2a7   : > { %v3168_v33 = vmul.f32 %v3104_v61, %v2750_v38  ;;  %v2749_v9 = vadd.f32 %v2685_v21, %v2539_v1  ;;  %v2893_v18 = vsel %vm2821_vm3, %v5863_v46, 0.0  ;;  %v3039_v16 = vsel %vm2967_vm5, %v5850_v10, 0.0  ;;  %v8212_v21 = vld [vmem:[#allocation38_spill] sm:$0xff] }
 0x2a8   : > { %v3103_v48 = vadd.f32 %v3039_v16, %v2893_v18  ;;  %v2538_v55 = vsel %vm2466_vm6, %v5543_v24, 0.0  ;;  %vm2612_vm1 = vcmp.eq.s32.totalorder %v8211_v26, %v5554_v44  ;;  %vm2820_vm4 = vcmp.eq.s32.totalorder %v5112_v36, %v8197_v29  ;;  %v8229_v26 = vld [vmem:[#allocation58_spill] sm:$0xff] }
 0x2a9   : > { %3239 = vmatpush1.msra.mxu1 %v3168_v33  ;;  %v2684_v3 = vsel %vm2612_vm1, %v8198_v35, 0.0  ;;  %v2892_v23 = vsel %vm2820_vm4, %v5836_v45, 0.0  ;;  %vm2966_vm7 = vcmp.eq.s32.totalorder %v5112_v36, %v5847_v58  ;;  %vm2465_vm8 = vcmp.eq.s32.totalorder %v8212_v21, %v5531_v13 }
 0x2aa   : > { %v3167_v38 = vmul.f32 %v3103_v48, %v2749_v9  ;;  %v2748_v61 = vadd.f32 %v2684_v3, %v2538_v55  ;;  %v3038_v1 = vsel %vm2966_vm7, %v8199_v32, 0.0  ;;  %v2537_v18 = vsel %vm2465_vm8, %v5526_v40, 0.0 }
 0x2ab   : > { %v3102_v16 = vadd.f32 %v3038_v1, %v2892_v23  ;;  %vm2611_vm9 = vcmp.eq.s32.totalorder %v8212_v21, %v5534_v7  ;;  %vm2819_vm10 = vcmp.eq.s32.totalorder %v8135_v42, %v5860_v6  ;;  %vm2965_vm11 = vcmp.eq.s32.totalorder %v8135_v42, %v5867_v30 }
 0x2ac   : > { %3240 = vmatprep.subr.mxu1 %v3167_v38  ;;  %v2683_v33 = vsel %vm2611_vm9, %v5517_v14, 0.0  ;;  %v2891_v9 = vsel %vm2819_vm10, %v5863_v46, 0.0  ;;  %v3037_v48 = vsel %vm2965_vm11, %v5850_v10, 0.0  ;;  %vm2464_vm12 = vcmp.eq.s32.totalorder %v8212_v21, %v5540_v43  ;;  %v8213_v38 = vld [vmem:[#allocation39_spill] sm:$0xff] }
 0x2ad   : > { %v3166_v55 = vmul.f32 %v3102_v16, %v2748_v61  ;;  %v2747_v3 = vadd.f32 %v2683_v33, %v2537_v18  ;;  %v3101_v23 = vadd.f32 %v3037_v48, %v2891_v9  ;;  %v2536_v1 = vsel %vm2464_vm12, %v5543_v24, 0.0 }
 0x2ae   : > { %vm2610_vm13 = vcmp.eq.s32.totalorder %v8212_v21, %v5554_v44  ;;  %vm2818_vm14 = vcmp.eq.s32.totalorder %v8135_v42, %v8197_v29  ;;  %vm2964_vm15 = vcmp.eq.s32.totalorder %v8135_v42, %v5847_v58  ;;  %vm2463_vm0 = vcmp.eq.s32.totalorder %v8213_v38, %v5531_v13  ;;  %v8214_v21 = vld [vmem:[#allocation40_spill] sm:$0xff] }
 0x2af   : > { %3241 = vmatpush1.msra.mxu1 %v3166_v55  ;;  %v3165_v36 = vmul.f32 %v3101_v23, %v2747_v3  ;;  %v2682_v61 = vsel %vm2610_vm13, %v8198_v35, 0.0  ;;  %v2890_v18 = vsel %vm2818_vm14, %v5836_v45, 0.0  ;;  %v3036_v16 = vsel %vm2964_vm15, %v8199_v32, 0.0 }
 0x2b0   : > { %v2746_v33 = vadd.f32 %v2682_v61, %v2536_v1  ;;  %v3100_v9 = vadd.f32 %v3036_v16, %v2890_v18  ;;  %v2535_v48 = vsel %vm2463_vm0, %v5526_v40, 0.0  ;;  %vm2609_vm2 = vcmp.eq.s32.totalorder %v8213_v38, %v5534_v7 }
 0x2b1   : > { %3242 = vmatprep.subr.mxu1 %v3165_v36  ;;  %v2681_v42 = vsel %vm2609_vm2, %v5517_v14, 0.0  ;;  %vm2817_vm3 = vcmp.eq.s32.totalorder %v8214_v21, %v5860_v6  ;;  %vm2963_vm5 = vcmp.eq.s32.totalorder %v8214_v21, %v5867_v30  ;;  %vm2462_vm6 = vcmp.eq.s32.totalorder %v8213_v38, %v5540_v43 }
 0x2b2   : > { %v3164_v55 = vmul.f32 %v3100_v9, %v2746_v33  ;;  %v2745_v3 = vadd.f32 %v2681_v42, %v2535_v48  ;;  %v2889_v23 = vsel %vm2817_vm3, %v5863_v46, 0.0  ;;  %v3035_v1 = vsel %vm2963_vm5, %v5850_v10, 0.0  ;;  %v8215_v42 = vld [vmem:[#allocation41_spill] sm:$0xff] }
 0x2b3   : > { %v3099_v61 = vadd.f32 %v3035_v1, %v2889_v23  ;;  %v2534_v36 = vsel %vm2462_vm6, %v5543_v24, 0.0  ;;  %vm2608_vm1 = vcmp.eq.s32.totalorder %v8213_v38, %v5554_v44  ;;  %vm2816_vm4 = vcmp.eq.s32.totalorder %v8214_v21, %v8197_v29 }
 0x2b4   : > { %3243 = vmatpush1.msra.mxu1 %v3164_v55  ;;  %v2680_v18 = vsel %vm2608_vm1, %v8198_v35, 0.0  ;;  %v2888_v16 = vsel %vm2816_vm4, %v5836_v45, 0.0  ;;  %vm2962_vm7 = vcmp.eq.s32.totalorder %v8214_v21, %v5847_v58  ;;  %vm2461_vm8 = vcmp.eq.s32.totalorder %v8215_v42, %v5531_v13  ;;  %v8216_v55 = vld [vmem:[#allocation42_spill] sm:$0xff] }
 0x2b5   : > { %v3163_v33 = vmul.f32 %v3099_v61, %v2745_v3  ;;  %v2744_v9 = vadd.f32 %v2680_v18, %v2534_v36  ;;  %v3034_v48 = vsel %vm2962_vm7, %v8199_v32, 0.0  ;;  %v2533_v23 = vsel %vm2461_vm8, %v5526_v40, 0.0 }
 0x2b6   : > { %v3098_v1 = vadd.f32 %v3034_v48, %v2888_v16  ;;  %vm2607_vm9 = vcmp.eq.s32.totalorder %v8215_v42, %v5534_v7  ;;  %vm2815_vm10 = vcmp.eq.s32.totalorder %v8216_v55, %v5860_v6  ;;  %vm2961_vm11 = vcmp.eq.s32.totalorder %v8216_v55, %v5867_v30 }
 0x2b7   : > { %3244 = vmatprep.subr.mxu1 %v3163_v33  ;;  %v2679_v21 = vsel %vm2607_vm9, %v5517_v14, 0.0  ;;  %v2887_v3 = vsel %vm2815_vm10, %v5863_v46, 0.0  ;;  %v3033_v61 = vsel %vm2961_vm11, %v5850_v10, 0.0  ;;  %vm2460_vm12 = vcmp.eq.s32.totalorder %v8215_v42, %v5540_v43  ;;  %v8217_v33 = vld [vmem:[#allocation43_spill] sm:$0xff] }
 0x2b8   : > { %v3162_v36 = vmul.f32 %v3098_v1, %v2744_v9  ;;  %v2743_v18 = vadd.f32 %v2679_v21, %v2533_v23  ;;  %v3097_v16 = vadd.f32 %v3033_v61, %v2887_v3  ;;  %v2532_v48 = vsel %vm2460_vm12, %v5543_v24, 0.0 }
 0x2b9   : > { %vm2606_vm13 = vcmp.eq.s32.totalorder %v8215_v42, %v5554_v44  ;;  %vm2814_vm14 = vcmp.eq.s32.totalorder %v8216_v55, %v8197_v29  ;;  %vm2960_vm15 = vcmp.eq.s32.totalorder %v8216_v55, %v5847_v58  ;;  %vm2459_vm0 = vcmp.eq.s32.totalorder %v8217_v33, %v5531_v13  ;;  %v8218_v42 = vld [vmem:[#allocation44_spill] sm:$0xff] }
 0x2ba   : > { %3245 = vmatpush1.msra.mxu1 %v3162_v36  ;;  %v3161_v38 = vmul.f32 %v3097_v16, %v2743_v18  ;;  %v2678_v9 = vsel %vm2606_vm13, %v8198_v35, 0.0  ;;  %v2886_v21 = vsel %vm2814_vm14, %v5836_v45, 0.0  ;;  %v3032_v23 = vsel %vm2960_vm15, %v8199_v32, 0.0 }
 0x2bb   : > { %v2742_v1 = vadd.f32 %v2678_v9, %v2532_v48  ;;  %v3096_v3 = vadd.f32 %v3032_v23, %v2886_v21  ;;  %v2531_v61 = vsel %vm2459_vm0, %v5526_v40, 0.0  ;;  %vm2605_vm2 = vcmp.eq.s32.totalorder %v8217_v33, %v5534_v7 }
 0x2bc   : > { %3246 = vmatprep.subr.mxu1 %v3161_v38  ;;  %v2677_v55 = vsel %vm2605_vm2, %v5517_v14, 0.0  ;;  %vm2813_vm3 = vcmp.eq.s32.totalorder %v8218_v42, %v5860_v6  ;;  %vm2959_vm5 = vcmp.eq.s32.totalorder %v8218_v42, %v5867_v30  ;;  %vm2458_vm6 = vcmp.eq.s32.totalorder %v8217_v33, %v5540_v43 }
 0x2bd   : > { %v3160_v36 = vmul.f32 %v3096_v3, %v2742_v1  ;;  %v2741_v18 = vadd.f32 %v2677_v55, %v2531_v61  ;;  %v2885_v16 = vsel %vm2813_vm3, %v5863_v46, 0.0  ;;  %v3031_v48 = vsel %vm2959_vm5, %v5850_v10, 0.0  ;;  %v8219_v55 = vld [vmem:[#allocation46_spill] sm:$0xff] }
 0x2be   : > { %v3095_v9 = vadd.f32 %v3031_v48, %v2885_v16  ;;  %v2530_v38 = vsel %vm2458_vm6, %v5543_v24, 0.0  ;;  %vm2604_vm1 = vcmp.eq.s32.totalorder %v8217_v33, %v5554_v44  ;;  %vm2812_vm4 = vcmp.eq.s32.totalorder %v8218_v42, %v8197_v29 }
 0x2bf   : > { %3247 = vmatpush1.msra.mxu1 %v3160_v36  ;;  %v2676_v21 = vsel %vm2604_vm1, %v8198_v35, 0.0  ;;  %v2884_v23 = vsel %vm2812_vm4, %v5836_v45, 0.0  ;;  %vm2958_vm7 = vcmp.eq.s32.totalorder %v8218_v42, %v5847_v58  ;;  %vm2457_vm8 = vcmp.eq.s32.totalorder %v8219_v55, %v5531_v13  ;;  %v8220_v36 = vld [vmem:[#allocation45_spill] sm:$0xff] }
 0x2c0   : > { %v3159_v1 = vmul.f32 %v3095_v9, %v2741_v18  ;;  %v2740_v3 = vadd.f32 %v2676_v21, %v2530_v38  ;;  %v3030_v61 = vsel %vm2958_vm7, %v8199_v32, 0.0  ;;  %v2529_v16 = vsel %vm2457_vm8, %v5526_v40, 0.0 }
 0x2c1   : > { %v3094_v48 = vadd.f32 %v3030_v61, %v2884_v23  ;;  %vm2603_vm9 = vcmp.eq.s32.totalorder %v8219_v55, %v5534_v7  ;;  %vm2811_vm10 = vcmp.eq.s32.totalorder %v8220_v36, %v5860_v6  ;;  %vm2957_vm11 = vcmp.eq.s32.totalorder %v8220_v36, %v5867_v30 }
 0x2c2   : > { %3248 = vmatprep.subr.mxu1 %v3159_v1  ;;  %v2675_v42 = vsel %vm2603_vm9, %v5517_v14, 0.0  ;;  %v2883_v18 = vsel %vm2811_vm10, %v5863_v46, 0.0  ;;  %v3029_v9 = vsel %vm2957_vm11, %v5850_v10, 0.0  ;;  %vm2456_vm12 = vcmp.eq.s32.totalorder %v8219_v55, %v5540_v43  ;;  %v8221_v1 = vld [vmem:[#allocation47_spill] sm:$0xff] }
 0x2c3   : > { %v3158_v38 = vmul.f32 %v3094_v48, %v2740_v3  ;;  %v2739_v21 = vadd.f32 %v2675_v42, %v2529_v16  ;;  %v3093_v23 = vadd.f32 %v3029_v9, %v2883_v18  ;;  %v2528_v61 = vsel %vm2456_vm12, %v5543_v24, 0.0 }
 0x2c4   : > { %vm2602_vm13 = vcmp.eq.s32.totalorder %v8219_v55, %v5554_v44  ;;  %vm2810_vm14 = vcmp.eq.s32.totalorder %v8220_v36, %v8197_v29  ;;  %vm2956_vm15 = vcmp.eq.s32.totalorder %v8220_v36, %v5847_v58  ;;  %vm2519_vm0 = vcmp.eq.s32.totalorder %v8221_v1, %v5531_v13  ;;  %v8222_v55 = vld [vmem:[#allocation48_spill] sm:$0xff] }
 0x2c5   : > { %3249 = vmatpush1.msra.mxu1 %v3158_v38  ;;  %v3157_v33 = vmul.f32 %v3093_v23, %v2739_v21  ;;  %v2674_v3 = vsel %vm2602_vm13, %v8198_v35, 0.0  ;;  %v2882_v42 = vsel %vm2810_vm14, %v5836_v45, 0.0  ;;  %v3028_v16 = vsel %vm2956_vm15, %v8199_v32, 0.0 }
 0x2c6   : > { %v2738_v48 = vadd.f32 %v2674_v3, %v2528_v61  ;;  %v3092_v18 = vadd.f32 %v3028_v16, %v2882_v42  ;;  %v2591_v9 = vsel %vm2519_vm0, %v5526_v40, 0.0  ;;  %vm2665_vm2 = vcmp.eq.s32.totalorder %v8221_v1, %v5534_v7 }
 0x2c7   : > { %3250 = vmatprep.subr.mxu1 %v3157_v33  ;;  %v2737_v36 = vsel %vm2665_vm2, %v5517_v14, 0.0  ;;  %vm2873_vm3 = vcmp.eq.s32.totalorder %v8222_v55, %v5860_v6  ;;  %vm3019_vm5 = vcmp.eq.s32.totalorder %v8222_v55, %v5867_v30  ;;  %vm2518_vm6 = vcmp.eq.s32.totalorder %v8221_v1, %v5540_v43 }
 0x2c8   : > { %v3156_v38 = vmul.f32 %v3092_v18, %v2738_v48  ;;  %v2801_v21 = vadd.f32 %v2737_v36, %v2591_v9  ;;  %v2945_v23 = vsel %vm2873_vm3, %v5863_v46, 0.0  ;;  %v3091_v61 = vsel %vm3019_vm5, %v5850_v10, 0.0  ;;  %v8223_v36 = vld [vmem:[#allocation50_spill] sm:$0xff] }
 0x2c9   : > { %v3155_v3 = vadd.f32 %v3091_v61, %v2945_v23  ;;  %v2590_v33 = vsel %vm2518_vm6, %v5543_v24, 0.0  ;;  %vm2664_vm1 = vcmp.eq.s32.totalorder %v8221_v1, %v5554_v44  ;;  %vm2872_vm4 = vcmp.eq.s32.totalorder %v8222_v55, %v8197_v29 }
 0x2ca   : > { %3251 = vmatpush1.msra.mxu1 %v3156_v38  ;;  %v2736_v42 = vsel %vm2664_vm1, %v8198_v35, 0.0  ;;  %v2944_v16 = vsel %vm2872_vm4, %v5836_v45, 0.0  ;;  %vm3018_vm7 = vcmp.eq.s32.totalorder %v8222_v55, %v5847_v58  ;;  %vm2517_vm8 = vcmp.eq.s32.totalorder %v8223_v36, %v5531_v13  ;;  %v8224_v38 = vld [vmem:[#allocation49_spill] sm:$0xff] }
 0x2cb   : > { %v3219_v48 = vmul.f32 %v3155_v3, %v2801_v21  ;;  %v2800_v18 = vadd.f32 %v2736_v42, %v2590_v33  ;;  %v3090_v9 = vsel %vm3018_vm7, %v8199_v32, 0.0  ;;  %v2589_v23 = vsel %vm2517_vm8, %v5526_v40, 0.0 }
 0x2cc   : > { %v3154_v61 = vadd.f32 %v3090_v9, %v2944_v16  ;;  %vm2663_vm9 = vcmp.eq.s32.totalorder %v8223_v36, %v5534_v7  ;;  %vm2871_vm10 = vcmp.eq.s32.totalorder %v8224_v38, %v5860_v6  ;;  %vm3017_vm11 = vcmp.eq.s32.totalorder %v8224_v38, %v5867_v30 }
 0x2cd   : > { %3252 = vmatprep.subr.mxu1 %v3219_v48  ;;  %v2735_v55 = vsel %vm2663_vm9, %v5517_v14, 0.0  ;;  %v2943_v21 = vsel %vm2871_vm10, %v5863_v46, 0.0  ;;  %v3089_v3 = vsel %vm3017_vm11, %v5850_v10, 0.0  ;;  %vm2516_vm12 = vcmp.eq.s32.totalorder %v8223_v36, %v5540_v43  ;;  %v8225_v48 = vld [vmem:[#allocation51_spill] sm:$0xff] }
 0x2ce   : > { %v3218_v33 = vmul.f32 %v3154_v61, %v2800_v18  ;;  %v2799_v42 = vadd.f32 %v2735_v55, %v2589_v23  ;;  %v3153_v16 = vadd.f32 %v3089_v3, %v2943_v21  ;;  %v2588_v9 = vsel %vm2516_vm12, %v5543_v24, 0.0 }
 0x2cf   : > { %vm2662_vm13 = vcmp.eq.s32.totalorder %v8223_v36, %v5554_v44  ;;  %vm2870_vm14 = vcmp.eq.s32.totalorder %v8224_v38, %v8197_v29  ;;  %vm3016_vm15 = vcmp.eq.s32.totalorder %v8224_v38, %v5847_v58  ;;  %vm2515_vm0 = vcmp.eq.s32.totalorder %v8225_v48, %v5531_v13  ;;  %v8226_v36 = vld [vmem:[#allocation52_spill] sm:$0xff] }
 0x2d0   : > { %3253 = vmatpush2.msra.mxu1 %v3218_v33  ;;  %v3217_v1 = vmul.f32 %v3153_v16, %v2799_v42  ;;  %v2734_v18 = vsel %vm2662_vm13, %v8198_v35, 0.0  ;;  %v2942_v55 = vsel %vm2870_vm14, %v5836_v45, 0.0  ;;  %v3088_v23 = vsel %vm3016_vm15, %v8199_v32, 0.0 }
 0x2d1   : > { %v2798_v61 = vadd.f32 %v2734_v18, %v2588_v9  ;;  %v3152_v21 = vadd.f32 %v3088_v23, %v2942_v55  ;;  %v2587_v3 = vsel %vm2515_vm0, %v5526_v40, 0.0  ;;  %vm2661_vm2 = vcmp.eq.s32.totalorder %v8225_v48, %v5534_v7  ;;  %v8227_v55 = vld [vmem:[#allocation56_spill] sm:$0xff]  ;;  %v8228_v23 = vld [vmem:[#allocation63_spill] sm:$0xff] }
 0x2d2   : > { %3254 = vmatprep.subr.mxu1 %v3217_v1  ;;  %v2733_v38 = vsel %vm2661_vm2, %v5517_v14, 0.0  ;;  %vm2869_vm3 = vcmp.eq.s32.totalorder %v8226_v36, %v5860_v6  ;;  %vm3015_vm5 = vcmp.eq.s32.totalorder %v8226_v36, %v5867_v30  ;;  %vm3362_vm6 = vcmp.eq.s32.totalorder %v8195_v52, %v5882_v50 }
 0x2d3   : > { %v3216_v33 = vmul.f32 %v3152_v21, %v2798_v61  ;;  %v2797_v42 = vadd.f32 %v2733_v38, %v2587_v3  ;;  %v2941_v16 = vsel %vm2869_vm3, %v5863_v46, 0.0  ;;  %v3087_v9 = vsel %vm3015_vm5, %v5850_v10, 0.0 }
 0x2d4   : > { %v3151_v18 = vadd.f32 %v3087_v9, %v2941_v16  ;;  %v3434_v1 = vsel %vm3362_vm6, %v8227_v55, 0.0  ;;  %vm3508_vm1 = vcmp.eq.s32.totalorder %v8195_v52, %v8228_v23  ;;  %vm3716_vm4 = vcmp.eq.s32.totalorder %v5069_v54, %v6440_v27  ;;  %v8230_v9 = vld [vmem:[#allocation53_spill] sm:$0xff] }
 0x2d5   : > { %3255 = vmatpush2.msra.mxu1 %v3216_v33  ;;  %v3580_v47 = vsel %vm3508_vm1, %v8229_v26, 0.0  ;;  %v3788_v17 = vsel %vm3716_vm4, %v6443_v34, 0.0  ;;  %vm3862_vm7 = vcmp.eq.s32.totalorder %v5069_v54, %v6452_v20  ;;  %vm2514_vm8 = vcmp.eq.s32.totalorder %v8225_v48, %v5540_v43 }
 0x2d6   : > { %v3215_v38 = vmul.f32 %v3151_v18, %v2797_v42  ;;  %v3644_v61 = vadd.f32 %v3580_v47, %v3434_v1  ;;  %v3934_v21 = vsel %vm3862_vm7, %v6431_v28, 0.0  ;;  %v2586_v3 = vsel %vm2514_vm8, %v5543_v24, 0.0 }
 0x2d7   : > { %v3998_v16 = vadd.f32 %v3934_v21, %v3788_v17  ;;  %vm2660_vm9 = vcmp.eq.s32.totalorder %v8225_v48, %v5554_v44  ;;  %vm2868_vm10 = vcmp.eq.s32.totalorder %v8226_v36, %v8197_v29  ;;  %vm3014_vm11 = vcmp.eq.s32.totalorder %v8226_v36, %v5847_v58  ;;  %v8231_v36 = vld [vmem:[#allocation54_spill] sm:$0xff] }
 0x2d8   : > { %3256 = vmatprep.subr.mxu1 %v3215_v38  ;;  %v2732_v33 = vsel %vm2660_vm9, %v8198_v35, 0.0  ;;  %v2940_v42 = vsel %vm2868_vm10, %v5836_v45, 0.0  ;;  %v3086_v47 = vsel %vm3014_vm11, %v8199_v32, 0.0  ;;  %vm2513_vm12 = vcmp.eq.s32.totalorder %v8230_v9, %v5531_v13 }
 0x2d9   : > { %v4062_v17 = vmul.f32 %v3998_v16, %v3644_v61  ;;  %v2796_v18 = vadd.f32 %v2732_v33, %v2586_v3  ;;  %v3150_v1 = vadd.f32 %v3086_v47, %v2940_v42  ;;  %v2585_v21 = vsel %vm2513_vm12, %v5526_v40, 0.0 }
 0x2da   : > { %vm2659_vm13 = vcmp.eq.s32.totalorder %v8230_v9, %v5534_v7  ;;  %vm2867_vm14 = vcmp.eq.s32.totalorder %v8231_v36, %v5860_v6  ;;  %vm3013_vm15 = vcmp.eq.s32.totalorder %v8231_v36, %v5867_v30  ;;  %vm2512_vm0 = vcmp.eq.s32.totalorder %v8230_v9, %v5540_v43 }
 0x2db   : > { %4095 = vmatprep.subr.mxu0 %v4062_v17  ;;  %v3214_v38 = vmul.f32 %v3150_v1, %v2796_v18  ;;  %v2731_v61 = vsel %vm2659_vm13, %v5517_v14, 0.0  ;;  %v2939_v3 = vsel %vm2867_vm14, %v5863_v46, 0.0  ;;  %v3085_v16 = vsel %vm3013_vm15, %v5850_v10, 0.0  ;;  %v8232_v17 = vld [vmem:[#allocation57_spill] sm:$0xff] }
 0x2dc   : > { %v2795_v33 = vadd.f32 %v2731_v61, %v2585_v21  ;;  %v3149_v42 = vadd.f32 %v3085_v16, %v2939_v3  ;;  %v2584_v47 = vsel %vm2512_vm0, %v5543_v24, 0.0  ;;  %vm2658_vm2 = vcmp.eq.s32.totalorder %v8230_v9, %v5554_v44  ;;  %v8233_v16 = vld [vmem:[#allocation61_spill] sm:$0xff] }
 0x2dd   : > { %3257 = vmatpush2.msra.mxu1 %v3214_v38  ;;  %v2730_v48 = vsel %vm2658_vm2, %v8198_v35, 0.0  ;;  %vm2866_vm3 = vcmp.eq.s32.totalorder %v8231_v36, %v8197_v29  ;;  %vm3012_vm5 = vcmp.eq.s32.totalorder %v8231_v36, %v5847_v58  ;;  %vm2511_vm6 = vcmp.eq.s32.totalorder %v8232_v17, %v5531_v13 }
 0x2de   : > { %v3213_v18 = vmul.f32 %v3149_v42, %v2795_v33  ;;  %v2794_v1 = vadd.f32 %v2730_v48, %v2584_v47  ;;  %v2938_v21 = vsel %vm2866_vm3, %v5836_v45, 0.0  ;;  %v3084_v61 = vsel %vm3012_vm5, %v8199_v32, 0.0  ;;  %v1359_v48 = vld [vmem:[#allocation10] sm:$0x3] }
 0x2df   : > { %v3148_v3 = vadd.f32 %v3084_v61, %v2938_v21  ;;  %v2583_v38 = vsel %vm2511_vm6, %v5526_v40, 0.0  ;;  %vm2657_vm1 = vcmp.eq.s32.totalorder %v8232_v17, %v5534_v7  ;;  %vm2865_vm4 = vcmp.eq.s32.totalorder %v8233_v16, %v5860_v6 }
 0x2e0   : > { %3258 = vmatprep.subr.mxu1 %v3213_v18  ;;  %v2729_v36 = vsel %vm2657_vm1, %v5517_v14, 0.0  ;;  %v2937_v9 = vsel %vm2865_vm4, %v5863_v46, 0.0  ;;  %vm3011_vm7 = vcmp.eq.s32.totalorder %v8233_v16, %v5867_v30  ;;  %vm2510_vm8 = vcmp.eq.s32.totalorder %v8232_v17, %v5540_v43  ;;  %v1437_v18 = vpop.f32.mrf.mxu1 }
 0x2e1   : > { %v3212_v33 = vmul.f32 %v3148_v3, %v2794_v1  ;;  %v2793_v42 = vadd.f32 %v2729_v36, %v2583_v38  ;;  %v3083_v47 = vsel %vm3011_vm7, %v5850_v10, 0.0  ;;  %v2582_v21 = vsel %vm2510_vm8, %v5543_v24, 0.0 }
 0x2e2   : > { %v3147_v61 = vadd.f32 %v3083_v47, %v2937_v9  ;;  %vm2656_vm9 = vcmp.eq.s32.totalorder %v8232_v17, %v5554_v44  ;;  %vm2864_vm10 = vcmp.eq.s32.totalorder %v8233_v16, %v8197_v29  ;;  %vm3010_vm11 = vcmp.eq.s32.totalorder %v8233_v16, %v5847_v58  ;;  %v8234_v17 = vld [vmem:[#allocation55_spill] sm:$0xff] }
 0x2e3   : > { %3259 = vmatpush2.msra.mxu1 %v3212_v33  ;;  %v2728_v19 = vsel %vm2656_vm9, %v8198_v35, 0.0  ;;  %v2936_v36 = vsel %vm2864_vm10, %v5836_v45, 0.0  ;;  %v3082_v1 = vsel %vm3010_vm11, %v8199_v32, 0.0  ;;  %v1364_v3 = vrot.slane %v1359_v48, %v5012_v62  ;;  %v8235_v33 = vld [vmem:[#allocation67_spill] sm:$0xff] }
 0x2e4   : > { %v3211_v9 = vmul.f32 %v3147_v61, %v2793_v42  ;;  %v2792_v38 = vadd.f32 %v2728_v19, %v2582_v21  ;;  %v3146_v47 = vadd.f32 %v3082_v1, %v2936_v36  ;;  %vm2509_vm12 = vcmp.eq.s32.totalorder %v8234_v17, %v5531_v13  ;;  %v1439_v36 = vpop.f32.mrf.mxu1 }
 0x2e5   : > { %v1438_v12 = vadd.f32 %v1437_v18, %v1364_v3  ;;  %v2581_v5 = vsel %vm2509_vm12, %v5526_v40, 0.0  ;;  %vm2655_vm13 = vcmp.eq.s32.totalorder %v8234_v17, %v5534_v7  ;;  %vm2863_vm14 = vcmp.eq.s32.totalorder %v8235_v33, %v5860_v6 }
 0x2e6   : > { %3260 = vmatprep.subr.mxu1 %v3211_v9  ;;  %v3210_v16 = vmul.f32 %v3146_v47, %v2792_v38  ;;  %v2727_v25 = vsel %vm2655_vm13, %v5517_v14, 0.0  ;;  %v2935_v62 = vsel %vm2863_vm14, %v5863_v46, 0.0  ;;  %vm3009_vm15 = vcmp.eq.s32.totalorder %v8235_v33, %v5867_v30  ;;  %v8237_v38 = vld [vmem:[#allocation72_spill] sm:$0xff] }
 0x2e7   : > { %v1442_v19 = vmax.f32 %v1438_v12, 0.0  ;;  %v2791_v42 = vadd.f32 %v2727_v25, %v2581_v5  ;;  %v3081_v21 = vsel %vm3009_vm15, %v5850_v10, 0.0  ;;  %vm2508_vm0 = vcmp.eq.s32.totalorder %v8234_v17, %v5540_v43  ;;  %v8236_v25 = vld [vmem:[#allocation20_spill] sm:$0xff] }
 0x2e8   : > { %3261 = vmatpush2.msra.mxu1 %v3210_v16  ;;  %v3145_v61 = vadd.f32 %v3081_v21, %v2935_v62  ;;  %v2580_v18 = vsel %vm2508_vm0, %v5543_v24, 0.0  ;;  %vm2654_vm2 = vcmp.eq.s32.totalorder %v8234_v17, %v5554_v44  ;;  %vm2862_vm3 = vcmp.eq.s32.totalorder %v8235_v33, %v8197_v29 }
 0x2e9   : > { %v2726_v1 = vsel %vm2654_vm2, %v8198_v35, 0.0  ;;  %v2934_v12 = vsel %vm2862_vm3, %v5836_v45, 0.0  ;;  %vm3008_vm5 = vcmp.eq.s32.totalorder %v8235_v33, %v5847_v58  ;;  %v1368_v5 = vrot.slane %v1359_v48, %v8236_v25  ;;  %v8238_v33 = vld [vmem:[#allocation71_spill] sm:$0xff] }
 0x2ea   : > { %v3209_v16 = vmul.f32 %v3145_v61, %v2791_v42  ;;  %v2790_v3 = vadd.f32 %v2726_v1, %v2580_v18  ;;  %v3080_v9 = vsel %vm3008_vm5, %v8199_v32, 0.0  ;;  %vm2507_vm6 = vcmp.eq.s32.totalorder %v8237_v38, %v5531_v13 }
 0x2eb   : > { %v3144_v47 = vadd.f32 %v3080_v9, %v2934_v12  ;;  %v1440_v62 = vadd.f32 %v1439_v36, %v1368_v5  ;;  %v2579_v21 = vsel %vm2507_vm6, %v5526_v40, 0.0  ;;  %vm2653_vm1 = vcmp.eq.s32.totalorder %v8237_v38, %v5534_v7 }
 0x2ec   : > { %3262 = vmatprep.subr.mxu1 %v3209_v16  ;;  %v2725_v17 = vsel %vm2653_vm1, %v5517_v14, 0.0  ;;  %vm2861_vm4 = vcmp.eq.s32.totalorder %v8238_v33, %v5860_v6  ;;  %vm3007_vm7 = vcmp.eq.s32.totalorder %v8238_v33, %v5867_v30  ;;  %vm2506_vm8 = vcmp.eq.s32.totalorder %v8237_v38, %v5540_v43 }
 0x2ed   : > { %v3208_v48 = vmul.f32 %v3144_v47, %v2790_v3  ;;  %v1443_v42 = vmax.f32 %v1440_v62, 0.0  ;;  %v2789_v61 = vadd.f32 %v2725_v17, %v2579_v21  ;;  %v2933_v18 = vsel %vm2861_vm4, %v5863_v46, 0.0  ;;  %v8239_v3 = vld [vmem:[#allocation74_spill] sm:$0xff] }
 0x2ee   : > { %v3079_v36 = vsel %vm3007_vm7, %v5850_v10, 0.0  ;;  %v2578_v1 = vsel %vm2506_vm8, %v5543_v24, 0.0  ;;  %vm2652_vm9 = vcmp.eq.s32.totalorder %v8237_v38, %v5554_v44  ;;  %vm2860_vm10 = vcmp.eq.s32.totalorder %v8238_v33, %v8197_v29 }
 0x2ef   : > { %3263 = vmatpush2.msra.mxu1 %v3208_v48  ;;  %v3143_v12 = vadd.f32 %v3079_v36, %v2933_v18  ;;  %v2724_v25 = vsel %vm2652_vm9, %v8198_v35, 0.0  ;;  %v2932_v5 = vsel %vm2860_vm10, %v5836_v45, 0.0  ;;  %vm3006_vm11 = vcmp.eq.s32.totalorder %v8238_v33, %v5847_v58  ;;  %2409 = vmatprep.mubr.f32.mxu0 %v1443_v42  ;;  %v8240_v18 = vld [vmem:[#allocation73_spill] sm:$0xff] }
 0x2f0   : > { %v2788_v17 = vadd.f32 %v2724_v25, %v2578_v1  ;;  %v3078_v16 = vsel %vm3006_vm11, %v8199_v32, 0.0  ;;  %vm2505_vm12 = vcmp.eq.s32.totalorder %v8239_v3, %v5531_v13  ;;  %vm2651_vm13 = vcmp.eq.s32.totalorder %v8239_v3, %v5534_v7  ;;  %2410 = vmatmul.mubr.f32.vlgmr.msra.gmra.mxu0 %v1442_v19 }
 0x2f1   : > { %v3207_v9 = vmul.f32 %v3143_v12, %v2789_v61  ;;  %v3142_v47 = vadd.f32 %v3078_v16, %v2932_v5  ;;  %v2577_v62 = vsel %vm2505_vm12, %v5526_v40, 0.0  ;;  %v2723_v21 = vsel %vm2651_vm13, %v5517_v14, 0.0 }
 0x2f2   : > { %v2787_v48 = vadd.f32 %v2723_v21, %v2577_v62  ;;  %vm2859_vm14 = vcmp.eq.s32.totalorder %v8240_v18, %v5860_v6  ;;  %vm3005_vm15 = vcmp.eq.s32.totalorder %v8240_v18, %v5867_v30  ;;  %vm2504_vm0 = vcmp.eq.s32.totalorder %v8239_v3, %v5540_v43  ;;  %v8241_v62 = vld [vmem:[#allocation75_spill] sm:$0xff] }
 0x2f3   : > { %3264 = vmatprep.subr.mxu1 %v3207_v9  ;;  %v3206_v42 = vmul.f32 %v3142_v47, %v2788_v17  ;;  %v2931_v19 = vsel %vm2859_vm14, %v5863_v46, 0.0  ;;  %v3077_v61 = vsel %vm3005_vm15, %v5850_v10, 0.0  ;;  %v2576_v36 = vsel %vm2504_vm0, %v5543_v24, 0.0 }
 0x2f4   : > { %v3141_v1 = vadd.f32 %v3077_v61, %v2931_v19  ;;  %vm2650_vm2 = vcmp.eq.s32.totalorder %v8239_v3, %v5554_v44  ;;  %vm2858_vm3 = vcmp.eq.s32.totalorder %v8240_v18, %v8197_v29  ;;  %vm3004_vm5 = vcmp.eq.s32.totalorder %v8240_v18, %v5847_v58  ;;  %v8248_v3 = vld [vmem:[#allocation83_spill] sm:$0xff] }
 0x2f5   : > { %3265 = vmatpush2.msra.mxu1 %v3206_v42  ;;  %v2722_v12 = vsel %vm2650_vm2, %v8198_v35, 0.0  ;;  %v2930_v25 = vsel %vm2858_vm3, %v5836_v45, 0.0  ;;  %v3076_v5 = vsel %vm3004_vm5, %v8199_v32, 0.0  ;;  %vm2503_vm6 = vcmp.eq.s32.totalorder %v6029_v49, %v5531_v13 }
 0x2f6   : > { %v3205_v17 = vmul.f32 %v3141_v1, %v2787_v48  ;;  %v2786_v16 = vadd.f32 %v2722_v12, %v2576_v36  ;;  %v3140_v9 = vadd.f32 %v3076_v5, %v2930_v25  ;;  %v2575_v47 = vsel %vm2503_vm6, %v5526_v40, 0.0 }
 0x2f7   : > { %vm2649_vm1 = vcmp.eq.s32.totalorder %v6029_v49, %v5534_v7  ;;  %vm2857_vm4 = vcmp.eq.s32.totalorder %v8241_v62, %v5860_v6  ;;  %vm3003_vm7 = vcmp.eq.s32.totalorder %v8241_v62, %v5867_v30  ;;  %vm2502_vm8 = vcmp.eq.s32.totalorder %v6029_v49, %v5540_v43 }
 0x2f8   : > { %3266 = vmatprep.subr.mxu1 %v3205_v17  ;;  %v3204_v21 = vmul.f32 %v3140_v9, %v2786_v16  ;;  %v2721_v48 = vsel %vm2649_vm1, %v5517_v14, 0.0  ;;  %v2929_v42 = vsel %vm2857_vm4, %v5863_v46, 0.0  ;;  %v3075_v19 = vsel %vm3003_vm7, %v5850_v10, 0.0 }
 0x2f9   : > { %v2785_v61 = vadd.f32 %v2721_v48, %v2575_v47  ;;  %v3139_v36 = vadd.f32 %v3075_v19, %v2929_v42  ;;  %v2574_v1 = vsel %vm2502_vm8, %v5543_v24, 0.0  ;;  %vm2648_vm9 = vcmp.eq.s32.totalorder %v6029_v49, %v5554_v44  ;;  %v8243_v19 = vld [vmem:[#allocation65_spill] sm:$0xff]  ;;  %v8247_v49 = vld [vmem:[#allocation59_spill] sm:$0xff] }
 0x2fa   : > { %3267 = vmatpush2.msra.mxu1 %v3204_v21  ;;  %v2720_v12 = vsel %vm2648_vm9, %v8198_v35, 0.0  ;;  %vm2856_vm10 = vcmp.eq.s32.totalorder %v8241_v62, %v8197_v29  ;;  %vm3002_vm11 = vcmp.eq.s32.totalorder %v8241_v62, %v5847_v58  ;;  %vm2501_vm12 = vcmp.eq.s32.totalorder %v6033_v31, %v5531_v13  ;;  %v8242_v21 = vld [vmem:[#allocation77_spill] sm:$0xff]  ;;  %v8245_v62 = vld [vmem:[#allocation62_spill] sm:$0xff] }
 0x2fb   : > { %v3203_v25 = vmul.f32 %v3139_v36, %v2785_v61  ;;  %v2784_v5 = vadd.f32 %v2720_v12, %v2574_v1  ;;  %v2928_v17 = vsel %vm2856_vm10, %v5836_v45, 0.0  ;;  %v3074_v16 = vsel %vm3002_vm11, %v8199_v32, 0.0  ;;  %v8244_v12 = vld [vmem:[#allocation60_spill] sm:$0xff] }
 0x2fc   : > { %v3138_v9 = vadd.f32 %v3074_v16, %v2928_v17  ;;  %v2573_v47 = vsel %vm2501_vm12, %v5526_v40, 0.0  ;;  %vm2647_vm13 = vcmp.eq.s32.totalorder %v6033_v31, %v5534_v7  ;;  %vm2855_vm14 = vcmp.eq.s32.totalorder %v8242_v21, %v5860_v6 }
 0x2fd   : > { %3268 = vmatprep.subr.mxu1 %v3203_v25  ;;  %v2719_v48 = vsel %vm2647_vm13, %v5517_v14, 0.0  ;;  %v2927_v42 = vsel %vm2855_vm14, %v5863_v46, 0.0  ;;  %vm3001_vm15 = vcmp.eq.s32.totalorder %v8242_v21, %v5867_v30  ;;  %vm3361_vm0 = vcmp.eq.s32.totalorder %v8195_v52, %v8243_v19  ;;  %v8246_v25 = vld [vmem:[#allocation64_spill] sm:$0xff] }
 0x2fe   : > { %v3202_v61 = vmul.f32 %v3138_v9, %v2784_v5  ;;  %v2783_v36 = vadd.f32 %v2719_v48, %v2573_v47  ;;  %v3073_v1 = vsel %vm3001_vm15, %v5850_v10, 0.0  ;;  %v3433_v17 = vsel %vm3361_vm0, %v8244_v12, 0.0  ;;  %v8249_v9 = vld [vmem:[#allocation66_spill] sm:$0xff] }
 0x2ff   : > { %v3137_v16 = vadd.f32 %v3073_v1, %v2927_v42  ;;  %vm3507_vm2 = vcmp.eq.s32.totalorder %v8195_v52, %v8245_v62  ;;  %vm3715_vm3 = vcmp.eq.s32.totalorder %v5069_v54, %v8246_v25  ;;  %vm3861_vm5 = vcmp.eq.s32.totalorder %v5069_v54, %v6151_v59 }
 0x300   : > { %3269 = vmatpush2.msra.mxu1 %v3202_v61  ;;  %v3579_v18 = vsel %vm3507_vm2, %v8247_v49, 0.0  ;;  %v3787_v5 = vsel %vm3715_vm3, %v8248_v3, 0.0  ;;  %v3933_v47 = vsel %vm3861_vm5, %v8249_v9, 0.0  ;;  %vm2500_vm6 = vcmp.eq.s32.totalorder %v6033_v31, %v5540_v43 }
 0x301   : > { %v3201_v48 = vmul.f32 %v3137_v16, %v2783_v36  ;;  %v3643_v42 = vadd.f32 %v3579_v18, %v3433_v17  ;;  %v3997_v1 = vadd.f32 %v3933_v47, %v3787_v5  ;;  %v2572_v52 = vsel %vm2500_vm6, %v5543_v24, 0.0 }
 0x302   : > { %vm2646_vm1 = vcmp.eq.s32.totalorder %v6033_v31, %v5554_v44  ;;  %vm2854_vm4 = vcmp.eq.s32.totalorder %v8242_v21, %v8197_v29  ;;  %vm3000_vm7 = vcmp.eq.s32.totalorder %v8242_v21, %v5847_v58  ;;  %vm3360_vm8 = vcmp.eq.s32.totalorder %v8200_v53, %v5882_v50 }
 0x303   : > { %3270 = vmatprep.subr.mxu1 %v3201_v48  ;;  %v4061_v54 = vmul.f32 %v3997_v1, %v3643_v42  ;;  %v2718_v61 = vsel %vm2646_vm1, %v8198_v35, 0.0  ;;  %v2926_v18 = vsel %vm2854_vm4, %v5836_v45, 0.0  ;;  %v3072_v36 = vsel %vm3000_vm7, %v8199_v32, 0.0  ;;  %v8250_v48 = vld [vmem:[#allocation80_spill] sm:$0xff] }
 0x304   : > { %v2782_v17 = vadd.f32 %v2718_v61, %v2572_v52  ;;  %v3136_v16 = vadd.f32 %v3072_v36, %v2926_v18  ;;  %v3432_v5 = vsel %vm3360_vm8, %v8227_v55, 0.0  ;;  %vm3506_vm9 = vcmp.eq.s32.totalorder %v8200_v53, %v8228_v23  ;;  %v8251_v36 = vld [vmem:[#allocation79_spill] sm:$0xff] }
 0x305   : > { %4096 = vmatpush1.msra.mxu0 %v4061_v54  ;;  %v3578_v47 = vsel %vm3506_vm9, %v8229_v26, 0.0  ;;  %vm3714_vm10 = vcmp.eq.s32.totalorder %v8201_v39, %v6440_v27  ;;  %vm3860_vm11 = vcmp.eq.s32.totalorder %v8201_v39, %v6452_v20  ;;  %vm2499_vm12 = vcmp.eq.s32.totalorder %v8250_v48, %v5531_v13 }
 0x306   : > { %v3200_v42 = vmul.f32 %v3136_v16, %v2782_v17  ;;  %v3642_v1 = vadd.f32 %v3578_v47, %v3432_v5  ;;  %v3786_v52 = vsel %vm3714_vm10, %v6443_v34, 0.0  ;;  %v3932_v61 = vsel %vm3860_vm11, %v6431_v28, 0.0 }
 0x307   : > { %v3996_v18 = vadd.f32 %v3932_v61, %v3786_v52  ;;  %v2571_v54 = vsel %vm2499_vm12, %v5526_v40, 0.0  ;;  %vm2645_vm13 = vcmp.eq.s32.totalorder %v8250_v48, %v5534_v7  ;;  %vm2853_vm14 = vcmp.eq.s32.totalorder %v8251_v36, %v5860_v6 }
 0x308   : > { %3271 = vmatpush2.msra.mxu1 %v3200_v42  ;;  %v2717_v21 = vsel %vm2645_vm13, %v5517_v14, 0.0  ;;  %v2925_v31 = vsel %vm2853_vm14, %v5863_v46, 0.0  ;;  %vm2999_vm15 = vcmp.eq.s32.totalorder %v8251_v36, %v5867_v30  ;;  %vm3359_vm0 = vcmp.eq.s32.totalorder %v8200_v53, %v8243_v19 }
 0x309   : > { %v4060_v17 = vmul.f32 %v3996_v18, %v3642_v1  ;;  %v2781_v16 = vadd.f32 %v2717_v21, %v2571_v54  ;;  %v3071_v5 = vsel %vm2999_vm15, %v5850_v10, 0.0  ;;  %v3431_v47 = vsel %vm3359_vm0, %v8244_v12, 0.0 }
 0x30a   : > { %v3135_v52 = vadd.f32 %v3071_v5, %v2925_v31  ;;  %vm3505_vm2 = vcmp.eq.s32.totalorder %v8200_v53, %v8245_v62  ;;  %vm3713_vm3 = vcmp.eq.s32.totalorder %v8201_v39, %v8246_v25  ;;  %vm3859_vm5 = vcmp.eq.s32.totalorder %v8201_v39, %v6151_v59 }
 0x30b   : > { %4097 = vmatprep.subr.mxu0 %v4060_v17  ;;  %v3577_v42 = vsel %vm3505_vm2, %v8247_v49, 0.0  ;;  %v3785_v1 = vsel %vm3713_vm3, %v8248_v3, 0.0  ;;  %v3931_v21 = vsel %vm3859_vm5, %v8249_v9, 0.0  ;;  %vm2498_vm6 = vcmp.eq.s32.totalorder %v8250_v48, %v5540_v43 }
 0x30c   : > { %v3199_v31 = vmul.f32 %v3135_v52, %v2781_v16  ;;  %v3641_v61 = vadd.f32 %v3577_v42, %v3431_v47  ;;  %v3995_v18 = vadd.f32 %v3931_v21, %v3785_v1  ;;  %v2570_v53 = vsel %vm2498_vm6, %v5543_v24, 0.0  ;;  %v8252_v1 = vld [vmem:[#allocation82_spill] sm:$0xff] }
 0x30d   : > { %vm2644_vm1 = vcmp.eq.s32.totalorder %v8250_v48, %v5554_v44  ;;  %vm2852_vm4 = vcmp.eq.s32.totalorder %v8251_v36, %v8197_v29  ;;  %vm2998_vm7 = vcmp.eq.s32.totalorder %v8251_v36, %v5847_v58  ;;  %vm3358_vm8 = vcmp.eq.s32.totalorder %v8202_v51, %v5882_v50 }
 0x30e   : > { %3272 = vmatprep.subr.mxu1 %v3199_v31  ;;  %v4059_v39 = vmul.f32 %v3995_v18, %v3641_v61  ;;  %v2716_v54 = vsel %vm2644_vm1, %v8198_v35, 0.0  ;;  %v2924_v17 = vsel %vm2852_vm4, %v5836_v45, 0.0  ;;  %v3070_v16 = vsel %vm2998_vm7, %v8199_v32, 0.0 }
 0x30f   : > { %v2780_v5 = vadd.f32 %v2716_v54, %v2570_v53  ;;  %v3134_v47 = vadd.f32 %v3070_v16, %v2924_v17  ;;  %v3430_v52 = vsel %vm3358_vm8, %v8227_v55, 0.0  ;;  %vm3504_vm9 = vcmp.eq.s32.totalorder %v8202_v51, %v8228_v23  ;;  %v8253_v54 = vld [vmem:[#allocation81_spill] sm:$0xff] }
 0x310   : > { %4098 = vmatpush1.msra.mxu0 %v4059_v39  ;;  %v3576_v42 = vsel %vm3504_vm9, %v8229_v26, 0.0  ;;  %vm3712_vm10 = vcmp.eq.s32.totalorder %v5073_v57, %v6440_v27  ;;  %vm3858_vm11 = vcmp.eq.s32.totalorder %v5073_v57, %v6452_v20  ;;  %vm2497_vm12 = vcmp.eq.s32.totalorder %v8252_v1, %v5531_v13 }
 0x311   : > { %v3198_v21 = vmul.f32 %v3134_v47, %v2780_v5  ;;  %v3640_v31 = vadd.f32 %v3576_v42, %v3430_v52  ;;  %v3784_v61 = vsel %vm3712_vm10, %v6443_v34, 0.0  ;;  %v3930_v18 = vsel %vm3858_vm11, %v6431_v28, 0.0 }
 0x312   : > { %v3994_v53 = vadd.f32 %v3930_v18, %v3784_v61  ;;  %v2569_v39 = vsel %vm2497_vm12, %v5526_v40, 0.0  ;;  %vm2643_vm13 = vcmp.eq.s32.totalorder %v8252_v1, %v5534_v7  ;;  %vm2851_vm14 = vcmp.eq.s32.totalorder %v8253_v54, %v5860_v6 }
 0x313   : > { %3273 = vmatpush2.msra.mxu1 %v3198_v21  ;;  %v2715_v17 = vsel %vm2643_vm13, %v5517_v14, 0.0  ;;  %v2923_v16 = vsel %vm2851_vm14, %v5863_v46, 0.0  ;;  %vm2997_vm15 = vcmp.eq.s32.totalorder %v8253_v54, %v5867_v30  ;;  %vm3357_vm0 = vcmp.eq.s32.totalorder %v8202_v51, %v8243_v19 }
 0x314   : > { %v4058_v5 = vmul.f32 %v3994_v53, %v3640_v31  ;;  %v2779_v47 = vadd.f32 %v2715_v17, %v2569_v39  ;;  %v3069_v52 = vsel %vm2997_vm15, %v5850_v10, 0.0  ;;  %v3429_v42 = vsel %vm3357_vm0, %v8244_v12, 0.0 }
 0x315   : > { %v3133_v61 = vadd.f32 %v3069_v52, %v2923_v16  ;;  %vm3503_vm2 = vcmp.eq.s32.totalorder %v8202_v51, %v8245_v62  ;;  %vm3711_vm3 = vcmp.eq.s32.totalorder %v5073_v57, %v8246_v25  ;;  %vm3857_vm5 = vcmp.eq.s32.totalorder %v5073_v57, %v6151_v59 }
 0x316   : > { %4099 = vmatprep.subr.mxu0 %v4058_v5  ;;  %v3575_v21 = vsel %vm3503_vm2, %v8247_v49, 0.0  ;;  %v3783_v31 = vsel %vm3711_vm3, %v8248_v3, 0.0  ;;  %v3929_v18 = vsel %vm3857_vm5, %v8249_v9, 0.0  ;;  %vm2496_vm6 = vcmp.eq.s32.totalorder %v8252_v1, %v5540_v43 }
 0x317   : > { %v3197_v53 = vmul.f32 %v3133_v61, %v2779_v47  ;;  %v3639_v39 = vadd.f32 %v3575_v21, %v3429_v42  ;;  %v3993_v17 = vadd.f32 %v3929_v18, %v3783_v31  ;;  %v2568_v51 = vsel %vm2496_vm6, %v5543_v24, 0.0 }
 0x318   : > { %vm2642_vm1 = vcmp.eq.s32.totalorder %v8252_v1, %v5554_v44  ;;  %vm2850_vm4 = vcmp.eq.s32.totalorder %v8253_v54, %v8197_v29  ;;  %vm2996_vm7 = vcmp.eq.s32.totalorder %v8253_v54, %v5847_v58  ;;  %vm3356_vm8 = vcmp.eq.s32.totalorder %v8203_v37, %v5882_v50 }
 0x319   : > { %3274 = vmatprep.subr.mxu1 %v3197_v53  ;;  %v4057_v57 = vmul.f32 %v3993_v17, %v3639_v39  ;;  %v2714_v16 = vsel %vm2642_vm1, %v8198_v35, 0.0  ;;  %v2922_v5 = vsel %vm2850_vm4, %v5836_v45, 0.0  ;;  %v3068_v47 = vsel %vm2996_vm7, %v8199_v32, 0.0 }
 0x31a   : > { %v2778_v52 = vadd.f32 %v2714_v16, %v2568_v51  ;;  %v3132_v42 = vadd.f32 %v3068_v47, %v2922_v5  ;;  %v3428_v61 = vsel %vm3356_vm8, %v8227_v55, 0.0  ;;  %vm3502_vm9 = vcmp.eq.s32.totalorder %v8203_v37, %v8228_v23 }
 0x31b   : > { %4100 = vmatpush1.msra.mxu0 %v4057_v57  ;;  %v3574_v21 = vsel %vm3502_vm9, %v8229_v26, 0.0  ;;  %vm3710_vm10 = vcmp.eq.s32.totalorder %v5076_v60, %v6440_v27  ;;  %vm3856_vm11 = vcmp.eq.s32.totalorder %v5076_v60, %v6452_v20  ;;  %vm2495_vm12 = vcmp.eq.s32.totalorder %v6155_v15, %v5531_v13  ;;  %v8254_v57 = vld [vmem:[#allocation84_spill] sm:$0xff] }
 0x31c   : > { %v3196_v31 = vmul.f32 %v3132_v42, %v2778_v52  ;;  %v3638_v18 = vadd.f32 %v3574_v21, %v3428_v61  ;;  %v3782_v53 = vsel %vm3710_vm10, %v6443_v34, 0.0  ;;  %v3928_v39 = vsel %vm3856_vm11, %v6431_v28, 0.0 }
 0x31d   : > { %v3992_v17 = vadd.f32 %v3928_v39, %v3782_v53  ;;  %v2567_v51 = vsel %vm2495_vm12, %v5526_v40, 0.0  ;;  %vm2641_vm13 = vcmp.eq.s32.totalorder %v6155_v15, %v5534_v7  ;;  %vm2849_vm14 = vcmp.eq.s32.totalorder %v8254_v57, %v5860_v6 }
 0x31e   : > { %3275 = vmatpush2.msra.mxu1 %v3196_v31  ;;  %v2713_v16 = vsel %vm2641_vm13, %v5517_v14, 0.0  ;;  %v2921_v5 = vsel %vm2849_vm14, %v5863_v46, 0.0  ;;  %vm2995_vm15 = vcmp.eq.s32.totalorder %v8254_v57, %v5867_v30  ;;  %vm3355_vm0 = vcmp.eq.s32.totalorder %v8203_v37, %v8243_v19 }
 0x31f   : > { %v4056_v47 = vmul.f32 %v3992_v17, %v3638_v18  ;;  %v2777_v52 = vadd.f32 %v2713_v16, %v2567_v51  ;;  %v3067_v42 = vsel %vm2995_vm15, %v5850_v10, 0.0  ;;  %v3427_v61 = vsel %vm3355_vm0, %v8244_v12, 0.0 }
 0x320   : > { %v3131_v21 = vadd.f32 %v3067_v42, %v2921_v5  ;;  %vm3501_vm2 = vcmp.eq.s32.totalorder %v8203_v37, %v8245_v62  ;;  %vm3709_vm3 = vcmp.eq.s32.totalorder %v5076_v60, %v8246_v25  ;;  %vm3855_vm5 = vcmp.eq.s32.totalorder %v5076_v60, %v6151_v59 }
 0x321   : > { %4101 = vmatprep.subr.mxu0 %v4056_v47  ;;  %v3573_v31 = vsel %vm3501_vm2, %v8247_v49, 0.0  ;;  %v3781_v18 = vsel %vm3709_vm3, %v8248_v3, 0.0  ;;  %v3927_v53 = vsel %vm3855_vm5, %v8249_v9, 0.0  ;;  %vm2494_vm6 = vcmp.eq.s32.totalorder %v6155_v15, %v5540_v43 }
 0x322   : > { %v3195_v39 = vmul.f32 %v3131_v21, %v2777_v52  ;;  %v3637_v17 = vadd.f32 %v3573_v31, %v3427_v61  ;;  %v3991_v51 = vadd.f32 %v3927_v53, %v3781_v18  ;;  %v2566_v37 = vsel %vm2494_vm6, %v5543_v24, 0.0 }
 0x323   : > { %vm2640_vm1 = vcmp.eq.s32.totalorder %v6155_v15, %v5554_v44  ;;  %vm2848_vm4 = vcmp.eq.s32.totalorder %v8254_v57, %v8197_v29  ;;  %vm2994_vm7 = vcmp.eq.s32.totalorder %v8254_v57, %v5847_v58  ;;  %vm3354_vm8 = vcmp.eq.s32.totalorder %v8205_v41, %v5882_v50 }
 0x324   : > { %3276 = vmatprep.subr.mxu1 %v3195_v39  ;;  %v4055_v60 = vmul.f32 %v3991_v51, %v3637_v17  ;;  %v2712_v16 = vsel %vm2640_vm1, %v8198_v35, 0.0  ;;  %v2920_v5 = vsel %vm2848_vm4, %v5836_v45, 0.0  ;;  %v3066_v47 = vsel %vm2994_vm7, %v8199_v32, 0.0 }
 0x325   : > { %v2776_v52 = vadd.f32 %v2712_v16, %v2566_v37  ;;  %v3130_v42 = vadd.f32 %v3066_v47, %v2920_v5  ;;  %v3426_v61 = vsel %vm3354_vm8, %v8227_v55, 0.0  ;;  %vm3500_vm9 = vcmp.eq.s32.totalorder %v8205_v41, %v8228_v23  ;;  %v8255_v37 = vld [vmem:[#allocation85_spill] sm:$0xff] }
 0x326   : > { %4102 = vmatpush1.msra.mxu0 %v4055_v60  ;;  %v3572_v21 = vsel %vm3500_vm9, %v8229_v26, 0.0  ;;  %vm3708_vm10 = vcmp.eq.s32.totalorder %v5083_v2, %v6440_v27  ;;  %vm3854_vm11 = vcmp.eq.s32.totalorder %v5083_v2, %v6452_v20  ;;  %vm2493_vm12 = vcmp.eq.s32.totalorder %v6162_v0, %v5531_v13 }
 0x327   : > { %v3194_v31 = vmul.f32 %v3130_v42, %v2776_v52  ;;  %v3636_v18 = vadd.f32 %v3572_v21, %v3426_v61  ;;  %v3780_v53 = vsel %vm3708_vm10, %v6443_v34, 0.0  ;;  %v3926_v39 = vsel %vm3854_vm11, %v6431_v28, 0.0 }
 0x328   : > { %v3990_v17 = vadd.f32 %v3926_v39, %v3780_v53  ;;  %v2565_v51 = vsel %vm2493_vm12, %v5526_v40, 0.0  ;;  %vm2639_vm13 = vcmp.eq.s32.totalorder %v6162_v0, %v5534_v7  ;;  %vm2847_vm14 = vcmp.eq.s32.totalorder %v8255_v37, %v5860_v6 }
 0x329   : > { %3277 = vmatpush2.msra.mxu1 %v3194_v31  ;;  %v2711_v60 = vsel %vm2639_vm13, %v5517_v14, 0.0  ;;  %v2919_v16 = vsel %vm2847_vm14, %v5863_v46, 0.0  ;;  %vm2993_vm15 = vcmp.eq.s32.totalorder %v8255_v37, %v5867_v30  ;;  %vm3353_vm0 = vcmp.eq.s32.totalorder %v8205_v41, %v8243_v19 }
 0x32a   : > { %v4054_v5 = vmul.f32 %v3990_v17, %v3636_v18  ;;  %v2775_v47 = vadd.f32 %v2711_v60, %v2565_v51  ;;  %v3065_v52 = vsel %vm2993_vm15, %v5850_v10, 0.0  ;;  %v3425_v42 = vsel %vm3353_vm0, %v8244_v12, 0.0 }
 0x32b   : > { %v3129_v61 = vadd.f32 %v3065_v52, %v2919_v16  ;;  %vm3499_vm2 = vcmp.eq.s32.totalorder %v8205_v41, %v8245_v62  ;;  %vm3707_vm3 = vcmp.eq.s32.totalorder %v5083_v2, %v8246_v25  ;;  %vm3853_vm5 = vcmp.eq.s32.totalorder %v5083_v2, %v6151_v59 }
 0x32c   : > { %4103 = vmatprep.subr.mxu0 %v4054_v5  ;;  %v3571_v21 = vsel %vm3499_vm2, %v8247_v49, 0.0  ;;  %v3779_v31 = vsel %vm3707_vm3, %v8248_v3, 0.0  ;;  %v3925_v18 = vsel %vm3853_vm5, %v8249_v9, 0.0  ;;  %vm2492_vm6 = vcmp.eq.s32.totalorder %v6162_v0, %v5540_v43 }
 0x32d   : > { %v3193_v53 = vmul.f32 %v3129_v61, %v2775_v47  ;;  %v3635_v39 = vadd.f32 %v3571_v21, %v3425_v42  ;;  %v3989_v17 = vadd.f32 %v3925_v18, %v3779_v31  ;;  %v2564_v41 = vsel %vm2492_vm6, %v5543_v24, 0.0  ;;  %v8256_v61 = vld [vmem:[#allocation86_spill] sm:$0xff] }
 0x32e   : > { %vm2638_vm1 = vcmp.eq.s32.totalorder %v6162_v0, %v5554_v44  ;;  %vm2846_vm4 = vcmp.eq.s32.totalorder %v8255_v37, %v8197_v29  ;;  %vm2992_vm7 = vcmp.eq.s32.totalorder %v8255_v37, %v5847_v58  ;;  %vm3352_vm8 = vcmp.eq.s32.totalorder %v8206_v22, %v5882_v50 }
 0x32f   : > { %3278 = vmatprep.subr.mxu1 %v3193_v53  ;;  %v4053_v2 = vmul.f32 %v3989_v17, %v3635_v39  ;;  %v2710_v51 = vsel %vm2638_vm1, %v8198_v35, 0.0  ;;  %v2918_v60 = vsel %vm2846_vm4, %v5836_v45, 0.0  ;;  %v3064_v16 = vsel %vm2992_vm7, %v8199_v32, 0.0 }
 0x330   : > { %v2774_v5 = vadd.f32 %v2710_v51, %v2564_v41  ;;  %v3128_v47 = vadd.f32 %v3064_v16, %v2918_v60  ;;  %v3424_v52 = vsel %vm3352_vm8, %v8227_v55, 0.0  ;;  %vm3498_vm9 = vcmp.eq.s32.totalorder %v8206_v22, %v8228_v23 }
 0x331   : > { %4104 = vmatpush1.msra.mxu0 %v4053_v2  ;;  %v3570_v42 = vsel %vm3498_vm9, %v8229_v26, 0.0  ;;  %vm3706_vm10 = vcmp.eq.s32.totalorder %v5085_v4, %v6440_v27  ;;  %vm3852_vm11 = vcmp.eq.s32.totalorder %v5085_v4, %v6452_v20  ;;  %vm2491_vm12 = vcmp.eq.s32.totalorder %v8256_v61, %v5531_v13 }
 0x332   : > { %v3192_v21 = vmul.f32 %v3128_v47, %v2774_v5  ;;  %v3634_v31 = vadd.f32 %v3570_v42, %v3424_v52  ;;  %v3778_v18 = vsel %vm3706_vm10, %v6443_v34, 0.0  ;;  %v3924_v53 = vsel %vm3852_vm11, %v6431_v28, 0.0 }
 0x333   : > { %v3988_v39 = vadd.f32 %v3924_v53, %v3778_v18  ;;  %v2563_v17 = vsel %vm2491_vm12, %v5526_v40, 0.0  ;;  %vm2637_vm13 = vcmp.eq.s32.totalorder %v8256_v61, %v5534_v7  ;;  %vm2845_vm14 = vcmp.eq.s32.totalorder %v6164_v56, %v5860_v6 }
 0x334   : > { %3279 = vmatpush2.msra.mxu1 %v3192_v21  ;;  %v2709_v41 = vsel %vm2637_vm13, %v5517_v14, 0.0  ;;  %v2917_v2 = vsel %vm2845_vm14, %v5863_v46, 0.0  ;;  %vm2991_vm15 = vcmp.eq.s32.totalorder %v6164_v56, %v5867_v30  ;;  %vm3351_vm0 = vcmp.eq.s32.totalorder %v8206_v22, %v8243_v19 }
 0x335   : > { %v4052_v51 = vmul.f32 %v3988_v39, %v3634_v31  ;;  %v2773_v60 = vadd.f32 %v2709_v41, %v2563_v17  ;;  %v3063_v16 = vsel %vm2991_vm15, %v5850_v10, 0.0  ;;  %v3423_v5 = vsel %vm3351_vm0, %v8244_v12, 0.0 }
 0x336   : > { %v3127_v47 = vadd.f32 %v3063_v16, %v2917_v2  ;;  %vm3497_vm2 = vcmp.eq.s32.totalorder %v8206_v22, %v8245_v62  ;;  %vm3705_vm3 = vcmp.eq.s32.totalorder %v5085_v4, %v8246_v25  ;;  %vm3851_vm5 = vcmp.eq.s32.totalorder %v5085_v4, %v6151_v59 }
 0x337   : > { %4105 = vmatprep.subr.mxu0 %v4052_v51  ;;  %v3569_v52 = vsel %vm3497_vm2, %v8247_v49, 0.0  ;;  %v3777_v42 = vsel %vm3705_vm3, %v8248_v3, 0.0  ;;  %v3923_v21 = vsel %vm3851_vm5, %v8249_v9, 0.0  ;;  %vm2490_vm6 = vcmp.eq.s32.totalorder %v8256_v61, %v5540_v43 }
 0x338   : > { %v3191_v31 = vmul.f32 %v3127_v47, %v2773_v60  ;;  %v3633_v18 = vadd.f32 %v3569_v52, %v3423_v5  ;;  %v3987_v53 = vadd.f32 %v3923_v21, %v3777_v42  ;;  %v2562_v22 = vsel %vm2490_vm6, %v5543_v24, 0.0 }
 0x339   : > { %vm2636_vm1 = vcmp.eq.s32.totalorder %v8256_v61, %v5554_v44  ;;  %vm2844_vm4 = vcmp.eq.s32.totalorder %v6164_v56, %v8197_v29  ;;  %vm2990_vm7 = vcmp.eq.s32.totalorder %v6164_v56, %v5847_v58  ;;  %vm3350_vm8 = vcmp.eq.s32.totalorder %v8207_v8, %v5882_v50 }
 0x33a   : > { %3280 = vmatprep.subr.mxu1 %v3191_v31  ;;  %v4051_v4 = vmul.f32 %v3987_v53, %v3633_v18  ;;  %v2708_v39 = vsel %vm2636_vm1, %v8198_v35, 0.0  ;;  %v2916_v17 = vsel %vm2844_vm4, %v5836_v45, 0.0  ;;  %v3062_v41 = vsel %vm2990_vm7, %v8199_v32, 0.0  ;;  %v8257_v18 = vld [vmem:[#allocation21_spill] sm:$0xff] }
 0x33b   : > { %v2772_v2 = vadd.f32 %v2708_v39, %v2562_v22  ;;  %v3126_v51 = vadd.f32 %v3062_v41, %v2916_v17  ;;  %v3422_v60 = vsel %vm3350_vm8, %v8227_v55, 0.0  ;;  %vm3496_vm9 = vcmp.eq.s32.totalorder %v8207_v8, %v8228_v23 }
 0x33c   : > { %4106 = vmatpush1.msra.mxu0 %v4051_v4  ;;  %v3568_v16 = vsel %vm3496_vm9, %v8229_v26, 0.0  ;;  %vm3704_vm10 = vcmp.eq.s32.totalorder %v5091_v11, %v6440_v27  ;;  %vm3850_vm11 = vcmp.eq.s32.totalorder %v5091_v11, %v6452_v20  ;;  %vm2489_vm12 = vcmp.eq.s32.totalorder %v6248_v63, %v5531_v13 }
 0x33d   : > { %v3190_v5 = vmul.f32 %v3126_v51, %v2772_v2  ;;  %v3632_v47 = vadd.f32 %v3568_v16, %v3422_v60  ;;  %v3776_v52 = vsel %vm3704_vm10, %v6443_v34, 0.0  ;;  %v3922_v42 = vsel %vm3850_vm11, %v6431_v28, 0.0 }
 0x33e   : > { %v3986_v21 = vadd.f32 %v3922_v42, %v3776_v52  ;;  %v2561_v31 = vsel %vm2489_vm12, %v5526_v40, 0.0  ;;  %vm2635_vm13 = vcmp.eq.s32.totalorder %v6248_v63, %v5534_v7  ;;  %vm2843_vm14 = vcmp.eq.s32.totalorder %v8257_v18, %v5860_v6 }
 0x33f   : > { %3281 = vmatpush2.msra.mxu1 %v3190_v5  ;;  %v2707_v53 = vsel %vm2635_vm13, %v5517_v14, 0.0  ;;  %v2915_v13 = vsel %vm2843_vm14, %v5863_v46, 0.0  ;;  %vm2989_vm15 = vcmp.eq.s32.totalorder %v8257_v18, %v5867_v30  ;;  %vm3349_vm0 = vcmp.eq.s32.totalorder %v8207_v8, %v8243_v19 }
 0x340   : > { %v4050_v22 = vmul.f32 %v3986_v21, %v3632_v47  ;;  %v2771_v4 = vadd.f32 %v2707_v53, %v2561_v31  ;;  %v3061_v40 = vsel %vm2989_vm15, %v5850_v10, 0.0  ;;  %v3421_v7 = vsel %vm3349_vm0, %v8244_v12, 0.0  ;;  %v8260_v21 = vld [vmem:[#allocation31_spill] sm:$0xff] }
 0x341   : > { %v3125_v39 = vadd.f32 %v3061_v40, %v2915_v13  ;;  %vm3495_vm2 = vcmp.eq.s32.totalorder %v8207_v8, %v8245_v62  ;;  %vm3703_vm3 = vcmp.eq.s32.totalorder %v5091_v11, %v8246_v25  ;;  %vm3849_vm5 = vcmp.eq.s32.totalorder %v5091_v11, %v6151_v59  ;;  %v8258_v11 = vld [vmem:[#allocation30_spill] sm:$0xff]  ;;  %v8261_v40 = vld [vmem:[#allocation32_spill] sm:$0xff] }
 0x342   : > { %4107 = vmatprep.subr.mxu0 %v4050_v22  ;;  %v3567_v14 = vsel %vm3495_vm2, %v8247_v49, 0.0  ;;  %v3775_v6 = vsel %vm3703_vm3, %v8248_v3, 0.0  ;;  %v3921_v46 = vsel %vm3849_vm5, %v8249_v9, 0.0  ;;  %vm2488_vm6 = vcmp.eq.s32.totalorder %v6248_v63, %v5540_v43 }
 0x343   : > { %v3189_v10 = vmul.f32 %v3125_v39, %v2771_v4  ;;  %v3631_v30 = vadd.f32 %v3567_v14, %v3421_v7  ;;  %v3985_v17 = vadd.f32 %v3921_v46, %v3775_v6  ;;  %v2560_v8 = vsel %vm2488_vm6, %v5543_v24, 0.0 }
 0x344   : > { %vm2634_vm1 = vcmp.eq.s32.totalorder %v6248_v63, %v5554_v44  ;;  %vm2842_vm4 = vcmp.eq.s32.totalorder %v8257_v18, %v8197_v29  ;;  %vm2988_vm7 = vcmp.eq.s32.totalorder %v8257_v18, %v5847_v58  ;;  %vm3348_vm8 = vcmp.eq.s32.totalorder %v8258_v11, %v5882_v50  ;;  %v8259_v29 = vld [vmem:[#allocation29_spill] sm:$0xff] }
 0x345   : > { %3282 = vmatprep.subr.mxu1 %v3189_v10  ;;  %v4049_v41 = vmul.f32 %v3985_v17, %v3631_v30  ;;  %v2706_v43 = vsel %vm2634_vm1, %v8198_v35, 0.0  ;;  %v2914_v2 = vsel %vm2842_vm4, %v5836_v45, 0.0  ;;  %v3060_v24 = vsel %vm2988_vm7, %v8199_v32, 0.0  ;;  %v8262_v17 = vld [vmem:[#allocation33_spill] sm:$0xff] }
 0x346   : > { %v2770_v51 = vadd.f32 %v2706_v43, %v2560_v8  ;;  %v3124_v60 = vadd.f32 %v3060_v24, %v2914_v2  ;;  %v3420_v44 = vsel %vm3348_vm8, %v8227_v55, 0.0  ;;  %vm3494_vm9 = vcmp.eq.s32.totalorder %v8258_v11, %v8228_v23 }
 0x347   : > { %4108 = vmatpush1.msra.mxu0 %v4049_v41  ;;  %v3566_v58 = vsel %vm3494_vm9, %v8229_v26, 0.0  ;;  %vm3702_vm10 = vcmp.eq.s32.totalorder %v8259_v29, %v6440_v27  ;;  %vm3848_vm11 = vcmp.eq.s32.totalorder %v8259_v29, %v6452_v20  ;;  %vm3347_vm12 = vcmp.eq.s32.totalorder %v8258_v11, %v8243_v19 }
 0x348   : > { %v3188_v45 = vmul.f32 %v3124_v60, %v2770_v51  ;;  %v3630_v35 = vadd.f32 %v3566_v58, %v3420_v44  ;;  %v3774_v32 = vsel %vm3702_vm10, %v6443_v34, 0.0  ;;  %v3920_v16 = vsel %vm3848_vm11, %v6431_v28, 0.0  ;;  %v8263_v44 = vld [vmem:[#allocation34_spill] sm:$0xff] }
 0x349   : > { %v3984_v5 = vadd.f32 %v3920_v16, %v3774_v32  ;;  %v3419_v47 = vsel %vm3347_vm12, %v8244_v12, 0.0  ;;  %vm3493_vm13 = vcmp.eq.s32.totalorder %v8258_v11, %v8245_v62  ;;  %vm3701_vm14 = vcmp.eq.s32.totalorder %v8259_v29, %v8246_v25 }
 0x34a   : > { %3283 = vmatpush2.msra.mxu1 %v3188_v45  ;;  %v3565_v52 = vsel %vm3493_vm13, %v8247_v49, 0.0  ;;  %v3773_v42 = vsel %vm3701_vm14, %v8248_v3, 0.0  ;;  %vm3847_vm15 = vcmp.eq.s32.totalorder %v8259_v29, %v6151_v59  ;;  %vm3346_vm0 = vcmp.eq.s32.totalorder %v8260_v21, %v5882_v50 }
 0x34b   : > { %v4048_v31 = vmul.f32 %v3984_v5, %v3630_v35  ;;  %v3629_v53 = vadd.f32 %v3565_v52, %v3419_v47  ;;  %v3919_v13 = vsel %vm3847_vm15, %v8249_v9, 0.0  ;;  %v3418_v22 = vsel %vm3346_vm0, %v8227_v55, 0.0  ;;  %v8264_v52 = vld [vmem:[#allocation35_spill] sm:$0xff] }
 0x34c   : > { %v3983_v4 = vadd.f32 %v3919_v13, %v3773_v42  ;;  %vm3492_vm2 = vcmp.eq.s32.totalorder %v8260_v21, %v8228_v23  ;;  %vm3700_vm3 = vcmp.eq.s32.totalorder %v8261_v40, %v6440_v27  ;;  %vm3846_vm5 = vcmp.eq.s32.totalorder %v8261_v40, %v6452_v20 }
 0x34d   : > { %4109 = vmatprep.subr.mxu0 %v4048_v31  ;;  %v3564_v7 = vsel %vm3492_vm2, %v8229_v26, 0.0  ;;  %v3772_v39 = vsel %vm3700_vm3, %v6443_v34, 0.0  ;;  %v3918_v14 = vsel %vm3846_vm5, %v6431_v28, 0.0  ;;  %vm3345_vm6 = vcmp.eq.s32.totalorder %v8260_v21, %v8243_v19 }
 0x34e   : > { %v4047_v6 = vmul.f32 %v3983_v4, %v3629_v53  ;;  %v3628_v46 = vadd.f32 %v3564_v7, %v3418_v22  ;;  %v3982_v10 = vadd.f32 %v3918_v14, %v3772_v39  ;;  %v3417_v30 = vsel %vm3345_vm6, %v8244_v12, 0.0  ;;  %v8265_v22 = vld [vmem:[#allocation36_spill] sm:$0xff] }
 0x34f   : > { %vm3491_vm1 = vcmp.eq.s32.totalorder %v8260_v21, %v8245_v62  ;;  %vm3699_vm4 = vcmp.eq.s32.totalorder %v8261_v40, %v8246_v25  ;;  %vm3845_vm7 = vcmp.eq.s32.totalorder %v8261_v40, %v6151_v59  ;;  %vm3344_vm8 = vcmp.eq.s32.totalorder %v8262_v17, %v5882_v50 }
 0x350   : > { %4110 = vmatpush1.msra.mxu0 %v4047_v6  ;;  %v4046_v8 = vmul.f32 %v3982_v10, %v3628_v46  ;;  %v3563_v11 = vsel %vm3491_vm1, %v8247_v49, 0.0  ;;  %v3771_v41 = vsel %vm3699_vm4, %v8248_v3, 0.0  ;;  %v3917_v43 = vsel %vm3845_vm7, %v8249_v9, 0.0  ;;  %v8266_v10 = vld [vmem:[#allocation38_spill] sm:$0xff] }
 0x351   : > { %v3627_v2 = vadd.f32 %v3563_v11, %v3417_v30  ;;  %v3981_v24 = vadd.f32 %v3917_v43, %v3771_v41  ;;  %v3416_v51 = vsel %vm3344_vm8, %v8227_v55, 0.0  ;;  %vm3490_vm9 = vcmp.eq.s32.totalorder %v8262_v17, %v8228_v23 }
 0x352   : > { %4111 = vmatprep.subr.mxu0 %v4046_v8  ;;  %v3562_v60 = vsel %vm3490_vm9, %v8229_v26, 0.0  ;;  %vm3698_vm10 = vcmp.eq.s32.totalorder %v8263_v44, %v6440_v27  ;;  %vm3844_vm11 = vcmp.eq.s32.totalorder %v8263_v44, %v6452_v20  ;;  %vm3343_vm12 = vcmp.eq.s32.totalorder %v8262_v17, %v8243_v19 }
 0x353   : > { %v4045_v58 = vmul.f32 %v3981_v24, %v3627_v2  ;;  %v3626_v29 = vadd.f32 %v3562_v60, %v3416_v51  ;;  %v3770_v45 = vsel %vm3698_vm10, %v6443_v34, 0.0  ;;  %v3916_v35 = vsel %vm3844_vm11, %v6431_v28, 0.0  ;;  %v8267_v51 = vld [vmem:[#allocation37_spill] sm:$0xff] }
 0x354   : > { %v3980_v32 = vadd.f32 %v3916_v35, %v3770_v45  ;;  %v3415_v16 = vsel %vm3343_vm12, %v8244_v12, 0.0  ;;  %vm3489_vm13 = vcmp.eq.s32.totalorder %v8262_v17, %v8245_v62  ;;  %vm3697_vm14 = vcmp.eq.s32.totalorder %v8263_v44, %v8246_v25 }
 0x355   : > { %4112 = vmatpush1.msra.mxu0 %v4045_v58  ;;  %v3561_v5 = vsel %vm3489_vm13, %v8247_v49, 0.0  ;;  %v3769_v47 = vsel %vm3697_vm14, %v8248_v3, 0.0  ;;  %vm3843_vm15 = vcmp.eq.s32.totalorder %v8263_v44, %v6151_v59  ;;  %vm3342_vm0 = vcmp.eq.s32.totalorder %v8264_v52, %v5882_v50 }
 0x356   : > { %v4044_v42 = vmul.f32 %v3980_v32, %v3626_v29  ;;  %v3625_v21 = vadd.f32 %v3561_v5, %v3415_v16  ;;  %v3915_v31 = vsel %vm3843_vm15, %v8249_v9, 0.0  ;;  %v3414_v53 = vsel %vm3342_vm0, %v8227_v55, 0.0  ;;  %v8268_v5 = vld [vmem:[#allocation39_spill] sm:$0xff] }
 0x357   : > { %v3979_v13 = vadd.f32 %v3915_v31, %v3769_v47  ;;  %vm3488_vm2 = vcmp.eq.s32.totalorder %v8264_v52, %v8228_v23  ;;  %vm3696_vm3 = vcmp.eq.s32.totalorder %v8265_v22, %v6440_v27  ;;  %vm3842_vm5 = vcmp.eq.s32.totalorder %v8265_v22, %v6452_v20 }
 0x358   : > { %4113 = vmatprep.subr.mxu0 %v4044_v42  ;;  %v3560_v4 = vsel %vm3488_vm2, %v8229_v26, 0.0  ;;  %v3768_v40 = vsel %vm3696_vm3, %v6443_v34, 0.0  ;;  %v3914_v7 = vsel %vm3842_vm5, %v6431_v28, 0.0  ;;  %vm3341_vm6 = vcmp.eq.s32.totalorder %v8264_v52, %v8243_v19 }
 0x359   : > { %v4043_v39 = vmul.f32 %v3979_v13, %v3625_v21  ;;  %v3624_v14 = vadd.f32 %v3560_v4, %v3414_v53  ;;  %v3978_v6 = vadd.f32 %v3914_v7, %v3768_v40  ;;  %v3413_v46 = vsel %vm3341_vm6, %v8244_v12, 0.0  ;;  %v8269_v53 = vld [vmem:[#allocation40_spill] sm:$0xff] }
 0x35a   : > { %vm3487_vm1 = vcmp.eq.s32.totalorder %v8264_v52, %v8245_v62  ;;  %vm3695_vm4 = vcmp.eq.s32.totalorder %v8265_v22, %v8246_v25  ;;  %vm3841_vm7 = vcmp.eq.s32.totalorder %v8265_v22, %v6151_v59  ;;  %vm3340_vm8 = vcmp.eq.s32.totalorder %v8266_v10, %v5882_v50 }
 0x35b   : > { %4114 = vmatpush1.msra.mxu0 %v4043_v39  ;;  %v4042_v30 = vmul.f32 %v3978_v6, %v3624_v14  ;;  %v3559_v17 = vsel %vm3487_vm1, %v8247_v49, 0.0  ;;  %v3767_v8 = vsel %vm3695_vm4, %v8248_v3, 0.0  ;;  %v3913_v11 = vsel %vm3841_vm7, %v8249_v9, 0.0  ;;  %v8270_v6 = vld [vmem:[#allocation41_spill] sm:$0xff] }
 0x35c   : > { %v3623_v41 = vadd.f32 %v3559_v17, %v3413_v46  ;;  %v3977_v43 = vadd.f32 %v3913_v11, %v3767_v8  ;;  %v3412_v2 = vsel %vm3340_vm8, %v8227_v55, 0.0  ;;  %vm3486_vm9 = vcmp.eq.s32.totalorder %v8266_v10, %v8228_v23 }
 0x35d   : > { %4115 = vmatprep.subr.mxu0 %v4042_v30  ;;  %v3558_v24 = vsel %vm3486_vm9, %v8229_v26, 0.0  ;;  %vm3694_vm10 = vcmp.eq.s32.totalorder %v8267_v51, %v6440_v27  ;;  %vm3840_vm11 = vcmp.eq.s32.totalorder %v8267_v51, %v6452_v20  ;;  %vm3339_vm12 = vcmp.eq.s32.totalorder %v8266_v10, %v8243_v19 }
 0x35e   : > { %v4041_v60 = vmul.f32 %v3977_v43, %v3623_v41  ;;  %v3622_v44 = vadd.f32 %v3558_v24, %v3412_v2  ;;  %v3766_v58 = vsel %vm3694_vm10, %v6443_v34, 0.0  ;;  %v3912_v29 = vsel %vm3840_vm11, %v6431_v28, 0.0  ;;  %v8271_v2 = vld [vmem:[#allocation42_spill] sm:$0xff] }
 0x35f   : > { %v3976_v45 = vadd.f32 %v3912_v29, %v3766_v58  ;;  %v3411_v35 = vsel %vm3339_vm12, %v8244_v12, 0.0  ;;  %vm3485_vm13 = vcmp.eq.s32.totalorder %v8266_v10, %v8245_v62  ;;  %vm3693_vm14 = vcmp.eq.s32.totalorder %v8267_v51, %v8246_v25 }
 0x360   : > { %4116 = vmatpush1.msra.mxu0 %v4041_v60  ;;  %v3557_v32 = vsel %vm3485_vm13, %v8247_v49, 0.0  ;;  %v3765_v16 = vsel %vm3693_vm14, %v8248_v3, 0.0  ;;  %vm3839_vm15 = vcmp.eq.s32.totalorder %v8267_v51, %v6151_v59  ;;  %vm3338_vm0 = vcmp.eq.s32.totalorder %v8268_v5, %v5882_v50 }
 0x361   : > { %v4040_v47 = vmul.f32 %v3976_v45, %v3622_v44  ;;  %v3621_v52 = vadd.f32 %v3557_v32, %v3411_v35  ;;  %v3911_v42 = vsel %vm3839_vm15, %v8249_v9, 0.0  ;;  %v3410_v21 = vsel %vm3338_vm0, %v8227_v55, 0.0  ;;  %v8272_v32 = vld [vmem:[#allocation43_spill] sm:$0xff] }
 0x362   : > { %v3975_v31 = vadd.f32 %v3911_v42, %v3765_v16  ;;  %vm3484_vm2 = vcmp.eq.s32.totalorder %v8268_v5, %v8228_v23  ;;  %vm3692_vm3 = vcmp.eq.s32.totalorder %v8269_v53, %v6440_v27  ;;  %vm3838_vm5 = vcmp.eq.s32.totalorder %v8269_v53, %v6452_v20 }
 0x363   : > { %4117 = vmatprep.subr.mxu0 %v4040_v47  ;;  %v3556_v13 = vsel %vm3484_vm2, %v8229_v26, 0.0  ;;  %v3764_v22 = vsel %vm3692_vm3, %v6443_v34, 0.0  ;;  %v3910_v4 = vsel %vm3838_vm5, %v6431_v28, 0.0  ;;  %vm3337_vm6 = vcmp.eq.s32.totalorder %v8268_v5, %v8243_v19 }
 0x364   : > { %v4039_v40 = vmul.f32 %v3975_v31, %v3621_v52  ;;  %v3620_v7 = vadd.f32 %v3556_v13, %v3410_v21  ;;  %v3974_v39 = vadd.f32 %v3910_v4, %v3764_v22  ;;  %v3409_v14 = vsel %vm3337_vm6, %v8244_v12, 0.0  ;;  %v8273_v21 = vld [vmem:[#allocation44_spill] sm:$0xff] }
 0x365   : > { %vm3483_vm1 = vcmp.eq.s32.totalorder %v8268_v5, %v8245_v62  ;;  %vm3691_vm4 = vcmp.eq.s32.totalorder %v8269_v53, %v8246_v25  ;;  %vm3837_vm7 = vcmp.eq.s32.totalorder %v8269_v53, %v6151_v59  ;;  %vm3336_vm8 = vcmp.eq.s32.totalorder %v8270_v6, %v5882_v50 }
 0x366   : > { %4118 = vmatpush1.msra.mxu0 %v4039_v40  ;;  %v4038_v46 = vmul.f32 %v3974_v39, %v3620_v7  ;;  %v3555_v10 = vsel %vm3483_vm1, %v8247_v49, 0.0  ;;  %v3763_v30 = vsel %vm3691_vm4, %v8248_v3, 0.0  ;;  %v3909_v17 = vsel %vm3837_vm7, %v8249_v9, 0.0  ;;  %v8274_v39 = vld [vmem:[#allocation46_spill] sm:$0xff] }
 0x367   : > { %v3619_v8 = vadd.f32 %v3555_v10, %v3409_v14  ;;  %v3973_v11 = vadd.f32 %v3909_v17, %v3763_v30  ;;  %v3408_v41 = vsel %vm3336_vm8, %v8227_v55, 0.0  ;;  %vm3482_vm9 = vcmp.eq.s32.totalorder %v8270_v6, %v8228_v23 }
 0x368   : > { %4119 = vmatprep.subr.mxu0 %v4038_v46  ;;  %v3554_v43 = vsel %vm3482_vm9, %v8229_v26, 0.0  ;;  %vm3690_vm10 = vcmp.eq.s32.totalorder %v8271_v2, %v6440_v27  ;;  %vm3836_vm11 = vcmp.eq.s32.totalorder %v8271_v2, %v6452_v20  ;;  %vm3335_vm12 = vcmp.eq.s32.totalorder %v8270_v6, %v8243_v19 }
 0x369   : > { %v4037_v24 = vmul.f32 %v3973_v11, %v3619_v8  ;;  %v3618_v51 = vadd.f32 %v3554_v43, %v3408_v41  ;;  %v3762_v60 = vsel %vm3690_vm10, %v6443_v34, 0.0  ;;  %v3908_v44 = vsel %vm3836_vm11, %v6431_v28, 0.0  ;;  %v8275_v41 = vld [vmem:[#allocation45_spill] sm:$0xff] }
 0x36a   : > { %v3972_v58 = vadd.f32 %v3908_v44, %v3762_v60  ;;  %v3407_v29 = vsel %vm3335_vm12, %v8244_v12, 0.0  ;;  %vm3481_vm13 = vcmp.eq.s32.totalorder %v8270_v6, %v8245_v62  ;;  %vm3689_vm14 = vcmp.eq.s32.totalorder %v8271_v2, %v8246_v25 }
 0x36b   : > { %4120 = vmatpush1.msra.mxu0 %v4037_v24  ;;  %v3553_v45 = vsel %vm3481_vm13, %v8247_v49, 0.0  ;;  %v3761_v35 = vsel %vm3689_vm14, %v8248_v3, 0.0  ;;  %vm3835_vm15 = vcmp.eq.s32.totalorder %v8271_v2, %v6151_v59  ;;  %vm3334_vm0 = vcmp.eq.s32.totalorder %v8272_v32, %v5882_v50 }
 0x36c   : > { %v4036_v16 = vmul.f32 %v3972_v58, %v3618_v51  ;;  %v3617_v5 = vadd.f32 %v3553_v45, %v3407_v29  ;;  %v3907_v47 = vsel %vm3835_vm15, %v8249_v9, 0.0  ;;  %v3406_v52 = vsel %vm3334_vm0, %v8227_v55, 0.0  ;;  %v8276_v45 = vld [vmem:[#allocation47_spill] sm:$0xff] }
 0x36d   : > { %v3971_v42 = vadd.f32 %v3907_v47, %v3761_v35  ;;  %vm3480_vm2 = vcmp.eq.s32.totalorder %v8272_v32, %v8228_v23  ;;  %vm3688_vm3 = vcmp.eq.s32.totalorder %v8273_v21, %v6440_v27  ;;  %vm3834_vm5 = vcmp.eq.s32.totalorder %v8273_v21, %v6452_v20 }
 0x36e   : > { %4121 = vmatprep.subr.mxu0 %v4036_v16  ;;  %v3552_v31 = vsel %vm3480_vm2, %v8229_v26, 0.0  ;;  %v3760_v53 = vsel %vm3688_vm3, %v6443_v34, 0.0  ;;  %v3906_v13 = vsel %vm3834_vm5, %v6431_v28, 0.0  ;;  %vm3333_vm6 = vcmp.eq.s32.totalorder %v8272_v32, %v8243_v19 }
 0x36f   : > { %v4035_v22 = vmul.f32 %v3971_v42, %v3617_v5  ;;  %v3616_v4 = vadd.f32 %v3552_v31, %v3406_v52  ;;  %v3970_v40 = vadd.f32 %v3906_v13, %v3760_v53  ;;  %v3405_v7 = vsel %vm3333_vm6, %v8244_v12, 0.0  ;;  %v8277_v52 = vld [vmem:[#allocation48_spill] sm:$0xff] }
 0x370   : > { %vm3479_vm1 = vcmp.eq.s32.totalorder %v8272_v32, %v8245_v62  ;;  %vm3687_vm4 = vcmp.eq.s32.totalorder %v8273_v21, %v8246_v25  ;;  %vm3833_vm7 = vcmp.eq.s32.totalorder %v8273_v21, %v6151_v59  ;;  %vm3332_vm8 = vcmp.eq.s32.totalorder %v8274_v39, %v5882_v50 }
 0x371   : > { %4122 = vmatpush1.msra.mxu0 %v4035_v22  ;;  %v4034_v14 = vmul.f32 %v3970_v40, %v3616_v4  ;;  %v3551_v6 = vsel %vm3479_vm1, %v8247_v49, 0.0  ;;  %v3759_v46 = vsel %vm3687_vm4, %v8248_v3, 0.0  ;;  %v3905_v10 = vsel %vm3833_vm7, %v8249_v9, 0.0  ;;  %v8278_v40 = vld [vmem:[#allocation50_spill] sm:$0xff] }
 0x372   : > { %v3615_v30 = vadd.f32 %v3551_v6, %v3405_v7  ;;  %v3969_v17 = vadd.f32 %v3905_v10, %v3759_v46  ;;  %v3404_v8 = vsel %vm3332_vm8, %v8227_v55, 0.0  ;;  %vm3478_vm9 = vcmp.eq.s32.totalorder %v8274_v39, %v8228_v23 }
 0x373   : > { %4123 = vmatprep.subr.mxu0 %v4034_v14  ;;  %v3550_v11 = vsel %vm3478_vm9, %v8229_v26, 0.0  ;;  %vm3686_vm10 = vcmp.eq.s32.totalorder %v8275_v41, %v6440_v27  ;;  %vm3832_vm11 = vcmp.eq.s32.totalorder %v8275_v41, %v6452_v20  ;;  %vm3331_vm12 = vcmp.eq.s32.totalorder %v8274_v39, %v8243_v19 }
 0x374   : > { %v4033_v43 = vmul.f32 %v3969_v17, %v3615_v30  ;;  %v3614_v2 = vadd.f32 %v3550_v11, %v3404_v8  ;;  %v3758_v24 = vsel %vm3686_vm10, %v6443_v34, 0.0  ;;  %v3904_v51 = vsel %vm3832_vm11, %v6431_v28, 0.0  ;;  %v8279_v8 = vld [vmem:[#allocation49_spill] sm:$0xff] }
 0x375   : > { %v3968_v60 = vadd.f32 %v3904_v51, %v3758_v24  ;;  %v3403_v44 = vsel %vm3331_vm12, %v8244_v12, 0.0  ;;  %vm3477_vm13 = vcmp.eq.s32.totalorder %v8274_v39, %v8245_v62  ;;  %vm3685_vm14 = vcmp.eq.s32.totalorder %v8275_v41, %v8246_v25 }
 0x376   : > { %4124 = vmatpush1.msra.mxu0 %v4033_v43  ;;  %v3549_v58 = vsel %vm3477_vm13, %v8247_v49, 0.0  ;;  %v3757_v29 = vsel %vm3685_vm14, %v8248_v3, 0.0  ;;  %vm3831_vm15 = vcmp.eq.s32.totalorder %v8275_v41, %v6151_v59  ;;  %vm3394_vm0 = vcmp.eq.s32.totalorder %v8276_v45, %v5882_v50 }
 0x377   : > { %v4032_v35 = vmul.f32 %v3968_v60, %v3614_v2  ;;  %v3613_v32 = vadd.f32 %v3549_v58, %v3403_v44  ;;  %v3903_v16 = vsel %vm3831_vm15, %v8249_v9, 0.0  ;;  %v3466_v5 = vsel %vm3394_vm0, %v8227_v55, 0.0  ;;  %v8280_v58 = vld [vmem:[#allocation51_spill] sm:$0xff] }
 0x378   : > { %v3967_v47 = vadd.f32 %v3903_v16, %v3757_v29  ;;  %vm3540_vm2 = vcmp.eq.s32.totalorder %v8276_v45, %v8228_v23  ;;  %vm3748_vm3 = vcmp.eq.s32.totalorder %v8277_v52, %v6440_v27  ;;  %vm3894_vm5 = vcmp.eq.s32.totalorder %v8277_v52, %v6452_v20 }
 0x379   : > { %4125 = vmatprep.subr.mxu0 %v4032_v35  ;;  %v3612_v42 = vsel %vm3540_vm2, %v8229_v26, 0.0  ;;  %v3820_v21 = vsel %vm3748_vm3, %v6443_v34, 0.0  ;;  %v3966_v31 = vsel %vm3894_vm5, %v6431_v28, 0.0  ;;  %vm3393_vm6 = vcmp.eq.s32.totalorder %v8276_v45, %v8243_v19 }
 0x37a   : > { %v4031_v53 = vmul.f32 %v3967_v47, %v3613_v32  ;;  %v3676_v13 = vadd.f32 %v3612_v42, %v3466_v5  ;;  %v4030_v22 = vadd.f32 %v3966_v31, %v3820_v21  ;;  %v3465_v4 = vsel %vm3393_vm6, %v8244_v12, 0.0  ;;  %v8281_v5 = vld [vmem:[#allocation52_spill] sm:$0xff] }
 0x37b   : > { %vm3539_vm1 = vcmp.eq.s32.totalorder %v8276_v45, %v8245_v62  ;;  %vm3747_vm4 = vcmp.eq.s32.totalorder %v8277_v52, %v8246_v25  ;;  %vm3893_vm7 = vcmp.eq.s32.totalorder %v8277_v52, %v6151_v59  ;;  %vm3392_vm8 = vcmp.eq.s32.totalorder %v8278_v40, %v5882_v50 }
 0x37c   : > { %4126 = vmatpush1.msra.mxu0 %v4031_v53  ;;  %v4094_v7 = vmul.f32 %v4030_v22, %v3676_v13  ;;  %v3611_v39 = vsel %vm3539_vm1, %v8247_v49, 0.0  ;;  %v3819_v14 = vsel %vm3747_vm4, %v8248_v3, 0.0  ;;  %v3965_v6 = vsel %vm3893_vm7, %v8249_v9, 0.0  ;;  %v8282_v22 = vld [vmem:[#allocation53_spill] sm:$0xff] }
 0x37d   : > { %v3675_v46 = vadd.f32 %v3611_v39, %v3465_v4  ;;  %v4029_v10 = vadd.f32 %v3965_v6, %v3819_v14  ;;  %v3464_v30 = vsel %vm3392_vm8, %v8227_v55, 0.0  ;;  %vm3538_vm9 = vcmp.eq.s32.totalorder %v8278_v40, %v8228_v23 }
 0x37e   : > { %4127 = vmatprep.subr.mxu0 %v4094_v7  ;;  %v3610_v17 = vsel %vm3538_vm9, %v8229_v26, 0.0  ;;  %vm3746_vm10 = vcmp.eq.s32.totalorder %v8279_v8, %v6440_v27  ;;  %vm3892_vm11 = vcmp.eq.s32.totalorder %v8279_v8, %v6452_v20  ;;  %vm3391_vm12 = vcmp.eq.s32.totalorder %v8278_v40, %v8243_v19 }
 0x37f   : > { %v4093_v11 = vmul.f32 %v4029_v10, %v3675_v46  ;;  %v3674_v41 = vadd.f32 %v3610_v17, %v3464_v30  ;;  %v3818_v43 = vsel %vm3746_vm10, %v6443_v34, 0.0  ;;  %v3964_v2 = vsel %vm3892_vm11, %v6431_v28, 0.0  ;;  %v8283_v30 = vld [vmem:[#allocation54_spill] sm:$0xff] }
 0x380   : > { %v4028_v24 = vadd.f32 %v3964_v2, %v3818_v43  ;;  %v3463_v51 = vsel %vm3391_vm12, %v8244_v12, 0.0  ;;  %vm3537_vm13 = vcmp.eq.s32.totalorder %v8278_v40, %v8245_v62  ;;  %vm3745_vm14 = vcmp.eq.s32.totalorder %v8279_v8, %v8246_v25 }
 0x381   : > { %4128 = vmatpush2.msra.mxu0 %v4093_v11  ;;  %v3609_v60 = vsel %vm3537_vm13, %v8247_v49, 0.0  ;;  %v3817_v44 = vsel %vm3745_vm14, %v8248_v3, 0.0  ;;  %vm3891_vm15 = vcmp.eq.s32.totalorder %v8279_v8, %v6151_v59  ;;  %vm3390_vm0 = vcmp.eq.s32.totalorder %v8280_v58, %v5882_v50 }
 0x382   : > { %v4092_v29 = vmul.f32 %v4028_v24, %v3674_v41  ;;  %v3673_v45 = vadd.f32 %v3609_v60, %v3463_v51  ;;  %v3963_v35 = vsel %vm3891_vm15, %v8249_v9, 0.0  ;;  %v3462_v32 = vsel %vm3390_vm0, %v8227_v55, 0.0  ;;  %v8284_v60 = vld [vmem:[#allocation57_spill] sm:$0xff] }
 0x383   : > { %v4027_v16 = vadd.f32 %v3963_v35, %v3817_v44  ;;  %vm3536_vm2 = vcmp.eq.s32.totalorder %v8280_v58, %v8228_v23  ;;  %vm3744_vm3 = vcmp.eq.s32.totalorder %v8281_v5, %v6440_v27  ;;  %vm3890_vm5 = vcmp.eq.s32.totalorder %v8281_v5, %v6452_v20 }
 0x384   : > { %4129 = vmatprep.subr.mxu0 %v4092_v29  ;;  %v3608_v47 = vsel %vm3536_vm2, %v8229_v26, 0.0  ;;  %v3816_v52 = vsel %vm3744_vm3, %v6443_v34, 0.0  ;;  %v3962_v42 = vsel %vm3890_vm5, %v6431_v28, 0.0  ;;  %vm3389_vm6 = vcmp.eq.s32.totalorder %v8280_v58, %v8243_v19 }
 0x385   : > { %v4091_v21 = vmul.f32 %v4027_v16, %v3673_v45  ;;  %v3672_v31 = vadd.f32 %v3608_v47, %v3462_v32  ;;  %v4026_v53 = vadd.f32 %v3962_v42, %v3816_v52  ;;  %v3461_v13 = vsel %vm3389_vm6, %v8244_v12, 0.0  ;;  %v8285_v32 = vld [vmem:[#allocation61_spill] sm:$0xff] }
 0x386   : > { %vm3535_vm1 = vcmp.eq.s32.totalorder %v8280_v58, %v8245_v62  ;;  %vm3743_vm4 = vcmp.eq.s32.totalorder %v8281_v5, %v8246_v25  ;;  %vm3889_vm7 = vcmp.eq.s32.totalorder %v8281_v5, %v6151_v59  ;;  %vm3388_vm8 = vcmp.eq.s32.totalorder %v8282_v22, %v5882_v50 }
 0x387   : > { %4130 = vmatpush2.msra.mxu0 %v4091_v21  ;;  %v4090_v4 = vmul.f32 %v4026_v53, %v3672_v31  ;;  %v3607_v40 = vsel %vm3535_vm1, %v8247_v49, 0.0  ;;  %v3815_v7 = vsel %vm3743_vm4, %v8248_v3, 0.0  ;;  %v3961_v39 = vsel %vm3889_vm7, %v8249_v9, 0.0  ;;  %v8286_v53 = vld [vmem:[#allocation55_spill] sm:$0xff] }
 0x388   : > { %v3671_v14 = vadd.f32 %v3607_v40, %v3461_v13  ;;  %v4025_v6 = vadd.f32 %v3961_v39, %v3815_v7  ;;  %v3460_v46 = vsel %vm3388_vm8, %v8227_v55, 0.0  ;;  %vm3534_vm9 = vcmp.eq.s32.totalorder %v8282_v22, %v8228_v23 }
 0x389   : > { %4131 = vmatprep.subr.mxu0 %v4090_v4  ;;  %v3606_v10 = vsel %vm3534_vm9, %v8229_v26, 0.0  ;;  %vm3742_vm10 = vcmp.eq.s32.totalorder %v8283_v30, %v6440_v27  ;;  %vm3888_vm11 = vcmp.eq.s32.totalorder %v8283_v30, %v6452_v20  ;;  %vm3387_vm12 = vcmp.eq.s32.totalorder %v8282_v22, %v8243_v19 }
 0x38a   : > { %v4089_v17 = vmul.f32 %v4025_v6, %v3671_v14  ;;  %v3670_v8 = vadd.f32 %v3606_v10, %v3460_v46  ;;  %v3814_v11 = vsel %vm3742_vm10, %v6443_v34, 0.0  ;;  %v3960_v41 = vsel %vm3888_vm11, %v6431_v28, 0.0  ;;  %v8287_v46 = vld [vmem:[#allocation67_spill] sm:$0xff] }
 0x38b   : > { %v4024_v43 = vadd.f32 %v3960_v41, %v3814_v11  ;;  %v3459_v2 = vsel %vm3387_vm12, %v8244_v12, 0.0  ;;  %vm3533_vm13 = vcmp.eq.s32.totalorder %v8282_v22, %v8245_v62  ;;  %vm3741_vm14 = vcmp.eq.s32.totalorder %v8283_v30, %v8246_v25 }
 0x38c   : > { %4132 = vmatpush2.msra.mxu0 %v4089_v17  ;;  %v3605_v24 = vsel %vm3533_vm13, %v8247_v49, 0.0  ;;  %v3813_v51 = vsel %vm3741_vm14, %v8248_v3, 0.0  ;;  %vm3887_vm15 = vcmp.eq.s32.totalorder %v8283_v30, %v6151_v59  ;;  %vm3386_vm0 = vcmp.eq.s32.totalorder %v8284_v60, %v5882_v50 }
 0x38d   : > { %v4088_v44 = vmul.f32 %v4024_v43, %v3670_v8  ;;  %v3669_v58 = vadd.f32 %v3605_v24, %v3459_v2  ;;  %v3959_v29 = vsel %vm3887_vm15, %v8249_v9, 0.0  ;;  %v3458_v45 = vsel %vm3386_vm0, %v8227_v55, 0.0 }
 0x38e   : > { %v4023_v35 = vadd.f32 %v3959_v29, %v3813_v51  ;;  %vm3532_vm2 = vcmp.eq.s32.totalorder %v8284_v60, %v8228_v23  ;;  %vm3740_vm3 = vcmp.eq.s32.totalorder %v8285_v32, %v6440_v27  ;;  %vm3886_vm5 = vcmp.eq.s32.totalorder %v8285_v32, %v6452_v20 }
 0x38f   : > { %4133 = vmatprep.subr.mxu0 %v4088_v44  ;;  %v3604_v16 = vsel %vm3532_vm2, %v8229_v26, 0.0  ;;  %v3812_v5 = vsel %vm3740_vm3, %v6443_v34, 0.0  ;;  %v3958_v47 = vsel %vm3886_vm5, %v6431_v28, 0.0  ;;  %vm3385_vm6 = vcmp.eq.s32.totalorder %v8284_v60, %v8243_v19 }
 0x390   : > { %v4087_v52 = vmul.f32 %v4023_v35, %v3669_v58  ;;  %v3668_v42 = vadd.f32 %v3604_v16, %v3458_v45  ;;  %v4022_v21 = vadd.f32 %v3958_v47, %v3812_v5  ;;  %v3457_v31 = vsel %vm3385_vm6, %v8244_v12, 0.0 }
 0x391   : > { %vm3531_vm1 = vcmp.eq.s32.totalorder %v8284_v60, %v8245_v62  ;;  %vm3739_vm4 = vcmp.eq.s32.totalorder %v8285_v32, %v8246_v25  ;;  %vm3885_vm7 = vcmp.eq.s32.totalorder %v8285_v32, %v6151_v59  ;;  %vm3384_vm8 = vcmp.eq.s32.totalorder %v8286_v53, %v5882_v50 }
 0x392   : > { %4134 = vmatpush2.msra.mxu0 %v4087_v52  ;;  %v4086_v13 = vmul.f32 %v4022_v21, %v3668_v42  ;;  %v3603_v22 = vsel %vm3531_vm1, %v8247_v49, 0.0  ;;  %v3811_v4 = vsel %vm3739_vm4, %v8248_v3, 0.0  ;;  %v3957_v40 = vsel %vm3885_vm7, %v8249_v9, 0.0  ;;  %v8288_v52 = vld [vmem:[#allocation74_spill] sm:$0xff] }
 0x393   : > { %v3667_v7 = vadd.f32 %v3603_v22, %v3457_v31  ;;  %v4021_v39 = vadd.f32 %v3957_v40, %v3811_v4  ;;  %v3456_v14 = vsel %vm3384_vm8, %v8227_v55, 0.0  ;;  %vm3530_vm9 = vcmp.eq.s32.totalorder %v8286_v53, %v8228_v23  ;;  %v8289_v4 = vld [vmem:[#allocation73_spill] sm:$0xff] }
 0x394   : > { %4135 = vmatprep.subr.mxu0 %v4086_v13  ;;  %v3602_v6 = vsel %vm3530_vm9, %v8229_v26, 0.0  ;;  %vm3738_vm10 = vcmp.eq.s32.totalorder %v8287_v46, %v6440_v27  ;;  %vm3884_vm11 = vcmp.eq.s32.totalorder %v8287_v46, %v6452_v20  ;;  %vm3383_vm12 = vcmp.eq.s32.totalorder %v8286_v53, %v8243_v19 }
 0x395   : > { %v4085_v10 = vmul.f32 %v4021_v39, %v3667_v7  ;;  %v3666_v30 = vadd.f32 %v3602_v6, %v3456_v14  ;;  %v3810_v17 = vsel %vm3738_vm10, %v6443_v34, 0.0  ;;  %v3956_v8 = vsel %vm3884_vm11, %v6431_v28, 0.0 }
 0x396   : > { %v4020_v11 = vadd.f32 %v3956_v8, %v3810_v17  ;;  %v3455_v41 = vsel %vm3383_vm12, %v8244_v12, 0.0  ;;  %vm3529_vm13 = vcmp.eq.s32.totalorder %v8286_v53, %v8245_v62  ;;  %vm3737_vm14 = vcmp.eq.s32.totalorder %v8287_v46, %v8246_v25  ;;  %v8290_v17 = vld [vmem:[#allocation76_spill] sm:$0xff] }
 0x397   : > { %4136 = vmatpush2.msra.mxu0 %v4085_v10  ;;  %v3601_v43 = vsel %vm3529_vm13, %v8247_v49, 0.0  ;;  %v3809_v2 = vsel %vm3737_vm14, %v8248_v3, 0.0  ;;  %vm3883_vm15 = vcmp.eq.s32.totalorder %v8287_v46, %v6151_v59  ;;  %vm3382_vm0 = vcmp.eq.s32.totalorder %v8237_v38, %v5882_v50 }
 0x398   : > { %v4084_v24 = vmul.f32 %v4020_v11, %v3666_v30  ;;  %v3665_v51 = vadd.f32 %v3601_v43, %v3455_v41  ;;  %v3955_v60 = vsel %vm3883_vm15, %v8249_v9, 0.0  ;;  %v3454_v44 = vsel %vm3382_vm0, %v8227_v55, 0.0 }
 0x399   : > { %v4019_v58 = vadd.f32 %v3955_v60, %v3809_v2  ;;  %vm3528_vm2 = vcmp.eq.s32.totalorder %v8237_v38, %v8228_v23  ;;  %vm3736_vm3 = vcmp.eq.s32.totalorder %v8238_v33, %v6440_v27  ;;  %vm3882_vm5 = vcmp.eq.s32.totalorder %v8238_v33, %v6452_v20 }
 0x39a   : > { %4137 = vmatprep.subr.mxu0 %v4084_v24  ;;  %v3600_v29 = vsel %vm3528_vm2, %v8229_v26, 0.0  ;;  %v3808_v45 = vsel %vm3736_vm3, %v6443_v34, 0.0  ;;  %v3954_v35 = vsel %vm3882_vm5, %v6431_v28, 0.0  ;;  %vm3381_vm6 = vcmp.eq.s32.totalorder %v8237_v38, %v8243_v19  ;;  %v8291_v24 = vld [vmem:[#allocation75_spill] sm:$0xff] }
 0x39b   : > { %v4083_v32 = vmul.f32 %v4019_v58, %v3665_v51  ;;  %v3664_v16 = vadd.f32 %v3600_v29, %v3454_v44  ;;  %v4018_v5 = vadd.f32 %v3954_v35, %v3808_v45  ;;  %v3453_v47 = vsel %vm3381_vm6, %v8244_v12, 0.0 }
 0x39c   : > { %vm3527_vm1 = vcmp.eq.s32.totalorder %v8237_v38, %v8245_v62  ;;  %vm3735_vm4 = vcmp.eq.s32.totalorder %v8238_v33, %v8246_v25  ;;  %vm3881_vm7 = vcmp.eq.s32.totalorder %v8238_v33, %v6151_v59  ;;  %vm3380_vm8 = vcmp.eq.s32.totalorder %v8288_v52, %v5882_v50 }
 0x39d   : > { %4138 = vmatpush2.msra.mxu0 %v4083_v32  ;;  %v4082_v42 = vmul.f32 %v4018_v5, %v3664_v16  ;;  %v3599_v21 = vsel %vm3527_vm1, %v8247_v49, 0.0  ;;  %v3807_v31 = vsel %vm3735_vm4, %v8248_v3, 0.0  ;;  %v3953_v53 = vsel %vm3881_vm7, %v8249_v9, 0.0  ;;  %v8292_v32 = vld [vmem:[#allocation78_spill] sm:$0xff] }
 0x39e   : > { %v3663_v13 = vadd.f32 %v3599_v21, %v3453_v47  ;;  %v4017_v22 = vadd.f32 %v3953_v53, %v3807_v31  ;;  %v3452_v38 = vsel %vm3380_vm8, %v8227_v55, 0.0  ;;  %vm3526_vm9 = vcmp.eq.s32.totalorder %v8288_v52, %v8228_v23 }
 0x39f   : > { %4139 = vmatprep.subr.mxu0 %v4082_v42  ;;  %v3598_v33 = vsel %vm3526_vm9, %v8229_v26, 0.0  ;;  %vm3734_vm10 = vcmp.eq.s32.totalorder %v8289_v4, %v6440_v27  ;;  %vm3880_vm11 = vcmp.eq.s32.totalorder %v8289_v4, %v6452_v20  ;;  %vm3379_vm12 = vcmp.eq.s32.totalorder %v8288_v52, %v8243_v19 }
 0x3a0   : > { %v4081_v40 = vmul.f32 %v4017_v22, %v3663_v13  ;;  %v3662_v7 = vadd.f32 %v3598_v33, %v3452_v38  ;;  %v3806_v39 = vsel %vm3734_vm10, %v6443_v34, 0.0  ;;  %v3952_v14 = vsel %vm3880_vm11, %v6431_v28, 0.0  ;;  %v8293_v13 = vld [vmem:[#allocation77_spill] sm:$0xff] }
 0x3a1   : > { %v4016_v6 = vadd.f32 %v3952_v14, %v3806_v39  ;;  %v3451_v46 = vsel %vm3379_vm12, %v8244_v12, 0.0  ;;  %vm3525_vm13 = vcmp.eq.s32.totalorder %v8288_v52, %v8245_v62  ;;  %vm3733_vm14 = vcmp.eq.s32.totalorder %v8289_v4, %v8246_v25 }
 0x3a2   : > { %4140 = vmatpush2.msra.mxu0 %v4081_v40  ;;  %v3597_v10 = vsel %vm3525_vm13, %v8247_v49, 0.0  ;;  %v3805_v30 = vsel %vm3733_vm14, %v8248_v3, 0.0  ;;  %vm3879_vm15 = vcmp.eq.s32.totalorder %v8289_v4, %v6151_v59  ;;  %vm3378_vm0 = vcmp.eq.s32.totalorder %v8290_v17, %v5882_v50 }
 0x3a3   : > { %v4080_v8 = vmul.f32 %v4016_v6, %v3662_v7  ;;  %v3661_v11 = vadd.f32 %v3597_v10, %v3451_v46  ;;  %v3951_v41 = vsel %vm3879_vm15, %v8249_v9, 0.0  ;;  %v3450_v43 = vsel %vm3378_vm0, %v8227_v55, 0.0 }
 0x3a4   : > { %v4015_v2 = vadd.f32 %v3951_v41, %v3805_v30  ;;  %vm3524_vm2 = vcmp.eq.s32.totalorder %v8290_v17, %v8228_v23  ;;  %vm3732_vm3 = vcmp.eq.s32.totalorder %v8291_v24, %v6440_v27  ;;  %vm3878_vm5 = vcmp.eq.s32.totalorder %v8291_v24, %v6452_v20 }
 0x3a5   : > { %4141 = vmatprep.subr.mxu0 %v4080_v8  ;;  %v3596_v51 = vsel %vm3524_vm2, %v8229_v26, 0.0  ;;  %v3804_v60 = vsel %vm3732_vm3, %v6443_v34, 0.0  ;;  %v3950_v44 = vsel %vm3878_vm5, %v6431_v28, 0.0  ;;  %vm3377_vm6 = vcmp.eq.s32.totalorder %v8290_v17, %v8243_v19 }
 0x3a6   : > { %v4079_v58 = vmul.f32 %v4015_v2, %v3661_v11  ;;  %v3660_v29 = vadd.f32 %v3596_v51, %v3450_v43  ;;  %v4014_v45 = vadd.f32 %v3950_v44, %v3804_v60  ;;  %v3449_v35 = vsel %vm3377_vm6, %v8244_v12, 0.0 }
 0x3a7   : > { %vm3523_vm1 = vcmp.eq.s32.totalorder %v8290_v17, %v8245_v62  ;;  %vm3731_vm4 = vcmp.eq.s32.totalorder %v8291_v24, %v8246_v25  ;;  %vm3877_vm7 = vcmp.eq.s32.totalorder %v8291_v24, %v6151_v59  ;;  %vm3376_vm8 = vcmp.eq.s32.totalorder %v8292_v32, %v5882_v50 }
 0x3a8   : > { %4142 = vmatpush2.msra.mxu0 %v4079_v58  ;;  %v4078_v16 = vmul.f32 %v4014_v45, %v3660_v29  ;;  %v3595_v5 = vsel %vm3523_vm1, %v8247_v49, 0.0  ;;  %v3803_v47 = vsel %vm3731_vm4, %v8248_v3, 0.0  ;;  %v3949_v52 = vsel %vm3877_vm7, %v8249_v9, 0.0 }
 0x3a9   : > { %v3659_v42 = vadd.f32 %v3595_v5, %v3449_v35  ;;  %v4013_v21 = vadd.f32 %v3949_v52, %v3803_v47  ;;  %v3448_v31 = vsel %vm3376_vm8, %v8227_v55, 0.0  ;;  %vm3522_vm9 = vcmp.eq.s32.totalorder %v8292_v32, %v8228_v23 }
 0x3aa   : > { %4143 = vmatprep.subr.mxu0 %v4078_v16  ;;  %v3594_v53 = vsel %vm3522_vm9, %v8229_v26, 0.0  ;;  %vm3730_vm10 = vcmp.eq.s32.totalorder %v8293_v13, %v6440_v27  ;;  %vm3876_vm11 = vcmp.eq.s32.totalorder %v8293_v13, %v6452_v20  ;;  %vm3375_vm12 = vcmp.eq.s32.totalorder %v8292_v32, %v8243_v19 }
 0x3ab   : > { %v4077_v22 = vmul.f32 %v4013_v21, %v3659_v42  ;;  %v3658_v38 = vadd.f32 %v3594_v53, %v3448_v31  ;;  %v3802_v33 = vsel %vm3730_vm10, %v6443_v34, 0.0  ;;  %v3948_v4 = vsel %vm3876_vm11, %v6431_v28, 0.0 }
 0x3ac   : > { %v4012_v40 = vadd.f32 %v3948_v4, %v3802_v33  ;;  %v3447_v7 = vsel %vm3375_vm12, %v8244_v12, 0.0  ;;  %vm3521_vm13 = vcmp.eq.s32.totalorder %v8292_v32, %v8245_v62  ;;  %vm3729_vm14 = vcmp.eq.s32.totalorder %v8293_v13, %v8246_v25 }
 0x3ad   : > { %4144 = vmatpush2.msra.mxu0 %v4077_v22  ;;  %v3593_v39 = vsel %vm3521_vm13, %v8247_v49, 0.0  ;;  %v3801_v14 = vsel %vm3729_vm14, %v8248_v3, 0.0  ;;  %vm3875_vm15 = vcmp.eq.s32.totalorder %v8293_v13, %v6151_v59  ;;  %vm3374_vm0 = vcmp.eq.s32.totalorder %v8250_v48, %v5882_v50 }
 0x3ae   : > { %v4076_v6 = vmul.f32 %v4012_v40, %v3658_v38  ;;  %v3657_v46 = vadd.f32 %v3593_v39, %v3447_v7  ;;  %v3947_v10 = vsel %vm3875_vm15, %v8249_v9, 0.0  ;;  %v3446_v30 = vsel %vm3374_vm0, %v8227_v55, 0.0 }
 0x3af   : > { %v4011_v17 = vadd.f32 %v3947_v10, %v3801_v14  ;;  %vm3520_vm2 = vcmp.eq.s32.totalorder %v8250_v48, %v8228_v23  ;;  %vm3728_vm3 = vcmp.eq.s32.totalorder %v8251_v36, %v6440_v27  ;;  %vm3874_vm5 = vcmp.eq.s32.totalorder %v8251_v36, %v6452_v20 }
 0x3b0   : > { %4145 = vmatprep.subr.mxu0 %v4076_v6  ;;  %v3592_v8 = vsel %vm3520_vm2, %v8229_v26, 0.0  ;;  %v3800_v11 = vsel %vm3728_vm3, %v6443_v34, 0.0  ;;  %v3946_v41 = vsel %vm3874_vm5, %v6431_v28, 0.0  ;;  %vm3373_vm6 = vcmp.eq.s32.totalorder %v8250_v48, %v8243_v19  ;;  %v2411_v43 = vpop.f32.mrf.mxu0 }
 0x3b1   : > { %v4075_v2 = vmul.f32 %v4011_v17, %v3657_v46  ;;  %v3656_v24 = vadd.f32 %v3592_v8, %v3446_v30  ;;  %v4010_v51 = vadd.f32 %v3946_v41, %v3800_v11  ;;  %v3445_v60 = vsel %vm3373_vm6, %v8244_v12, 0.0 }
 0x3b2   : > { %vm3519_vm1 = vcmp.eq.s32.totalorder %v8250_v48, %v8245_v62  ;;  %vm3727_vm4 = vcmp.eq.s32.totalorder %v8251_v36, %v8246_v25  ;;  %vm3873_vm7 = vcmp.eq.s32.totalorder %v8251_v36, %v6151_v59  ;;  %vm3372_vm8 = vcmp.eq.s32.totalorder %v8252_v1, %v5882_v50  ;;  %v2413_v44 = vpop.f32.mrf.mxu0 }
 0x3b3   : > { %4146 = vmatpush2.msra.mxu0 %v4075_v2  ;;  %v4074_v58 = vmul.f32 %v4010_v51, %v3656_v24  ;;  %v3591_v29 = vsel %vm3519_vm1, %v8247_v49, 0.0  ;;  %v3799_v45 = vsel %vm3727_vm4, %v8248_v3, 0.0  ;;  %v3945_v35 = vsel %vm3873_vm7, %v8249_v9, 0.0  ;;  %3284 = vmatprep.mubr.f32.mxu1 %v2413_v44 }
 0x3b4   : > { %v3655_v48 = vadd.f32 %v3591_v29, %v3445_v60  ;;  %v4009_v32 = vadd.f32 %v3945_v35, %v3799_v45  ;;  %v3444_v16 = vsel %vm3372_vm8, %v8227_v55, 0.0  ;;  %vm3518_vm9 = vcmp.eq.s32.totalorder %v8252_v1, %v8228_v23  ;;  %3285 = vmatmul.mubr.f32.vlgmr.msra.gmra.mxu1 %v2411_v43 }
 0x3b5   : > { %4147 = vmatprep.subr.mxu0 %v4074_v58  ;;  %v3590_v36 = vsel %vm3518_vm9, %v8229_v26, 0.0  ;;  %vm3726_vm10 = vcmp.eq.s32.totalorder %v8253_v54, %v6440_v27  ;;  %vm3872_vm11 = vcmp.eq.s32.totalorder %v8253_v54, %v6452_v20  ;;  %vm3371_vm12 = vcmp.eq.s32.totalorder %v8252_v1, %v8243_v19 }
 0x3b6   : > { %v4073_v5 = vmul.f32 %v4009_v32, %v3655_v48  ;;  %v3654_v47 = vadd.f32 %v3590_v36, %v3444_v16  ;;  %v3798_v52 = vsel %vm3726_vm10, %v6443_v34, 0.0  ;;  %v3944_v42 = vsel %vm3872_vm11, %v6431_v28, 0.0 }
 0x3b7   : > { %v4008_v21 = vadd.f32 %v3944_v42, %v3798_v52  ;;  %v3443_v31 = vsel %vm3371_vm12, %v8244_v12, 0.0  ;;  %vm3517_vm13 = vcmp.eq.s32.totalorder %v8252_v1, %v8245_v62  ;;  %vm3725_vm14 = vcmp.eq.s32.totalorder %v8253_v54, %v8246_v25 }
 0x3b8   : > { %4148 = vmatpush2.msra.mxu0 %v4073_v5  ;;  %v3589_v53 = vsel %vm3517_vm13, %v8247_v49, 0.0  ;;  %v3797_v13 = vsel %vm3725_vm14, %v8248_v3, 0.0  ;;  %vm3871_vm15 = vcmp.eq.s32.totalorder %v8253_v54, %v6151_v59  ;;  %vm3370_vm0 = vcmp.eq.s32.totalorder %v6155_v15, %v5882_v50 }
 0x3b9   : > { %v4072_v22 = vmul.f32 %v4008_v21, %v3654_v47  ;;  %v3653_v38 = vadd.f32 %v3589_v53, %v3443_v31  ;;  %v3943_v33 = vsel %vm3871_vm15, %v8249_v9, 0.0  ;;  %v3442_v1 = vsel %vm3370_vm0, %v8227_v55, 0.0 }
 0x3ba   : > { %v4007_v4 = vadd.f32 %v3943_v33, %v3797_v13  ;;  %vm3516_vm2 = vcmp.eq.s32.totalorder %v6155_v15, %v8228_v23  ;;  %vm3724_vm3 = vcmp.eq.s32.totalorder %v8254_v57, %v6440_v27  ;;  %vm3870_vm5 = vcmp.eq.s32.totalorder %v8254_v57, %v6452_v20 }
 0x3bb   : > { %4149 = vmatprep.subr.mxu0 %v4072_v22  ;;  %v3588_v54 = vsel %vm3516_vm2, %v8229_v26, 0.0  ;;  %v3796_v40 = vsel %vm3724_vm3, %v6443_v34, 0.0  ;;  %v3942_v7 = vsel %vm3870_vm5, %v6431_v28, 0.0  ;;  %vm3369_vm6 = vcmp.eq.s32.totalorder %v6155_v15, %v8243_v19 }
 0x3bc   : > { %v4071_v39 = vmul.f32 %v4007_v4, %v3653_v38  ;;  %v3652_v14 = vadd.f32 %v3588_v54, %v3442_v1  ;;  %v4006_v6 = vadd.f32 %v3942_v7, %v3796_v40  ;;  %v3441_v46 = vsel %vm3369_vm6, %v8244_v12, 0.0 }
 0x3bd   : > { %vm3515_vm1 = vcmp.eq.s32.totalorder %v6155_v15, %v8245_v62  ;;  %vm3723_vm4 = vcmp.eq.s32.totalorder %v8254_v57, %v8246_v25  ;;  %vm3869_vm7 = vcmp.eq.s32.totalorder %v8254_v57, %v6151_v59  ;;  %vm3368_vm8 = vcmp.eq.s32.totalorder %v6162_v0, %v5882_v50 }
 0x3be   : > { %4150 = vmatpush2.msra.mxu0 %v4071_v39  ;;  %v4070_v10 = vmul.f32 %v4006_v6, %v3652_v14  ;;  %v3587_v30 = vsel %vm3515_vm1, %v8247_v49, 0.0  ;;  %v3795_v17 = vsel %vm3723_vm4, %v8248_v3, 0.0  ;;  %v3941_v8 = vsel %vm3869_vm7, %v8249_v9, 0.0 }
 0x3bf   : > { %v3651_v11 = vadd.f32 %v3587_v30, %v3441_v46  ;;  %v4005_v41 = vadd.f32 %v3941_v8, %v3795_v17  ;;  %v3440_v15 = vsel %vm3368_vm8, %v8227_v55, 0.0  ;;  %vm3514_vm9 = vcmp.eq.s32.totalorder %v6162_v0, %v8228_v23 }
 0x3c0   : > { %4151 = vmatprep.subr.mxu0 %v4070_v10  ;;  %v3586_v57 = vsel %vm3514_vm9, %v8229_v26, 0.0  ;;  %vm3722_vm10 = vcmp.eq.s32.totalorder %v8255_v37, %v6440_v27  ;;  %vm3868_vm11 = vcmp.eq.s32.totalorder %v8255_v37, %v6452_v20  ;;  %vm3367_vm12 = vcmp.eq.s32.totalorder %v6162_v0, %v8243_v19 }
 0x3c1   : > { %v4069_v43 = vmul.f32 %v4005_v41, %v3651_v11  ;;  %v3650_v2 = vadd.f32 %v3586_v57, %v3440_v15  ;;  %v3794_v24 = vsel %vm3722_vm10, %v6443_v34, 0.0  ;;  %v3940_v51 = vsel %vm3868_vm11, %v6431_v28, 0.0 }
 0x3c2   : > { %v4004_v60 = vadd.f32 %v3940_v51, %v3794_v24  ;;  %v3439_v44 = vsel %vm3367_vm12, %v8244_v12, 0.0  ;;  %vm3513_vm13 = vcmp.eq.s32.totalorder %v6162_v0, %v8245_v62  ;;  %vm3721_vm14 = vcmp.eq.s32.totalorder %v8255_v37, %v8246_v25 }
 0x3c3   : > { %4152 = vmatpush2.msra.mxu0 %v4069_v43  ;;  %v3585_v58 = vsel %vm3513_vm13, %v8247_v49, 0.0  ;;  %v3793_v29 = vsel %vm3721_vm14, %v8248_v3, 0.0  ;;  %vm3867_vm15 = vcmp.eq.s32.totalorder %v8255_v37, %v6151_v59  ;;  %vm3366_vm0 = vcmp.eq.s32.totalorder %v8256_v61, %v5882_v50 }
 0x3c4   : > { %v4068_v45 = vmul.f32 %v4004_v60, %v3650_v2  ;;  %v3649_v35 = vadd.f32 %v3585_v58, %v3439_v44  ;;  %v3939_v48 = vsel %vm3867_vm15, %v8249_v9, 0.0  ;;  %v3438_v0 = vsel %vm3366_vm0, %v8227_v55, 0.0 }
 0x3c5   : > { %v4003_v32 = vadd.f32 %v3939_v48, %v3793_v29  ;;  %vm3512_vm2 = vcmp.eq.s32.totalorder %v8256_v61, %v8228_v23  ;;  %vm3720_vm3 = vcmp.eq.s32.totalorder %v6164_v56, %v6440_v27  ;;  %vm3866_vm5 = vcmp.eq.s32.totalorder %v6164_v56, %v6452_v20 }
 0x3c6   : > { %4153 = vmatprep.subr.mxu0 %v4068_v45  ;;  %v3584_v37 = vsel %vm3512_vm2, %v8229_v26, 0.0  ;;  %v3792_v16 = vsel %vm3720_vm3, %v6443_v34, 0.0  ;;  %v3938_v36 = vsel %vm3866_vm5, %v6431_v28, 0.0  ;;  %vm3365_vm6 = vcmp.eq.s32.totalorder %v8256_v61, %v8243_v19 }
 0x3c7   : > { %v4067_v5 = vmul.f32 %v4003_v32, %v3649_v35  ;;  %v3648_v47 = vadd.f32 %v3584_v37, %v3438_v0  ;;  %v4002_v52 = vadd.f32 %v3938_v36, %v3792_v16  ;;  %v3437_v42 = vsel %vm3365_vm6, %v8244_v12, 0.0 }
 0x3c8   : > { %vm3511_vm1 = vcmp.eq.s32.totalorder %v8256_v61, %v8245_v62  ;;  %vm3719_vm4 = vcmp.eq.s32.totalorder %v6164_v56, %v8246_v25  ;;  %vm3865_vm7 = vcmp.eq.s32.totalorder %v6164_v56, %v6151_v59  ;;  %vm3364_vm8 = vcmp.eq.s32.totalorder %v6248_v63, %v5882_v50 }
 0x3c9   : > { %4154 = vmatpush2.msra.mxu0 %v4067_v5  ;;  %v4066_v21 = vmul.f32 %v4002_v52, %v3648_v47  ;;  %v3583_v31 = vsel %vm3511_vm1, %v8247_v49, 0.0  ;;  %v3791_v53 = vsel %vm3719_vm4, %v8248_v3, 0.0  ;;  %v3937_v13 = vsel %vm3865_vm7, %v8249_v9, 0.0 }
 0x3ca   : > { %v3647_v22 = vadd.f32 %v3583_v31, %v3437_v42  ;;  %v4001_v38 = vadd.f32 %v3937_v13, %v3791_v53  ;;  %v3436_v61 = vsel %vm3364_vm8, %v8227_v55, 0.0  ;;  %vm3510_vm9 = vcmp.eq.s32.totalorder %v6248_v63, %v8228_v23 }
 0x3cb   : > { %4155 = vmatprep.subr.mxu0 %v4066_v21  ;;  %v3582_v56 = vsel %vm3510_vm9, %v8229_v26, 0.0  ;;  %vm3718_vm10 = vcmp.eq.s32.totalorder %v8257_v18, %v6440_v27  ;;  %vm3864_vm11 = vcmp.eq.s32.totalorder %v8257_v18, %v6452_v20  ;;  %vm3363_vm12 = vcmp.eq.s32.totalorder %v6248_v63, %v8243_v19 }
 0x3cc   : > { %v4065_v50 = vmul.f32 %v4001_v38, %v3647_v22  ;;  %v3646_v33 = vadd.f32 %v3582_v56, %v3436_v61  ;;  %v3790_v1 = vsel %vm3718_vm10, %v6443_v34, 0.0  ;;  %v3936_v55 = vsel %vm3864_vm11, %v6431_v28, 0.0 }
 0x3cd   : > { %v4000_v4 = vadd.f32 %v3936_v55, %v3790_v1  ;;  %v3435_v23 = vsel %vm3363_vm12, %v8244_v12, 0.0  ;;  %vm3509_vm13 = vcmp.eq.s32.totalorder %v6248_v63, %v8245_v62  ;;  %vm3717_vm14 = vcmp.eq.s32.totalorder %v8257_v18, %v8246_v25 }
 0x3ce   : > { %4156 = vmatpush2.msra.mxu0 %v4065_v50  ;;  %v3581_v27 = vsel %vm3509_vm13, %v8247_v49, 0.0  ;;  %v3789_v20 = vsel %vm3717_vm14, %v8248_v3, 0.0  ;;  %vm3863_vm15 = vcmp.eq.s32.totalorder %v8257_v18, %v6151_v59 }
 0x3cf   : > { %v4064_v28 = vmul.f32 %v4000_v4, %v3646_v33  ;;  %v3645_v34 = vadd.f32 %v3581_v27, %v3435_v23  ;;  %v3935_v26 = vsel %vm3863_vm15, %v8249_v9, 0.0 }
 0x3d0   : > { %v3999_v63 = vadd.f32 %v3935_v26, %v3789_v20 }
 0x3d1   : > { %4157 = vmatprep.subr.mxu0 %v4064_v28 }
 0x3d2   : > { %v4063_v62 = vmul.f32 %v3999_v63, %v3645_v34 }
 0x3d4   : > { %4158 = vmatpush2.msra.mxu0 %v4063_v62 }
 0x474   : > { %v3286_v19 = vpop.f32.mrf.mxu1 }
 0x476   : > { %v3288_v12 = vpop.f32.mrf.mxu1 }
 0x477   : > { %4159 = vmatprep.mubr.f32.mxu0 %v3288_v12 }
 0x478   : > { %4160 = vmatmul.mubr.f32.vlgmr.msra.gmra.mxu0 %v3286_v19 }
 0x479   : > { %4697 = shalt.err (!%p4694_p11)
}
 0x47a   : > { %s4698_s10 = scalar_lea.hbm %s4205_s12, 16  ;;  %s4702_s28 = scalar_lea.hbm %s7898_s5, 32 }
 0x47b   : > { %p4699_p13 = scmp.ne.s32.totalorder %s4205_s12, %s4698_s10  ;;  %p4703_p4 = scmp.lt.s32.totalorder %s4205_s12, %s7898_s5 }
 0x47c   : > { %p4704_p6 = scmp.lt.s32.totalorder %s4702_s28, %s4698_s10 }
 0x47d   : > { %p4700_p1 = pnand %p4699_p13, %p8294_p7 }
 0x47e   : > { %p4705_p2 = por %p4704_p6, %p4703_p4 }
 0x47f   : > { %p4701_p3 = pneg %p4700_p1 }
 0x481   : > { %p4706_p8 = pnand %p4705_p2, %p4701_p3 }
 0x483   : > { %4709 = shalt.err (!%p4706_p8)
}
 0x484   : > { %4471 = dma.vmem_to_hbm [thread:$0]  (%p8294_p7), %s4208_s9, 16, %s4205_s12, %s4190_s29   ;;  %v4799_v59 = vmov 1966171168   ;;  %v8295_v9 = vld [vmem:[#allocation19_spill] sm:$0xff]  ;;  %v8296_v39 = vlaneseq }
 0x485   : > { %v4170_v49 = vunpack.c.l.s4 %v4799_v59  ;;  %s4393_s11 = sshll.u32 %s4857_s27, 5  ;;  %s331_s25 = scalar_lea.vmem [#allocation12], %s4368_s14 }
 0x486   : > { %s4221_s30 = sshll.u32 %s331_s25, 4  ;;  %vm4186_vm0 = vcmp.lt.s32.totalorder %v8296_v39, 256  ;;  %s4219_s9 = scalar_lea.hbm %s7899_s6, %s4393_s11  ;;  %s4222_s30 = int_to_ptr.vmem [resolvable:$true] %s4221_s30 }
 0x487   : > { %v4171_v3 = vunpack.c.0.s8 %v4170_v49  ;;  %s4194_s29 = scalar_lea.sflag [#allocation13], %s4984_s13  ;;  %s4710_s18 = scalar_lea.vmem %s4222_s30, 32 }
 0x488   : > { %p4711_p10 = scmp.ne.s32.totalorder %s4222_s30, %s4710_s18  ;;  %s4800_s27 = smov [#allocation12]  }
 0x489   : > { %v4174_v18 = vsub.s32 %v4171_v3, %v8295_v9  ;;  %s4714_s10 = sshll.u32 %s4800_s27, 4  ;;  %s4715_s10 = int_to_ptr.vmem [resolvable:$false] %s4714_s10 }
 0x48a   : > { %p4712_p0 = pnand %p4711_p10, %p8294_p7  ;;  %s4716_s14 = scalar_lea.vmem %s4715_s10, 64 }
 0x48b   : > { %p4717_p5 = scmp.lt.s32.totalorder %s4222_s30, %s4715_s10  ;;  %p4718_p9 = scmp.lt.s32.totalorder %s4716_s14, %s4710_s18 }
 0x48c   : > { %p4713_p12 = pneg %p4712_p0 }
 0x48d   : > { %p4719_p11 = por %p4718_p9, %p4717_p5 }
 0x48f   : > { %p4720_p13 = pnand %p4719_p11, %p4713_p12 }
 0x538   : > { %v4161_v25 = vpop.f32.mrf.mxu0 }
 0x53a   : > { %v4163_v54 = vpop.f32.mrf.mxu0 }
 0x53b   : > { %v4168_v40 = vcombine.low %v4161_v25, %v4163_v54 }
 0x53d   : > { %v4175_v7 = vrot.slane %v4168_v40, %v4174_v18 }
 0x53f   : > { %v4182_v14 = vrot.slane %v4175_v7, %v4174_v18 }
 0x541   : > { %4188 = vst.msk [vmem:[%s331_s25] sm:$0x3] %vm4186_vm0, %v4182_v14 }
 0x542   : > { %4723 = shalt.err (!%p4720_p13)
}
 0x543   : > { %s4724_s26 = scalar_lea.hbm %s4219_s9, 32  ;;  %s4728_s28 = scalar_lea.hbm %s7899_s6, 64 }
 0x544   : > { %p4725_p1 = scmp.ne.s32.totalorder %s4219_s9, %s4724_s26  ;;  %p4729_p6 = scmp.lt.s32.totalorder %s4219_s9, %s7899_s6 }
 0x545   : > { %p4730_p2 = scmp.lt.s32.totalorder %s4728_s28, %s4724_s26 }
 0x546   : > { %p4726_p3 = pnand %p4725_p1, %p8294_p7 }
 0x547   : > { %p4731_p8 = por %p4730_p2, %p4729_p6 }
 0x548   : > { %p4727_p4 = pneg %p4726_p3 }
 0x54a   : > { %p4732_p10 = pnand %p4731_p8, %p4727_p4 }
 0x54c   : > { %4735 = shalt.err (!%p4732_p10)
}
 0x54d   : > { %4472 = dma.vmem_to_hbm [thread:$0]  (%p8294_p7), %s4222_s30, 32, %s4219_s9, %s4194_s29  }
 0x54e PF: > { %s4233_s11 = sand.u32 1, %s4774_s21   ;;  %p8297_p0 = scmp.ne.s32.totalorder %s8072_s20, 0 }
 0x54f   : > { %p8298_p12 = scmp.ge.s32.totalorder %s4786_s24, 2  ;;  %s4234_s25 = scalar_lea.sflag [#allocation4], %s4233_s11 }
 0x551   : > { %p4493_p5 = pnand %p8298_p12, %p8297_p0 }
 0x553   : > { %p4494_p9 = pneg %p4493_p5 }
 0x555   : > { %4765 = dma.done.wait (%p4494_p9), %s4234_s25, 16  }
 0x556   : > { %4767 = vsyncadd (%p4494_p9), %s4234_s25, 4294967280  ;;  %s4242_s16 = scalar_lea.sflag [#allocation13], %s4233_s11 }
 0x557   : > { %4769 = dma.done.wait (%p4494_p9), %s4242_s16, 32  }
 0x558   : > { %4771 = vsyncadd (%p4494_p9), %s4242_s16, 4294967264  ;;  %p25_p7 = scmp.ge.s32.totalorder %s4921_s7, 4   ;;  %s8299_s21 = smov %s4778_s22 }
 0x559   : > { %s8300_s22 = smov %s4782_s23  ;;  %s8301_s23 = smov %s4932_s15 }
 0x55a   : > { %s8302_s24 = smov %s4921_s7  ;;  %27 = sbr.rel (!%p25_p7) target bundleno = 11 (0xb), region = 118 }
 0x55f   :  { %4247 = vsyncpa [#allocation3], 1 }
 0x560   :  { %4249 = vsyncpa [#allocation3 + $0x1], 1 }
 0x561   :  { %4250 = vsyncpa [#allocation6], 1 }
 0x562   :  { %4251 = vsyncpa [#allocation9], 1 }
 0x563   :  { %4252 = vsyncpa [#allocation4], 1 }
 0x564   :  { %4254 = vsyncpa [#allocation4 + $0x1], 1 }
 0x565   :  { %4255 = vsyncpa [#allocation13], 1 }
 0x566   :  { %4257 = vsyncpa [#allocation13 + $0x1], 1 }

</bundles_post_ra>
